<compile_context>
chip_gen: v7x
topology: tpu7x:2x2x1
jax: 0.10.0
libtpu: 0.0.40
codegen_flags: <defaults>
</compile_context>

<pallas_src>
import functools

import jax
import jax.numpy as jnp
from jax.experimental import pallas as pl
from jax.experimental.pallas import tpu as pltpu

_MERGE_TAP_K_MIN_CIN = 32  # merge taps along K only for wide channel counts


def _round_up(x, m):
    return (x + m - 1) // m * m


@functools.lru_cache(maxsize=1)
def _vmem_limit_bytes():
    """Generation-aware scoped-VMEM limit (v7x: 64 MiB phys, v5e/v6e: 128)."""
    try:
        cap = getattr(pltpu.get_tpu_info(), "vmem_capacity_bytes", None)
        if cap:
            return int(min(cap * 3 // 4, 96 * 1024 * 1024))
    except Exception:
        pass
    return 48 * 1024 * 1024  # safe default on every generation


# ---------------------------------------------------------------------------
# Conv2d (NHWC) as row-tiled, tap-merged MXU matmuls on a stride-phase layout.
#   xs[n, a*s+b, i*ws + j, c] = xpad[n, i*s + a, j*s + b, c]
# Tap (ki,kj) of a row tile is then one contiguous (static) slice of the tile.
# ---------------------------------------------------------------------------
def _phase_flatten(x, pad, s, hs, ws):
    n, h, w, c = x.shape
    xp = jnp.pad(x, ((0, 0), (pad, pad), (pad, pad), (0, 0)))
    xp = xp[:, :s * hs, :s * ws, :]
    dh = s * hs - xp.shape[1]
    dw = s * ws - xp.shape[2]
    if dh > 0 or dw > 0:
        xp = jnp.pad(xp, ((0, 0), (0, max(dh, 0)), (0, max(dw, 0)), (0, 0)))
    xp = xp.reshape(n, hs, s, ws, s, c)
    return jnp.transpose(xp, (0, 2, 4, 1, 3, 5)).reshape(n, s * s, hs * ws, c)


def _tile_with_halo(xs, rt, ws, halo_len, nt):
    """Re-pack flat phase planes into disjoint per-tile slabs with their halo
    appended, so standard Blocked BlockSpecs can row-tile without overlap."""
    n, ss, length, c = xs.shape
    m = rt * ws
    tile_len = _round_up(m + halo_len, 8)
    if nt == 1:
        if length < tile_len:
            xs = jnp.pad(xs, ((0, 0), (0, 0), (0, tile_len - length), (0, 0)))
        else:
            xs = xs[:, :, :tile_len, :]
        return xs.reshape(n, ss, 1, tile_len, c), tile_len
    halo_pad = tile_len - m
    assert halo_pad <= m, "row tile must be at least as long as its halo"
    need = (nt + 1) * m
    if length < need:
        xs = jnp.pad(xs, ((0, 0), (0, 0), (0, need - length), (0, 0)))
    else:
        xs = xs[:, :, :need, :]
    body = xs[:, :, :nt * m, :].reshape(n, ss, nt, m, c)
    halo = xs[:, :, m:(nt + 1) * m, :].reshape(n, ss, nt, m, c)[:, :, :, :halo_pad, :]
    return jnp.concatenate([body, halo], axis=3), tile_len


def _pick_row_tile(oh, ws, *, ss, cin, k_taps, cout, c_out, halo_len, vmem_limit):
    """Largest divisor of oh whose working set fits the per-generation budget."""
    budget = max(vmem_limit // 3, 4 * 1024 * 1024)
    aligned = []
    for rt in range(oh, 0, -1):
        if oh % rt:
            continue
        nt = oh // rt
        m = rt * ws
        tile_len = _round_up(m + halo_len, 8)
        if nt > 1:
            if m % 8:                     # output block second-minor alignment
                continue
            if tile_len - m > m:          # halo-window trick needs halo <= body
                continue
        aligned.append(rt)
        in_b = 2 * ss * tile_len * cin * 2        # bf16 input slab, double-buf
        lhs_b = m * k_taps * cin * 2              # merged-K LHS
        acc_b = m * cout * 4                      # f32 accumulator
        out_b = 2 * m * c_out * 4                 # output block, double-buf
        w_b = 2 * k_taps * cin * cout * 2         # weights, double-buf
        if in_b + lhs_b + acc_b + out_b + w_b <= budget:
            return rt
    return aligned[-1] if aligned else oh


def _load_taps(x_ref, kh, kw, s, ws, m):
    # NOTE: taps with a column shift (kj//s) read one element past each plane
    # row; those wrapped values only land in the halo columns (>= ow), which
    # are sliced off after the kernel -- do not remove that slice.
    patches = []
    for ki in range(kh):
        for kj in range(kw):
            phase = (ki % s) * s + (kj % s)
            start = (ki // s) * ws + (kj // s)          # tile-relative, static
            patches.append(x_ref[0, phase, 0, start:start + m, :])
    return patches


def _tap_matmul(patches, w_ref, cin, merge_k):
    if merge_k:
        lhs = jnp.concatenate(patches, axis=-1)          # (m, kh*kw*cin)
        return jnp.dot(lhs, w_ref[...], preferred_element_type=jnp.float32)
    acc = None
    for t, p in enumerate(patches):
        part = jnp.dot(p, w_ref[t * cin:(t + 1) * cin, :],
                       preferred_element_type=jnp.float32)
        acc = part if acc is None else acc + part
    return acc


def _conv_kernel(x_ref, w_ref, b_ref, o_ref, *, kh, kw, s, ws, m, cin, relu,
                 merge_k):
    patches = _load_taps(x_ref, kh, kw, s, ws, m)
    acc = _tap_matmul(patches, w_ref, cin, merge_k) + b_ref[...]
    if relu:
        acc = jnp.maximum(acc, 0.0)
    o_ref[0] = acc.astype(o_ref.dtype)


def _conv_fused_kernel(x_ref, w_ref, b_ref, w2_ref, b2_ref, o_ref, *, kh, kw,
                       s, ws, m, cin, merge_k):
    patches = _load_taps(x_ref, kh, kw, s, ws, m)
    acc = _tap_matmul(patches, w_ref, cin, merge_k) + b_ref[...]
    acc = jnp.maximum(acc, 0.0)                             # 3x3 conv + ReLU
    proj = jnp.dot(acc, w2_ref[...],                        # fused 1x1 (f32)
                   preferred_element_type=jnp.float32) + b2_ref[...]
    o_ref[0] = proj.astype(o_ref.dtype)


def conv2d_nhwc(x, w, b, *, stride, pad, relu, w2=None, b2=None,
                out_dtype=jnp.bfloat16):
    """KHxKW conv (NHWC) + bias (+ReLU); optionally fuses a trailing 1x1 conv."""
    n, h, wd, cin = x.shape
    kh, kw, cin2, cout = w.shape
    assert cin == cin2
    s = stride
    oh = (h + 2 * pad - kh) // s + 1
    ow = (wd + 2 * pad - kw) // s + 1
    hr = (kh - 1) // s
    wr = (kw - 1) // s
    hs, ws = oh + hr, ow + wr
    halo_len = hr * ws + wr
    ss = s * s
    c_out = cout if w2 is None else w2.shape[-1]

    vmem_limit = _vmem_limit_bytes()
    rt = _pick_row_tile(oh, ws, ss=ss, cin=cin, k_taps=kh * kw, cout=cout,
                        c_out=c_out, halo_len=halo_len, vmem_limit=vmem_limit)
    nt = oh // rt
    m = rt * ws

    xs = _phase_flatten(x.astype(jnp.bfloat16), pad, s, hs, ws)
    xs_t, tile_len = _tile_with_halo(xs, rt, ws, halo_len, nt)

    wk = w.reshape(kh * kw * cin, cout).astype(jnp.bfloat16)
    bk = jnp.reshape(b, (1, cout)).astype(jnp.float32)
    merge_k = cin >= _MERGE_TAP_K_MIN_CIN

    in_specs = [
        pl.BlockSpec((1, ss, 1, tile_len, cin), lambda i, j: (i, 0, j, 0, 0)),
        pl.BlockSpec((kh * kw * cin, cout), lambda i, j: (0, 0)),
        pl.BlockSpec((1, cout), lambda i, j: (0, 0)),
    ]
    args = [xs_t, wk, bk]
    if w2 is None:
        kernel = functools.partial(_conv_kernel, kh=kh, kw=kw, s=s, ws=ws,
                                   m=m, cin=cin, relu=relu, merge_k=merge_k)
    else:
        w2k = w2.reshape(cout, c_out).astype(jnp.float32)
        b2k = jnp.reshape(b2, (1, c_out)).astype(jnp.float32)
        in_specs += [pl.BlockSpec((cout, c_out), lambda i, j: (0, 0)),
                     pl.BlockSpec((1, c_out), lambda i, j: (0, 0))]
        args += [w2k, b2k]
        kernel = functools.partial(_conv_fused_kernel, kh=kh, kw=kw, s=s,
                                   ws=ws, m=m, cin=cin, merge_k=merge_k)

    out = pl.pallas_call(
        kernel,
        out_shape=jax.ShapeDtypeStruct((n, oh * ws, c_out), out_dtype),
        grid=(n, nt),
        in_specs=in_specs,
        out_specs=pl.BlockSpec((1, m, c_out), lambda i, j: (i, j, 0)),
        compiler_params=pltpu.CompilerParams(
            dimension_semantics=("parallel", "parallel"),
            vmem_limit_bytes=vmem_limit),
    )(*args)
    # Drop the wr halo columns computed past the valid output width.
    return out.reshape(n, oh, ws, c_out)[:, :, :ow, :]


# ---------------------------------------------------------------------------
# PixelShuffle(r) with PyTorch NCHW semantics, expressed on NHWC tensors.
# ---------------------------------------------------------------------------
def pixel_shuffle_nhwc(x, r):
    n, h, w, c = x.shape
    cout = c // (r * r)
    x = x.reshape(n, h, w, cout, r, r)          # channel = c*r*r + i*r + j
    x = jnp.transpose(x, (0, 1, 4, 2, 5, 3))    # (n, h, i, w, j, cout)
    return x.reshape(n, h * r, w * r, cout)


# ---------------------------------------------------------------------------
# Three x2 bilinear upsamples (align_corners=True) composed into one x8
# interpolation matrix per axis, applied in ONE fused Pallas kernel per image
# that writes the NCHW output directly (lane-dense 8W-wide stores).
# ---------------------------------------------------------------------------
def _interp_matrix(in_size, out_size):
    scale = 0.0 if out_size == 1 else (in_size - 1) / (out_size - 1)
    src = jnp.arange(out_size, dtype=jnp.float32) * scale
    i0 = jnp.clip(jnp.floor(src).astype(jnp.int32), 0, in_size - 1)
    i1 = jnp.minimum(i0 + 1, in_size - 1)
    w1 = src - i0.astype(jnp.float32)
    w0 = 1.0 - w1
    return (w0[:, None] * jax.nn.one_hot(i0, in_size, dtype=jnp.float32)
            + w1[:, None] * jax.nn.one_hot(i1, in_size, dtype=jnp.float32))


def _bilinear_x8_matrix(size):
    m = _interp_matrix(size, 2 * size)
    m = _interp_matrix(2 * size, 4 * size) @ m
    m = _interp_matrix(4 * size, 8 * size) @ m
    return m                                     # (8*size, size) float32


def _upsample_x8_kernel(seg_ref, ah_ref, awt_ref, o_ref, *, oh, nc):
    # seg_ref: (1, nc*oh, ow) f32;  awt: (ow, 8ow);  ah: (8oh, oh)
    y1 = jnp.dot(seg_ref[0], awt_ref[...],
                 preferred_element_type=jnp.float32)        # (nc*oh, 8ow)
    for c in range(nc):
        o_ref[0, c] = jnp.dot(ah_ref[...], y1[c * oh:(c + 1) * oh, :],
                              preferred_element_type=jnp.float32
                              ).astype(o_ref.dtype)


def upsample_x8_to_nchw(seg_nhwc):
    """(N, H, W, C) f32 -> (N, C, 8H, 8W) f32 via exact composed bilinear x8."""
    n, oh, ow, c = seg_nhwc.shape
    oho, owo = 8 * oh, 8 * ow
    ah = _bilinear_x8_matrix(oh)                 # (8oh, oh) f32
    awt = _bilinear_x8_matrix(ow).T              # (ow, 8ow) f32
    # Tiny (few-KB) channel-major layout prep stays in XLA.
    seg_cm = jnp.transpose(seg_nhwc.astype(jnp.float32),
                           (0, 3, 1, 2)).reshape(n, c * oh, ow)
    return pl.pallas_call(
        functools.partial(_upsample_x8_kernel, oh=oh, nc=c),
        out_shape=jax.ShapeDtypeStruct((n, c, oho, owo), jnp.float32),
        grid=(n,),
        in_specs=[pl.BlockSpec((1, c * oh, ow), lambda i: (i, 0, 0)),
                  pl.BlockSpec((oho, oh), lambda i: (0, 0)),
                  pl.BlockSpec((ow, owo), lambda i: (0, 0))],
        out_specs=pl.BlockSpec((1, c, oho, owo), lambda i: (i, 0, 0, 0)),
        compiler_params=pltpu.CompilerParams(
            dimension_semantics=("parallel",),
            vmem_limit_bytes=_vmem_limit_bytes()),
    )(seg_cm, ah, awt)


# ---------------------------------------------------------------------------
# Parameters & forward pass
# ---------------------------------------------------------------------------
def init_params(key, in_ch, num_classes):
    ks = jax.random.split(key, 10)
    rnd = lambda k, s, sc: sc * jax.random.normal(k, s, jnp.float32)
    return {
        "c1_w": rnd(ks[0], (3, 3, in_ch, 32), 0.10), "c1_b": rnd(ks[1], (32,), 0.01),
        "c2_w": rnd(ks[2], (3, 3, 32, 64), 0.05),    "c2_b": rnd(ks[3], (64,), 0.01),
        "c3_w": rnd(ks[4], (3, 3, 64, 256), 0.05),   "c3_b": rnd(ks[5], (256,), 0.01),
        "lc1_w": rnd(ks[6], (3, 3, 16, 16), 0.10),   "lc1_b": rnd(ks[7], (16,), 0.01),
        "lc2_w": rnd(ks[8], (1, 1, 16, num_classes), 0.10),
        "lc2_b": rnd(ks[9], (num_classes,), 0.01),
    }


def seg_no_ffm_fpn_forward(params, x_nchw):
    x = jnp.transpose(x_nchw, (0, 2, 3, 1))          # NCHW -> NHWC
    # MN4 backbone (synthetic); the forward uses its third output (256ch, /8).
    f1 = conv2d_nhwc(x, params["c1_w"], params["c1_b"], stride=2, pad=1, relu=True)
    f2 = conv2d_nhwc(f1, params["c2_w"], params["c2_b"], stride=2, pad=1, relu=True)
    s3 = conv2d_nhwc(f2, params["c3_w"], params["c3_b"], stride=2, pad=1, relu=True)
    # PixelShuffle(4): 256ch -> 16ch, spatial x4 (pure permutation)
    seg = pixel_shuffle_nhwc(s3, 4)
    # LastConv: 3x3(16->16)+ReLU fused with the 1x1(16->num_classes) projection
    seg = conv2d_nhwc(seg, params["lc1_w"], params["lc1_b"], stride=1, pad=1,
                      relu=True, w2=params["lc2_w"], b2=params["lc2_b"],
                      out_dtype=jnp.float32)
    # three x2 bilinear upsamples (align_corners=True) as one fused x8 kernel
    return upsample_x8_to_nchw(seg)


if __name__ == "__main__":
    num_classes = 5
    n, cin, h, w = 2, 3, 32, 32
    key = jax.random.PRNGKey(0)
    kx, kp = jax.random.split(key)
    x_nchw = jax.random.normal(kx, (n, cin, h, w), jnp.float32)
    params = init_params(kp, cin, num_classes)

    out = jax.jit(seg_no_ffm_fpn_forward)(params, x_nchw)
    out = jax.block_until_ready(out)

    # MN4 downsamples x8, PixelShuffle x4, three bilinear x2 -> x4 overall.
    assert out.shape == (n, num_classes, 4 * h, 4 * w), out.shape
    assert out.dtype == jnp.float32
    assert bool(jnp.all(jnp.isfinite(out)))
    print("KERNEL_OK")
</pallas_src>

<mosaic_0001>
module attributes {stable_mosaic.version = 11 : i64} {
  func.func @_conv_kernel(%arg0: i32, %arg1: i32, %arg2: memref<1x4x1x296x3xbf16, #tpu.memory_space<vmem>>, %arg3: memref<27x32xbf16, #tpu.memory_space<vmem>>, %arg4: memref<1x32xf32, #tpu.memory_space<vmem>>, %arg5: memref<1x272x32xbf16, #tpu.memory_space<vmem>>) attributes {dimension_semantics = [#tpu.dimension_semantics<parallel>, #tpu.dimension_semantics<parallel>], iteration_bounds = array<i64: 2, 1>, scalar_prefetch = 0 : i64, scratch_operands = 0 : i64, tpu.core_type = #tpu.core_type<tc>, window_params = [{transform_indices = @transform_0, window_bounds = array<i64: 1, 4, 1, 296, 3>}, {pipeline_mode = #tpu.pipeline_mode<synchronous>, transform_indices = @transform_1, window_bounds = array<i64: 27, 32>}, {pipeline_mode = #tpu.pipeline_mode<synchronous>, transform_indices = @transform_2, window_bounds = array<i64: 1, 32>}, {transform_indices = @transform_3, window_bounds = array<i64: 1, 272, 32>}]} {
    %c0 = arith.constant 0 : index
    %c0_0 = arith.constant 0 : index
    %c0_1 = arith.constant 0 : index
    %c0_2 = arith.constant 0 : index
    %c0_3 = arith.constant 0 : index
    %0 = vector.load %arg2[%c0, %c0_0, %c0_1, %c0_2, %c0_3] : memref<1x4x1x296x3xbf16, #tpu.memory_space<vmem>>, vector<1x1x1x272x3xbf16>
    %1 = vector.shape_cast %0 : vector<1x1x1x272x3xbf16> to vector<272x3xbf16>
    %c0_4 = arith.constant 0 : index
    %c1 = arith.constant 1 : index
    %c0_5 = arith.constant 0 : index
    %c0_6 = arith.constant 0 : index
    %c0_7 = arith.constant 0 : index
    %2 = vector.load %arg2[%c0_4, %c1, %c0_5, %c0_6, %c0_7] : memref<1x4x1x296x3xbf16, #tpu.memory_space<vmem>>, vector<1x1x1x272x3xbf16>
    %3 = vector.shape_cast %2 : vector<1x1x1x272x3xbf16> to vector<272x3xbf16>
    %c0_8 = arith.constant 0 : index
    %c0_9 = arith.constant 0 : index
    %c0_10 = arith.constant 0 : index
    %c1_11 = arith.constant 1 : index
    %c0_12 = arith.constant 0 : index
    %4 = vector.load %arg2[%c0_8, %c0_9, %c0_10, %c1_11, %c0_12] : memref<1x4x1x296x3xbf16, #tpu.memory_space<vmem>>, vector<1x1x1x272x3xbf16>
    %5 = vector.shape_cast %4 : vector<1x1x1x272x3xbf16> to vector<272x3xbf16>
    %c0_13 = arith.constant 0 : index
    %c2 = arith.constant 2 : index
    %c0_14 = arith.constant 0 : index
    %c0_15 = arith.constant 0 : index
    %c0_16 = arith.constant 0 : index
    %6 = vector.load %arg2[%c0_13, %c2, %c0_14, %c0_15, %c0_16] : memref<1x4x1x296x3xbf16, #tpu.memory_space<vmem>>, vector<1x1x1x272x3xbf16>
    %7 = vector.shape_cast %6 : vector<1x1x1x272x3xbf16> to vector<272x3xbf16>
    %c0_17 = arith.constant 0 : index
    %c3 = arith.constant 3 : index
    %c0_18 = arith.constant 0 : index
    %c0_19 = arith.constant 0 : index
    %c0_20 = arith.constant 0 : index
    %8 = vector.load %arg2[%c0_17, %c3, %c0_18, %c0_19, %c0_20] : memref<1x4x1x296x3xbf16, #tpu.memory_space<vmem>>, vector<1x1x1x272x3xbf16>
    %9 = vector.shape_cast %8 : vector<1x1x1x272x3xbf16> to vector<272x3xbf16>
    %c0_21 = arith.constant 0 : index
    %c2_22 = arith.constant 2 : index
    %c0_23 = arith.constant 0 : index
    %c1_24 = arith.constant 1 : index
    %c0_25 = arith.constant 0 : index
    %10 = vector.load %arg2[%c0_21, %c2_22, %c0_23, %c1_24, %c0_25] : memref<1x4x1x296x3xbf16, #tpu.memory_space<vmem>>, vector<1x1x1x272x3xbf16>
    %11 = vector.shape_cast %10 : vector<1x1x1x272x3xbf16> to vector<272x3xbf16>
    %c0_26 = arith.constant 0 : index
    %c0_27 = arith.constant 0 : index
    %c0_28 = arith.constant 0 : index
    %c17 = arith.constant 17 : index
    %c0_29 = arith.constant 0 : index
    %12 = vector.load %arg2[%c0_26, %c0_27, %c0_28, %c17, %c0_29] : memref<1x4x1x296x3xbf16, #tpu.memory_space<vmem>>, vector<1x1x1x272x3xbf16>
    %13 = vector.shape_cast %12 : vector<1x1x1x272x3xbf16> to vector<272x3xbf16>
    %c0_30 = arith.constant 0 : index
    %c1_31 = arith.constant 1 : index
    %c0_32 = arith.constant 0 : index
    %c17_33 = arith.constant 17 : index
    %c0_34 = arith.constant 0 : index
    %14 = vector.load %arg2[%c0_30, %c1_31, %c0_32, %c17_33, %c0_34] : memref<1x4x1x296x3xbf16, #tpu.memory_space<vmem>>, vector<1x1x1x272x3xbf16>
    %15 = vector.shape_cast %14 : vector<1x1x1x272x3xbf16> to vector<272x3xbf16>
    %c0_35 = arith.constant 0 : index
    %c0_36 = arith.constant 0 : index
    %c0_37 = arith.constant 0 : index
    %c18 = arith.constant 18 : index
    %c0_38 = arith.constant 0 : index
    %16 = vector.load %arg2[%c0_35, %c0_36, %c0_37, %c18, %c0_38] : memref<1x4x1x296x3xbf16, #tpu.memory_space<vmem>>, vector<1x1x1x272x3xbf16>
    %17 = vector.shape_cast %16 : vector<1x1x1x272x3xbf16> to vector<272x3xbf16>
    %c0_39 = arith.constant 0 : index
    %c0_40 = arith.constant 0 : index
    %18 = vector.load %arg3[%c0_39, %c0_40] : memref<27x32xbf16, #tpu.memory_space<vmem>>, vector<3x32xbf16>
    %cst = arith.constant dense<0.000000e+00> : vector<272x32xf32>
    %19 = tpu.matmul %1, %18, %cst {dimension_numbers = #tpu.dot_dimension_numbers<[1], [0], [0], [1], [0, 0, 1, 1], [], []>} : vector<272x3xbf16>, vector<3x32xbf16>, vector<272x32xf32> -> vector<272x32xf32>
    %c3_41 = arith.constant 3 : index
    %c0_42 = arith.constant 0 : index
    %20 = vector.load %arg3[%c3_41, %c0_42] : memref<27x32xbf16, #tpu.memory_space<vmem>>, vector<3x32xbf16>
    %cst_43 = arith.constant dense<0.000000e+00> : vector<272x32xf32>
    %21 = tpu.matmul %3, %20, %cst_43 {dimension_numbers = #tpu.dot_dimension_numbers<[1], [0], [0], [1], [0, 0, 1, 1], [], []>} : vector<272x3xbf16>, vector<3x32xbf16>, vector<272x32xf32> -> vector<272x32xf32>
    %22 = arith.addf %19, %21 : vector<272x32xf32>
    %c6 = arith.constant 6 : index
    %c0_44 = arith.constant 0 : index
    %23 = vector.load %arg3[%c6, %c0_44] : memref<27x32xbf16, #tpu.memory_space<vmem>>, vector<3x32xbf16>
    %cst_45 = arith.constant dense<0.000000e+00> : vector<272x32xf32>
    %24 = tpu.matmul %5, %23, %cst_45 {dimension_numbers = #tpu.dot_dimension_numbers<[1], [0], [0], [1], [0, 0, 1, 1], [], []>} : vector<272x3xbf16>, vector<3x32xbf16>, vector<272x32xf32> -> vector<272x32xf32>
    %25 = arith.addf %22, %24 : vector<272x32xf32>
    %c9 = arith.constant 9 : index
    %c0_46 = arith.constant 0 : index
    %26 = vector.load %arg3[%c9, %c0_46] : memref<27x32xbf16, #tpu.memory_space<vmem>>, vector<3x32xbf16>
    %cst_47 = arith.constant dense<0.000000e+00> : vector<272x32xf32>
    %27 = tpu.matmul %7, %26, %cst_47 {dimension_numbers = #tpu.dot_dimension_numbers<[1], [0], [0], [1], [0, 0, 1, 1], [], []>} : vector<272x3xbf16>, vector<3x32xbf16>, vector<272x32xf32> -> vector<272x32xf32>
    %28 = arith.addf %25, %27 : vector<272x32xf32>
    %c12 = arith.constant 12 : index
    %c0_48 = arith.constant 0 : index
    %29 = vector.load %arg3[%c12, %c0_48] : memref<27x32xbf16, #tpu.memory_space<vmem>>, vector<3x32xbf16>
    %cst_49 = arith.constant dense<0.000000e+00> : vector<272x32xf32>
    %30 = tpu.matmul %9, %29, %cst_49 {dimension_numbers = #tpu.dot_dimension_numbers<[1], [0], [0], [1], [0, 0, 1, 1], [], []>} : vector<272x3xbf16>, vector<3x32xbf16>, vector<272x32xf32> -> vector<272x32xf32>
    %31 = arith.addf %28, %30 : vector<272x32xf32>
    %c15 = arith.constant 15 : index
    %c0_50 = arith.constant 0 : index
    %32 = vector.load %arg3[%c15, %c0_50] : memref<27x32xbf16, #tpu.memory_space<vmem>>, vector<3x32xbf16>
    %cst_51 = arith.constant dense<0.000000e+00> : vector<272x32xf32>
    %33 = tpu.matmul %11, %32, %cst_51 {dimension_numbers = #tpu.dot_dimension_numbers<[1], [0], [0], [1], [0, 0, 1, 1], [], []>} : vector<272x3xbf16>, vector<3x32xbf16>, vector<272x32xf32> -> vector<272x32xf32>
    %34 = arith.addf %31, %33 : vector<272x32xf32>
    %c18_52 = arith.constant 18 : index
    %c0_53 = arith.constant 0 : index
    %35 = vector.load %arg3[%c18_52, %c0_53] : memref<27x32xbf16, #tpu.memory_space<vmem>>, vector<3x32xbf16>
    %cst_54 = arith.constant dense<0.000000e+00> : vector<272x32xf32>
    %36 = tpu.matmul %13, %35, %cst_54 {dimension_numbers = #tpu.dot_dimension_numbers<[1], [0], [0], [1], [0, 0, 1, 1], [], []>} : vector<272x3xbf16>, vector<3x32xbf16>, vector<272x32xf32> -> vector<272x32xf32>
    %37 = arith.addf %34, %36 : vector<272x32xf32>
    %c21 = arith.constant 21 : index
    %c0_55 = arith.constant 0 : index
    %38 = vector.load %arg3[%c21, %c0_55] : memref<27x32xbf16, #tpu.memory_space<vmem>>, vector<3x32xbf16>
    %cst_56 = arith.constant dense<0.000000e+00> : vector<272x32xf32>
    %39 = tpu.matmul %15, %38, %cst_56 {dimension_numbers = #tpu.dot_dimension_numbers<[1], [0], [0], [1], [0, 0, 1, 1], [], []>} : vector<272x3xbf16>, vector<3x32xbf16>, vector<272x32xf32> -> vector<272x32xf32>
    %40 = arith.addf %37, %39 : vector<272x32xf32>
    %c24 = arith.constant 24 : index
    %c0_57 = arith.constant 0 : index
    %41 = vector.load %arg3[%c24, %c0_57] : memref<27x32xbf16, #tpu.memory_space<vmem>>, vector<3x32xbf16>
    %cst_58 = arith.constant dense<0.000000e+00> : vector<272x32xf32>
    %42 = tpu.matmul %17, %41, %cst_58 {dimension_numbers = #tpu.dot_dimension_numbers<[1], [0], [0], [1], [0, 0, 1, 1], [], []>} : vector<272x3xbf16>, vector<3x32xbf16>, vector<272x32xf32> -> vector<272x32xf32>
    %43 = arith.addf %40, %42 : vector<272x32xf32>
    %c0_59 = arith.constant 0 : index
    %c0_60 = arith.constant 0 : index
    %44 = vector.load %arg4[%c0_59, %c0_60] : memref<1x32xf32, #tpu.memory_space<vmem>>, vector<1x32xf32>
    %45 = vector.broadcast %44 : vector<1x32xf32> to vector<272x32xf32>
    %46 = arith.addf %43, %45 : vector<272x32xf32>
    %cst_61 = arith.constant 0.000000e+00 : f32
    %47 = vector.broadcast %cst_61 : f32 to vector<272x32xf32>
    %48 = arith.maximumf %46, %47 : vector<272x32xf32>
    %49 = arith.truncf %48 : vector<272x32xf32> to vector<272x32xbf16>
    %c0_62 = arith.constant 0 : index
    %c0_63 = arith.constant 0 : index
    %c0_64 = arith.constant 0 : index
    %50 = vector.load %arg5[%c0_62, %c0_63, %c0_64] : memref<1x272x32xbf16, #tpu.memory_space<vmem>>, vector<1x272x32xbf16>
    %51 = vector.shape_cast %50 : vector<1x272x32xbf16> to vector<272x32xbf16>
    %52 = vector.shape_cast %49 : vector<272x32xbf16> to vector<1x272x32xbf16>
    tpu.vector_store %arg5[%c0_62, %c0_63, %c0_64], %52 {strides = array<i32>} : memref<1x272x32xbf16, #tpu.memory_space<vmem>>, vector<1x272x32xbf16>,
    return
  }
  func.func @transform_0(%arg0: i32, %arg1: i32) -> (i32, i32, i32, i32, i32) {
    %c0_i32 = arith.constant 0 : i32
    %c0_i32_0 = arith.constant 0 : i32
    %c0_i32_1 = arith.constant 0 : i32
    %c0_i32_2 = arith.constant 0 : i32
    return %arg0, %c0_i32, %arg1, %c0_i32_0, %c0_i32_1 : i32, i32, i32, i32, i32
  }
  func.func @transform_1(%arg0: i32, %arg1: i32) -> (i32, i32) {
    %c0_i32 = arith.constant 0 : i32
    %c0_i32_0 = arith.constant 0 : i32
    %c0_i32_1 = arith.constant 0 : i32
    return %c0_i32, %c0_i32_0 : i32, i32
  }
  func.func @transform_2(%arg0: i32, %arg1: i32) -> (i32, i32) {
    %c0_i32 = arith.constant 0 : i32
    %c0_i32_0 = arith.constant 0 : i32
    %c0_i32_1 = arith.constant 0 : i32
    return %c0_i32, %c0_i32_0 : i32, i32
  }
  func.func @transform_3(%arg0: i32, %arg1: i32) -> (i32, i32, i32) {
    %c0_i32 = arith.constant 0 : i32
    %c0_i32_0 = arith.constant 0 : i32
    return %arg0, %arg1, %c0_i32 : i32, i32, i32
  }
}

module attributes {stable_mosaic.version = 11 : i64} {
  func.func @_conv_kernel(%arg0: i32, %arg1: i32, %arg2: memref<1x4x1x88x32xbf16, #tpu.memory_space<vmem>>, %arg3: memref<288x64xbf16, #tpu.memory_space<vmem>>, %arg4: memref<1x64xf32, #tpu.memory_space<vmem>>, %arg5: memref<1x72x64xbf16, #tpu.memory_space<vmem>>) attributes {dimension_semantics = [#tpu.dimension_semantics<parallel>, #tpu.dimension_semantics<parallel>], iteration_bounds = array<i64: 2, 1>, scalar_prefetch = 0 : i64, scratch_operands = 0 : i64, tpu.core_type = #tpu.core_type<tc>, window_params = [{transform_indices = @transform_0, window_bounds = array<i64: 1, 4, 1, 88, 32>}, {pipeline_mode = #tpu.pipeline_mode<synchronous>, transform_indices = @transform_1, window_bounds = array<i64: 288, 64>}, {pipeline_mode = #tpu.pipeline_mode<synchronous>, transform_indices = @transform_2, window_bounds = array<i64: 1, 64>}, {transform_indices = @transform_3, window_bounds = array<i64: 1, 72, 64>}]} {
    %c0 = arith.constant 0 : index
    %c0_0 = arith.constant 0 : index
    %c0_1 = arith.constant 0 : index
    %c0_2 = arith.constant 0 : index
    %c0_3 = arith.constant 0 : index
    %0 = vector.load %arg2[%c0, %c0_0, %c0_1, %c0_2, %c0_3] : memref<1x4x1x88x32xbf16, #tpu.memory_space<vmem>>, vector<1x1x1x72x32xbf16>
    %1 = vector.shape_cast %0 : vector<1x1x1x72x32xbf16> to vector<72x32xbf16>
    %c0_4 = arith.constant 0 : index
    %c1 = arith.constant 1 : index
    %c0_5 = arith.constant 0 : index
    %c0_6 = arith.constant 0 : index
    %c0_7 = arith.constant 0 : index
    %2 = vector.load %arg2[%c0_4, %c1, %c0_5, %c0_6, %c0_7] : memref<1x4x1x88x32xbf16, #tpu.memory_space<vmem>>, vector<1x1x1x72x32xbf16>
    %3 = vector.shape_cast %2 : vector<1x1x1x72x32xbf16> to vector<72x32xbf16>
    %c0_8 = arith.constant 0 : index
    %c0_9 = arith.constant 0 : index
    %c0_10 = arith.constant 0 : index
    %c1_11 = arith.constant 1 : index
    %c0_12 = arith.constant 0 : index
    %4 = vector.load %arg2[%c0_8, %c0_9, %c0_10, %c1_11, %c0_12] : memref<1x4x1x88x32xbf16, #tpu.memory_space<vmem>>, vector<1x1x1x72x32xbf16>
    %5 = vector.shape_cast %4 : vector<1x1x1x72x32xbf16> to vector<72x32xbf16>
    %c0_13 = arith.constant 0 : index
    %c2 = arith.constant 2 : index
    %c0_14 = arith.constant 0 : index
    %c0_15 = arith.constant 0 : index
    %c0_16 = arith.constant 0 : index
    %6 = vector.load %arg2[%c0_13, %c2, %c0_14, %c0_15, %c0_16] : memref<1x4x1x88x32xbf16, #tpu.memory_space<vmem>>, vector<1x1x1x72x32xbf16>
    %7 = vector.shape_cast %6 : vector<1x1x1x72x32xbf16> to vector<72x32xbf16>
    %c0_17 = arith.constant 0 : index
    %c3 = arith.constant 3 : index
    %c0_18 = arith.constant 0 : index
    %c0_19 = arith.constant 0 : index
    %c0_20 = arith.constant 0 : index
    %8 = vector.load %arg2[%c0_17, %c3, %c0_18, %c0_19, %c0_20] : memref<1x4x1x88x32xbf16, #tpu.memory_space<vmem>>, vector<1x1x1x72x32xbf16>
    %9 = vector.shape_cast %8 : vector<1x1x1x72x32xbf16> to vector<72x32xbf16>
    %c0_21 = arith.constant 0 : index
    %c2_22 = arith.constant 2 : index
    %c0_23 = arith.constant 0 : index
    %c1_24 = arith.constant 1 : index
    %c0_25 = arith.constant 0 : index
    %10 = vector.load %arg2[%c0_21, %c2_22, %c0_23, %c1_24, %c0_25] : memref<1x4x1x88x32xbf16, #tpu.memory_space<vmem>>, vector<1x1x1x72x32xbf16>
    %11 = vector.shape_cast %10 : vector<1x1x1x72x32xbf16> to vector<72x32xbf16>
    %c0_26 = arith.constant 0 : index
    %c0_27 = arith.constant 0 : index
    %c0_28 = arith.constant 0 : index
    %c9 = arith.constant 9 : index
    %c0_29 = arith.constant 0 : index
    %12 = vector.load %arg2[%c0_26, %c0_27, %c0_28, %c9, %c0_29] : memref<1x4x1x88x32xbf16, #tpu.memory_space<vmem>>, vector<1x1x1x72x32xbf16>
    %13 = vector.shape_cast %12 : vector<1x1x1x72x32xbf16> to vector<72x32xbf16>
    %c0_30 = arith.constant 0 : index
    %c1_31 = arith.constant 1 : index
    %c0_32 = arith.constant 0 : index
    %c9_33 = arith.constant 9 : index
    %c0_34 = arith.constant 0 : index
    %14 = vector.load %arg2[%c0_30, %c1_31, %c0_32, %c9_33, %c0_34] : memref<1x4x1x88x32xbf16, #tpu.memory_space<vmem>>, vector<1x1x1x72x32xbf16>
    %15 = vector.shape_cast %14 : vector<1x1x1x72x32xbf16> to vector<72x32xbf16>
    %c0_35 = arith.constant 0 : index
    %c0_36 = arith.constant 0 : index
    %c0_37 = arith.constant 0 : index
    %c10 = arith.constant 10 : index
    %c0_38 = arith.constant 0 : index
    %16 = vector.load %arg2[%c0_35, %c0_36, %c0_37, %c10, %c0_38] : memref<1x4x1x88x32xbf16, #tpu.memory_space<vmem>>, vector<1x1x1x72x32xbf16>
    %17 = vector.shape_cast %16 : vector<1x1x1x72x32xbf16> to vector<72x32xbf16>
    %18 = tpu.concatenate %1, %3, %5, %7, %9, %11, %13, %15, %17 in 1 : vector<72x32xbf16>, vector<72x32xbf16>, vector<72x32xbf16>, vector<72x32xbf16>, vector<72x32xbf16>, vector<72x32xbf16>, vector<72x32xbf16>, vector<72x32xbf16>, vector<72x32xbf16> -> vector<72x288xbf16>
    %c0_39 = arith.constant 0 : index
    %c0_40 = arith.constant 0 : index
    %19 = vector.load %arg3[%c0_39, %c0_40] : memref<288x64xbf16, #tpu.memory_space<vmem>>, vector<288x64xbf16>
    %cst = arith.constant dense<0.000000e+00> : vector<72x64xf32>
    %20 = tpu.matmul %18, %19, %cst {dimension_numbers = #tpu.dot_dimension_numbers<[1], [0], [0], [1], [0, 0, 1, 1], [], []>} : vector<72x288xbf16>, vector<288x64xbf16>, vector<72x64xf32> -> vector<72x64xf32>
    %c0_41 = arith.constant 0 : index
    %c0_42 = arith.constant 0 : index
    %21 = vector.load %arg4[%c0_41, %c0_42] : memref<1x64xf32, #tpu.memory_space<vmem>>, vector<1x64xf32>
    %22 = vector.broadcast %21 : vector<1x64xf32> to vector<72x64xf32>
    %23 = arith.addf %20, %22 : vector<72x64xf32>
    %cst_43 = arith.constant 0.000000e+00 : f32
    %24 = vector.broadcast %cst_43 : f32 to vector<72x64xf32>
    %25 = arith.maximumf %23, %24 : vector<72x64xf32>
    %26 = arith.truncf %25 : vector<72x64xf32> to vector<72x64xbf16>
    %c0_44 = arith.constant 0 : index
    %c0_45 = arith.constant 0 : index
    %c0_46 = arith.constant 0 : index
    %27 = vector.load %arg5[%c0_44, %c0_45, %c0_46] : memref<1x72x64xbf16, #tpu.memory_space<vmem>>, vector<1x72x64xbf16>
    %28 = vector.shape_cast %27 : vector<1x72x64xbf16> to vector<72x64xbf16>
    %29 = vector.shape_cast %26 : vector<72x64xbf16> to vector<1x72x64xbf16>
    tpu.vector_store %arg5[%c0_44, %c0_45, %c0_46], %29 {strides = array<i32>} : memref<1x72x64xbf16, #tpu.memory_space<vmem>>, vector<1x72x64xbf16>,
    return
  }
  func.func @transform_0(%arg0: i32, %arg1: i32) -> (i32, i32, i32, i32, i32) {
    %c0_i32 = arith.constant 0 : i32
    %c0_i32_0 = arith.constant 0 : i32
    %c0_i32_1 = arith.constant 0 : i32
    %c0_i32_2 = arith.constant 0 : i32
    return %arg0, %c0_i32, %arg1, %c0_i32_0, %c0_i32_1 : i32, i32, i32, i32, i32
  }
  func.func @transform_1(%arg0: i32, %arg1: i32) -> (i32, i32) {
    %c0_i32 = arith.constant 0 : i32
    %c0_i32_0 = arith.constant 0 : i32
    %c0_i32_1 = arith.constant 0 : i32
    return %c0_i32, %c0_i32_0 : i32, i32
  }
  func.func @transform_2(%arg0: i32, %arg1: i32) -> (i32, i32) {
    %c0_i32 = arith.constant 0 : i32
    %c0_i32_0 = arith.constant 0 : i32
    %c0_i32_1 = arith.constant 0 : i32
    return %c0_i32, %c0_i32_0 : i32, i32
  }
  func.func @transform_3(%arg0: i32, %arg1: i32) -> (i32, i32, i32) {
    %c0_i32 = arith.constant 0 : i32
    %c0_i32_0 = arith.constant 0 : i32
    return %arg0, %arg1, %c0_i32 : i32, i32, i32
  }
}

module attributes {stable_mosaic.version = 11 : i64} {
  func.func @_conv_kernel(%arg0: i32, %arg1: i32, %arg2: memref<1x4x1x32x64xbf16, #tpu.memory_space<vmem>>, %arg3: memref<576x256xbf16, #tpu.memory_space<vmem>>, %arg4: memref<1x256xf32, #tpu.memory_space<vmem>>, %arg5: memref<1x20x256xbf16, #tpu.memory_space<vmem>>) attributes {dimension_semantics = [#tpu.dimension_semantics<parallel>, #tpu.dimension_semantics<parallel>], iteration_bounds = array<i64: 2, 1>, scalar_prefetch = 0 : i64, scratch_operands = 0 : i64, tpu.core_type = #tpu.core_type<tc>, window_params = [{transform_indices = @transform_0, window_bounds = array<i64: 1, 4, 1, 32, 64>}, {pipeline_mode = #tpu.pipeline_mode<synchronous>, transform_indices = @transform_1, window_bounds = array<i64: 576, 256>}, {pipeline_mode = #tpu.pipeline_mode<synchronous>, transform_indices = @transform_2, window_bounds = array<i64: 1, 256>}, {transform_indices = @transform_3, window_bounds = array<i64: 1, 20, 256>}]} {
    %c0 = arith.constant 0 : index
    %c0_0 = arith.constant 0 : index
    %c0_1 = arith.constant 0 : index
    %c0_2 = arith.constant 0 : index
    %c0_3 = arith.constant 0 : index
    %0 = vector.load %arg2[%c0, %c0_0, %c0_1, %c0_2, %c0_3] : memref<1x4x1x32x64xbf16, #tpu.memory_space<vmem>>, vector<1x1x1x20x64xbf16>
    %1 = vector.shape_cast %0 : vector<1x1x1x20x64xbf16> to vector<20x64xbf16>
    %c0_4 = arith.constant 0 : index
    %c1 = arith.constant 1 : index
    %c0_5 = arith.constant 0 : index
    %c0_6 = arith.constant 0 : index
    %c0_7 = arith.constant 0 : index
    %2 = vector.load %arg2[%c0_4, %c1, %c0_5, %c0_6, %c0_7] : memref<1x4x1x32x64xbf16, #tpu.memory_space<vmem>>, vector<1x1x1x20x64xbf16>
    %3 = vector.shape_cast %2 : vector<1x1x1x20x64xbf16> to vector<20x64xbf16>
    %c0_8 = arith.constant 0 : index
    %c0_9 = arith.constant 0 : index
    %c0_10 = arith.constant 0 : index
    %c1_11 = arith.constant 1 : index
    %c0_12 = arith.constant 0 : index
    %4 = vector.load %arg2[%c0_8, %c0_9, %c0_10, %c1_11, %c0_12] : memref<1x4x1x32x64xbf16, #tpu.memory_space<vmem>>, vector<1x1x1x20x64xbf16>
    %5 = vector.shape_cast %4 : vector<1x1x1x20x64xbf16> to vector<20x64xbf16>
    %c0_13 = arith.constant 0 : index
    %c2 = arith.constant 2 : index
    %c0_14 = arith.constant 0 : index
    %c0_15 = arith.constant 0 : index
    %c0_16 = arith.constant 0 : index
    %6 = vector.load %arg2[%c0_13, %c2, %c0_14, %c0_15, %c0_16] : memref<1x4x1x32x64xbf16, #tpu.memory_space<vmem>>, vector<1x1x1x20x64xbf16>
    %7 = vector.shape_cast %6 : vector<1x1x1x20x64xbf16> to vector<20x64xbf16>
    %c0_17 = arith.constant 0 : index
    %c3 = arith.constant 3 : index
    %c0_18 = arith.constant 0 : index
    %c0_19 = arith.constant 0 : index
    %c0_20 = arith.constant 0 : index
    %8 = vector.load %arg2[%c0_17, %c3, %c0_18, %c0_19, %c0_20] : memref<1x4x1x32x64xbf16, #tpu.memory_space<vmem>>, vector<1x1x1x20x64xbf16>
    %9 = vector.shape_cast %8 : vector<1x1x1x20x64xbf16> to vector<20x64xbf16>
    %c0_21 = arith.constant 0 : index
    %c2_22 = arith.constant 2 : index
    %c0_23 = arith.constant 0 : index
    %c1_24 = arith.constant 1 : index
    %c0_25 = arith.constant 0 : index
    %10 = vector.load %arg2[%c0_21, %c2_22, %c0_23, %c1_24, %c0_25] : memref<1x4x1x32x64xbf16, #tpu.memory_space<vmem>>, vector<1x1x1x20x64xbf16>
    %11 = vector.shape_cast %10 : vector<1x1x1x20x64xbf16> to vector<20x64xbf16>
    %c0_26 = arith.constant 0 : index
    %c0_27 = arith.constant 0 : index
    %c0_28 = arith.constant 0 : index
    %c5 = arith.constant 5 : index
    %c0_29 = arith.constant 0 : index
    %12 = vector.load %arg2[%c0_26, %c0_27, %c0_28, %c5, %c0_29] : memref<1x4x1x32x64xbf16, #tpu.memory_space<vmem>>, vector<1x1x1x20x64xbf16>
    %13 = vector.shape_cast %12 : vector<1x1x1x20x64xbf16> to vector<20x64xbf16>
    %c0_30 = arith.constant 0 : index
    %c1_31 = arith.constant 1 : index
    %c0_32 = arith.constant 0 : index
    %c5_33 = arith.constant 5 : index
    %c0_34 = arith.constant 0 : index
    %14 = vector.load %arg2[%c0_30, %c1_31, %c0_32, %c5_33, %c0_34] : memref<1x4x1x32x64xbf16, #tpu.memory_space<vmem>>, vector<1x1x1x20x64xbf16>
    %15 = vector.shape_cast %14 : vector<1x1x1x20x64xbf16> to vector<20x64xbf16>
    %c0_35 = arith.constant 0 : index
    %c0_36 = arith.constant 0 : index
    %c0_37 = arith.constant 0 : index
    %c6 = arith.constant 6 : index
    %c0_38 = arith.constant 0 : index
    %16 = vector.load %arg2[%c0_35, %c0_36, %c0_37, %c6, %c0_38] : memref<1x4x1x32x64xbf16, #tpu.memory_space<vmem>>, vector<1x1x1x20x64xbf16>
    %17 = vector.shape_cast %16 : vector<1x1x1x20x64xbf16> to vector<20x64xbf16>
    %18 = tpu.concatenate %1, %3, %5, %7, %9, %11, %13, %15, %17 in 1 : vector<20x64xbf16>, vector<20x64xbf16>, vector<20x64xbf16>, vector<20x64xbf16>, vector<20x64xbf16>, vector<20x64xbf16>, vector<20x64xbf16>, vector<20x64xbf16>, vector<20x64xbf16> -> vector<20x576xbf16>
    %c0_39 = arith.constant 0 : index
    %c0_40 = arith.constant 0 : index
    %19 = vector.load %arg3[%c0_39, %c0_40] : memref<576x256xbf16, #tpu.memory_space<vmem>>, vector<576x256xbf16>
    %cst = arith.constant dense<0.000000e+00> : vector<20x256xf32>
    %20 = tpu.matmul %18, %19, %cst {dimension_numbers = #tpu.dot_dimension_numbers<[1], [0], [0], [1], [0, 0, 1, 1], [], []>} : vector<20x576xbf16>, vector<576x256xbf16>, vector<20x256xf32> -> vector<20x256xf32>
    %c0_41 = arith.constant 0 : index
    %c0_42 = arith.constant 0 : index
    %21 = vector.load %arg4[%c0_41, %c0_42] : memref<1x256xf32, #tpu.memory_space<vmem>>, vector<1x256xf32>
    %22 = vector.broadcast %21 : vector<1x256xf32> to vector<20x256xf32>
    %23 = arith.addf %20, %22 : vector<20x256xf32>
    %cst_43 = arith.constant 0.000000e+00 : f32
    %24 = vector.broadcast %cst_43 : f32 to vector<20x256xf32>
    %25 = arith.maximumf %23, %24 : vector<20x256xf32>
    %26 = arith.truncf %25 : vector<20x256xf32> to vector<20x256xbf16>
    %c0_44 = arith.constant 0 : index
    %c0_45 = arith.constant 0 : index
    %c0_46 = arith.constant 0 : index
    %27 = vector.load %arg5[%c0_44, %c0_45, %c0_46] : memref<1x20x256xbf16, #tpu.memory_space<vmem>>, vector<1x20x256xbf16>
    %28 = vector.shape_cast %27 : vector<1x20x256xbf16> to vector<20x256xbf16>
    %29 = vector.shape_cast %26 : vector<20x256xbf16> to vector<1x20x256xbf16>
    tpu.vector_store %arg5[%c0_44, %c0_45, %c0_46], %29 {strides = array<i32>} : memref<1x20x256xbf16, #tpu.memory_space<vmem>>, vector<1x20x256xbf16>,
    return
  }
  func.func @transform_0(%arg0: i32, %arg1: i32) -> (i32, i32, i32, i32, i32) {
    %c0_i32 = arith.constant 0 : i32
    %c0_i32_0 = arith.constant 0 : i32
    %c0_i32_1 = arith.constant 0 : i32
    %c0_i32_2 = arith.constant 0 : i32
    return %arg0, %c0_i32, %arg1, %c0_i32_0, %c0_i32_1 : i32, i32, i32, i32, i32
  }
  func.func @transform_1(%arg0: i32, %arg1: i32) -> (i32, i32) {
    %c0_i32 = arith.constant 0 : i32
    %c0_i32_0 = arith.constant 0 : i32
    %c0_i32_1 = arith.constant 0 : i32
    return %c0_i32, %c0_i32_0 : i32, i32
  }
  func.func @transform_2(%arg0: i32, %arg1: i32) -> (i32, i32) {
    %c0_i32 = arith.constant 0 : i32
    %c0_i32_0 = arith.constant 0 : i32
    %c0_i32_1 = arith.constant 0 : i32
    return %c0_i32, %c0_i32_0 : i32, i32
  }
  func.func @transform_3(%arg0: i32, %arg1: i32) -> (i32, i32, i32) {
    %c0_i32 = arith.constant 0 : i32
    %c0_i32_0 = arith.constant 0 : i32
    return %arg0, %arg1, %c0_i32 : i32, i32, i32
  }
}

module attributes {stable_mosaic.version = 11 : i64} {
  func.func @_conv_fused_kernel(%arg0: i32, %arg1: i32, %arg2: memref<1x1x1x328x16xbf16, #tpu.memory_space<vmem>>, %arg3: memref<144x16xbf16, #tpu.memory_space<vmem>>, %arg4: memref<1x16xf32, #tpu.memory_space<vmem>>, %arg5: memref<16x5xf32, #tpu.memory_space<vmem>>, %arg6: memref<1x5xf32, #tpu.memory_space<vmem>>, %arg7: memref<1x288x5xf32, #tpu.memory_space<vmem>>) attributes {dimension_semantics = [#tpu.dimension_semantics<parallel>, #tpu.dimension_semantics<parallel>], iteration_bounds = array<i64: 2, 1>, scalar_prefetch = 0 : i64, scratch_operands = 0 : i64, tpu.core_type = #tpu.core_type<tc>, window_params = [{transform_indices = @transform_0, window_bounds = array<i64: 1, 1, 1, 328, 16>}, {pipeline_mode = #tpu.pipeline_mode<synchronous>, transform_indices = @transform_1, window_bounds = array<i64: 144, 16>}, {pipeline_mode = #tpu.pipeline_mode<synchronous>, transform_indices = @transform_2, window_bounds = array<i64: 1, 16>}, {pipeline_mode = #tpu.pipeline_mode<synchronous>, transform_indices = @transform_3, window_bounds = array<i64: 16, 5>}, {pipeline_mode = #tpu.pipeline_mode<synchronous>, transform_indices = @transform_4, window_bounds = array<i64: 1, 5>}, {transform_indices = @transform_5, window_bounds = array<i64: 1, 288, 5>}]} {
    %c0 = arith.constant 0 : index
    %c0_0 = arith.constant 0 : index
    %c0_1 = arith.constant 0 : index
    %c0_2 = arith.constant 0 : index
    %c0_3 = arith.constant 0 : index
    %0 = vector.load %arg2[%c0, %c0_0, %c0_1, %c0_2, %c0_3] : memref<1x1x1x328x16xbf16, #tpu.memory_space<vmem>>, vector<1x1x1x288x16xbf16>
    %1 = vector.shape_cast %0 : vector<1x1x1x288x16xbf16> to vector<288x16xbf16>
    %c0_4 = arith.constant 0 : index
    %c0_5 = arith.constant 0 : index
    %c0_6 = arith.constant 0 : index
    %c1 = arith.constant 1 : index
    %c0_7 = arith.constant 0 : index
    %2 = vector.load %arg2[%c0_4, %c0_5, %c0_6, %c1, %c0_7] : memref<1x1x1x328x16xbf16, #tpu.memory_space<vmem>>, vector<1x1x1x288x16xbf16>
    %3 = vector.shape_cast %2 : vector<1x1x1x288x16xbf16> to vector<288x16xbf16>
    %c0_8 = arith.constant 0 : index
    %c0_9 = arith.constant 0 : index
    %c0_10 = arith.constant 0 : index
    %c2 = arith.constant 2 : index
    %c0_11 = arith.constant 0 : index
    %4 = vector.load %arg2[%c0_8, %c0_9, %c0_10, %c2, %c0_11] : memref<1x1x1x328x16xbf16, #tpu.memory_space<vmem>>, vector<1x1x1x288x16xbf16>
    %5 = vector.shape_cast %4 : vector<1x1x1x288x16xbf16> to vector<288x16xbf16>
    %c0_12 = arith.constant 0 : index
    %c0_13 = arith.constant 0 : index
    %c0_14 = arith.constant 0 : index
    %c18 = arith.constant 18 : index
    %c0_15 = arith.constant 0 : index
    %6 = vector.load %arg2[%c0_12, %c0_13, %c0_14, %c18, %c0_15] : memref<1x1x1x328x16xbf16, #tpu.memory_space<vmem>>, vector<1x1x1x288x16xbf16>
    %7 = vector.shape_cast %6 : vector<1x1x1x288x16xbf16> to vector<288x16xbf16>
    %c0_16 = arith.constant 0 : index
    %c0_17 = arith.constant 0 : index
    %c0_18 = arith.constant 0 : index
    %c19 = arith.constant 19 : index
    %c0_19 = arith.constant 0 : index
    %8 = vector.load %arg2[%c0_16, %c0_17, %c0_18, %c19, %c0_19] : memref<1x1x1x328x16xbf16, #tpu.memory_space<vmem>>, vector<1x1x1x288x16xbf16>
    %9 = vector.shape_cast %8 : vector<1x1x1x288x16xbf16> to vector<288x16xbf16>
    %c0_20 = arith.constant 0 : index
    %c0_21 = arith.constant 0 : index
    %c0_22 = arith.constant 0 : index
    %c20 = arith.constant 20 : index
    %c0_23 = arith.constant 0 : index
    %10 = vector.load %arg2[%c0_20, %c0_21, %c0_22, %c20, %c0_23] : memref<1x1x1x328x16xbf16, #tpu.memory_space<vmem>>, vector<1x1x1x288x16xbf16>
    %11 = vector.shape_cast %10 : vector<1x1x1x288x16xbf16> to vector<288x16xbf16>
    %c0_24 = arith.constant 0 : index
    %c0_25 = arith.constant 0 : index
    %c0_26 = arith.constant 0 : index
    %c36 = arith.constant 36 : index
    %c0_27 = arith.constant 0 : index
    %12 = vector.load %arg2[%c0_24, %c0_25, %c0_26, %c36, %c0_27] : memref<1x1x1x328x16xbf16, #tpu.memory_space<vmem>>, vector<1x1x1x288x16xbf16>
    %13 = vector.shape_cast %12 : vector<1x1x1x288x16xbf16> to vector<288x16xbf16>
    %c0_28 = arith.constant 0 : index
    %c0_29 = arith.constant 0 : index
    %c0_30 = arith.constant 0 : index
    %c37 = arith.constant 37 : index
    %c0_31 = arith.constant 0 : index
    %14 = vector.load %arg2[%c0_28, %c0_29, %c0_30, %c37, %c0_31] : memref<1x1x1x328x16xbf16, #tpu.memory_space<vmem>>, vector<1x1x1x288x16xbf16>
    %15 = vector.shape_cast %14 : vector<1x1x1x288x16xbf16> to vector<288x16xbf16>
    %c0_32 = arith.constant 0 : index
    %c0_33 = arith.constant 0 : index
    %c0_34 = arith.constant 0 : index
    %c38 = arith.constant 38 : index
    %c0_35 = arith.constant 0 : index
    %16 = vector.load %arg2[%c0_32, %c0_33, %c0_34, %c38, %c0_35] : memref<1x1x1x328x16xbf16, #tpu.memory_space<vmem>>, vector<1x1x1x288x16xbf16>
    %17 = vector.shape_cast %16 : vector<1x1x1x288x16xbf16> to vector<288x16xbf16>
    %c0_36 = arith.constant 0 : index
    %c0_37 = arith.constant 0 : index
    %18 = vector.load %arg3[%c0_36, %c0_37] : memref<144x16xbf16, #tpu.memory_space<vmem>>, vector<16x16xbf16>
    %cst = arith.constant dense<0.000000e+00> : vector<288x16xf32>
    %19 = tpu.matmul %1, %18, %cst {dimension_numbers = #tpu.dot_dimension_numbers<[1], [0], [0], [1], [0, 0, 1, 1], [], []>} : vector<288x16xbf16>, vector<16x16xbf16>, vector<288x16xf32> -> vector<288x16xf32>
    %c16 = arith.constant 16 : index
    %c0_38 = arith.constant 0 : index
    %20 = vector.load %arg3[%c16, %c0_38] : memref<144x16xbf16, #tpu.memory_space<vmem>>, vector<16x16xbf16>
    %cst_39 = arith.constant dense<0.000000e+00> : vector<288x16xf32>
    %21 = tpu.matmul %3, %20, %cst_39 {dimension_numbers = #tpu.dot_dimension_numbers<[1], [0], [0], [1], [0, 0, 1, 1], [], []>} : vector<288x16xbf16>, vector<16x16xbf16>, vector<288x16xf32> -> vector<288x16xf32>
    %22 = arith.addf %19, %21 : vector<288x16xf32>
    %c32 = arith.constant 32 : index
    %c0_40 = arith.constant 0 : index
    %23 = vector.load %arg3[%c32, %c0_40] : memref<144x16xbf16, #tpu.memory_space<vmem>>, vector<16x16xbf16>
    %cst_41 = arith.constant dense<0.000000e+00> : vector<288x16xf32>
    %24 = tpu.matmul %5, %23, %cst_41 {dimension_numbers = #tpu.dot_dimension_numbers<[1], [0], [0], [1], [0, 0, 1, 1], [], []>} : vector<288x16xbf16>, vector<16x16xbf16>, vector<288x16xf32> -> vector<288x16xf32>
    %25 = arith.addf %22, %24 : vector<288x16xf32>
    %c48 = arith.constant 48 : index
    %c0_42 = arith.constant 0 : index
    %26 = vector.load %arg3[%c48, %c0_42] : memref<144x16xbf16, #tpu.memory_space<vmem>>, vector<16x16xbf16>
    %cst_43 = arith.constant dense<0.000000e+00> : vector<288x16xf32>
    %27 = tpu.matmul %7, %26, %cst_43 {dimension_numbers = #tpu.dot_dimension_numbers<[1], [0], [0], [1], [0, 0, 1, 1], [], []>} : vector<288x16xbf16>, vector<16x16xbf16>, vector<288x16xf32> -> vector<288x16xf32>
    %28 = arith.addf %25, %27 : vector<288x16xf32>
    %c64 = arith.constant 64 : index
    %c0_44 = arith.constant 0 : index
    %29 = vector.load %arg3[%c64, %c0_44] : memref<144x16xbf16, #tpu.memory_space<vmem>>, vector<16x16xbf16>
    %cst_45 = arith.constant dense<0.000000e+00> : vector<288x16xf32>
    %30 = tpu.matmul %9, %29, %cst_45 {dimension_numbers = #tpu.dot_dimension_numbers<[1], [0], [0], [1], [0, 0, 1, 1], [], []>} : vector<288x16xbf16>, vector<16x16xbf16>, vector<288x16xf32> -> vector<288x16xf32>
    %31 = arith.addf %28, %30 : vector<288x16xf32>
    %c80 = arith.constant 80 : index
    %c0_46 = arith.constant 0 : index
    %32 = vector.load %arg3[%c80, %c0_46] : memref<144x16xbf16, #tpu.memory_space<vmem>>, vector<16x16xbf16>
    %cst_47 = arith.constant dense<0.000000e+00> : vector<288x16xf32>
    %33 = tpu.matmul %11, %32, %cst_47 {dimension_numbers = #tpu.dot_dimension_numbers<[1], [0], [0], [1], [0, 0, 1, 1], [], []>} : vector<288x16xbf16>, vector<16x16xbf16>, vector<288x16xf32> -> vector<288x16xf32>
    %34 = arith.addf %31, %33 : vector<288x16xf32>
    %c96 = arith.constant 96 : index
    %c0_48 = arith.constant 0 : index
    %35 = vector.load %arg3[%c96, %c0_48] : memref<144x16xbf16, #tpu.memory_space<vmem>>, vector<16x16xbf16>
    %cst_49 = arith.constant dense<0.000000e+00> : vector<288x16xf32>
    %36 = tpu.matmul %13, %35, %cst_49 {dimension_numbers = #tpu.dot_dimension_numbers<[1], [0], [0], [1], [0, 0, 1, 1], [], []>} : vector<288x16xbf16>, vector<16x16xbf16>, vector<288x16xf32> -> vector<288x16xf32>
    %37 = arith.addf %34, %36 : vector<288x16xf32>
    %c112 = arith.constant 112 : index
    %c0_50 = arith.constant 0 : index
    %38 = vector.load %arg3[%c112, %c0_50] : memref<144x16xbf16, #tpu.memory_space<vmem>>, vector<16x16xbf16>
    %cst_51 = arith.constant dense<0.000000e+00> : vector<288x16xf32>
    %39 = tpu.matmul %15, %38, %cst_51 {dimension_numbers = #tpu.dot_dimension_numbers<[1], [0], [0], [1], [0, 0, 1, 1], [], []>} : vector<288x16xbf16>, vector<16x16xbf16>, vector<288x16xf32> -> vector<288x16xf32>
    %40 = arith.addf %37, %39 : vector<288x16xf32>
    %c128 = arith.constant 128 : index
    %c0_52 = arith.constant 0 : index
    %41 = vector.load %arg3[%c128, %c0_52] : memref<144x16xbf16, #tpu.memory_space<vmem>>, vector<16x16xbf16>
    %cst_53 = arith.constant dense<0.000000e+00> : vector<288x16xf32>
    %42 = tpu.matmul %17, %41, %cst_53 {dimension_numbers = #tpu.dot_dimension_numbers<[1], [0], [0], [1], [0, 0, 1, 1], [], []>} : vector<288x16xbf16>, vector<16x16xbf16>, vector<288x16xf32> -> vector<288x16xf32>
    %43 = arith.addf %40, %42 : vector<288x16xf32>
    %c0_54 = arith.constant 0 : index
    %c0_55 = arith.constant 0 : index
    %44 = vector.load %arg4[%c0_54, %c0_55] : memref<1x16xf32, #tpu.memory_space<vmem>>, vector<1x16xf32>
    %45 = vector.broadcast %44 : vector<1x16xf32> to vector<288x16xf32>
    %46 = arith.addf %43, %45 : vector<288x16xf32>
    %cst_56 = arith.constant 0.000000e+00 : f32
    %47 = vector.broadcast %cst_56 : f32 to vector<288x16xf32>
    %48 = arith.maximumf %46, %47 : vector<288x16xf32>
    %c0_57 = arith.constant 0 : index
    %c0_58 = arith.constant 0 : index
    %49 = vector.load %arg5[%c0_57, %c0_58] : memref<16x5xf32, #tpu.memory_space<vmem>>, vector<16x5xf32>
    %cst_59 = arith.constant dense<0.000000e+00> : vector<288x5xf32>
    %50 = tpu.matmul %48, %49, %cst_59 {dimension_numbers = #tpu.dot_dimension_numbers<[1], [0], [0], [1], [0, 0, 1, 1], [], []>} : vector<288x16xf32>, vector<16x5xf32>, vector<288x5xf32> -> vector<288x5xf32>
    %c0_60 = arith.constant 0 : index
    %c0_61 = arith.constant 0 : index
    %51 = vector.load %arg6[%c0_60, %c0_61] : memref<1x5xf32, #tpu.memory_space<vmem>>, vector<1x5xf32>
    %52 = vector.broadcast %51 : vector<1x5xf32> to vector<288x5xf32>
    %53 = arith.addf %50, %52 : vector<288x5xf32>
    %c0_62 = arith.constant 0 : index
    %c0_63 = arith.constant 0 : index
    %c0_64 = arith.constant 0 : index
    %54 = vector.load %arg7[%c0_62, %c0_63, %c0_64] : memref<1x288x5xf32, #tpu.memory_space<vmem>>, vector<1x288x5xf32>
    %55 = vector.shape_cast %54 : vector<1x288x5xf32> to vector<288x5xf32>
    %56 = vector.shape_cast %53 : vector<288x5xf32> to vector<1x288x5xf32>
    tpu.vector_store %arg7[%c0_62, %c0_63, %c0_64], %56 {strides = array<i32>} : memref<1x288x5xf32, #tpu.memory_space<vmem>>, vector<1x288x5xf32>,
    return
  }
  func.func @transform_0(%arg0: i32, %arg1: i32) -> (i32, i32, i32, i32, i32) {
    %c0_i32 = arith.constant 0 : i32
    %c0_i32_0 = arith.constant 0 : i32
    %c0_i32_1 = arith.constant 0 : i32
    %c0_i32_2 = arith.constant 0 : i32
    return %arg0, %c0_i32, %arg1, %c0_i32_0, %c0_i32_1 : i32, i32, i32, i32, i32
  }
  func.func @transform_1(%arg0: i32, %arg1: i32) -> (i32, i32) {
    %c0_i32 = arith.constant 0 : i32
    %c0_i32_0 = arith.constant 0 : i32
    %c0_i32_1 = arith.constant 0 : i32
    return %c0_i32, %c0_i32_0 : i32, i32
  }
  func.func @transform_2(%arg0: i32, %arg1: i32) -> (i32, i32) {
    %c0_i32 = arith.constant 0 : i32
    %c0_i32_0 = arith.constant 0 : i32
    %c0_i32_1 = arith.constant 0 : i32
    return %c0_i32, %c0_i32_0 : i32, i32
  }
  func.func @transform_3(%arg0: i32, %arg1: i32) -> (i32, i32) {
    %c0_i32 = arith.constant 0 : i32
    %c0_i32_0 = arith.constant 0 : i32
    %c0_i32_1 = arith.constant 0 : i32
    return %c0_i32, %c0_i32_0 : i32, i32
  }
  func.func @transform_4(%arg0: i32, %arg1: i32) -> (i32, i32) {
    %c0_i32 = arith.constant 0 : i32
    %c0_i32_0 = arith.constant 0 : i32
    %c0_i32_1 = arith.constant 0 : i32
    return %c0_i32, %c0_i32_0 : i32, i32
  }
  func.func @transform_5(%arg0: i32, %arg1: i32) -> (i32, i32, i32) {
    %c0_i32 = arith.constant 0 : i32
    %c0_i32_0 = arith.constant 0 : i32
    return %arg0, %arg1, %c0_i32 : i32, i32, i32
  }
}

module attributes {stable_mosaic.version = 11 : i64} {
  func.func @_upsample_x8_kernel(%arg0: i32, %arg1: memref<1x80x16xf32, #tpu.memory_space<vmem>>, %arg2: memref<128x16xf32, #tpu.memory_space<vmem>>, %arg3: memref<16x128xf32, #tpu.memory_space<vmem>>, %arg4: memref<1x5x128x128xf32, #tpu.memory_space<vmem>>) attributes {dimension_semantics = [#tpu.dimension_semantics<parallel>], iteration_bounds = array<i64: 2>, scalar_prefetch = 0 : i64, scratch_operands = 0 : i64, tpu.core_type = #tpu.core_type<tc>, window_params = [{transform_indices = @transform_0, window_bounds = array<i64: 1, 80, 16>}, {pipeline_mode = #tpu.pipeline_mode<synchronous>, transform_indices = @transform_1, window_bounds = array<i64: 128, 16>}, {pipeline_mode = #tpu.pipeline_mode<synchronous>, transform_indices = @transform_2, window_bounds = array<i64: 16, 128>}, {transform_indices = @transform_3, window_bounds = array<i64: 1, 5, 128, 128>}]} {
    %c0 = arith.constant 0 : index
    %c0_0 = arith.constant 0 : index
    %c0_1 = arith.constant 0 : index
    %0 = vector.load %arg1[%c0, %c0_0, %c0_1] : memref<1x80x16xf32, #tpu.memory_space<vmem>>, vector<1x80x16xf32>
    %1 = vector.shape_cast %0 : vector<1x80x16xf32> to vector<80x16xf32>
    %c0_2 = arith.constant 0 : index
    %c0_3 = arith.constant 0 : index
    %2 = vector.load %arg3[%c0_2, %c0_3] : memref<16x128xf32, #tpu.memory_space<vmem>>, vector<16x128xf32>
    %cst = arith.constant dense<0.000000e+00> : vector<80x128xf32>
    %3 = tpu.matmul %1, %2, %cst {dimension_numbers = #tpu.dot_dimension_numbers<[1], [0], [0], [1], [0, 0, 1, 1], [], []>} : vector<80x16xf32>, vector<16x128xf32>, vector<80x128xf32> -> vector<80x128xf32>
    %c0_4 = arith.constant 0 : index
    %c0_5 = arith.constant 0 : index
    %4 = vector.load %arg2[%c0_4, %c0_5] : memref<128x16xf32, #tpu.memory_space<vmem>>, vector<128x16xf32>
    %5 = vector.extract_strided_slice %3 {offsets = [0, 0], sizes = [16, 128], strides = [1, 1]} : vector<80x128xf32> to vector<16x128xf32>
    %cst_6 = arith.constant dense<0.000000e+00> : vector<128x128xf32>
    %6 = tpu.matmul %4, %5, %cst_6 {dimension_numbers = #tpu.dot_dimension_numbers<[1], [0], [0], [1], [0, 0, 1, 1], [], []>} : vector<128x16xf32>, vector<16x128xf32>, vector<128x128xf32> -> vector<128x128xf32>
    %c0_7 = arith.constant 0 : index
    %c0_8 = arith.constant 0 : index
    %c0_9 = arith.constant 0 : index
    %c0_10 = arith.constant 0 : index
    %7 = vector.load %arg4[%c0_7, %c0_8, %c0_9, %c0_10] : memref<1x5x128x128xf32, #tpu.memory_space<vmem>>, vector<1x1x128x128xf32>
    %8 = vector.shape_cast %7 : vector<1x1x128x128xf32> to vector<128x128xf32>
    %9 = vector.shape_cast %6 : vector<128x128xf32> to vector<1x1x128x128xf32>
    tpu.vector_store %arg4[%c0_7, %c0_8, %c0_9, %c0_10], %9 {strides = array<i32>} : memref<1x5x128x128xf32, #tpu.memory_space<vmem>>, vector<1x1x128x128xf32>,
    %c0_11 = arith.constant 0 : index
    %c0_12 = arith.constant 0 : index
    %10 = vector.load %arg2[%c0_11, %c0_12] : memref<128x16xf32, #tpu.memory_space<vmem>>, vector<128x16xf32>
    %11 = vector.extract_strided_slice %3 {offsets = [16, 0], sizes = [16, 128], strides = [1, 1]} : vector<80x128xf32> to vector<16x128xf32>
    %cst_13 = arith.constant dense<0.000000e+00> : vector<128x128xf32>
    %12 = tpu.matmul %10, %11, %cst_13 {dimension_numbers = #tpu.dot_dimension_numbers<[1], [0], [0], [1], [0, 0, 1, 1], [], []>} : vector<128x16xf32>, vector<16x128xf32>, vector<128x128xf32> -> vector<128x128xf32>
    %c0_14 = arith.constant 0 : index
    %c1 = arith.constant 1 : index
    %c0_15 = arith.constant 0 : index
    %c0_16 = arith.constant 0 : index
    %13 = vector.load %arg4[%c0_14, %c1, %c0_15, %c0_16] : memref<1x5x128x128xf32, #tpu.memory_space<vmem>>, vector<1x1x128x128xf32>
    %14 = vector.shape_cast %13 : vector<1x1x128x128xf32> to vector<128x128xf32>
    %15 = vector.shape_cast %12 : vector<128x128xf32> to vector<1x1x128x128xf32>
    tpu.vector_store %arg4[%c0_14, %c1, %c0_15, %c0_16], %15 {strides = array<i32>} : memref<1x5x128x128xf32, #tpu.memory_space<vmem>>, vector<1x1x128x128xf32>,
    %c0_17 = arith.constant 0 : index
    %c0_18 = arith.constant 0 : index
    %16 = vector.load %arg2[%c0_17, %c0_18] : memref<128x16xf32, #tpu.memory_space<vmem>>, vector<128x16xf32>
    %17 = vector.extract_strided_slice %3 {offsets = [32, 0], sizes = [16, 128], strides = [1, 1]} : vector<80x128xf32> to vector<16x128xf32>
    %cst_19 = arith.constant dense<0.000000e+00> : vector<128x128xf32>
    %18 = tpu.matmul %16, %17, %cst_19 {dimension_numbers = #tpu.dot_dimension_numbers<[1], [0], [0], [1], [0, 0, 1, 1], [], []>} : vector<128x16xf32>, vector<16x128xf32>, vector<128x128xf32> -> vector<128x128xf32>
    %c0_20 = arith.constant 0 : index
    %c2 = arith.constant 2 : index
    %c0_21 = arith.constant 0 : index
    %c0_22 = arith.constant 0 : index
    %19 = vector.load %arg4[%c0_20, %c2, %c0_21, %c0_22] : memref<1x5x128x128xf32, #tpu.memory_space<vmem>>, vector<1x1x128x128xf32>
    %20 = vector.shape_cast %19 : vector<1x1x128x128xf32> to vector<128x128xf32>
    %21 = vector.shape_cast %18 : vector<128x128xf32> to vector<1x1x128x128xf32>
    tpu.vector_store %arg4[%c0_20, %c2, %c0_21, %c0_22], %21 {strides = array<i32>} : memref<1x5x128x128xf32, #tpu.memory_space<vmem>>, vector<1x1x128x128xf32>,
    %c0_23 = arith.constant 0 : index
    %c0_24 = arith.constant 0 : index
    %22 = vector.load %arg2[%c0_23, %c0_24] : memref<128x16xf32, #tpu.memory_space<vmem>>, vector<128x16xf32>
    %23 = vector.extract_strided_slice %3 {offsets = [48, 0], sizes = [16, 128], strides = [1, 1]} : vector<80x128xf32> to vector<16x128xf32>
    %cst_25 = arith.constant dense<0.000000e+00> : vector<128x128xf32>
    %24 = tpu.matmul %22, %23, %cst_25 {dimension_numbers = #tpu.dot_dimension_numbers<[1], [0], [0], [1], [0, 0, 1, 1], [], []>} : vector<128x16xf32>, vector<16x128xf32>, vector<128x128xf32> -> vector<128x128xf32>
    %c0_26 = arith.constant 0 : index
    %c3 = arith.constant 3 : index
    %c0_27 = arith.constant 0 : index
    %c0_28 = arith.constant 0 : index
    %25 = vector.load %arg4[%c0_26, %c3, %c0_27, %c0_28] : memref<1x5x128x128xf32, #tpu.memory_space<vmem>>, vector<1x1x128x128xf32>
    %26 = vector.shape_cast %25 : vector<1x1x128x128xf32> to vector<128x128xf32>
    %27 = vector.shape_cast %24 : vector<128x128xf32> to vector<1x1x128x128xf32>
    tpu.vector_store %arg4[%c0_26, %c3, %c0_27, %c0_28], %27 {strides = array<i32>} : memref<1x5x128x128xf32, #tpu.memory_space<vmem>>, vector<1x1x128x128xf32>,
    %c0_29 = arith.constant 0 : index
    %c0_30 = arith.constant 0 : index
    %28 = vector.load %arg2[%c0_29, %c0_30] : memref<128x16xf32, #tpu.memory_space<vmem>>, vector<128x16xf32>
    %29 = vector.extract_strided_slice %3 {offsets = [64, 0], sizes = [16, 128], strides = [1, 1]} : vector<80x128xf32> to vector<16x128xf32>
    %cst_31 = arith.constant dense<0.000000e+00> : vector<128x128xf32>
    %30 = tpu.matmul %28, %29, %cst_31 {dimension_numbers = #tpu.dot_dimension_numbers<[1], [0], [0], [1], [0, 0, 1, 1], [], []>} : vector<128x16xf32>, vector<16x128xf32>, vector<128x128xf32> -> vector<128x128xf32>
    %c0_32 = arith.constant 0 : index
    %c4 = arith.constant 4 : index
    %c0_33 = arith.constant 0 : index
    %c0_34 = arith.constant 0 : index
    %31 = vector.load %arg4[%c0_32, %c4, %c0_33, %c0_34] : memref<1x5x128x128xf32, #tpu.memory_space<vmem>>, vector<1x1x128x128xf32>
    %32 = vector.shape_cast %31 : vector<1x1x128x128xf32> to vector<128x128xf32>
    %33 = vector.shape_cast %30 : vector<128x128xf32> to vector<1x1x128x128xf32>
    tpu.vector_store %arg4[%c0_32, %c4, %c0_33, %c0_34], %33 {strides = array<i32>} : memref<1x5x128x128xf32, #tpu.memory_space<vmem>>, vector<1x1x128x128xf32>,
    return
  }
  func.func @transform_0(%arg0: i32) -> (i32, i32, i32) {
    %c0_i32 = arith.constant 0 : i32
    %c0_i32_0 = arith.constant 0 : i32
    %c0_i32_1 = arith.constant 0 : i32
    return %arg0, %c0_i32, %c0_i32_0 : i32, i32, i32
  }
  func.func @transform_1(%arg0: i32) -> (i32, i32) {
    %c0_i32 = arith.constant 0 : i32
    %c0_i32_0 = arith.constant 0 : i32
    %c0_i32_1 = arith.constant 0 : i32
    return %c0_i32, %c0_i32_0 : i32, i32
  }
  func.func @transform_2(%arg0: i32) -> (i32, i32) {
    %c0_i32 = arith.constant 0 : i32
    %c0_i32_0 = arith.constant 0 : i32
    %c0_i32_1 = arith.constant 0 : i32
    return %c0_i32, %c0_i32_0 : i32, i32
  }
  func.func @transform_3(%arg0: i32) -> (i32, i32, i32, i32) {
    %c0_i32 = arith.constant 0 : i32
    %c0_i32_0 = arith.constant 0 : i32
    %c0_i32_1 = arith.constant 0 : i32
    %c0_i32_2 = arith.constant 0 : i32
    return %arg0, %c0_i32, %c0_i32_0, %c0_i32_1 : i32, i32, i32, i32
  }
}

</mosaic_0001>

<bundles_post_ra>
// kernel: seg_no_ffm_fpn_forward.5
= control target key start
LH: loop header
LB: loop body
LE: loop exit
PB: predicated region body
PF: predicated region fallthrough
CT: control target
= control target key end

     0   :  { %s5156_s12 = smov 0   ;;  %s5158_s13 = smov 0   ;;  %s6581_s0 = inlined_call_operand.vmem [shape: bf16[2,4,1,296,3], index: 0, kind: input, shape index: {}]   ;;  %s6582_s1 = inlined_call_operand.vmem [shape: bf16[27,32], index: 1, kind: input, shape index: {}]   ;;  %s6583_s2 = inlined_call_operand.vmem [shape: f32[1,32], index: 2, kind: input, shape index: {}]   ;;  %s6584_s3 = inlined_call_operand.vmem [shape: bf16[2,272,32], index: 3, kind: output, shape index: {}]  }
   0x1   :  { %s5160_s14 = smov 0  }
   0x2 LB: > { %s25_s15 = sadd.s32 1, %s5127_s13  ;;  %p3757_p0 = scmp.ge.s32.totalorder %s5131_s14, 1  ;;  %s5131_s14 = sphi %s5160_s14, %s13_s14   ;;  %s5127_s13 = sphi %s5158_s13, %s6675_s13   ;;  %s5123_s12 = sphi %s5156_s12, %s6674_s12  }
   0x3   : > { %p27_p1 = scmp.ge.s32.totalorder %s25_s15, 2  ;;  %p157_p2 = scmp.lt.s32.totalorder %s5131_s14, 3 }
   0x5   : > { %s6677_s15 = smov (%p27_p1, %s25_s15), 0  ;;  %p158_p3 = pnand %p3757_p0, %p157_p2 }
   0x7   : > { %161 = sbr.rel (%p158_p3) target bundleno = 857 (0x359), region = 32 }
   0xe   : > { %v4995_v0 = vld [vmem:[%s6582_s1] ss:$0 sps:$4 sm:$0x66]   ;;  %v6586_v1 = vmov 0.0   ;;  %vm507_vm0 = vcmask 1040384   ;;  %p189_p4 = scmp.lt.s32.totalorder %s5123_s12, 1 }
   0xf   : > { %4334 = vmatprep.subr.bf16.mxu0 %v6586_v1  ;;  %4964 = vmatprep.subr.bf16.mxu1 %v6586_v1  ;;  %v448_v2 = vshrl.u32 %v4995_v0, 16  ;;  %v451_v3 = vshll.u32 %v4995_v0, 16  ;;  %vm508_vm1 = vcmask 1041408   ;;  %v5134_v4 = vmov 65535   ;;  %v4998_v6 = vld [vmem:[%s6582_s1] sm:$0x18]  }
  0x10   : > { %v509_v5 = vsel %vm507_vm0, 4294967295, %v5134_v4  ;;  %vm5135_vm2 = vmmov 0   ;;  %s6679_s12 = smov (!%p189_p4, %s5123_s12), 1  ;;  %v1125_v11 = vrot.slane %v4998_v6, 3  ;;  %v357_v12 = vld [vmem:[%s6582_s1] sm:$0x3] }
  0x11   : > { %4336 = vmatprep.mubr.msk.bf16.mxu0 %vm5135_vm2, %v6586_v1  ;;  %4372 = vmatprep.mubr.msk.bf16.mxu1 %vm5135_vm2, %v6586_v1  ;;  %v450_v7 = vrot.slane %v448_v2, 1  ;;  %v453_v8 = vrot.slane %v451_v3, 2  ;;  %v5188_v9 = vsel %vm508_vm1, %v509_v5, 0  ;;  %s4966_s20 = smul.u32 592, %s6679_s12  ;;  %vm455_vm3 = vcmask 23552  }
  0x12   : > { %v1178_v16 = vand.u32 %v1125_v11, %v5188_v9  ;;  %v820_v17 = vand.u32 %v5188_v9, %v357_v12  ;;  %v5015_v28 = vld [vmem:[%s6582_s1 + $0x4] ss:$0 sps:$4 sm:$0x33]   ;;  %vm996_vm4 = vsmask.f32 7424  ;;  %vm3124_vm5 = vcmask 1046528  }
  0x13   : > { %v454_v10 = vor.u32 %v453_v8, %v450_v7  ;;  %s5194_s23 = scalar_lea.vmem %s6581_s0, %s4966_s20  ;;  %v1475_v31 = vshll.u32 %v5015_v28, 16  ;;  %v1473_v32 = vshrl.u32 %v5015_v28, 16  ;;  %v5018_v44 = vld [vmem:[%s6582_s1 + $0x4] ss:$0 sps:$4 sm:$0xcc]   ;;  %s4967_s17 = smul.u32 136, %s6679_s12 }
  0x14   : > { %v4996_v14 = vld [vmem:[%s5194_s23 + $0x94] sm:$0xff]   ;;  %v4997_v15 = vld [vmem:[%s5194_s23 + $0xdc] sm:$0xff]   ;;  %v5000_v19 = vld [vmem:[%s5194_s23 + $0xe4] sm:$0xff]   ;;  %v1825_v50 = vrot.slane %v5018_v44, 2  ;;  %vm3628_vm6 = vcmask 257024  }
  0x15   : > { %v512_v13 = vand.u32 %v5188_v9, %v454_v10  ;;  %v4999_v18 = vld [vmem:[%s5194_s23 + $0x9c] sm:$0xff]   ;;  %v5001_v20 = vld [vmem:[%s5194_s23 + $0xa4] sm:$0xff]   ;;  %v5002_v21 = vld [vmem:[%s5194_s23 + $0xec] sm:$0xff]   ;;  %v1477_v36 = vrot.slane %v1475_v31, 1  ;;  %s6440_s20 = scalar_lea.vmem %s6584_s3, %s4967_s17 }
  0x16   : > { %v5003_v22 = vld [vmem:[%s5194_s23 + $0xac] sm:$0xff]   ;;  %v5004_v23 = vld [vmem:[%s5194_s23 + $0xf4] sm:$0xff]   ;;  %v5006_v25 = vld [vmem:[%s5194_s23 + $0xfc] sm:$0xff]   ;;  %v1878_v53 = vand.u32 %v1825_v50, %v5188_v9 }
  0x17   : > { %4335 = vmatpush3.bf16.msra.mxu0 %v512_v13  ;;  %4965 = vmatpush3.bf16.msra.mxu1 %v512_v13  ;;  %v5005_v24 = vld [vmem:[%s5194_s23 + $0xb4] sm:$0xff]   ;;  %v5007_v26 = vld [vmem:[%s5194_s23 + $0xbc] sm:$0xff]   ;;  %v5008_v27 = vld [vmem:[%s5194_s23 + $0x104] sm:$0xff]   ;;  %v1478_v41 = vor.u32 %v1477_v36, %v1473_v32 }
  0x18   : > { %4474 = vmatprep.subr.bf16.mxu0 %v6586_v1  ;;  %4404 = vmatprep.subr.bf16.mxu1 %v6586_v1  ;;  %v5009_v29 = vld [vmem:[%s5194_s23 + $0xc4] sm:$0xff]   ;;  %v5010_v30 = vld [vmem:[%s5194_s23 + $0x10c] sm:$0xff]   ;;  %v5012_v34 = vld [vmem:[%s5194_s23 + $0x114] sm:$0xff]  }
  0x19   : > { %v5011_v33 = vld [vmem:[%s5194_s23 + $0xcc] sm:$0xff]   ;;  %v5014_v35 = vld [vmem:[%s5194_s23] sm:$0xff]   ;;  %v211_v37 = vld [vmem:[%s5194_s23 + $0x8] sm:$0xf]  ;;  %v1531_v47 = vand.u32 %v1478_v41, %v5188_v9 }
  0x1a   : > { %4337 = vmatmul.mubr.msk.bf16.vlgmr.msra.gmra.mrb[0].mxu0 %vm455_vm3, %v4996_v14  ;;  %4373 = vmatmul.mubr.msk.bf16.vlgmr.msra.gmra.mrb[0].mxu1 %vm455_vm3, %v4997_v15  ;;  %v212_v38 = vld [vmem:[%s5194_s23 + $0xc] sm:$0xf]  ;;  %v999_v40 = vshll.u32 %v5014_v35, 16  ;;  %v5013_v42 = vld [vmem:[%s5194_s23 + $0xd4] sm:$0xff]   ;;  %v997_v43 = vshrl.u32 %v5014_v35, 16  ;;  %v5021_v0 = vld [vmem:[%s5194_s23 + $0x20] sm:$0xff]  }
  0x1b   : > { %4475 = vmatpush3.bf16.msra.mxu0 %v1178_v16  ;;  %4340 = vmatprep.mubr.msk.bf16.mxu0 %vm5135_vm2, %v6586_v1  ;;  %v3902_v39 = vcombine.low %v211_v37, %v212_v38  ;;  %v5019_v51 = vld [vmem:[%s5194_s23 + $0x10] sm:$0xff]   ;;  %v5020_v58 = vld [vmem:[%s5194_s23 + $0x18] sm:$0xff]   ;;  %v1024_v4 = vshll.u32 %v5021_v0, 16  ;;  %v5022_v7 = vld [vmem:[%s5194_s23 + $0x28] sm:$0xff]   ;;  %v1028_v10 = vshrl.u32 %v5021_v0, 16 }
  0x1c   : > { %4376 = vmatprep.mubr.msk.bf16.mxu1 %vm5135_vm2, %v6586_v1  ;;  %4405 = vmatpush3.bf16.msra.mxu1 %v820_v17  ;;  %v1001_v46 = vrot.slane %v999_v40, 1  ;;  %v1010_v55 = vshll.u32 %v5019_v51, 16  ;;  %v1014_v60 = vshrl.u32 %v5019_v51, 16  ;;  %v1017_v61 = vshll.u32 %v5020_v58, 16  ;;  %v5023_v14 = vld [vmem:[%s5194_s23 + $0x30] sm:$0xff]   ;;  %v5026_v32 = vld [vmem:[%s5194_s23 + $0x48] sm:$0xff]  }
  0x1d   : > { %4544 = vmatprep.subr.bf16.mxu1 %v6586_v1  ;;  %4614 = vmatprep.subr.bf16.mxu0 %v6586_v1  ;;  %v1003_v45 = vshll.u32 %v3902_v39, 16  ;;  %v1007_v54 = vshrl.u32 %v3902_v39, 16  ;;  %v1021_v3 = vshrl.u32 %v5020_v58, 16  ;;  %v1026_v6 = vrot.slane %v1024_v4, 1  ;;  %v5027_v38 = vld [vmem:[%s5194_s23 + $0x50] sm:$0xff]   ;;  %v5028_v44 = vld [vmem:[%s5194_s23 + $0x58] sm:$0xff]  }
  0x1e   : > { %v1002_v49 = vor.u32 %v1001_v46, %v997_v43  ;;  %v1012_v57 = vrot.slane %v1010_v55, 1  ;;  %v1019_v63 = vrot.slane %v1017_v61, 1  ;;  %v1031_v11 = vshll.u32 %v5022_v7, 16  ;;  %v5029_v50 = vld [vmem:[%s5194_s23 + $0x60] sm:$0xff]  }
  0x1f   : > { %v1005_v48 = vrot.slane %v1003_v45, 1  ;;  %v1030_v12 = vor.u32 %v1028_v10, %v1026_v6  ;;  %v1035_v16 = vshrl.u32 %v5022_v7, 16  ;;  %v1038_v17 = vshll.u32 %v5023_v14, 16 }
  0x20   : > { %v1016_v62 = vor.u32 %v1014_v60, %v1012_v57  ;;  %v1023_v5 = vor.u32 %v1021_v3, %v1019_v63  ;;  %v1033_v13 = vrot.slane %v1031_v11, 1  ;;  %v1063_v40 = vshrl.u32 %v5026_v32, 16 }
  0x21   : > { %v1006_v52 = vsel %vm996_vm4, %v1002_v49, %v1005_v48  ;;  %v1009_v56 = vor.u32 %v1007_v54, %v1005_v48  ;;  %v1066_v41 = vshll.u32 %v5027_v38, 16  ;;  %v1070_v46 = vshrl.u32 %v5027_v38, 16 }
  0x22   : > { %4341 = vmatmul.mubr.msk.bf16.gmra.mrb[4].mxu0 %vm455_vm3, %v4999_v18  ;;  %4377 = vmatmul.mubr.msk.bf16.gmra.mrb[4].mxu1 %vm455_vm3, %v5000_v19  ;;  %v5311_v2 = vsel %vm996_vm4, %v1016_v62, %v1019_v63  ;;  %v5322_v8 = vsel %vm996_vm4, %v1023_v5, %v1026_v6  ;;  %v5333_v15 = vsel %vm996_vm4, %v1030_v12, %v1033_v13  ;;  %v1040_v19 = vrot.slane %v1038_v17, 1  ;;  %v5031_v63 = vld [vmem:[%s5194_s23 + $0x70] sm:$0xff]  }
  0x23   : > { %4344 = vmatprep.mubr.msk.bf16.mxu0 %vm5135_vm2, %v6586_v1  ;;  %4380 = vmatprep.mubr.msk.bf16.mxu1 %vm5135_vm2, %v6586_v1  ;;  %v5300_v59 = vsel %vm996_vm4, %v1009_v56, %v1012_v57  ;;  %v1037_v18 = vor.u32 %v1035_v16, %v1033_v13  ;;  %v1068_v43 = vrot.slane %v1066_v41, 1  ;;  %v5030_v56 = vld [vmem:[%s5194_s23 + $0x68] sm:$0xff]   ;;  %v1094_v4 = vshll.u32 %v5031_v63, 16  ;;  %v5033_v16 = vld [vmem:[%s5194_s23 + $0x80] sm:$0xff]  }
  0x24   : > { %v1087_v60 = vshll.u32 %v5030_v56, 16  ;;  %v1091_v3 = vshrl.u32 %v5030_v56, 16  ;;  %v1098_v11 = vshrl.u32 %v5031_v63, 16 }
  0x25   : > { %v1072_v48 = vor.u32 %v1070_v46, %v1068_v43  ;;  %v1096_v6 = vrot.slane %v1094_v4, 1 }
  0x26   : > { %v1089_v62 = vrot.slane %v1087_v60, 1 }
  0x27   : > { %v1100_v13 = vor.u32 %v1098_v11, %v1096_v6  ;;  %v5043_v11 = vld [vmem:[%s5194_s23 + $0x1cc] sm:$0xff]  }
  0x28   : > { %v1093_v5 = vor.u32 %v1091_v3, %v1089_v62 }
  0x2a   : > { %4345 = vmatmul.mubr.msk.bf16.gmra.mrb[8].mxu0 %vm455_vm3, %v5001_v20  ;;  %4381 = vmatmul.mubr.msk.bf16.gmra.mrb[8].mxu1 %vm455_vm3, %v5002_v21  ;;  %v5024_v20 = vld [vmem:[%s5194_s23 + $0x38] sm:$0xff]   ;;  %v5344_v21 = vsel %vm996_vm4, %v1037_v18, %v1040_v19  ;;  %v5432_v10 = vsel %vm996_vm4, %v1093_v5, %v1096_v6 }
  0x2b   : > { %4348 = vmatprep.mubr.msk.bf16.mxu0 %vm5135_vm2, %v6586_v1  ;;  %4384 = vmatprep.mubr.msk.bf16.mxu1 %vm5135_vm2, %v6586_v1  ;;  %v1049_v28 = vshrl.u32 %v5024_v20, 16  ;;  %6605 = vst [vmem:[#allocation8_spill] sm:$0xff] %v5432_v10 }
  0x32   : > { %4349 = vmatmul.mubr.msk.bf16.gmra.mrb[12].mxu0 %vm455_vm3, %v5003_v22  ;;  %4385 = vmatmul.mubr.msk.bf16.gmra.mrb[12].mxu1 %vm455_vm3, %v5004_v23  ;;  %v1042_v22 = vshrl.u32 %v5023_v14, 16  ;;  %v1045_v23 = vshll.u32 %v5024_v20, 16 }
  0x33   : > { %4352 = vmatprep.mubr.msk.bf16.mxu0 %vm5135_vm2, %v6586_v1  ;;  %4388 = vmatprep.mubr.msk.bf16.mxu1 %vm5135_vm2, %v6586_v1 }
  0x3a   : > { %4353 = vmatmul.mubr.msk.bf16.gmra.mrb[16].mxu0 %vm455_vm3, %v5005_v24  ;;  %4389 = vmatmul.mubr.msk.bf16.gmra.mrb[16].mxu1 %vm455_vm3, %v5006_v25  ;;  %v1044_v24 = vor.u32 %v1042_v22, %v1040_v19  ;;  %v1047_v25 = vrot.slane %v1045_v23, 1  ;;  %v1108_v19 = vshll.u32 %v5033_v16, 16 }
  0x3b   : > { %4356 = vmatprep.mubr.msk.bf16.mxu0 %vm5135_vm2, %v6586_v1  ;;  %4392 = vmatprep.mubr.msk.bf16.mxu1 %vm5135_vm2, %v6586_v1 }
  0x3c   : > { %v1110_v23 = vrot.slane %v1108_v19, 1 }
  0x42   : > { %4357 = vmatmul.mubr.msk.bf16.gmra.mrb[20].mxu0 %vm455_vm3, %v5007_v26  ;;  %4393 = vmatmul.mubr.msk.bf16.gmra.mrb[20].mxu1 %vm455_vm3, %v5008_v27  ;;  %v5025_v26 = vld [vmem:[%s5194_s23 + $0x40] sm:$0xff]   ;;  %v5355_v27 = vsel %vm996_vm4, %v1044_v24, %v1047_v25  ;;  %v5034_v24 = vld [vmem:[%s5194_s23 + $0x88] ss:$0 sps:$4 sm:$0x11]  }
  0x43   : > { %4360 = vmatprep.mubr.msk.bf16.mxu0 %vm5135_vm2, %v6586_v1  ;;  %4396 = vmatprep.mubr.msk.bf16.mxu1 %vm5135_vm2, %v6586_v1 }
  0x4a   : > { %4361 = vmatmul.mubr.msk.bf16.gmra.mrb[24].mxu0 %vm455_vm3, %v5009_v29  ;;  %4397 = vmatmul.mubr.msk.bf16.gmra.mrb[24].mxu1 %vm455_vm3, %v5010_v30  ;;  %v1052_v29 = vshll.u32 %v5025_v26, 16  ;;  %v1051_v30 = vor.u32 %v1049_v28, %v1047_v25 }
  0x4b   : > { %4364 = vmatprep.mubr.msk.bf16.mxu0 %vm5135_vm2, %v6586_v1  ;;  %4400 = vmatprep.mubr.msk.bf16.mxu1 %vm5135_vm2, %v6586_v1 }
  0x4c   : > { %v1054_v31 = vrot.slane %v1052_v29, 1  ;;  %v1112_v29 = vshrl.u32 %v5033_v16, 16 }
  0x52   : > { %4365 = vmatmul.mubr.msk.bf16.gmra.mrb[28].mxu0 %vm455_vm3, %v5011_v33  ;;  %4401 = vmatmul.mubr.msk.bf16.gmra.mrb[28].mxu1 %vm455_vm3, %v5012_v34  ;;  %v5366_v33 = vsel %vm996_vm4, %v1051_v30, %v1054_v31  ;;  %v1056_v34 = vshrl.u32 %v5025_v26, 16  ;;  %v1116_v30 = vshll.u32 %v5034_v24, 16 }
  0x53   : > { %4368 = vmatprep.mubr.msk.bf16.mxu0 %vm5135_vm2, %v6586_v1  ;;  %4406 = vmatprep.mubr.msk.bf16.mxu1 %vm5135_vm2, %v6586_v1  ;;  %6599 = vst [vmem:[#allocation2_spill] sm:$0xff] %v5366_v33 }
  0x54   : > { %v1058_v36 = vor.u32 %v1056_v34, %v1054_v31  ;;  %v5466_v34 = vor.u32 %v1112_v29, %v1110_v23 }
  0x56   : > { %6608 = vst [vmem:[#allocation11_spill] sm:$0xff] %v5466_v34 }
  0x5a   : > { %4369 = vmatmul.mubr.msk.bf16.gmra.mrb[32].mxu0 %vm455_vm3, %v5013_v42  ;;  %4407 = vmatmul.mubr.msk.bf16.vlgmr.msra.gmra.mrb[32].mxu1 %vm455_vm3, %v5014_v35  ;;  %v1059_v35 = vshll.u32 %v5026_v32, 16 }
  0x5b   : > { %4410 = vmatprep.mubr.msk.bf16.mxu1 %vm5135_vm2, %v6586_v1  ;;  %4476 = vmatprep.mubr.msk.bf16.mxu0 %vm5135_vm2, %v6586_v1 }
  0x5c   : > { %4545 = vmatpush3.bf16.msra.mxu1 %v1531_v47  ;;  %v1061_v37 = vrot.slane %v1059_v35, 1  ;;  %v1073_v47 = vshll.u32 %v5028_v44, 16  ;;  %v1118_v35 = vrot.slane %v1116_v30, 1 }
  0x5d   : > { %4684 = vmatprep.subr.bf16.mxu1 %v6586_v1 }
  0x5e   : > { %v1065_v42 = vor.u32 %v1063_v40, %v1061_v37  ;;  %v1075_v49 = vrot.slane %v1073_v47, 1  ;;  %v5039_v40 = vld [vmem:[%s6582_s1 + $0x8] ss:$0 sps:$4 sm:$0x66]  }
  0x60   : > { %v5388_v45 = vsel %vm996_vm4, %v1065_v42, %v1068_v43  ;;  %v2506_v42 = vrot.slane %v5039_v40, 1  ;;  %v5486_v43 = vld [vmem:[%s5194_s23 + $0x130] sm:$0xff]  }
  0x61   : > { %6601 = vst [vmem:[#allocation4_spill] sm:$0xff] %v5388_v45 }
  0x62   : > { %4411 = vmatmul.mubr.msk.bf16.gmra.mrb[36].mxu1 %vm455_vm3, %v3902_v39  ;;  %4477 = vmatmul.mubr.msk.bf16.vlgmr.msra.gmra.mrb[36].mxu0 %vm455_vm3, %v1006_v52  ;;  %v5377_v39 = vsel %vm996_vm4, %v1058_v36, %v1061_v37  ;;  %v1077_v52 = vshrl.u32 %v5028_v44, 16  ;;  %v5469_v37 = vld [vmem:[%s5194_s23 + $0x128] sm:$0xff]   ;;  %v2514_v46 = vand.u32 %v2506_v42, %v5188_v9 }
  0x63   : > { %4615 = vmatpush3.bf16.msra.mxu0 %v1878_v53  ;;  %4414 = vmatprep.mubr.msk.bf16.mxu1 %vm5135_vm2, %v6586_v1  ;;  %6600 = vst [vmem:[#allocation3_spill] sm:$0xff] %v5377_v39  ;;  %v1080_v53 = vshll.u32 %v5029_v50, 16 }
  0x64   : > { %4480 = vmatprep.mubr.msk.bf16.mxu0 %vm5135_vm2, %v6586_v1  ;;  %4754 = vmatprep.subr.bf16.mxu0 %v6586_v1  ;;  %v1079_v54 = vor.u32 %v1077_v52, %v1075_v49  ;;  %v5040_v52 = vld [vmem:[%s5194_s23 + $0x138] sm:$0xff]  }
  0x65   : > { %v1082_v55 = vrot.slane %v1080_v53, 1  ;;  %v5041_v53 = vld [vmem:[%s5194_s23 + $0x1c4] sm:$0xff]   ;;  %v2101_v60 = vshll.u32 %v5040_v52, 16  ;;  %v2105_v4 = vshrl.u32 %v5040_v52, 16 }
  0x67   : > { %v5410_v57 = vsel %vm996_vm4, %v1079_v54, %v1082_v55  ;;  %v5519_v3 = vrot.slane %v2101_v60, 1 }
  0x68   : > { %6603 = vst [vmem:[#allocation6_spill] sm:$0xff] %v5410_v57 }
  0x6a   : > { %4415 = vmatmul.mubr.msk.bf16.gmra.mrb[40].mxu1 %vm455_vm3, %v5019_v51  ;;  %4481 = vmatmul.mubr.msk.bf16.gmra.mrb[40].mxu0 %vm455_vm3, %v5300_v59  ;;  %v5399_v51 = vsel %vm996_vm4, %v1072_v48, %v1075_v49 }
  0x6b   : > { %4418 = vmatprep.mubr.msk.bf16.mxu1 %vm5135_vm2, %v6586_v1  ;;  %4484 = vmatprep.mubr.msk.bf16.mxu0 %vm5135_vm2, %v6586_v1  ;;  %6602 = vst [vmem:[#allocation5_spill] sm:$0xff] %v5399_v51 }
  0x72   : > { %4419 = vmatmul.mubr.msk.bf16.gmra.mrb[44].mxu1 %vm455_vm3, %v5020_v58  ;;  %4485 = vmatmul.mubr.msk.bf16.gmra.mrb[44].mxu0 %vm455_vm3, %v5311_v2  ;;  %v1084_v58 = vshrl.u32 %v5029_v50, 16 }
  0x73   : > { %4422 = vmatprep.mubr.msk.bf16.mxu1 %vm5135_vm2, %v6586_v1  ;;  %4488 = vmatprep.mubr.msk.bf16.mxu0 %vm5135_vm2, %v6586_v1 }
  0x74   : > { %v1086_v61 = vor.u32 %v1084_v58, %v1082_v55 }
  0x7a   : > { %4423 = vmatmul.mubr.msk.bf16.gmra.mrb[48].mxu1 %vm455_vm3, %v5021_v0  ;;  %4489 = vmatmul.mubr.msk.bf16.gmra.mrb[48].mxu0 %vm455_vm3, %v5322_v8  ;;  %v5421_v0 = vsel %vm996_vm4, %v1086_v61, %v1089_v62  ;;  %v5042_v61 = vld [vmem:[%s5194_s23 + $0x140] sm:$0xff]  }
  0x7b   : > { %4426 = vmatprep.mubr.msk.bf16.mxu1 %vm5135_vm2, %v6586_v1  ;;  %4492 = vmatprep.mubr.msk.bf16.mxu0 %vm5135_vm2, %v6586_v1  ;;  %6604 = vst [vmem:[#allocation7_spill] sm:$0xff] %v5421_v0  ;;  %v2108_v5 = vshll.u32 %v5042_v61, 16 }
  0x82   : > { %4427 = vmatmul.mubr.msk.bf16.gmra.mrb[52].mxu1 %vm455_vm3, %v5022_v7  ;;  %4493 = vmatmul.mubr.msk.bf16.gmra.mrb[52].mxu0 %vm455_vm3, %v5333_v15  ;;  %v5032_v7 = vld [vmem:[%s5194_s23 + $0x78] sm:$0xff]  }
  0x83   : > { %4430 = vmatprep.mubr.msk.bf16.mxu1 %vm5135_vm2, %v6586_v1  ;;  %4496 = vmatprep.mubr.msk.bf16.mxu0 %vm5135_vm2, %v6586_v1  ;;  %v1101_v12 = vshll.u32 %v5032_v7, 16  ;;  %v1105_v18 = vshrl.u32 %v5032_v7, 16 }
  0x8a   : > { %4431 = vmatmul.mubr.msk.bf16.gmra.mrb[56].mxu1 %vm455_vm3, %v5023_v14  ;;  %4497 = vmatmul.mubr.msk.bf16.gmra.mrb[56].mxu0 %vm455_vm3, %v5344_v21  ;;  %v1103_v14 = vrot.slane %v1101_v12, 1 }
  0x8b   : > { %4434 = vmatprep.mubr.msk.bf16.mxu1 %vm5135_vm2, %v6586_v1  ;;  %4500 = vmatprep.mubr.msk.bf16.mxu0 %vm5135_vm2, %v6586_v1 }
  0x8c   : > { %v5443_v17 = vsel %vm996_vm4, %v1100_v13, %v1103_v14  ;;  %v1107_v22 = vor.u32 %v1105_v18, %v1103_v14  ;;  %v2107_v14 = vor.u32 %v2105_v4, %v5519_v3 }
  0x8d   : > { %6606 = vst [vmem:[#allocation9_spill] sm:$0xff] %v5443_v17 }
  0x8e   : > { %v5457_v28 = vsel %vm996_vm4, %v1107_v22, %v1110_v23  ;;  %v5044_v22 = vld [vmem:[%s5194_s23 + $0x148] sm:$0xff]  }
  0x8f   : > { %6607 = vst [vmem:[#allocation10_spill] sm:$0xff] %v5457_v28 }
  0x92   : > { %4435 = vmatmul.mubr.msk.bf16.gmra.mrb[60].mxu1 %vm455_vm3, %v5024_v20  ;;  %4501 = vmatmul.mubr.msk.bf16.gmra.mrb[60].mxu0 %vm455_vm3, %v5355_v27  ;;  %v5036_v20 = vld [vmem:[%s6582_s1 + $0x4] sm:$0x18]  }
  0x93   : > { %4438 = vmatprep.mubr.msk.bf16.mxu1 %vm5135_vm2, %v6586_v1  ;;  %4504 = vmatprep.mubr.msk.bf16.mxu0 %vm5135_vm2, %v6586_v1  ;;  %v2217_v25 = vshrl.u32 %v5036_v20, 16 }
  0x95   : > { %v2219_v31 = vrot.slane %v2217_v25, 3  ;;  %v2112_v25 = vshrl.u32 %v5042_v61, 16 }
  0x9a   : > { %4439 = vmatmul.mubr.msk.bf16.gmra.mrb[64].mxu1 %vm455_vm3, %v5025_v26  ;;  %4505 = vmatmul.mubr.msk.bf16.gmra.mrb[64].mxu0 %vm455_vm3, %v5366_v33  ;;  %v2220_v26 = vshll.u32 %v5036_v20, 16 }
  0x9b   : > { %4442 = vmatprep.mubr.msk.bf16.mxu1 %vm5135_vm2, %v6586_v1  ;;  %4508 = vmatprep.mubr.msk.bf16.mxu0 %vm5135_vm2, %v6586_v1 }
  0xa2   : > { %4443 = vmatmul.mubr.msk.bf16.gmra.mrb[68].mxu1 %vm455_vm3, %v5026_v32  ;;  %4509 = vmatmul.mubr.msk.bf16.gmra.mrb[68].mxu0 %vm455_vm3, %v5377_v39  ;;  %v2222_v32 = vrot.slane %v2220_v26, 4  ;;  %v2115_v26 = vshll.u32 %v5044_v22, 16 }
  0xa3   : > { %4446 = vmatprep.mubr.msk.bf16.mxu1 %vm5135_vm2, %v6586_v1  ;;  %4512 = vmatprep.mubr.msk.bf16.mxu0 %vm5135_vm2, %v6586_v1 }
  0xa4   : > { %v2223_v36 = vor.u32 %v2222_v32, %v2219_v31  ;;  %v5045_v31 = vld [vmem:[%s5194_s23 + $0x1d4] sm:$0xff]  }
  0xa6   : > { %v2276_v41 = vand.u32 %v2223_v36, %v5188_v9 }
  0xaa   : > { %4447 = vmatmul.mubr.msk.bf16.gmra.mrb[72].mxu1 %vm455_vm3, %v5027_v38  ;;  %4513 = vmatmul.mubr.msk.bf16.gmra.mrb[72].mxu0 %vm455_vm3, %v5388_v45  ;;  %v1119_v38 = vsel %vm996_vm4, %v5466_v34, %v1118_v35 }
  0xab   : > { %4450 = vmatprep.mubr.msk.bf16.mxu1 %vm5135_vm2, %v6586_v1  ;;  %4516 = vmatprep.mubr.msk.bf16.mxu0 %vm5135_vm2, %v6586_v1 }
  0xb2   : > { %4451 = vmatmul.mubr.msk.bf16.gmra.mrb[76].mxu1 %vm455_vm3, %v5028_v44  ;;  %4517 = vmatmul.mubr.msk.bf16.gmra.mrb[76].mxu0 %vm455_vm3, %v5399_v51  ;;  %v5038_v44 = vld [vmem:[%s5194_s23 + $0x1bc] sm:$0xff]  }
  0xb3   : > { %4454 = vmatprep.mubr.msk.bf16.mxu1 %vm5135_vm2, %v6586_v1  ;;  %4520 = vmatprep.mubr.msk.bf16.mxu0 %vm5135_vm2, %v6586_v1 }
  0xba   : > { %4455 = vmatmul.mubr.msk.bf16.gmra.mrb[80].mxu1 %vm455_vm3, %v5029_v50  ;;  %4521 = vmatmul.mubr.msk.bf16.gmra.mrb[80].mxu0 %vm455_vm3, %v5410_v57 }
  0xbb   : > { %4458 = vmatprep.mubr.msk.bf16.mxu1 %vm5135_vm2, %v6586_v1  ;;  %4524 = vmatprep.mubr.msk.bf16.mxu0 %vm5135_vm2, %v6586_v1 }
  0xc2   : > { %4459 = vmatmul.mubr.msk.bf16.gmra.mrb[84].mxu1 %vm455_vm3, %v5030_v56  ;;  %4525 = vmatmul.mubr.msk.bf16.gmra.mrb[84].mxu0 %vm455_vm3, %v5421_v0 }
  0xc3   : > { %4462 = vmatprep.mubr.msk.bf16.mxu1 %vm5135_vm2, %v6586_v1  ;;  %4528 = vmatprep.mubr.msk.bf16.mxu0 %vm5135_vm2, %v6586_v1 }
  0xca   : > { %4463 = vmatmul.mubr.msk.bf16.gmra.mrb[88].mxu1 %vm455_vm3, %v5031_v63  ;;  %4529 = vmatmul.mubr.msk.bf16.gmra.mrb[88].mxu0 %vm455_vm3, %v5432_v10 }
  0xcb   : > { %4466 = vmatprep.mubr.msk.bf16.mxu1 %vm5135_vm2, %v6586_v1  ;;  %4532 = vmatprep.mubr.msk.bf16.mxu0 %vm5135_vm2, %v6586_v1 }
  0xd2   : > { %4467 = vmatmul.mubr.msk.bf16.gmra.mrb[92].mxu1 %vm455_vm3, %v5032_v7  ;;  %4533 = vmatmul.mubr.msk.bf16.gmra.mrb[92].mxu0 %vm455_vm3, %v5443_v17 }
  0xd3   : > { %4470 = vmatprep.mubr.msk.bf16.mxu1 %vm5135_vm2, %v6586_v1  ;;  %4536 = vmatprep.mubr.msk.bf16.mxu0 %vm5135_vm2, %v6586_v1 }
  0xda   : > { %4471 = vmatmul.mubr.msk.bf16.gmra.mrb[96].mxu1 %vm455_vm3, %v5033_v16  ;;  %4537 = vmatmul.mubr.msk.bf16.gmra.mrb[96].mxu0 %vm455_vm3, %v5457_v28  ;;  %v2110_v16 = vrot.slane %v2108_v5, 1 }
  0xdb   : > { %4540 = vmatprep.mubr.msk.bf16.mxu0 %vm5135_vm2, %v6586_v1  ;;  %4546 = vmatprep.mubr.msk.bf16.mxu1 %vm5135_vm2, %v6586_v1 }
  0xdc   : > { %v5528_v20 = vsel %vm996_vm4, %v2107_v14, %v2110_v16  ;;  %v2114_v36 = vor.u32 %v2112_v25, %v2110_v16  ;;  %v5048_v14 = vld [vmem:[%s5194_s23 + $0x158] sm:$0xff]  }
  0xe2   : > { %4541 = vmatmul.mubr.msk.bf16.gmra.mrb[100].mxu0 %vm455_vm3, %v1119_v38  ;;  %4547 = vmatmul.mubr.msk.bf16.vlgmr.msra.gmra.mrb[100].mxu1 %vm455_vm3, %v5469_v37  ;;  %v2117_v38 = vrot.slane %v2115_v26, 1 }
  0xe3   : > { %4550 = vmatprep.mubr.msk.bf16.mxu1 %vm5135_vm2, %v6586_v1  ;;  %4616 = vmatprep.mubr.msk.bf16.mxu0 %vm5135_vm2, %v6586_v1 }
  0xe4   : > { %4685 = vmatpush3.bf16.msra.mxu1 %v2276_v41  ;;  %v5547_v42 = vsel %vm996_vm4, %v2114_v36, %v2117_v38 }
  0xe5   : > { %4824 = vmatprep.subr.bf16.mxu1 %v6586_v1 }
  0xea   : > { %4551 = vmatmul.mubr.msk.bf16.gmra.mrb[104].mxu1 %vm455_vm3, %v5486_v43  ;;  %4617 = vmatmul.mubr.msk.bf16.vlgmr.msra.gmra.mrb[104].mxu0 %vm455_vm3, %v5038_v44  ;;  %v5046_v44 = vld [vmem:[%s5194_s23 + $0x150] sm:$0xff]  }
  0xeb   : > { %4755 = vmatpush3.bf16.msra.mxu0 %v2514_v46  ;;  %4554 = vmatprep.mubr.msk.bf16.mxu1 %vm5135_vm2, %v6586_v1 }
  0xec   : > { %4620 = vmatprep.mubr.msk.bf16.mxu0 %vm5135_vm2, %v6586_v1  ;;  %4894 = vmatprep.subr.bf16.mxu0 %v6586_v1 }
  0xed   : > { %v5498_v47 = vpop.f32.mrb[0].mxu0  ;;  %v5500_v48 = vpop.f32.mrb[0].mxu1 }
  0xee   : > { %v4338_v49 = vpop.f32.mrb[1].mxu0  ;;  %v4374_v50 = vpop.f32.mrb[1].mxu1 }
  0xef   : > { %v5504_v54 = vpop.f32.mrb[2].mxu0  ;;  %v5506_v55 = vpop.f32.mrb[2].mxu1  ;;  %v2119_v50 = vshrl.u32 %v5044_v22, 16 }
  0xf0   : > { %v4339_v56 = vpop.f32.mrb[3].mxu0  ;;  %v4375_v58 = vpop.f32.mrb[3].mxu1 }
  0xf1   : > { %v5047_v58 = vld [vmem:[%s5194_s23 + $0x1dc] sm:$0xff]   ;;  %v2121_v4 = vor.u32 %v2119_v50, %v2117_v38 }
  0xf2   : > { %4555 = vmatmul.mubr.msk.bf16.gmra.mrb[108].mxu1 %vm455_vm3, %v5040_v52  ;;  %4621 = vmatmul.mubr.msk.bf16.gmra.mrb[108].mxu0 %vm455_vm3, %v5041_v53  ;;  %v2122_v52 = vshll.u32 %v5046_v44, 16 }
  0xf3   : > { %4558 = vmatprep.mubr.msk.bf16.mxu1 %vm5135_vm2, %v6586_v1  ;;  %4624 = vmatprep.mubr.msk.bf16.mxu0 %vm5135_vm2, %v6586_v1 }
  0xf4   : > { %v2124_v5 = vrot.slane %v2122_v52, 1 }
  0xf5   : > { %v5515_v62 = vpop.f32.mrb[4].mxu0  ;;  %v5517_v63 = vpop.f32.mrb[4].mxu1 }
  0xf6   : > { %v4342_v6 = vpop.f32.mrb[5].mxu0  ;;  %v4378_v7 = vpop.f32.mrb[5].mxu1 }
  0xf7   : > { %v5522_v12 = vpop.f32.mrb[6].mxu0  ;;  %v5524_v13 = vpop.f32.mrb[6].mxu1 }
  0xf8   : > { %v4343_v18 = vpop.f32.mrb[7].mxu0  ;;  %v4379_v19 = vpop.f32.mrb[7].mxu1 }
  0xf9   : > { %v2126_v19 = vshrl.u32 %v5046_v44, 16 }
  0xfa   : > { %4559 = vmatmul.mubr.msk.bf16.gmra.mrb[112].mxu1 %vm455_vm3, %v5042_v61  ;;  %4625 = vmatmul.mubr.msk.bf16.gmra.mrb[112].mxu0 %vm455_vm3, %v5043_v11  ;;  %v5566_v11 = vsel %vm996_vm4, %v2121_v4, %v2124_v5 }
  0xfb   : > { %4562 = vmatprep.mubr.msk.bf16.mxu1 %vm5135_vm2, %v6586_v1  ;;  %4628 = vmatprep.mubr.msk.bf16.mxu0 %vm5135_vm2, %v6586_v1  ;;  %v2128_v36 = vor.u32 %v2126_v19, %v2124_v5 }
  0xfd   : > { %v5537_v23 = vpop.f32.mrb[8].mxu0  ;;  %v5539_v24 = vpop.f32.mrb[8].mxu1 }
  0xfe   : > { %v4346_v29 = vpop.f32.mrb[9].mxu0  ;;  %v4382_v30 = vpop.f32.mrb[9].mxu1 }
  0xff   : > { %v5542_v32 = vpop.f32.mrb[10].mxu0  ;;  %v5544_v35 = vpop.f32.mrb[10].mxu1  ;;  %v5049_v29 = vld [vmem:[%s5194_s23 + $0x1e4] sm:$0xff]  }
 0x100   : > { %v4347_v40 = vpop.f32.mrb[11].mxu0  ;;  %v4383_v41 = vpop.f32.mrb[11].mxu1 }
 0x102   : > { %4563 = vmatmul.mubr.msk.bf16.gmra.mrb[116].mxu1 %vm455_vm3, %v5044_v22  ;;  %4629 = vmatmul.mubr.msk.bf16.gmra.mrb[116].mxu0 %vm455_vm3, %v5045_v31  ;;  %v2129_v22 = vshll.u32 %v5048_v14, 16 }
 0x103   : > { %4566 = vmatprep.mubr.msk.bf16.mxu1 %vm5135_vm2, %v6586_v1  ;;  %4632 = vmatprep.mubr.msk.bf16.mxu0 %vm5135_vm2, %v6586_v1 }
 0x104   : > { %v2131_v38 = vrot.slane %v2129_v22, 1 }
 0x105   : > { %v5556_v46 = vpop.f32.mrb[12].mxu0  ;;  %v5558_v49 = vpop.f32.mrb[12].mxu1 }
 0x106   : > { %v4350_v53 = vpop.f32.mrb[13].mxu0  ;;  %v4386_v56 = vpop.f32.mrb[13].mxu1  ;;  %v5585_v50 = vsel %vm996_vm4, %v2128_v36, %v2131_v38 }
 0x107   : > { %v5561_v60 = vpop.f32.mrb[14].mxu0  ;;  %v5563_v61 = vpop.f32.mrb[14].mxu1  ;;  %v2133_v56 = vshrl.u32 %v5048_v14, 16 }
 0x108   : > { %v4351_v6 = vpop.f32.mrb[15].mxu0  ;;  %v4387_v7 = vpop.f32.mrb[15].mxu1 }
 0x109   : > { %v5051_v6 = vld [vmem:[%s5194_s23 + $0x1ec] sm:$0xff]   ;;  %v2135_v22 = vor.u32 %v2133_v56, %v2131_v38 }
 0x10a   : > { %4567 = vmatmul.mubr.msk.bf16.gmra.mrb[120].mxu1 %vm455_vm3, %v5046_v44  ;;  %4633 = vmatmul.mubr.msk.bf16.gmra.mrb[120].mxu0 %vm455_vm3, %v5047_v58  ;;  %v5050_v44 = vld [vmem:[%s5194_s23 + $0x160] sm:$0xff]  }
 0x10b   : > { %4570 = vmatprep.mubr.msk.bf16.mxu1 %vm5135_vm2, %v6586_v1  ;;  %4636 = vmatprep.mubr.msk.bf16.mxu0 %vm5135_vm2, %v6586_v1  ;;  %v2136_v58 = vshll.u32 %v5050_v44, 16 }
 0x10d   : > { %v5575_v16 = vpop.f32.mrb[16].mxu0  ;;  %v5577_v18 = vpop.f32.mrb[16].mxu1 }
 0x10e   : > { %v4354_v25 = vpop.f32.mrb[17].mxu0  ;;  %v4390_v26 = vpop.f32.mrb[17].mxu1 }
 0x10f   : > { %v5580_v30 = vpop.f32.mrb[18].mxu0  ;;  %v5582_v31 = vpop.f32.mrb[18].mxu1  ;;  %v2138_v25 = vrot.slane %v2136_v58, 1 }
 0x110   : > { %v4355_v40 = vpop.f32.mrb[19].mxu0  ;;  %v4391_v41 = vpop.f32.mrb[19].mxu1 }
 0x111   : > { %v5604_v36 = vsel %vm996_vm4, %v2135_v22, %v2138_v25  ;;  %v2140_v41 = vshrl.u32 %v5050_v44, 16 }
 0x112   : > { %4571 = vmatmul.mubr.msk.bf16.gmra.mrb[124].mxu1 %vm455_vm3, %v5048_v14  ;;  %4637 = vmatmul.mubr.msk.bf16.gmra.mrb[124].mxu0 %vm455_vm3, %v5049_v29  ;;  %v5052_v14 = vld [vmem:[%s5194_s23 + $0x168] sm:$0xff]  }
 0x113   : > { %4574 = vmatprep.mubr.msk.bf16.mxu1 %vm5135_vm2, %v6586_v1  ;;  %4640 = vmatprep.mubr.msk.bf16.mxu0 %vm5135_vm2, %v6586_v1  ;;  %v2143_v56 = vshll.u32 %v5052_v14, 16 }
 0x115   : > { %v5594_v52 = vpop.f32.mrb[20].mxu0  ;;  %v5596_v53 = vpop.f32.mrb[20].mxu1 }
 0x116   : > { %6609 = vst [vmem:[#allocation12_spill] sm:$0xff] %v5596_v53  ;;  %v4358_v4 = vpop.f32.mrb[21].mxu0  ;;  %v4394_v5 = vpop.f32.mrb[21].mxu1 }
 0x117   : > { %v5599_v7 = vpop.f32.mrb[22].mxu0  ;;  %v5601_v19 = vpop.f32.mrb[22].mxu1  ;;  %v5053_v5 = vld [vmem:[%s5194_s23 + $0x1f4] sm:$0xff]  }
 0x118   : > { %6610 = vst [vmem:[#allocation13_spill] sm:$0xff] %v5601_v19  ;;  %v4359_v26 = vpop.f32.mrb[23].mxu0  ;;  %v4395_v29 = vpop.f32.mrb[23].mxu1 }
 0x119   : > { %v2142_v26 = vor.u32 %v2140_v41, %v2138_v25  ;;  %v2145_v29 = vrot.slane %v2143_v56, 1 }
 0x11a   : > { %4575 = vmatmul.mubr.msk.bf16.gmra.mrb[128].mxu1 %vm455_vm3, %v5050_v44  ;;  %4641 = vmatmul.mubr.msk.bf16.gmra.mrb[128].mxu0 %vm455_vm3, %v5051_v6  ;;  %v6614_v44 = vmov 0.0  }
 0x11b   : > { %4578 = vmatprep.mubr.msk.bf16.mxu1 %vm5135_vm2, %v6586_v1  ;;  %4644 = vmatprep.mubr.msk.bf16.mxu0 %vm5135_vm2, %v6586_v1  ;;  %v5623_v28 = vsel %vm996_vm4, %v2142_v26, %v2145_v29  ;;  %v5055_v26 = vld [vmem:[%s5194_s23 + $0x1fc] sm:$0xff]  }
 0x11c   : > { %6613 = vst [vmem:[#allocation16_spill] sm:$0xff] %v5623_v28 }
 0x11d   : > { %v5613_v40 = vpop.f32.mrb[24].mxu0  ;;  %v5615_v38 = vpop.f32.mrb[24].mxu1 }
 0x11e   : > { %6611 = vst [vmem:[#allocation14_spill] sm:$0xff] %v5615_v38  ;;  %v4362_v58 = vpop.f32.mrb[25].mxu0  ;;  %v4398_v4 = vpop.f32.mrb[25].mxu1 }
 0x11f   : > { %v5618_v22 = vpop.f32.mrb[26].mxu0  ;;  %v5620_v6 = vpop.f32.mrb[26].mxu1  ;;  %v5054_v58 = vld [vmem:[%s5194_s23 + $0x170] sm:$0xff]  }
 0x120   : > { %6612 = vst [vmem:[#allocation15_spill] sm:$0xff] %v5620_v6  ;;  %v4363_v34 = vpop.f32.mrb[27].mxu0  ;;  %v4399_v1 = vpop.f32.mrb[27].mxu1 }
 0x121   : > { %v2147_v34 = vshrl.u32 %v5052_v14, 16  ;;  %v2150_v1 = vshll.u32 %v5054_v58, 16 }
 0x122   : > { %4579 = vmatmul.mubr.msk.bf16.gmra.mrb[132].mxu1 %vm455_vm3, %v5052_v14  ;;  %4645 = vmatmul.mubr.msk.bf16.gmra.mrb[132].mxu0 %vm455_vm3, %v5053_v5  ;;  %v5056_v14 = vld [vmem:[%s5194_s23 + $0x178] sm:$0xff]  }
 0x123   : > { %4582 = vmatprep.mubr.msk.bf16.mxu1 %vm5135_vm2, %v6614_v44  ;;  %4648 = vmatprep.mubr.msk.bf16.mxu0 %vm5135_vm2, %v6614_v44  ;;  %v2149_v10 = vor.u32 %v2147_v34, %v2145_v29  ;;  %v2152_v0 = vrot.slane %v2150_v1, 1  ;;  %v2154_v34 = vshrl.u32 %v5054_v58, 16 }
 0x125   : > { %v5632_v4 = vpop.f32.mrb[28].mxu0  ;;  %v5634_v25 = vpop.f32.mrb[28].mxu1  ;;  %v5642_v45 = vsel %vm996_vm4, %v2149_v10, %v2152_v0 }
 0x126   : > { %6615 = vst [vmem:[#allocation17_spill] sm:$0xff] %v5634_v25  ;;  %v4366_v41 = vpop.f32.mrb[29].mxu0  ;;  %v4402_v56 = vpop.f32.mrb[29].mxu1  ;;  %6617 = vst [vmem:[#allocation19_spill] sm:$0xff] %v5642_v45  ;;  %v2156_v25 = vor.u32 %v2154_v34, %v2152_v0  ;;  %v5058_v0 = vld [vmem:[%s5194_s23 + $0x180] sm:$0xff]   ;;  %v5059_v34 = vld [vmem:[%s5194_s23 + $0x20c] sm:$0xff]  }
 0x127   : > { %v5637_v17 = vpop.f32.mrb[30].mxu0  ;;  %v5639_v5 = vpop.f32.mrb[30].mxu1  ;;  %v5057_v56 = vld [vmem:[%s5194_s23 + $0x204] sm:$0xff]  }
 0x128   : > { %6616 = vst [vmem:[#allocation18_spill] sm:$0xff] %v5639_v5  ;;  %v4367_v57 = vpop.f32.mrb[31].mxu0  ;;  %v4403_v51 = vpop.f32.mrb[31].mxu1 }
 0x129   : > { %v2157_v57 = vshll.u32 %v5056_v14, 16 }
 0x12a   : > { %4583 = vmatmul.mubr.msk.bf16.gmra.mrb[136].mxu1 %vm455_vm3, %v5054_v58  ;;  %4649 = vmatmul.mubr.msk.bf16.gmra.mrb[136].mxu0 %vm455_vm3, %v5055_v26 }
 0x12b   : > { %4586 = vmatprep.mubr.msk.bf16.mxu1 %vm5135_vm2, %v6614_v44  ;;  %4652 = vmatprep.mubr.msk.bf16.mxu0 %vm5135_vm2, %v6614_v44  ;;  %v2159_v39 = vrot.slane %v2157_v57, 1 }
 0x12d   : > { %v5651_v41 = vpop.f32.mrb[32].mxu0  ;;  %v856_v29 = vpop.f32.mrb[32].mxu1  ;;  %v5659_v33 = vsel %vm996_vm4, %v2156_v25, %v2159_v39 }
 0x12e   : > { %v857_v51 = vadd.f32 %v856_v29, %v5498_v47  ;;  %v4370_v10 = vpop.f32.mrb[33].mxu0  ;;  %v4408_v1 = vpop.f32.mrb[33].mxu1  ;;  %6618 = vst [vmem:[#allocation20_spill] sm:$0xff] %v5659_v33  ;;  %v2164_v29 = vshll.u32 %v5058_v0, 16 }
 0x12f   : > { %v5655_v5 = vpop.f32.mrb[34].mxu0  ;;  %v859_v26 = vpop.f32.mrb[34].mxu1 }
 0x130   : > { %v860_v45 = vadd.f32 %v859_v26, %v5504_v54  ;;  %v4371_v6 = vpop.f32.mrb[35].mxu0  ;;  %v4409_v38 = vpop.f32.mrb[35].mxu1  ;;  %v2161_v54 = vshrl.u32 %v5056_v14, 16  ;;  %v2166_v26 = vrot.slane %v2164_v29, 1 }
 0x132   : > { %4587 = vmatmul.mubr.msk.bf16.gmra.mrb[140].mxu1 %vm455_vm3, %v5056_v14  ;;  %4653 = vmatmul.mubr.msk.bf16.gmra.mrb[140].mxu0 %vm455_vm3, %v5057_v56  ;;  %v2163_v56 = vor.u32 %v2161_v54, %v2159_v39  ;;  %v5060_v39 = vld [vmem:[%s5194_s23 + $0x188] sm:$0xff]  }
 0x133   : > { %4590 = vmatprep.mubr.msk.bf16.mxu1 %vm5135_vm2, %v6614_v44  ;;  %4656 = vmatprep.mubr.msk.bf16.mxu0 %vm5135_vm2, %v6614_v44 }
 0x134   : > { %v5676_v14 = vsel %vm996_vm4, %v2163_v56, %v2166_v26 }
 0x135   : > { %v864_v47 = vpop.f32.mrb[36].mxu1  ;;  %v1214_v58 = vpop.f32.mrb[36].mxu0  ;;  %6619 = vst [vmem:[#allocation21_spill] sm:$0xff] %v5676_v14 }
 0x136   : > { %v865_v38 = vadd.f32 %v864_v47, %v5515_v62  ;;  %v4412_v6 = vpop.f32.mrb[37].mxu1  ;;  %v4478_v25 = vpop.f32.mrb[37].mxu0  ;;  %v5670_v57 = vadd.f32 %v1214_v58, %v857_v51  ;;  %v5061_v58 = vld [vmem:[%s5194_s23 + $0x214] sm:$0xff]  }
 0x137   : > { %v867_v10 = vpop.f32.mrb[38].mxu1  ;;  %v1217_v1 = vpop.f32.mrb[38].mxu0 }
 0x138   : > { %v868_v33 = vadd.f32 %v867_v10, %v5522_v12  ;;  %v4479_v28 = vpop.f32.mrb[39].mxu0  ;;  %v4413_v19 = vpop.f32.mrb[39].mxu1  ;;  %v5673_v53 = vadd.f32 %v1217_v1, %v860_v45  ;;  %v2168_v12 = vshrl.u32 %v5058_v0, 16 }
 0x139   : > { %v2171_v19 = vshll.u32 %v5060_v39, 16 }
 0x13a   : > { %4591 = vmatmul.mubr.msk.bf16.gmra.mrb[144].mxu1 %vm455_vm3, %v5058_v0  ;;  %4657 = vmatmul.mubr.msk.bf16.gmra.mrb[144].mxu0 %vm455_vm3, %v5059_v34  ;;  %v2170_v25 = vor.u32 %v2168_v12, %v2166_v26  ;;  %v2175_v26 = vshrl.u32 %v5060_v39, 16 }
 0x13b   : > { %4594 = vmatprep.mubr.msk.bf16.mxu1 %vm5135_vm2, %v6614_v44  ;;  %4660 = vmatprep.mubr.msk.bf16.mxu0 %vm5135_vm2, %v6614_v44  ;;  %v2173_v34 = vrot.slane %v2171_v19, 1  ;;  %v5063_v19 = vld [vmem:[%s5194_s23 + $0x21c] sm:$0xff]  }
 0x13d   : > { %v872_v62 = vpop.f32.mrb[40].mxu1  ;;  %v1222_v28 = vpop.f32.mrb[40].mxu0  ;;  %v5693_v0 = vsel %vm996_vm4, %v2170_v25, %v2173_v34 }
 0x13e   : > { %v873_v45 = vadd.f32 %v872_v62, %v5537_v23  ;;  %v4416_v51 = vpop.f32.mrb[41].mxu1  ;;  %v4482_v47 = vpop.f32.mrb[41].mxu0  ;;  %v5687_v54 = vadd.f32 %v1222_v28, %v865_v38  ;;  %6620 = vst [vmem:[#allocation22_spill] sm:$0xff] %v5693_v0  ;;  %v5062_v23 = vld [vmem:[%s5194_s23 + $0x190] sm:$0xff]  }
 0x13f   : > { %v875_v29 = vpop.f32.mrb[42].mxu1  ;;  %v1225_v6 = vpop.f32.mrb[42].mxu0  ;;  %v2178_v62 = vshll.u32 %v5062_v23, 16 }
 0x140   : > { %v876_v10 = vadd.f32 %v875_v29, %v5542_v32  ;;  %v4483_v1 = vpop.f32.mrb[43].mxu0  ;;  %v4417_v56 = vpop.f32.mrb[43].mxu1  ;;  %v5690_v14 = vadd.f32 %v1225_v6, %v868_v33  ;;  %v2177_v29 = vor.u32 %v2175_v26, %v2173_v34  ;;  %v2182_v34 = vshrl.u32 %v5062_v23, 16 }
 0x141   : > { %v2180_v6 = vrot.slane %v2178_v62, 1  ;;  %v5065_v62 = vld [vmem:[%s5194_s23 + $0x224] sm:$0xff]  }
 0x142   : > { %4595 = vmatmul.mubr.msk.bf16.gmra.mrb[148].mxu1 %vm455_vm3, %v5060_v39  ;;  %4661 = vmatmul.mubr.msk.bf16.gmra.mrb[148].mxu0 %vm455_vm3, %v5061_v58 }
 0x143   : > { %4598 = vmatprep.mubr.msk.bf16.mxu1 %vm5135_vm2, %v6614_v44  ;;  %4664 = vmatprep.mubr.msk.bf16.mxu0 %vm5135_vm2, %v6614_v44  ;;  %v5710_v39 = vsel %vm996_vm4, %v2177_v29, %v2180_v6 }
 0x144   : > { %6622 = vst [vmem:[#allocation24_spill] sm:$0xff] %v5710_v39 }
 0x145   : > { %v880_v32 = vpop.f32.mrb[44].mxu1  ;;  %v1230_v38 = vpop.f32.mrb[44].mxu0 }
 0x146   : > { %v881_v33 = vadd.f32 %v880_v32, %v5556_v46  ;;  %v4420_v28 = vpop.f32.mrb[45].mxu1  ;;  %v4486_v12 = vpop.f32.mrb[45].mxu0  ;;  %v5704_v51 = vadd.f32 %v1230_v38, %v873_v45  ;;  %v5064_v46 = vld [vmem:[%s5194_s23 + $0x198] sm:$0xff]  }
 0x147   : > { %v883_v47 = vpop.f32.mrb[46].mxu1  ;;  %v1233_v58 = vpop.f32.mrb[46].mxu0  ;;  %v2185_v32 = vshll.u32 %v5064_v46, 16 }
 0x148   : > { %v884_v25 = vadd.f32 %v883_v47, %v5561_v60  ;;  %v4487_v1 = vpop.f32.mrb[47].mxu0  ;;  %v4421_v56 = vpop.f32.mrb[47].mxu1  ;;  %v5707_v0 = vadd.f32 %v1233_v58, %v876_v10  ;;  %v2184_v47 = vor.u32 %v2182_v34, %v2180_v6  ;;  %v2189_v6 = vshrl.u32 %v5064_v46, 16 }
 0x149   : > { %v2187_v58 = vrot.slane %v2185_v32, 1 }
 0x14a   : > { %6621 = vst [vmem:[#allocation23_spill] sm:$0xff] %v5707_v0  ;;  %4599 = vmatmul.mubr.msk.bf16.gmra.mrb[152].mxu1 %vm455_vm3, %v5062_v23  ;;  %4665 = vmatmul.mubr.msk.bf16.gmra.mrb[152].mxu0 %vm455_vm3, %v5063_v19 }
 0x14b   : > { %4602 = vmatprep.mubr.msk.bf16.mxu1 %vm5135_vm2, %v6614_v44  ;;  %4668 = vmatprep.mubr.msk.bf16.mxu0 %vm5135_vm2, %v6614_v44  ;;  %v5727_v23 = vsel %vm996_vm4, %v2184_v47, %v2187_v58 }
 0x14c   : > { %6625 = vst [vmem:[#allocation27_spill] sm:$0xff] %v5727_v23 }
 0x14d   : > { %v888_v60 = vpop.f32.mrb[48].mxu1  ;;  %v1238_v45 = vpop.f32.mrb[48].mxu0 }
 0x14e   : > { %v889_v10 = vadd.f32 %v888_v60, %v5575_v16  ;;  %v4424_v38 = vpop.f32.mrb[49].mxu1  ;;  %v4490_v26 = vpop.f32.mrb[49].mxu0  ;;  %v5721_v28 = vadd.f32 %v1238_v45, %v881_v33  ;;  %v5066_v16 = vld [vmem:[%s5194_s23 + $0x1a0] sm:$0xff]  }
 0x14f   : > { %v891_v12 = vpop.f32.mrb[50].mxu1  ;;  %v1241_v19 = vpop.f32.mrb[50].mxu0  ;;  %v2192_v60 = vshll.u32 %v5066_v16, 16  ;;  %v5067_v38 = vld [vmem:[%s5194_s23 + $0x22c] sm:$0xff]  }
 0x150   : > { %6623 = vst [vmem:[#allocation25_spill] sm:$0xff] %v5721_v28  ;;  %v892_v29 = vadd.f32 %v891_v12, %v5580_v30  ;;  %v4491_v1 = vpop.f32.mrb[51].mxu0  ;;  %v4425_v56 = vpop.f32.mrb[51].mxu1  ;;  %v5724_v39 = vadd.f32 %v1241_v19, %v884_v25  ;;  %v2191_v12 = vor.u32 %v2189_v6, %v2187_v58 }
 0x151   : > { %v2194_v19 = vrot.slane %v2192_v60, 1  ;;  %v2094_v60 = vshll.u32 %v5486_v43, 16 }
 0x152   : > { %6624 = vst [vmem:[#allocation26_spill] sm:$0xff] %v5724_v39  ;;  %4603 = vmatmul.mubr.msk.bf16.gmra.mrb[156].mxu1 %vm455_vm3, %v5064_v46  ;;  %4669 = vmatmul.mubr.msk.bf16.gmra.mrb[156].mxu0 %vm455_vm3, %v5065_v62 }
 0x153   : > { %4606 = vmatprep.mubr.msk.bf16.mxu1 %vm5135_vm2, %v6614_v44  ;;  %4672 = vmatprep.mubr.msk.bf16.mxu0 %vm5135_vm2, %v6614_v44  ;;  %v5747_v46 = vsel %vm996_vm4, %v2191_v12, %v2194_v19 }
 0x154   : > { %6628 = vst [vmem:[#allocation30_spill] sm:$0xff] %v5747_v46  ;;  %v2088_v46 = vshrl.u32 %v5469_v37, 16 }
 0x155   : > { %v896_v30 = vpop.f32.mrb[52].mxu1  ;;  %v1246_v33 = vpop.f32.mrb[52].mxu0 }
 0x156   : > { %v897_v25 = vadd.f32 %v896_v30, %v5594_v52  ;;  %v5737_v45 = vadd.f32 %v1246_v33, %v889_v10  ;;  %v4428_v34 = vpop.f32.mrb[53].mxu1  ;;  %v4494_v32 = vpop.f32.mrb[53].mxu0  ;;  %v5071_v52 = vld [vmem:[%s6582_s1 + $0x8] ss:$0 sps:$4 sm:$0xcc]   ;;  %v2090_v10 = vshll.u32 %v5469_v37, 16 }
 0x157   : > { %v899_v26 = vpop.f32.mrb[54].mxu1  ;;  %v1249_v62 = vpop.f32.mrb[54].mxu0  ;;  %v2856_v58 = vshrl.u32 %v5071_v52, 16  ;;  %v2196_v33 = vshrl.u32 %v5066_v16, 16  ;;  %v2096_v37 = vrot.slane %v2094_v60, 1 }
 0x158   : > { %6626 = vst [vmem:[#allocation28_spill] sm:$0xff] %v5737_v45  ;;  %v900_v47 = vadd.f32 %v899_v26, %v5599_v7  ;;  %v5741_v1 = vadd.f32 %v1249_v62, %v892_v29  ;;  %v4495_v56 = vpop.f32.mrb[55].mxu0  ;;  %v4429_v23 = vpop.f32.mrb[55].mxu1  ;;  %v5756_v7 = vld [vmem:[%s5194_s23 + $0x1a8] sm:$0xff]   ;;  %v2859_v29 = vshll.u32 %v5071_v52, 16  ;;  %v5069_v62 = vld [vmem:[%s5194_s23 + $0x234] sm:$0xff]  }
 0x159   : > { %v2199_v6 = vshll.u32 %v5756_v7, 16  ;;  %v2198_v52 = vor.u32 %v2196_v33, %v2194_v19 }
 0x15a   : > { %6627 = vst [vmem:[#allocation29_spill] sm:$0xff] %v5741_v1  ;;  %4607 = vmatmul.mubr.msk.bf16.gmra.mrb[160].mxu1 %vm455_vm3, %v5066_v16  ;;  %4673 = vmatmul.mubr.msk.bf16.gmra.mrb[160].mxu0 %vm455_vm3, %v5067_v38  ;;  %v2092_v1 = vrot.slane %v2090_v10, 1 }
 0x15b   : > { %4610 = vmatprep.mubr.msk.bf16.mxu1 %vm5135_vm2, %v6614_v44  ;;  %4676 = vmatprep.mubr.msk.bf16.mxu0 %vm5135_vm2, %v6614_v44  ;;  %v5766_v45 = vrot.slane %v2199_v6, 1 }
 0x15d   : > { %v904_v23 = vpop.f32.mrb[56].mxu1  ;;  %v1254_v30 = vpop.f32.mrb[56].mxu0 }
 0x15e   : > { %v905_v34 = vadd.f32 %v904_v23, %v5613_v40  ;;  %v5762_v32 = vadd.f32 %v1254_v30, %v897_v25  ;;  %v4432_v38 = vpop.f32.mrb[57].mxu1  ;;  %v4498_v26 = vpop.f32.mrb[57].mxu0  ;;  %v2858_v40 = vrot.slane %v2856_v58, 2  ;;  %v2861_v25 = vrot.slane %v2859_v29, 3  ;;  %v5070_v30 = vld [vmem:[%s5194_s23 + $0x23c] sm:$0xff]  }
 0x15f   : > { %v907_v12 = vpop.f32.mrb[58].mxu1  ;;  %v1257_v56 = vpop.f32.mrb[58].mxu0  ;;  %v5773_v23 = vsel %vm996_vm4, %v2198_v52, %v5766_v45  ;;  %v2098_v38 = vshrl.u32 %v5486_v43, 16 }
 0x160   : > { %v908_v16 = vadd.f32 %v907_v12, %v5618_v22  ;;  %v5769_v39 = vadd.f32 %v1257_v56, %v900_v47  ;;  %v4499_v28 = vpop.f32.mrb[59].mxu0  ;;  %v4433_v0 = vpop.f32.mrb[59].mxu1  ;;  %v2093_v22 = vor.u32 %v2092_v1, %v2088_v46 }
 0x161   : > { %v2862_v0 = vor.u32 %v2861_v25, %v2858_v40 }
 0x162   : > { %4611 = vmatmul.mubr.msk.bf16.gmra.mrb[164].mxu1 %vm455_vm3, %v5756_v7  ;;  %4677 = vmatmul.mubr.msk.bf16.gmra.mrb[164].mxu0 %vm455_vm3, %v5069_v62  ;;  %v2097_v60 = vsel %vm996_vm4, %v2093_v22, %v2096_v37 }
 0x163   : > { %4680 = vmatprep.mubr.msk.bf16.mxu0 %vm5135_vm2, %v6614_v44  ;;  %4686 = vmatprep.mubr.msk.bf16.mxu1 %vm5135_vm2, %v6614_v44  ;;  %v2915_v12 = vand.u32 %v2862_v0, %v5188_v9 }
 0x165   : > { %v912_v28 = vpop.f32.mrb[60].mxu1  ;;  %v1262_v19 = vpop.f32.mrb[60].mxu0 }
 0x166   : > { %v913_v47 = vadd.f32 %v912_v28, %v5632_v4  ;;  %v5783_v10 = vadd.f32 %v1262_v19, %v905_v34  ;;  %v4436_v58 = vpop.f32.mrb[61].mxu1  ;;  %v4502_v29 = vpop.f32.mrb[61].mxu0  ;;  %v2100_v4 = vor.u32 %v2098_v38, %v2096_v37 }
 0x167   : > { %v915_v33 = vpop.f32.mrb[62].mxu1  ;;  %v1265_v6 = vpop.f32.mrb[62].mxu0 }
 0x168   : > { %v916_v26 = vadd.f32 %v915_v33, %v5637_v17  ;;  %v5789_v62 = vadd.f32 %v1265_v6, %v908_v16  ;;  %v4503_v1 = vpop.f32.mrb[63].mxu0  ;;  %v4437_v46 = vpop.f32.mrb[63].mxu1  ;;  %v3120_v17 = vld [vmem:[%s6582_s1 + $0xc] sm:$0x3]  ;;  %v2104_v0 = vsel %vm996_vm4, %v2100_v4, %v5519_v3 }
 0x169   : > { %v3212_v37 = vand.u32 %v3120_v17, %v5188_v9 }
 0x16a   : > { %4681 = vmatmul.mubr.msk.bf16.gmra.mrb[168].mxu0 %vm455_vm3, %v5070_v30  ;;  %4687 = vmatmul.mubr.msk.bf16.vlgmr.msra.gmra.mrb[168].mxu1 %vm455_vm3, %v2097_v60 }
 0x16b   : > { %4690 = vmatprep.mubr.msk.bf16.mxu1 %vm5135_vm2, %v6614_v44  ;;  %4756 = vmatprep.mubr.msk.bf16.mxu0 %vm5135_vm2, %v6614_v44 }
 0x16c   : > { %4825 = vmatpush3.bf16.msra.mxu1 %v2915_v12 }
 0x16d   : > { %v920_v43 = vpop.f32.mrb[64].mxu1  ;;  %v1270_v34 = vpop.f32.mrb[64].mxu0 }
 0x16e   : > { %v921_v56 = vadd.f32 %v920_v43, %v5651_v41  ;;  %v5802_v52 = vadd.f32 %v1270_v34, %v913_v47  ;;  %v4440_v16 = vpop.f32.mrb[65].mxu1  ;;  %v4506_v40 = vpop.f32.mrb[65].mxu0 }
 0x16f   : > { %v923_v25 = vpop.f32.mrb[66].mxu1  ;;  %v1273_v22 = vpop.f32.mrb[66].mxu0 }
 0x170   : > { %v924_v28 = vadd.f32 %v923_v25, %v5655_v5  ;;  %v5808_v19 = vadd.f32 %v1273_v22, %v916_v26  ;;  %v4507_v58 = vpop.f32.mrb[67].mxu0  ;;  %v4441_v29 = vpop.f32.mrb[67].mxu1 }
 0x172   : > { %4691 = vmatmul.mubr.msk.bf16.gmra.mrb[172].mxu1 %vm455_vm3, %v2104_v0  ;;  %4757 = vmatmul.mubr.msk.bf16.vlgmr.msra.gmra.mrb[172].mxu0 %vm455_vm3, %v5300_v59 }
 0x173   : > { %4895 = vmatpush3.bf16.msra.mxu0 %v3212_v37  ;;  %4694 = vmatprep.mubr.msk.bf16.mxu1 %vm5135_vm2, %v6614_v44 }
 0x174   : > { %4760 = vmatprep.mubr.msk.bf16.mxu0 %vm5135_vm2, %v6614_v44 }
 0x175   : > { %v928_v3 = vpop.f32.mrb[68].mxu1  ;;  %v1278_v9 = vpop.f32.mrb[68].mxu0 }
 0x176   : > { %v929_v5 = vadd.f32 %v928_v3, %v5500_v48  ;;  %v5818_v41 = vadd.f32 %v1278_v9, %v921_v56  ;;  %v4444_v47 = vpop.f32.mrb[69].mxu1  ;;  %v4510_v30 = vpop.f32.mrb[69].mxu0 }
 0x177   : > { %v931_v33 = vpop.f32.mrb[70].mxu1  ;;  %v1281_v6 = vpop.f32.mrb[70].mxu0 }
 0x178   : > { %v932_v60 = vadd.f32 %v931_v33, %v5506_v55  ;;  %v5821_v59 = vadd.f32 %v1281_v6, %v924_v28  ;;  %v4511_v38 = vpop.f32.mrb[71].mxu0  ;;  %v4445_v26 = vpop.f32.mrb[71].mxu1 }
 0x17a   : > { %4695 = vmatmul.mubr.msk.bf16.gmra.mrb[176].mxu1 %vm455_vm3, %v5528_v20  ;;  %4761 = vmatmul.mubr.msk.bf16.gmra.mrb[176].mxu0 %vm455_vm3, %v5311_v2 }
 0x17b   : > { %4698 = vmatprep.mubr.msk.bf16.mxu1 %vm5135_vm2, %v6614_v44  ;;  %4764 = vmatprep.mubr.msk.bf16.mxu0 %vm5135_vm2, %v6614_v44 }
 0x17d   : > { %v936_v48 = vpop.f32.mrb[72].mxu1  ;;  %v1286_v1 = vpop.f32.mrb[72].mxu0 }
 0x17e   : > { %v937_v55 = vadd.f32 %v936_v48, %v5517_v63  ;;  %v5832_v46 = vadd.f32 %v1286_v1, %v929_v5  ;;  %v4448_v12 = vpop.f32.mrb[73].mxu1  ;;  %v4514_v4 = vpop.f32.mrb[73].mxu0 }
 0x17f   : > { %v939_v17 = vpop.f32.mrb[74].mxu1  ;;  %v1289_v43 = vpop.f32.mrb[74].mxu0 }
 0x180   : > { %v940_v20 = vadd.f32 %v939_v17, %v5524_v13  ;;  %v5835_v34 = vadd.f32 %v1289_v43, %v932_v60  ;;  %v4515_v2 = vpop.f32.mrb[75].mxu0  ;;  %v4449_v56 = vpop.f32.mrb[75].mxu1 }
 0x182   : > { %4699 = vmatmul.mubr.msk.bf16.gmra.mrb[180].mxu1 %vm455_vm3, %v5547_v42  ;;  %4765 = vmatmul.mubr.msk.bf16.gmra.mrb[180].mxu0 %vm455_vm3, %v5322_v8 }
 0x183   : > { %4702 = vmatprep.mubr.msk.bf16.mxu1 %vm5135_vm2, %v6614_v44  ;;  %4768 = vmatprep.mubr.msk.bf16.mxu0 %vm5135_vm2, %v6614_v44 }
 0x185   : > { %v944_v63 = vpop.f32.mrb[76].mxu1  ;;  %v1294_v16 = vpop.f32.mrb[76].mxu0 }
 0x186   : > { %v945_v13 = vadd.f32 %v944_v63, %v5539_v24  ;;  %v5846_v40 = vadd.f32 %v1294_v16, %v937_v55  ;;  %v4452_v25 = vpop.f32.mrb[77].mxu1  ;;  %v4518_v22 = vpop.f32.mrb[77].mxu0 }
 0x187   : > { %v947_v0 = vpop.f32.mrb[78].mxu1  ;;  %v1297_v37 = vpop.f32.mrb[78].mxu0  ;;  %v6629_v25 = vld [vmem:[#allocation12_spill] sm:$0xff] }
 0x188   : > { %v948_v42 = vadd.f32 %v947_v0, %v5544_v35  ;;  %v5849_v28 = vadd.f32 %v1297_v37, %v940_v20  ;;  %v4519_v8 = vpop.f32.mrb[79].mxu0  ;;  %v4453_v58 = vpop.f32.mrb[79].mxu1 }
 0x18a   : > { %4703 = vmatmul.mubr.msk.bf16.gmra.mrb[184].mxu1 %vm455_vm3, %v5566_v11  ;;  %4769 = vmatmul.mubr.msk.bf16.gmra.mrb[184].mxu0 %vm455_vm3, %v5333_v15 }
 0x18b   : > { %4706 = vmatprep.mubr.msk.bf16.mxu1 %vm5135_vm2, %v6614_v44  ;;  %4772 = vmatprep.mubr.msk.bf16.mxu0 %vm5135_vm2, %v6614_v44 }
 0x18d   : > { %v952_v24 = vpop.f32.mrb[80].mxu1  ;;  %v1302_v29 = vpop.f32.mrb[80].mxu0 }
 0x18e   : > { %v953_v35 = vadd.f32 %v952_v24, %v5558_v49  ;;  %v5860_v3 = vadd.f32 %v1302_v29, %v945_v13  ;;  %v4456_v9 = vpop.f32.mrb[81].mxu1  ;;  %v4522_v5 = vpop.f32.mrb[81].mxu0  ;;  %v6630_v29 = vld [vmem:[#allocation13_spill] sm:$0xff] }
 0x18f   : > { %v955_v47 = vpop.f32.mrb[82].mxu1  ;;  %v1305_v11 = vpop.f32.mrb[82].mxu0 }
 0x190   : > { %v956_v30 = vadd.f32 %v955_v47, %v5563_v61  ;;  %v5863_v15 = vadd.f32 %v1305_v11, %v948_v42  ;;  %v4523_v33 = vpop.f32.mrb[83].mxu0  ;;  %v4457_v6 = vpop.f32.mrb[83].mxu1  ;;  %v5077_v61 = vld [vmem:[%s5194_s23 + $0xcc] sm:$0xff]   ;;  %v5079_v42 = vld [vmem:[%s5194_s23 + $0xdc] sm:$0xff]  }
 0x191   : > { %v2769_v38 = vshll.u32 %v5077_v61, 16  ;;  %v2773_v4 = vshrl.u32 %v5077_v61, 16  ;;  %v2783_v8 = vshll.u32 %v5079_v42, 16  ;;  %v6632_v33 = vld [vmem:[#allocation2_spill] sm:$0xff] }
 0x192   : > { %4707 = vmatmul.mubr.msk.bf16.gmra.mrb[188].mxu1 %vm455_vm3, %v5585_v50  ;;  %4773 = vmatmul.mubr.msk.bf16.gmra.mrb[188].mxu0 %vm455_vm3, %v5344_v21  ;;  %v5078_v21 = vld [vmem:[%s5194_s23 + $0xd4] sm:$0xff]  }
 0x193   : > { %4710 = vmatprep.mubr.msk.bf16.mxu1 %vm5135_vm2, %v6614_v44  ;;  %4776 = vmatprep.mubr.msk.bf16.mxu0 %vm5135_vm2, %v6614_v44  ;;  %v2776_v17 = vshll.u32 %v5078_v21, 16  ;;  %v5881_v63 = vrot.slane %v2769_v38, 1  ;;  %v2780_v24 = vshrl.u32 %v5078_v21, 16  ;;  %v2785_v6 = vrot.slane %v2783_v8, 1  ;;  %v6633_v38 = vld [vmem:[#allocation14_spill] sm:$0xff] }
 0x195   : > { %v960_v49 = vpop.f32.mrb[84].mxu1  ;;  %v1310_v60 = vpop.f32.mrb[84].mxu0 }
 0x196   : > { %v961_v26 = vadd.f32 %v960_v49, %v5577_v18  ;;  %v5875_v48 = vadd.f32 %v1310_v60, %v953_v35  ;;  %v4460_v1 = vpop.f32.mrb[85].mxu1  ;;  %v4526_v55 = vpop.f32.mrb[85].mxu0  ;;  %v2775_v18 = vor.u32 %v2773_v4, %v5881_v63 }
 0x197   : > { %v963_v50 = vpop.f32.mrb[86].mxu1  ;;  %v1313_v12 = vpop.f32.mrb[86].mxu0 }
 0x198   : > { %v964_v43 = vadd.f32 %v963_v50, %v5582_v31  ;;  %v5879_v20 = vadd.f32 %v1313_v12, %v956_v30  ;;  %v4527_v2 = vpop.f32.mrb[87].mxu0  ;;  %v4461_v56 = vpop.f32.mrb[87].mxu1  ;;  %v2778_v31 = vrot.slane %v2776_v17, 1  ;;  %v6631_v30 = vld [vmem:[#allocation16_spill] sm:$0xff]  ;;  %v2787_v12 = vshrl.u32 %v5079_v42, 16  ;;  %v5080_v17 = vld [vmem:[%s5194_s23 + $0xe4] sm:$0xff]  }
 0x199   : > { %v6634_v2 = vld [vmem:[#allocation15_spill] sm:$0xff] }
 0x19a   : > { %4711 = vmatmul.mubr.msk.bf16.gmra.mrb[192].mxu1 %vm455_vm3, %v5604_v36  ;;  %4777 = vmatmul.mubr.msk.bf16.gmra.mrb[192].mxu0 %vm455_vm3, %v5355_v27  ;;  %v5900_v11 = vsel %vm996_vm4, %v2775_v18, %v2778_v31  ;;  %v2782_v49 = vor.u32 %v2780_v24, %v2778_v31 }
 0x19b   : > { %4714 = vmatprep.mubr.msk.bf16.mxu1 %vm5135_vm2, %v6614_v44  ;;  %4780 = vmatprep.mubr.msk.bf16.mxu0 %vm5135_vm2, %v6614_v44 }
 0x19c   : > { %v5918_v31 = vsel %vm996_vm4, %v2782_v49, %v2785_v6 }
 0x19d   : > { %v968_v16 = vpop.f32.mrb[88].mxu1  ;;  %v1318_v13 = vpop.f32.mrb[88].mxu0 }
 0x19e   : > { %v969_v22 = vadd.f32 %v968_v16, %v6629_v25  ;;  %v5893_v0 = vadd.f32 %v1318_v13, %v961_v26  ;;  %v4464_v37 = vpop.f32.mrb[89].mxu1  ;;  %v4530_v36 = vpop.f32.mrb[89].mxu0  ;;  %v6635_v25 = vld [vmem:[#allocation19_spill] sm:$0xff] }
 0x19f   : > { %v971_v27 = vpop.f32.mrb[90].mxu1  ;;  %v1321_v58 = vpop.f32.mrb[90].mxu0  ;;  %v2789_v37 = vor.u32 %v2787_v12, %v2785_v6  ;;  %v6639_v12 = vld [vmem:[#allocation20_spill] sm:$0xff] }
 0x1a0   : > { %v972_v35 = vadd.f32 %v971_v27, %v6630_v29  ;;  %v5897_v9 = vadd.f32 %v1321_v58, %v964_v43  ;;  %v4531_v5 = vpop.f32.mrb[91].mxu0  ;;  %v4465_v47 = vpop.f32.mrb[91].mxu1  ;;  %v2790_v43 = vshll.u32 %v5080_v17, 16  ;;  %v6637_v27 = vld [vmem:[#allocation17_spill] sm:$0xff] }
 0x1a1   : > { %v2794_v5 = vshrl.u32 %v5080_v17, 16 }
 0x1a2   : > { %4715 = vmatmul.mubr.msk.bf16.gmra.mrb[196].mxu1 %vm455_vm3, %v6631_v30  ;;  %4781 = vmatmul.mubr.msk.bf16.gmra.mrb[196].mxu0 %vm455_vm3, %v6632_v33  ;;  %v2792_v36 = vrot.slane %v2790_v43, 1  ;;  %v5081_v33 = vld [vmem:[%s5194_s23 + $0xec] sm:$0xff]  }
 0x1a3   : > { %4718 = vmatprep.mubr.msk.bf16.mxu1 %vm5135_vm2, %v6614_v44  ;;  %4784 = vmatprep.mubr.msk.bf16.mxu0 %vm5135_vm2, %v6614_v44  ;;  %v2797_v49 = vshll.u32 %v5081_v33, 16 }
 0x1a5   : > { %v976_v60 = vpop.f32.mrb[92].mxu1  ;;  %v1326_v61 = vpop.f32.mrb[92].mxu0 }
 0x1a6   : > { %v977_v26 = vadd.f32 %v976_v60, %v6633_v38  ;;  %v5911_v1 = vadd.f32 %v1326_v61, %v969_v22  ;;  %v4468_v55 = vpop.f32.mrb[93].mxu1  ;;  %v4534_v50 = vpop.f32.mrb[93].mxu0  ;;  %v6636_v22 = vld [vmem:[#allocation3_spill] sm:$0xff]  ;;  %v6638_v60 = vld [vmem:[#allocation18_spill] sm:$0xff] }
 0x1a7   : > { %v979_v4 = vpop.f32.mrb[94].mxu1  ;;  %v1329_v21 = vpop.f32.mrb[94].mxu0  ;;  %v5936_v50 = vsel %vm996_vm4, %v2789_v37, %v2792_v36 }
 0x1a8   : > { %v980_v56 = vadd.f32 %v979_v4, %v6634_v2  ;;  %v5915_v18 = vadd.f32 %v1329_v21, %v972_v35  ;;  %v4535_v16 = vpop.f32.mrb[95].mxu0  ;;  %v4469_v13 = vpop.f32.mrb[95].mxu1  ;;  %v2796_v4 = vor.u32 %v2794_v5, %v2792_v36  ;;  %v2799_v21 = vrot.slane %v2797_v49, 1 }
 0x1aa   : > { %4719 = vmatmul.mubr.msk.bf16.gmra.mrb[200].mxu1 %vm455_vm3, %v6635_v25  ;;  %4785 = vmatmul.mubr.msk.bf16.gmra.mrb[200].mxu0 %vm455_vm3, %v6636_v22  ;;  %v2801_v25 = vshrl.u32 %v5081_v33, 16  ;;  %v5954_v5 = vsel %vm996_vm4, %v2796_v4, %v2799_v21  ;;  %v5083_v4 = vld [vmem:[%s5194_s23 + $0xfc] sm:$0xff]  }
 0x1ab   : > { %4722 = vmatprep.mubr.msk.bf16.mxu1 %vm5135_vm2, %v6614_v44  ;;  %4788 = vmatprep.mubr.msk.bf16.mxu0 %vm5135_vm2, %v6614_v44 }
 0x1ad   : > { %v984_v42 = vpop.f32.mrb[96].mxu1  ;;  %v1334_v8 = vpop.f32.mrb[96].mxu0 }
 0x1ae   : > { %v985_v58 = vadd.f32 %v984_v42, %v6637_v27  ;;  %v5929_v24 = vadd.f32 %v1334_v8, %v977_v26  ;;  %v4472_v29 = vpop.f32.mrb[97].mxu1  ;;  %v4538_v35 = vpop.f32.mrb[97].mxu0  ;;  %v6640_v26 = vld [vmem:[#allocation4_spill] sm:$0xff] }
 0x1af   : > { %v987_v47 = vpop.f32.mrb[98].mxu1  ;;  %v1337_v30 = vpop.f32.mrb[98].mxu0  ;;  %v5082_v42 = vld [vmem:[%s5194_s23 + $0xf4] sm:$0xff]  }
 0x1b0   : > { %v988_v61 = vadd.f32 %v987_v47, %v6638_v60  ;;  %v5933_v38 = vadd.f32 %v1337_v30, %v980_v56  ;;  %v4539_v55 = vpop.f32.mrb[99].mxu0  ;;  %v4473_v6 = vpop.f32.mrb[99].mxu1  ;;  %v2804_v8 = vshll.u32 %v5082_v42, 16  ;;  %v2803_v47 = vor.u32 %v2801_v25, %v2799_v21 }
 0x1b1   : > { %v2808_v6 = vshrl.u32 %v5082_v42, 16 }
 0x1b2   : > { %4723 = vmatmul.mubr.msk.bf16.gmra.mrb[204].mxu1 %vm455_vm3, %v6639_v12  ;;  %4789 = vmatmul.mubr.msk.bf16.gmra.mrb[204].mxu0 %vm455_vm3, %v6640_v26 }
 0x1b3   : > { %4726 = vmatprep.mubr.msk.bf16.mxu1 %vm5135_vm2, %v6614_v44  ;;  %4792 = vmatprep.mubr.msk.bf16.mxu0 %vm5135_vm2, %v6614_v44 }
 0x1b5   : > { %v1342_v17 = vpop.f32.mrb[100].mxu0  ;;  %v1567_v43 = vpop.f32.mrb[100].mxu1 }
 0x1b6   : > { %v5946_v2 = vadd.f32 %v1342_v17, %v985_v58  ;;  %v1702_v56 = vadd.f32 %v1567_v43, %v5670_v57  ;;  %v4542_v16 = vpop.f32.mrb[101].mxu0  ;;  %v4548_v13 = vpop.f32.mrb[101].mxu1  ;;  %v6641_v58 = vld [vmem:[#allocation21_spill] sm:$0xff]  ;;  %v2811_v17 = vshll.u32 %v5083_v4, 16 }
 0x1b7   : > { %v1345_v22 = vpop.f32.mrb[102].mxu0  ;;  %v1570_v37 = vpop.f32.mrb[102].mxu1  ;;  %v6642_v57 = vld [vmem:[#allocation5_spill] sm:$0xff] }
 0x1b8   : > { %v5950_v27 = vadd.f32 %v1345_v22, %v988_v61  ;;  %v1703_v29 = vadd.f32 %v1570_v37, %v5673_v53  ;;  %v4543_v35 = vpop.f32.mrb[103].mxu0  ;;  %v4549_v36 = vpop.f32.mrb[103].mxu1  ;;  %v2806_v53 = vrot.slane %v2804_v8, 1  ;;  %v6643_v22 = vld [vmem:[#allocation22_spill] sm:$0xff] }
 0x1ba   : > { %4727 = vmatmul.mubr.msk.bf16.gmra.mrb[208].mxu1 %vm455_vm3, %v6641_v58  ;;  %4793 = vmatmul.mubr.msk.bf16.gmra.mrb[208].mxu0 %vm455_vm3, %v6642_v57  ;;  %v5972_v25 = vsel %vm996_vm4, %v2803_v47, %v2806_v53  ;;  %v2815_v58 = vshrl.u32 %v5083_v4, 16 }
 0x1bb   : > { %4730 = vmatprep.mubr.msk.bf16.mxu1 %vm5135_vm2, %v6614_v44  ;;  %4796 = vmatprep.mubr.msk.bf16.mxu0 %vm5135_vm2, %v6614_v44 }
 0x1bd   : > { %v1575_v30 = vpop.f32.mrb[104].mxu1  ;;  %v1914_v33 = vpop.f32.mrb[104].mxu0 }
 0x1be   : > { %v1704_v49 = vadd.f32 %v1575_v30, %v5687_v54  ;;  %v5965_v60 = vadd.f32 %v1914_v33, %v1702_v56  ;;  %v4552_v61 = vpop.f32.mrb[105].mxu1  ;;  %v4618_v55 = vpop.f32.mrb[105].mxu0  ;;  %v6644_v54 = vld [vmem:[#allocation6_spill] sm:$0xff]  ;;  %v2813_v56 = vrot.slane %v2811_v17, 1  ;;  %v6646_v17 = vld [vmem:[#allocation24_spill] sm:$0xff] }
 0x1bf   : > { %v1578_v12 = vpop.f32.mrb[106].mxu1  ;;  %v1917_v26 = vpop.f32.mrb[106].mxu0  ;;  %v5084_v30 = vld [vmem:[%s5194_s23 + $0x104] sm:$0xff]  }
 0x1c0   : > { %v1705_v43 = vadd.f32 %v1578_v12, %v5690_v14  ;;  %v5969_v16 = vadd.f32 %v1917_v26, %v1703_v29  ;;  %v4619_v13 = vpop.f32.mrb[107].mxu0  ;;  %v4553_v21 = vpop.f32.mrb[107].mxu1  ;;  %v2810_v14 = vor.u32 %v2808_v6, %v2806_v53  ;;  %v2818_v33 = vshll.u32 %v5084_v30, 16  ;;  %v6645_v61 = vld [vmem:[#allocation23_spill] sm:$0xff] }
 0x1c1   : > { %v6648_v21 = vld [vmem:[#allocation25_spill] sm:$0xff] }
 0x1c2   : > { %4731 = vmatmul.mubr.msk.bf16.gmra.mrb[212].mxu1 %vm455_vm3, %v6643_v22  ;;  %4797 = vmatmul.mubr.msk.bf16.gmra.mrb[212].mxu0 %vm455_vm3, %v6644_v54  ;;  %v5990_v6 = vsel %vm996_vm4, %v2810_v14, %v2813_v56  ;;  %v2820_v4 = vrot.slane %v2818_v33, 1  ;;  %v6650_v33 = vld [vmem:[#allocation27_spill] sm:$0xff] }
 0x1c3   : > { %4734 = vmatprep.mubr.msk.bf16.mxu1 %vm5135_vm2, %v6614_v44  ;;  %4800 = vmatprep.mubr.msk.bf16.mxu0 %vm5135_vm2, %v6614_v44 }
 0x1c5   : > { %v1583_v37 = vpop.f32.mrb[108].mxu1  ;;  %v1922_v42 = vpop.f32.mrb[108].mxu0 }
 0x1c6   : > { %v1706_v8 = vadd.f32 %v1583_v37, %v5704_v51  ;;  %v5983_v29 = vadd.f32 %v1922_v42, %v1704_v49  ;;  %v4556_v35 = vpop.f32.mrb[109].mxu1  ;;  %v4622_v36 = vpop.f32.mrb[109].mxu0  ;;  %v6647_v51 = vld [vmem:[#allocation7_spill] sm:$0xff]  ;;  %v2817_v49 = vor.u32 %v2815_v58, %v2813_v56  ;;  %v2822_v42 = vshrl.u32 %v5084_v30, 16 }
 0x1c7   : > { %v1586_v57 = vpop.f32.mrb[110].mxu1  ;;  %v1925_v47 = vpop.f32.mrb[110].mxu0 }
 0x1c8   : > { %v1707_v55 = vadd.f32 %v1586_v57, %v6645_v61  ;;  %v5987_v12 = vadd.f32 %v1925_v47, %v1705_v43  ;;  %v4623_v26 = vpop.f32.mrb[111].mxu0  ;;  %v4557_v53 = vpop.f32.mrb[111].mxu1  ;;  %v5085_v57 = vld [vmem:[%s5194_s23 + $0x10c] sm:$0xff]   ;;  %v6649_v61 = vld [vmem:[#allocation26_spill] sm:$0xff]  ;;  %v6008_v58 = vsel %vm996_vm4, %v2817_v49, %v2820_v4  ;;  %v2824_v30 = vor.u32 %v2822_v42, %v2820_v4 }
 0x1c9   : > { %v2825_v47 = vshll.u32 %v5085_v57, 16 }
 0x1ca   : > { %4735 = vmatmul.mubr.msk.bf16.gmra.mrb[216].mxu1 %vm455_vm3, %v6646_v17  ;;  %4801 = vmatmul.mubr.msk.bf16.gmra.mrb[216].mxu0 %vm455_vm3, %v6647_v51 }
 0x1cb   : > { %4738 = vmatprep.mubr.msk.bf16.mxu1 %vm5135_vm2, %v6614_v44  ;;  %4804 = vmatprep.mubr.msk.bf16.mxu0 %vm5135_vm2, %v6614_v44 }
 0x1cd   : > { %v1591_v43 = vpop.f32.mrb[112].mxu1  ;;  %v1930_v13 = vpop.f32.mrb[112].mxu0 }
 0x1ce   : > { %v1708_v22 = vadd.f32 %v1591_v43, %v6648_v21  ;;  %v6001_v54 = vadd.f32 %v1930_v13, %v1706_v8  ;;  %v4560_v14 = vpop.f32.mrb[113].mxu1  ;;  %v4626_v37 = vpop.f32.mrb[113].mxu0  ;;  %v6651_v8 = vld [vmem:[#allocation8_spill] sm:$0xff] }
 0x1cf   : > { %v1594_v35 = vpop.f32.mrb[114].mxu1  ;;  %v1933_v36 = vpop.f32.mrb[114].mxu0  ;;  %v6652_v13 = vld [vmem:[#allocation28_spill] sm:$0xff] }
 0x1d0   : > { %v1709_v26 = vadd.f32 %v1594_v35, %v6649_v61  ;;  %v6005_v53 = vadd.f32 %v1933_v36, %v1707_v55  ;;  %v4627_v17 = vpop.f32.mrb[115].mxu0  ;;  %v4561_v56 = vpop.f32.mrb[115].mxu1  ;;  %v2827_v55 = vrot.slane %v2825_v47, 1  ;;  %v2829_v35 = vshrl.u32 %v5085_v57, 16 }
 0x1d1   : > { %v6022_v17 = vld [vmem:[%s5194_s23 + $0x114] sm:$0xff]   ;;  %v5072_v57 = vld [vmem:[%s5194_s23 + $0x1b0] ss:$0 sps:$4 sm:$0x11]  }
 0x1d2   : > { %4739 = vmatmul.mubr.msk.bf16.gmra.mrb[220].mxu1 %vm455_vm3, %v6650_v33  ;;  %4805 = vmatmul.mubr.msk.bf16.gmra.mrb[220].mxu0 %vm455_vm3, %v6651_v8  ;;  %6653 = vst [vmem:[#allocation12_spill] sm:$0xff] %v6022_v17  ;;  %v2832_v56 = vshll.u32 %v6022_v17, 16  ;;  %v6654_v33 = vld [vmem:[#allocation29_spill] sm:$0xff]  ;;  %v2207_v17 = vshll.u32 %v5072_v57, 16 }
 0x1d3   : > { %4742 = vmatprep.mubr.msk.bf16.mxu1 %vm5135_vm2, %v6614_v44  ;;  %4808 = vmatprep.mubr.msk.bf16.mxu0 %vm5135_vm2, %v6614_v44  ;;  %v6068_v57 = vld [vmem:[%s5194_s23 + $0x90] ss:$0 sps:$4 sm:$0x11]  }
 0x1d5   : > { %v1599_v51 = vpop.f32.mrb[116].mxu1  ;;  %v1938_v43 = vpop.f32.mrb[116].mxu0 }
 0x1d6   : > { %v1710_v49 = vadd.f32 %v1599_v51, %v6652_v13  ;;  %v6019_v21 = vadd.f32 %v1938_v43, %v1708_v22  ;;  %v4564_v14 = vpop.f32.mrb[117].mxu1  ;;  %v4630_v37 = vpop.f32.mrb[117].mxu0  ;;  %v6029_v22 = vsel %vm996_vm4, %v2824_v30, %v2827_v55  ;;  %v6657_v51 = vld [vmem:[#allocation30_spill] sm:$0xff]  ;;  %v6658_v43 = vld [vmem:[#allocation9_spill] sm:$0xff]  ;;  %v2831_v13 = vor.u32 %v2829_v35, %v2827_v55 }
 0x1d7   : > { %v1602_v36 = vpop.f32.mrb[118].mxu1  ;;  %v1941_v61 = vpop.f32.mrb[118].mxu0  ;;  %6656 = vst [vmem:[#allocation16_spill] sm:$0xff] %v6029_v22  ;;  %v6043_v14 = vrot.slane %v2832_v56, 1 }
 0x1d8   : > { %v1711_v4 = vadd.f32 %v1602_v36, %v6654_v33  ;;  %v6026_v42 = vadd.f32 %v1941_v61, %v1709_v26  ;;  %v4631_v47 = vpop.f32.mrb[119].mxu0  ;;  %v4565_v8 = vpop.f32.mrb[119].mxu1  ;;  %v6041_v26 = vld [vmem:[%s5194_s23 + $0x88] sm:$0xff]  }
 0x1d9   : > { %6659 = vst [vmem:[#allocation2_spill] sm:$0xff] %v6043_v14  ;;  %v2491_v22 = vshll.u32 %v6041_v26, 16 }
 0x1da   : > { %6655 = vst [vmem:[#allocation13_spill] sm:$0xff] %v6026_v42  ;;  %4743 = vmatmul.mubr.msk.bf16.gmra.mrb[224].mxu1 %vm455_vm3, %v6657_v51  ;;  %4809 = vmatmul.mubr.msk.bf16.gmra.mrb[224].mxu0 %vm455_vm3, %v6658_v43  ;;  %v2203_v43 = vshrl.u32 %v5756_v7, 16  ;;  %v6662_v7 = vld [vmem:[#allocation10_spill] sm:$0xff] }
 0x1db   : > { %4746 = vmatprep.mubr.msk.bf16.mxu1 %vm5135_vm2, %v6614_v44  ;;  %4812 = vmatprep.mubr.msk.bf16.mxu0 %vm5135_vm2, %v6614_v44 }
 0x1dd   : > { %v1607_v30 = vpop.f32.mrb[120].mxu1  ;;  %v1946_v37 = vpop.f32.mrb[120].mxu0 }
 0x1de   : > { %v1712_v36 = vadd.f32 %v1607_v30, %v5762_v32  ;;  %v6046_v61 = vadd.f32 %v1946_v37, %v1710_v49  ;;  %v4568_v33 = vpop.f32.mrb[121].mxu1  ;;  %v4634_v47 = vpop.f32.mrb[121].mxu0  ;;  %v6055_v32 = vsel %vm996_vm4, %v2831_v13, %v6043_v14  ;;  %v5087_v49 = vld [vmem:[%s5194_s23 + $0x9c] sm:$0xff]  }
 0x1df   : > { %v1610_v8 = vpop.f32.mrb[122].mxu1  ;;  %v1949_v51 = vpop.f32.mrb[122].mxu0  ;;  %6661 = vst [vmem:[#allocation15_spill] sm:$0xff] %v6055_v32  ;;  %v2730_v30 = vshll.u32 %v5087_v49, 16  ;;  %v2728_v13 = vshrl.u32 %v5087_v49, 16  ;;  %v2499_v49 = vshll.u32 %v6068_v57, 16 }
 0x1e0   : > { %v1713_v55 = vadd.f32 %v1610_v8, %v5769_v39  ;;  %v6051_v35 = vadd.f32 %v1949_v51, %v1711_v4  ;;  %v4635_v56 = vpop.f32.mrb[123].mxu0  ;;  %v4569_v42 = vpop.f32.mrb[123].mxu1  ;;  %v2205_v39 = vor.u32 %v2203_v43, %v5766_v45  ;;  %v2209_v4 = vrot.slane %v2207_v17, 1  ;;  %v6664_v17 = vld [vmem:[#allocation11_spill] sm:$0xff] }
 0x1e1   : > { %v2493_v42 = vrot.slane %v2491_v22, 1  ;;  %v2732_v47 = vrot.slane %v2730_v30, 1  ;;  %v2495_v43 = vshrl.u32 %v6041_v26, 16 }
 0x1e2   : > { %6660 = vst [vmem:[#allocation14_spill] sm:$0xff] %v6051_v35  ;;  %4747 = vmatmul.mubr.msk.bf16.gmra.mrb[228].mxu1 %vm455_vm3, %v5773_v23  ;;  %4813 = vmatmul.mubr.msk.bf16.gmra.mrb[228].mxu0 %vm455_vm3, %v6662_v7  ;;  %v5088_v23 = vld [vmem:[%s5194_s23 + $0xa4] sm:$0xff]   ;;  %v2210_v45 = vsel %vm996_vm4, %v2205_v39, %v2209_v4 }
 0x1e3   : > { %4750 = vmatprep.mubr.msk.bf16.mxu1 %vm5135_vm2, %v6614_v44  ;;  %4816 = vmatprep.mubr.msk.bf16.mxu0 %vm5135_vm2, %v6614_v44  ;;  %v2734_v8 = vshll.u32 %v5088_v23, 16  ;;  %v2494_v22 = vsel %vm996_vm4, %v6664_v17, %v2493_v42  ;;  %v356_v39 = vld [vmem:[%s5194_s23 + $0x8] sm:$0xe]  ;;  %v2497_v4 = vor.u32 %v2495_v43, %v2493_v42  ;;  %v2738_v43 = vshrl.u32 %v5088_v23, 16 }
 0x1e5   : > { %v1615_v37 = vpop.f32.mrb[124].mxu1  ;;  %v1954_v33 = vpop.f32.mrb[124].mxu0 }
 0x1e6   : > { %v1714_v51 = vadd.f32 %v1615_v37, %v5783_v10  ;;  %v6072_v56 = vadd.f32 %v1954_v33, %v1712_v36  ;;  %v4572_v7 = vpop.f32.mrb[125].mxu1  ;;  %v4638_v14 = vpop.f32.mrb[125].mxu0  ;;  %v2501_v33 = vrot.slane %v2499_v49, 1  ;;  %v5090_v49 = vld [vmem:[%s5194_s23 + $0xac] sm:$0xff]  }
 0x1e7   : > { %v1618_v32 = vpop.f32.mrb[126].mxu1  ;;  %v1957_v35 = vpop.f32.mrb[126].mxu0  ;;  %v2736_v14 = vrot.slane %v2734_v8, 1 }
 0x1e8   : > { %6663 = vst [vmem:[#allocation19_spill] sm:$0xff] %v6072_v56  ;;  %v1715_v30 = vadd.f32 %v1618_v32, %v5789_v62  ;;  %v6080_v10 = vadd.f32 %v1957_v35, %v1713_v55  ;;  %v4639_v36 = vpop.f32.mrb[127].mxu0  ;;  %v4573_v37 = vpop.f32.mrb[127].mxu1  ;;  %v2733_v62 = vor.u32 %v2732_v47, %v2728_v13  ;;  %v5089_v32 = vld [vmem:[%s5194_s23 + $0xc] sm:$0xf]  ;;  %v2741_v13 = vshll.u32 %v5090_v49, 16 }
 0x1e9   : > { %v4083_v7 = vcombine.low %v356_v39, %v5089_v32  ;;  %v2740_v23 = vor.u32 %v2738_v43, %v2736_v14 }
 0x1ea   : > { %6665 = vst [vmem:[#allocation3_spill] sm:$0xff] %v6080_v10  ;;  %4751 = vmatmul.mubr.msk.bf16.gmra.mrb[232].mxu1 %vm455_vm3, %v2210_v45  ;;  %4817 = vmatmul.mubr.msk.bf16.gmra.mrb[232].mxu0 %vm455_vm3, %v2494_v22  ;;  %v2502_v10 = vsel %vm996_vm4, %v2497_v4, %v2501_v33  ;;  %v2737_v42 = vsel %vm996_vm4, %v2733_v62, %v2736_v14  ;;  %v2743_v4 = vrot.slane %v2741_v13, 1  ;;  %v5091_v33 = vld [vmem:[%s5194_s23 + $0x10] sm:$0xff]  }
 0x1eb   : > { %4820 = vmatprep.mubr.msk.bf16.mxu0 %vm5135_vm2, %v6614_v44  ;;  %4826 = vmatprep.mubr.msk.bf16.mxu1 %vm5135_vm2, %v6614_v44 }
 0x1ec   : > { %v2744_v14 = vsel %vm996_vm4, %v2740_v23, %v2743_v4 }
 0x1ed   : > { %v1623_v55 = vpop.f32.mrb[128].mxu1  ;;  %v1962_v35 = vpop.f32.mrb[128].mxu0 }
 0x1ee   : > { %v1716_v45 = vadd.f32 %v1623_v55, %v5802_v52  ;;  %v6091_v17 = vadd.f32 %v1962_v35, %v1714_v51  ;;  %v4576_v8 = vpop.f32.mrb[129].mxu1  ;;  %v4642_v22 = vpop.f32.mrb[129].mxu0  ;;  %v3125_v51 = vrot.slane %v4083_v7, 1 }
 0x1ef   : > { %v1626_v36 = vpop.f32.mrb[130].mxu1  ;;  %v1965_v37 = vpop.f32.mrb[130].mxu0 }
 0x1f0   : > { %v1717_v47 = vadd.f32 %v1626_v36, %v5808_v19  ;;  %v6097_v56 = vadd.f32 %v1965_v37, %v1715_v30  ;;  %v4643_v39 = vpop.f32.mrb[131].mxu0  ;;  %v4577_v52 = vpop.f32.mrb[131].mxu1  ;;  %v3126_v19 = vrot.slane %v5091_v33, 1  ;;  %v3158_v30 = vrot.slane %v6068_v57, 1  ;;  %v5092_v57 = vld [vmem:[%s5194_s23 + $0xb4] sm:$0xff]  }
 0x1f1   : > { %v2748_v43 = vshll.u32 %v5092_v57, 16 }
 0x1f2   : > { %4821 = vmatmul.mubr.msk.bf16.gmra.mrb[236].mxu0 %vm455_vm3, %v2502_v10  ;;  %4827 = vmatmul.mubr.msk.bf16.vlgmr.msra.gmra.mrb[236].mxu1 %vm455_vm3, %v2737_v42  ;;  %v3156_v10 = vrot.slane %v6041_v26, 1  ;;  %v3127_v37 = vsel %vm3124_vm5, %v3125_v51, %v3126_v19  ;;  %v2745_v42 = vshrl.u32 %v5090_v49, 16 }
 0x1f3   : > { %4830 = vmatprep.mubr.msk.bf16.mxu1 %vm5135_vm2, %v6614_v44  ;;  %4896 = vmatprep.mubr.msk.bf16.mxu0 %vm5135_vm2, %v6614_v44  ;;  %v2750_v49 = vrot.slane %v2748_v43, 1 }
 0x1f5   : > { %v1631_v62 = vpop.f32.mrb[132].mxu1  ;;  %v1970_v55 = vpop.f32.mrb[132].mxu0 }
 0x1f6   : > { %v1718_v35 = vadd.f32 %v1631_v62, %v5818_v41  ;;  %v6109_v32 = vadd.f32 %v1970_v55, %v1716_v45  ;;  %v4580_v7 = vpop.f32.mrb[133].mxu1  ;;  %v4646_v8 = vpop.f32.mrb[133].mxu0  ;;  %v6120_v45 = vsel %vm3124_vm5, %v3156_v10, %v3158_v30 }
 0x1f7   : > { %v1634_v22 = vpop.f32.mrb[134].mxu1  ;;  %v1973_v36 = vpop.f32.mrb[134].mxu0 }
 0x1f8   : > { %v1719_v13 = vadd.f32 %v1634_v22, %v5821_v59  ;;  %v6115_v39 = vadd.f32 %v1973_v36, %v1717_v47  ;;  %v4647_v52 = vpop.f32.mrb[135].mxu0  ;;  %v4581_v41 = vpop.f32.mrb[135].mxu1  ;;  %v2747_v59 = vor.u32 %v2745_v42, %v2743_v4  ;;  %v5093_v47 = vld [vmem:[%s5194_s23 + $0x18] sm:$0xff]  }
 0x1f9   : > { %v3128_v51 = vrot.slane %v5093_v47, 1  ;;  %v5094_v4 = vld [vmem:[%s5194_s23 + $0xbc] sm:$0xff]  }
 0x1fa   : > { %4831 = vmatmul.mubr.msk.bf16.gmra.mrb[240].mxu1 %vm455_vm3, %v2744_v14  ;;  %4897 = vmatmul.mubr.msk.bf16.vlgmr.msra.gmra.mrb[240].mxu0 %vm455_vm3, %v3127_v37  ;;  %v2751_v36 = vsel %vm996_vm4, %v2747_v59, %v2750_v49  ;;  %v2752_v37 = vshrl.u32 %v5092_v57, 16  ;;  %v2755_v42 = vshll.u32 %v5094_v4, 16  ;;  %v5095_v57 = vld [vmem:[%s5194_s23 + $0x20] sm:$0xff]  }
 0x1fb   : > { %4834 = vmatprep.mubr.msk.bf16.mxu1 %vm5135_vm2, %v6614_v44  ;;  %4900 = vmatprep.mubr.msk.bf16.mxu0 %vm5135_vm2, %v6614_v44  ;;  %v3129_v14 = vsel %vm3124_vm5, %v3126_v19, %v3128_v51  ;;  %v3130_v59 = vrot.slane %v5095_v57, 1 }
 0x1fc   : > { %v2754_v19 = vor.u32 %v2752_v37, %v2750_v49  ;;  %v5096_v49 = vld [vmem:[%s5194_s23 + $0xc4] sm:$0xff]  }
 0x1fd   : > { %v1639_v23 = vpop.f32.mrb[136].mxu1  ;;  %v1978_v33 = vpop.f32.mrb[136].mxu0  ;;  %v2762_v37 = vshll.u32 %v5096_v49, 16 }
 0x1fe   : > { %v1720_v30 = vadd.f32 %v1639_v23, %v5832_v46  ;;  %v6130_v62 = vadd.f32 %v1978_v33, %v1718_v35  ;;  %v4584_v55 = vpop.f32.mrb[137].mxu1  ;;  %v4650_v7 = vpop.f32.mrb[137].mxu0  ;;  %v2757_v35 = vrot.slane %v2755_v42, 1 }
 0x1ff   : > { %v1642_v8 = vpop.f32.mrb[138].mxu1  ;;  %v1981_v22 = vpop.f32.mrb[138].mxu0 }
 0x200   : > { %v1721_v43 = vadd.f32 %v1642_v8, %v5835_v34  ;;  %v6136_v52 = vadd.f32 %v1981_v22, %v1719_v13  ;;  %v4651_v41 = vpop.f32.mrb[139].mxu0  ;;  %v4585_v46 = vpop.f32.mrb[139].mxu1  ;;  %v2758_v22 = vsel %vm996_vm4, %v2754_v19, %v2757_v35 }
 0x202   : > { %4835 = vmatmul.mubr.msk.bf16.gmra.mrb[244].mxu1 %vm455_vm3, %v2751_v36  ;;  %4901 = vmatmul.mubr.msk.bf16.gmra.mrb[244].mxu0 %vm455_vm3, %v3129_v14  ;;  %v3131_v36 = vsel %vm3124_vm5, %v3128_v51, %v3130_v59  ;;  %v2759_v14 = vshrl.u32 %v5094_v4, 16  ;;  %v5097_v4 = vld [vmem:[%s5194_s23 + $0x28] sm:$0xff]  }
 0x203   : > { %4838 = vmatprep.mubr.msk.bf16.mxu1 %vm5135_vm2, %v6614_v44  ;;  %4904 = vmatprep.mubr.msk.bf16.mxu0 %vm5135_vm2, %v6614_v44  ;;  %v3132_v19 = vrot.slane %v5097_v4, 1 }
 0x204   : > { %v2761_v51 = vor.u32 %v2759_v14, %v2757_v35 }
 0x205   : > { %v1647_v34 = vpop.f32.mrb[140].mxu1  ;;  %v1986_v13 = vpop.f32.mrb[140].mxu0 }
 0x206   : > { %v1722_v47 = vadd.f32 %v1647_v34, %v5846_v40  ;;  %v6146_v23 = vadd.f32 %v1986_v13, %v1720_v30  ;;  %v4588_v33 = vpop.f32.mrb[141].mxu1  ;;  %v4654_v55 = vpop.f32.mrb[141].mxu0  ;;  %v2764_v30 = vrot.slane %v2762_v37, 1 }
 0x207   : > { %v1650_v7 = vpop.f32.mrb[142].mxu1  ;;  %v1989_v8 = vpop.f32.mrb[142].mxu0 }
 0x208   : > { %v1723_v42 = vadd.f32 %v1650_v7, %v5849_v28  ;;  %v6152_v41 = vadd.f32 %v1989_v8, %v1721_v43  ;;  %v4655_v46 = vpop.f32.mrb[143].mxu0  ;;  %v4589_v40 = vpop.f32.mrb[143].mxu1  ;;  %v2765_v8 = vsel %vm996_vm4, %v2761_v51, %v2764_v30 }
 0x20a   : > { %4839 = vmatmul.mubr.msk.bf16.gmra.mrb[248].mxu1 %vm455_vm3, %v2758_v22  ;;  %4905 = vmatmul.mubr.msk.bf16.gmra.mrb[248].mxu0 %vm455_vm3, %v3131_v36  ;;  %v2766_v22 = vshrl.u32 %v5096_v49, 16  ;;  %v3133_v36 = vsel %vm3124_vm5, %v3130_v59, %v3132_v19 }
 0x20b   : > { %4842 = vmatprep.mubr.msk.bf16.mxu1 %vm5135_vm2, %v6614_v44  ;;  %4908 = vmatprep.mubr.msk.bf16.mxu0 %vm5135_vm2, %v6614_v44 }
 0x20c   : > { %v2768_v40 = vor.u32 %v2766_v22, %v2764_v30 }
 0x20d   : > { %v1655_v57 = vpop.f32.mrb[144].mxu1  ;;  %v1994_v28 = vpop.f32.mrb[144].mxu0 }
 0x20e   : > { %v1724_v43 = vadd.f32 %v1655_v57, %v5860_v3  ;;  %v6162_v34 = vadd.f32 %v1994_v28, %v1722_v47  ;;  %v4592_v13 = vpop.f32.mrb[145].mxu1  ;;  %v4658_v33 = vpop.f32.mrb[145].mxu0  ;;  %v5098_v3 = vld [vmem:[%s5194_s23 + $0x30] sm:$0xff]   ;;  %v2772_v57 = vsel %vm996_vm4, %v2768_v40, %v5881_v63 }
 0x20f   : > { %v1658_v55 = vpop.f32.mrb[146].mxu1  ;;  %v1997_v7 = vpop.f32.mrb[146].mxu0  ;;  %v3134_v47 = vrot.slane %v5098_v3, 1 }
 0x210   : > { %v1725_v35 = vadd.f32 %v1658_v55, %v5863_v15  ;;  %v6167_v14 = vadd.f32 %v1997_v7, %v1723_v42  ;;  %v4659_v37 = vpop.f32.mrb[147].mxu0  ;;  %v4593_v46 = vpop.f32.mrb[147].mxu1 }
 0x211   : > { %v3135_v30 = vsel %vm3124_vm5, %v3132_v19, %v3134_v47 }
 0x212   : > { %4843 = vmatmul.mubr.msk.bf16.gmra.mrb[252].mxu1 %vm455_vm3, %v2765_v8  ;;  %4909 = vmatmul.mubr.msk.bf16.gmra.mrb[252].mxu0 %vm455_vm3, %v3133_v36 }
 0x213   : > { %4846 = vmatprep.mubr.msk.bf16.mxu1 %vm5135_vm2, %v6614_v44  ;;  %4912 = vmatprep.mubr.msk.bf16.mxu0 %vm5135_vm2, %v6614_v44 }
 0x215   : > { %v1663_v59 = vpop.f32.mrb[148].mxu1  ;;  %v2002_v15 = vpop.f32.mrb[148].mxu0 }
 0x216   : > { %v1726_v49 = vadd.f32 %v1663_v59, %v5875_v48  ;;  %v6177_v42 = vadd.f32 %v2002_v15, %v1724_v43  ;;  %v4596_v51 = vpop.f32.mrb[149].mxu1  ;;  %v4662_v4 = vpop.f32.mrb[149].mxu0  ;;  %v5099_v48 = vld [vmem:[%s5194_s23 + $0x38] sm:$0xff]  }
 0x217   : > { %v1666_v28 = vpop.f32.mrb[150].mxu1  ;;  %v2005_v13 = vpop.f32.mrb[150].mxu0  ;;  %v3136_v43 = vrot.slane %v5099_v48, 1 }
 0x218   : > { %v1727_v33 = vadd.f32 %v1666_v28, %v5879_v20  ;;  %v6183_v55 = vadd.f32 %v2005_v13, %v1725_v35  ;;  %v4663_v7 = vpop.f32.mrb[151].mxu0  ;;  %v4597_v8 = vpop.f32.mrb[151].mxu1 }
 0x219   : > { %v3137_v3 = vsel %vm3124_vm5, %v3134_v47, %v3136_v43 }
 0x21a   : > { %4847 = vmatmul.mubr.msk.bf16.gmra.mrb[0].mxu1 %vm455_vm3, %v2772_v57  ;;  %4913 = vmatmul.mubr.msk.bf16.gmra.mrb[0].mxu0 %vm455_vm3, %v3135_v30 }
 0x21b   : > { %4850 = vmatprep.mubr.msk.bf16.mxu1 %vm5135_vm2, %v6614_v44  ;;  %4916 = vmatprep.mubr.msk.bf16.mxu0 %vm5135_vm2, %v6614_v44 }
 0x21d   : > { %v1671_v63 = vpop.f32.mrb[152].mxu1  ;;  %v2010_v19 = vpop.f32.mrb[152].mxu0 }
 0x21e   : > { %v1728_v20 = vadd.f32 %v1671_v63, %v5893_v0  ;;  %v6193_v22 = vadd.f32 %v2010_v19, %v1726_v49  ;;  %v4600_v36 = vpop.f32.mrb[153].mxu1  ;;  %v4666_v35 = vpop.f32.mrb[153].mxu0  ;;  %v5100_v0 = vld [vmem:[%s5194_s23 + $0x40] sm:$0xff]  }
 0x21f   : > { %v1674_v37 = vpop.f32.mrb[154].mxu1  ;;  %v2013_v46 = vpop.f32.mrb[154].mxu0  ;;  %v3138_v49 = vrot.slane %v5100_v0, 1 }
 0x220   : > { %v1729_v40 = vadd.f32 %v1674_v37, %v5897_v9  ;;  %v6197_v59 = vadd.f32 %v2013_v46, %v1727_v33  ;;  %v4667_v15 = vpop.f32.mrb[155].mxu0  ;;  %v4601_v51 = vpop.f32.mrb[155].mxu1 }
 0x221   : > { %v3139_v33 = vsel %vm3124_vm5, %v3136_v43, %v3138_v49 }
 0x222   : > { %4851 = vmatmul.mubr.msk.bf16.gmra.mrb[4].mxu1 %vm455_vm3, %v5900_v11  ;;  %4917 = vmatmul.mubr.msk.bf16.gmra.mrb[4].mxu0 %vm455_vm3, %v3137_v3 }
 0x223   : > { %4854 = vmatprep.mubr.msk.bf16.mxu1 %vm5135_vm2, %v6614_v44  ;;  %4920 = vmatprep.mubr.msk.bf16.mxu0 %vm5135_vm2, %v6614_v44 }
 0x225   : > { %v1679_v47 = vpop.f32.mrb[156].mxu1  ;;  %v2018_v9 = vpop.f32.mrb[156].mxu0 }
 0x226   : > { %v1730_v4 = vadd.f32 %v1679_v47, %v5911_v1  ;;  %v6208_v57 = vadd.f32 %v2018_v9, %v1728_v20  ;;  %v4604_v30 = vpop.f32.mrb[157].mxu1  ;;  %v4670_v28 = vpop.f32.mrb[157].mxu0  ;;  %v5101_v1 = vld [vmem:[%s5194_s23 + $0x48] sm:$0xff]  }
 0x227   : > { %v1682_v11 = vpop.f32.mrb[158].mxu1  ;;  %v2021_v13 = vpop.f32.mrb[158].mxu0  ;;  %v3140_v19 = vrot.slane %v5101_v1, 1 }
 0x228   : > { %v1731_v7 = vadd.f32 %v1682_v11, %v5915_v18  ;;  %v6212_v8 = vadd.f32 %v2021_v13, %v1729_v40  ;;  %v4671_v48 = vpop.f32.mrb[159].mxu0  ;;  %v4605_v63 = vpop.f32.mrb[159].mxu1 }
 0x229   : > { %v3141_v3 = vsel %vm3124_vm5, %v3138_v49, %v3140_v19 }
 0x22a   : > { %4855 = vmatmul.mubr.msk.bf16.gmra.mrb[8].mxu1 %vm455_vm3, %v5918_v31  ;;  %4921 = vmatmul.mubr.msk.bf16.gmra.mrb[8].mxu0 %vm455_vm3, %v3139_v33 }
 0x22b   : > { %4858 = vmatprep.mubr.msk.bf16.mxu1 %vm5135_vm2, %v6614_v44  ;;  %4924 = vmatprep.mubr.msk.bf16.mxu0 %vm5135_vm2, %v6614_v44 }
 0x22d   : > { %v1687_v43 = vpop.f32.mrb[160].mxu1  ;;  %v2026_v18 = vpop.f32.mrb[160].mxu0 }
 0x22e   : > { %v1732_v20 = vadd.f32 %v1687_v43, %v5929_v24  ;;  %v6223_v36 = vadd.f32 %v2026_v18, %v1730_v4  ;;  %v4608_v35 = vpop.f32.mrb[161].mxu1  ;;  %v4674_v37 = vpop.f32.mrb[161].mxu0  ;;  %v5102_v24 = vld [vmem:[%s5194_s23 + $0x50] sm:$0xff]  }
 0x22f   : > { %v1690_v31 = vpop.f32.mrb[162].mxu1  ;;  %v2029_v46 = vpop.f32.mrb[162].mxu0  ;;  %v3142_v47 = vrot.slane %v5102_v24, 1 }
 0x230   : > { %v1733_v40 = vadd.f32 %v1690_v31, %v5933_v38  ;;  %v6227_v15 = vadd.f32 %v2029_v46, %v1731_v7  ;;  %v4675_v51 = vpop.f32.mrb[163].mxu0  ;;  %v4609_v0 = vpop.f32.mrb[163].mxu1 }
 0x231   : > { %v3143_v13 = vsel %vm3124_vm5, %v3140_v19, %v3142_v47  ;;  %v5104_v0 = vld [vmem:[%s5194_s23 + $0x60] sm:$0xff]  }
 0x232   : > { %4859 = vmatmul.mubr.msk.bf16.gmra.mrb[12].mxu1 %vm455_vm3, %v5936_v50  ;;  %4925 = vmatmul.mubr.msk.bf16.gmra.mrb[12].mxu0 %vm455_vm3, %v3141_v3  ;;  %v3146_v24 = vrot.slane %v5104_v0, 1 }
 0x233   : > { %4862 = vmatprep.mubr.msk.bf16.mxu1 %vm5135_vm2, %v6614_v44  ;;  %4928 = vmatprep.mubr.msk.bf16.mxu0 %vm5135_vm2, %v6614_v44 }
 0x235   : > { %v1695_v49 = vpop.f32.mrb[164].mxu1  ;;  %v2034_v38 = vpop.f32.mrb[164].mxu0 }
 0x236   : > { %v1734_v9 = vadd.f32 %v1695_v49, %v5946_v2  ;;  %v6238_v4 = vadd.f32 %v2034_v38, %v1732_v20  ;;  %v4612_v30 = vpop.f32.mrb[165].mxu1  ;;  %v4678_v28 = vpop.f32.mrb[165].mxu0  ;;  %v5103_v2 = vld [vmem:[%s5194_s23 + $0x58] sm:$0xff]  }
 0x237   : > { %v1698_v50 = vpop.f32.mrb[166].mxu1  ;;  %v2037_v11 = vpop.f32.mrb[166].mxu0  ;;  %v3144_v1 = vrot.slane %v5103_v2, 1 }
 0x238   : > { %v1735_v33 = vadd.f32 %v1698_v50, %v5950_v27  ;;  %v6242_v7 = vadd.f32 %v2037_v11, %v1733_v40  ;;  %v4679_v48 = vpop.f32.mrb[167].mxu0  ;;  %v4613_v63 = vpop.f32.mrb[167].mxu1 }
 0x239   : > { %v3145_v31 = vsel %vm3124_vm5, %v3142_v47, %v3144_v1  ;;  %v3147_v28 = vsel %vm3124_vm5, %v3144_v1, %v3146_v24 }
 0x23a   : > { %4863 = vmatmul.mubr.msk.bf16.gmra.mrb[16].mxu1 %vm455_vm3, %v5954_v5  ;;  %4929 = vmatmul.mubr.msk.bf16.gmra.mrb[16].mxu0 %vm455_vm3, %v3143_v13 }
 0x23b   : > { %4866 = vmatprep.mubr.msk.bf16.mxu1 %vm5135_vm2, %v6614_v44  ;;  %4932 = vmatprep.mubr.msk.bf16.mxu0 %vm5135_vm2, %v6614_v44 }
 0x23d   : > { %v2042_v19 = vpop.f32.mrb[168].mxu0  ;;  %v2312_v27 = vpop.f32.mrb[168].mxu1 }
 0x23e   : > { %v6252_v43 = vadd.f32 %v2042_v19, %v1734_v9  ;;  %v2447_v18 = vadd.f32 %v2312_v27, %v5965_v60  ;;  %v4682_v20 = vpop.f32.mrb[169].mxu0  ;;  %v4688_v35 = vpop.f32.mrb[169].mxu1 }
 0x23f   : > { %v2045_v5 = vpop.f32.mrb[170].mxu0  ;;  %v2315_v37 = vpop.f32.mrb[170].mxu1 }
 0x240   : > { %v6256_v46 = vadd.f32 %v2045_v5, %v1735_v33  ;;  %v2448_v3 = vadd.f32 %v2315_v37, %v5969_v16  ;;  %v4683_v40 = vpop.f32.mrb[171].mxu0  ;;  %v4689_v51 = vpop.f32.mrb[171].mxu1 }
 0x242   : > { %4867 = vmatmul.mubr.msk.bf16.gmra.mrb[20].mxu1 %vm455_vm3, %v5972_v25  ;;  %4933 = vmatmul.mubr.msk.bf16.gmra.mrb[20].mxu0 %vm455_vm3, %v3145_v31 }
 0x243   : > { %4870 = vmatprep.mubr.msk.bf16.mxu1 %vm5135_vm2, %v6614_v44  ;;  %4936 = vmatprep.mubr.msk.bf16.mxu0 %vm5135_vm2, %v6614_v44 }
 0x245   : > { %v2320_v60 = vpop.f32.mrb[172].mxu1  ;;  %v2550_v47 = vpop.f32.mrb[172].mxu0 }
 0x246   : > { %v2449_v16 = vadd.f32 %v2320_v60, %v5983_v29  ;;  %v6268_v49 = vadd.f32 %v2550_v47, %v2447_v18  ;;  %v4692_v38 = vpop.f32.mrb[173].mxu1  ;;  %v4758_v9 = vpop.f32.mrb[173].mxu0  ;;  %v5105_v29 = vld [vmem:[%s5194_s23 + $0x68] sm:$0xff]  }
 0x247   : > { %v2323_v25 = vpop.f32.mrb[174].mxu1  ;;  %v2553_v30 = vpop.f32.mrb[174].mxu0  ;;  %v3148_v48 = vrot.slane %v5105_v29, 1  ;;  %v6666_v38 = vld [vmem:[#allocation13_spill] sm:$0xff] }
 0x248   : > { %v2450_v50 = vadd.f32 %v2323_v25, %v5987_v12  ;;  %v6272_v11 = vadd.f32 %v2553_v30, %v2448_v3  ;;  %v4759_v13 = vpop.f32.mrb[175].mxu0  ;;  %v4693_v33 = vpop.f32.mrb[175].mxu1 }
 0x249   : > { %v3149_v20 = vsel %vm3124_vm5, %v3146_v24, %v3148_v48  ;;  %v5075_v33 = vld [vmem:[%s5194_s23 + $0x11c] sm:$0xff]  }
 0x24a   : > { %4871 = vmatmul.mubr.msk.bf16.gmra.mrb[24].mxu1 %vm455_vm3, %v5990_v6  ;;  %4937 = vmatmul.mubr.msk.bf16.gmra.mrb[24].mxu0 %vm455_vm3, %v3147_v28 }
 0x24b   : > { %4874 = vmatprep.mubr.msk.bf16.mxu1 %vm5135_vm2, %v6614_v44  ;;  %4940 = vmatprep.mubr.msk.bf16.mxu0 %vm5135_vm2, %v6614_v44 }
 0x24d   : > { %v2328_v63 = vpop.f32.mrb[176].mxu1  ;;  %v2558_v12 = vpop.f32.mrb[176].mxu0 }
 0x24e   : > { %v2451_v2 = vadd.f32 %v2328_v63, %v6001_v54  ;;  %v6283_v1 = vadd.f32 %v2558_v12, %v2449_v16  ;;  %v4696_v19 = vpop.f32.mrb[177].mxu1  ;;  %v4762_v27 = vpop.f32.mrb[177].mxu0  ;;  %v5106_v54 = vld [vmem:[%s5194_s23 + $0x70] sm:$0xff]  }
 0x24f   : > { %v2331_v6 = vpop.f32.mrb[178].mxu1  ;;  %v2561_v18 = vpop.f32.mrb[178].mxu0  ;;  %v3150_v3 = vrot.slane %v5106_v54, 1  ;;  %v6668_v27 = vld [vmem:[#allocation12_spill] sm:$0xff] }
 0x250   : > { %v2452_v35 = vadd.f32 %v2331_v6, %v6005_v53  ;;  %v6287_v5 = vadd.f32 %v2561_v18, %v2450_v50  ;;  %v4763_v37 = vpop.f32.mrb[179].mxu0  ;;  %v4697_v31 = vpop.f32.mrb[179].mxu1  ;;  %v6667_v50 = vld [vmem:[#allocation16_spill] sm:$0xff]  ;;  %v2836_v6 = vshrl.u32 %v6668_v27, 16 }
 0x251   : > { %v3151_v16 = vsel %vm3124_vm5, %v3148_v48, %v3150_v3  ;;  %v2840_v37 = vshll.u32 %v5075_v33, 16  ;;  %v6669_v31 = vld [vmem:[#allocation14_spill] sm:$0xff] }
 0x252   : > { %4875 = vmatmul.mubr.msk.bf16.gmra.mrb[28].mxu1 %vm455_vm3, %v6008_v58  ;;  %4941 = vmatmul.mubr.msk.bf16.gmra.mrb[28].mxu0 %vm455_vm3, %v3149_v20 }
 0x253   : > { %4878 = vmatprep.mubr.msk.bf16.mxu1 %vm5135_vm2, %v6614_v44  ;;  %4944 = vmatprep.mubr.msk.bf16.mxu0 %vm5135_vm2, %v6614_v44 }
 0x255   : > { %v2336_v40 = vpop.f32.mrb[180].mxu1  ;;  %v2566_v53 = vpop.f32.mrb[180].mxu0 }
 0x256   : > { %v2453_v51 = vadd.f32 %v2336_v40, %v6019_v21  ;;  %v6298_v0 = vadd.f32 %v2566_v53, %v2451_v2  ;;  %v4700_v24 = vpop.f32.mrb[181].mxu1  ;;  %v4766_v58 = vpop.f32.mrb[181].mxu0  ;;  %v5107_v21 = vld [vmem:[%s5194_s23 + $0x78] sm:$0xff]  }
 0x257   : > { %v2339_v60 = vpop.f32.mrb[182].mxu1  ;;  %v2569_v47 = vpop.f32.mrb[182].mxu0  ;;  %v3152_v13 = vrot.slane %v5107_v21, 1 }
 0x258   : > { %v2454_v9 = vadd.f32 %v2339_v60, %v6666_v38  ;;  %v6302_v25 = vadd.f32 %v2569_v47, %v2452_v35  ;;  %v4767_v30 = vpop.f32.mrb[183].mxu0  ;;  %v4701_v28 = vpop.f32.mrb[183].mxu1  ;;  %v5108_v60 = vld [vmem:[%s5194_s23 + $0x80] sm:$0xff]  }
 0x259   : > { %v3153_v35 = vsel %vm3124_vm5, %v3150_v3, %v3152_v13  ;;  %v3154_v47 = vrot.slane %v5108_v60, 1  ;;  %v2842_v3 = vrot.slane %v2840_v37, 1  ;;  %v6672_v30 = vld [vmem:[#allocation19_spill] sm:$0xff] }
 0x25a   : > { %4879 = vmatmul.mubr.msk.bf16.gmra.mrb[32].mxu1 %vm455_vm3, %v6667_v50  ;;  %4945 = vmatmul.mubr.msk.bf16.gmra.mrb[32].mxu0 %vm455_vm3, %v3151_v16  ;;  %v5076_v16 = vld [vmem:[%s5194_s23 + $0x124] ss:$0 sps:$4 sm:$0x11]  }
 0x25b   : > { %4882 = vmatprep.mubr.msk.bf16.mxu1 %vm5135_vm2, %v6614_v44  ;;  %4948 = vmatprep.mubr.msk.bf16.mxu0 %vm5135_vm2, %v6614_v44  ;;  %v3155_v27 = vsel %vm3124_vm5, %v3152_v13, %v3154_v47 }
 0x25d   : > { %v2344_v29 = vpop.f32.mrb[184].mxu1  ;;  %v2574_v48 = vpop.f32.mrb[184].mxu0 }
 0x25e   : > { %v2455_v63 = vadd.f32 %v2344_v29, %v6046_v61  ;;  %v6314_v12 = vadd.f32 %v2574_v48, %v2453_v51  ;;  %v4704_v2 = vpop.f32.mrb[185].mxu1  ;;  %v4770_v19 = vpop.f32.mrb[185].mxu0  ;;  %v6670_v61 = vld [vmem:[#allocation15_spill] sm:$0xff]  ;;  %v6671_v51 = vld [vmem:[#allocation2_spill] sm:$0xff] }
 0x25f   : > { %v2347_v18 = vpop.f32.mrb[186].mxu1  ;;  %v2577_v20 = vpop.f32.mrb[186].mxu0  ;;  %v2838_v58 = vor.u32 %v2836_v6, %v6671_v51  ;;  %v2844_v6 = vshrl.u32 %v5075_v33, 16 }
 0x260   : > { %v2456_v54 = vadd.f32 %v2347_v18, %v6669_v31  ;;  %v6319_v40 = vadd.f32 %v2577_v20, %v2454_v9  ;;  %v4771_v53 = vpop.f32.mrb[187].mxu0  ;;  %v4705_v24 = vpop.f32.mrb[187].mxu1  ;;  %v2848_v18 = vshll.u32 %v5076_v16, 16  ;;  %v6673_v20 = vld [vmem:[#allocation3_spill] sm:$0xff] }
 0x261   : > { %v2843_v19 = vsel %vm996_vm4, %v2838_v58, %v2842_v3 }
 0x262   : > { %4883 = vmatmul.mubr.msk.bf16.gmra.mrb[36].mxu1 %vm455_vm3, %v6670_v61  ;;  %4949 = vmatmul.mubr.msk.bf16.gmra.mrb[36].mxu0 %vm455_vm3, %v3153_v35  ;;  %v2850_v13 = vrot.slane %v2848_v18, 1 }
 0x263   : > { %4886 = vmatprep.mubr.msk.bf16.mxu1 %vm5135_vm2, %v6614_v44  ;;  %4952 = vmatprep.mubr.msk.bf16.mxu0 %vm5135_vm2, %v6614_v44 }
 0x265   : > { %v2352_v38 = vpop.f32.mrb[188].mxu1  ;;  %v2582_v9 = vpop.f32.mrb[188].mxu0 }
 0x266   : > { %v2457_v28 = vadd.f32 %v2352_v38, %v6672_v30  ;;  %v6332_v50 = vadd.f32 %v2582_v9, %v2455_v63  ;;  %v4708_v21 = vpop.f32.mrb[189].mxu1  ;;  %v4774_v29 = vpop.f32.mrb[189].mxu0  ;;  %v2846_v63 = vor.u32 %v2844_v6, %v2842_v3  ;;  %v3157_v9 = vsel %vm3124_vm5, %v3154_v47, %v3156_v10 }
 0x267   : > { %v2355_v48 = vpop.f32.mrb[190].mxu1  ;;  %v2585_v2 = vpop.f32.mrb[190].mxu0 }
 0x268   : > { %v2458_v35 = vadd.f32 %v2355_v48, %v6673_v20  ;;  %v6337_v37 = vadd.f32 %v2585_v2, %v2456_v54  ;;  %v4775_v31 = vpop.f32.mrb[191].mxu0  ;;  %v4709_v53 = vpop.f32.mrb[191].mxu1  ;;  %v2851_v38 = vsel %vm996_vm4, %v2846_v63, %v2850_v13 }
 0x26a   : > { %4887 = vmatmul.mubr.msk.bf16.gmra.mrb[40].mxu1 %vm455_vm3, %v2843_v19  ;;  %4953 = vmatmul.mubr.msk.bf16.gmra.mrb[40].mxu0 %vm455_vm3, %v3155_v27 }
 0x26b   : > { %4890 = vmatprep.mubr.msk.bf16.mxu1 %vm5135_vm2, %v6614_v44  ;;  %4956 = vmatprep.mubr.msk.bf16.mxu0 %vm5135_vm2, %v6614_v44 }
 0x26d   : > { %v2360_v33 = vpop.f32.mrb[192].mxu1  ;;  %v2590_v24 = vpop.f32.mrb[192].mxu0 }
 0x26e   : > { %v2459_v61 = vadd.f32 %v2360_v33, %v6091_v17  ;;  %v6346_v54 = vadd.f32 %v2590_v24, %v2457_v28  ;;  %v4712_v51 = vpop.f32.mrb[193].mxu1  ;;  %v4778_v58 = vpop.f32.mrb[193].mxu0 }
 0x26f   : > { %v2363_v60 = vpop.f32.mrb[194].mxu1  ;;  %v2593_v16 = vpop.f32.mrb[194].mxu0 }
 0x270   : > { %v2460_v30 = vadd.f32 %v2363_v60, %v6097_v56  ;;  %v6353_v3 = vadd.f32 %v2593_v16, %v2458_v35  ;;  %v4779_v21 = vpop.f32.mrb[195].mxu0  ;;  %v4713_v29 = vpop.f32.mrb[195].mxu1 }
 0x272   : > { %4891 = vmatmul.mubr.msk.bf16.gmra.mrb[44].mxu1 %vm455_vm3, %v2851_v38  ;;  %4957 = vmatmul.mubr.msk.bf16.gmra.mrb[44].mxu0 %vm455_vm3, %v3157_v9 }
 0x273   : > { %4960 = vmatprep.mubr.msk.bf16.mxu0 %vm5135_vm2, %v6614_v44 }
 0x275   : > { %v2368_v17 = vpop.f32.mrb[196].mxu1  ;;  %v2598_v28 = vpop.f32.mrb[196].mxu0 }
 0x276   : > { %v2461_v48 = vadd.f32 %v2368_v17, %v6109_v32  ;;  %v6360_v26 = vadd.f32 %v2598_v28, %v2459_v61  ;;  %v4716_v10 = vpop.f32.mrb[197].mxu1  ;;  %v4782_v47 = vpop.f32.mrb[197].mxu0 }
 0x277   : > { %v2371_v56 = vpop.f32.mrb[198].mxu1  ;;  %v2601_v2 = vpop.f32.mrb[198].mxu0 }
 0x278   : > { %v2462_v19 = vadd.f32 %v2371_v56, %v6115_v39  ;;  %v6363_v27 = vadd.f32 %v2601_v2, %v2460_v30  ;;  %v4783_v6 = vpop.f32.mrb[199].mxu0  ;;  %v4717_v18 = vpop.f32.mrb[199].mxu1 }
 0x27a   : > { %4961 = vmatmul.mubr.msk.bf16.gmra.mrb[48].mxu0 %vm455_vm3, %v6120_v45 }
 0x27d   : > { %v2376_v44 = vpop.f32.mrb[200].mxu1  ;;  %v2606_v20 = vpop.f32.mrb[200].mxu0 }
 0x27e   : > { %v2463_v35 = vadd.f32 %v2376_v44, %v6130_v62  ;;  %v6368_v32 = vadd.f32 %v2606_v20, %v2461_v48  ;;  %v4720_v31 = vpop.f32.mrb[201].mxu1  ;;  %v4786_v53 = vpop.f32.mrb[201].mxu0 }
 0x27f   : > { %v2379_v63 = vpop.f32.mrb[202].mxu1  ;;  %v2609_v13 = vpop.f32.mrb[202].mxu0 }
 0x280   : > { %v2464_v33 = vadd.f32 %v2379_v63, %v6136_v52  ;;  %v6371_v39 = vadd.f32 %v2609_v13, %v2462_v19  ;;  %v4787_v24 = vpop.f32.mrb[203].mxu0  ;;  %v4721_v61 = vpop.f32.mrb[203].mxu1 }
 0x285   : > { %v2384_v51 = vpop.f32.mrb[204].mxu1  ;;  %v2614_v58 = vpop.f32.mrb[204].mxu0 }
 0x286   : > { %v2465_v45 = vadd.f32 %v2384_v51, %v6146_v23  ;;  %v6374_v60 = vadd.f32 %v2614_v58, %v2463_v35  ;;  %v4724_v16 = vpop.f32.mrb[205].mxu1  ;;  %v4790_v62 = vpop.f32.mrb[205].mxu0 }
 0x287   : > { %v2387_v38 = vpop.f32.mrb[206].mxu1  ;;  %v2617_v9 = vpop.f32.mrb[206].mxu0 }
 0x288   : > { %v2466_v30 = vadd.f32 %v2387_v38, %v6152_v41  ;;  %v6377_v21 = vadd.f32 %v2617_v9, %v2464_v33  ;;  %v4791_v29 = vpop.f32.mrb[207].mxu0  ;;  %v4725_v52 = vpop.f32.mrb[207].mxu1 }
 0x28d   : > { %v2392_v17 = vpop.f32.mrb[208].mxu1  ;;  %v2622_v28 = vpop.f32.mrb[208].mxu0 }
 0x28e   : > { %v2467_v48 = vadd.f32 %v2392_v17, %v6162_v34  ;;  %v6380_v10 = vadd.f32 %v2622_v28, %v2465_v45  ;;  %v4728_v47 = vpop.f32.mrb[209].mxu1  ;;  %v4794_v23 = vpop.f32.mrb[209].mxu0 }
 0x28f   : > { %v2395_v56 = vpop.f32.mrb[210].mxu1  ;;  %v2625_v2 = vpop.f32.mrb[210].mxu0 }
 0x290   : > { %v2468_v19 = vadd.f32 %v2395_v56, %v6167_v14  ;;  %v6383_v6 = vadd.f32 %v2625_v2, %v2466_v30  ;;  %v4795_v18 = vpop.f32.mrb[211].mxu0  ;;  %v4729_v41 = vpop.f32.mrb[211].mxu1 }
 0x295   : > { %v2400_v44 = vpop.f32.mrb[212].mxu1  ;;  %v2630_v20 = vpop.f32.mrb[212].mxu0 }
 0x296   : > { %v2469_v35 = vadd.f32 %v2400_v44, %v6177_v42  ;;  %v6386_v31 = vadd.f32 %v2630_v20, %v2467_v48  ;;  %v4732_v53 = vpop.f32.mrb[213].mxu1  ;;  %v4798_v34 = vpop.f32.mrb[213].mxu0 }
 0x297   : > { %v2403_v63 = vpop.f32.mrb[214].mxu1  ;;  %v2633_v13 = vpop.f32.mrb[214].mxu0 }
 0x298   : > { %v2470_v33 = vadd.f32 %v2403_v63, %v6183_v55  ;;  %v6389_v24 = vadd.f32 %v2633_v13, %v2468_v19  ;;  %v4799_v61 = vpop.f32.mrb[215].mxu0  ;;  %v4733_v14 = vpop.f32.mrb[215].mxu1 }
 0x29d   : > { %v2408_v51 = vpop.f32.mrb[216].mxu1  ;;  %v2638_v58 = vpop.f32.mrb[216].mxu0 }
 0x29e   : > { %v2471_v45 = vadd.f32 %v2408_v51, %v6193_v22  ;;  %v6392_v16 = vadd.f32 %v2638_v58, %v2469_v35  ;;  %v4736_v62 = vpop.f32.mrb[217].mxu1  ;;  %v4802_v42 = vpop.f32.mrb[217].mxu0 }
 0x29f   : > { %v2411_v38 = vpop.f32.mrb[218].mxu1  ;;  %v2641_v9 = vpop.f32.mrb[218].mxu0 }
 0x2a0   : > { %v2472_v30 = vadd.f32 %v2411_v38, %v6197_v59  ;;  %v6395_v29 = vadd.f32 %v2641_v9, %v2470_v33  ;;  %v4803_v52 = vpop.f32.mrb[219].mxu0  ;;  %v4737_v55 = vpop.f32.mrb[219].mxu1 }
 0x2a5   : > { %v2416_v17 = vpop.f32.mrb[220].mxu1  ;;  %v2646_v28 = vpop.f32.mrb[220].mxu0 }
 0x2a6   : > { %v2473_v48 = vadd.f32 %v2416_v17, %v6208_v57  ;;  %v6398_v47 = vadd.f32 %v2646_v28, %v2471_v45  ;;  %v4740_v23 = vpop.f32.mrb[221].mxu1  ;;  %v4806_v22 = vpop.f32.mrb[221].mxu0 }
 0x2a7   : > { %v2419_v56 = vpop.f32.mrb[222].mxu1  ;;  %v2649_v2 = vpop.f32.mrb[222].mxu0 }
 0x2a8   : > { %v2474_v19 = vadd.f32 %v2419_v56, %v6212_v8  ;;  %v6401_v18 = vadd.f32 %v2649_v2, %v2472_v30  ;;  %v4807_v41 = vpop.f32.mrb[223].mxu0  ;;  %v4741_v59 = vpop.f32.mrb[223].mxu1 }
 0x2ad   : > { %v2424_v44 = vpop.f32.mrb[224].mxu1  ;;  %v2654_v20 = vpop.f32.mrb[224].mxu0 }
 0x2ae   : > { %v2475_v35 = vadd.f32 %v2424_v44, %v6223_v36  ;;  %v6404_v53 = vadd.f32 %v2654_v20, %v2473_v48  ;;  %v4744_v34 = vpop.f32.mrb[225].mxu1  ;;  %v4810_v57 = vpop.f32.mrb[225].mxu0 }
 0x2af   : > { %v2427_v63 = vpop.f32.mrb[226].mxu1  ;;  %v2657_v13 = vpop.f32.mrb[226].mxu0 }
 0x2b0   : > { %v2476_v33 = vadd.f32 %v2427_v63, %v6227_v15  ;;  %v6407_v61 = vadd.f32 %v2657_v13, %v2474_v19  ;;  %v4811_v14 = vpop.f32.mrb[227].mxu0  ;;  %v4745_v8 = vpop.f32.mrb[227].mxu1 }
 0x2b5   : > { %v2432_v51 = vpop.f32.mrb[228].mxu1  ;;  %v2662_v58 = vpop.f32.mrb[228].mxu0 }
 0x2b6   : > { %v2477_v45 = vadd.f32 %v2432_v51, %v6238_v4  ;;  %v6410_v62 = vadd.f32 %v2662_v58, %v2475_v35  ;;  %v4748_v42 = vpop.f32.mrb[229].mxu1  ;;  %v4814_v36 = vpop.f32.mrb[229].mxu0 }
 0x2b7   : > { %v2435_v38 = vpop.f32.mrb[230].mxu1  ;;  %v2665_v9 = vpop.f32.mrb[230].mxu0 }
 0x2b8   : > { %v2478_v30 = vadd.f32 %v2435_v38, %v6242_v7  ;;  %v6413_v52 = vadd.f32 %v2665_v9, %v2476_v33  ;;  %v4815_v55 = vpop.f32.mrb[231].mxu0  ;;  %v4749_v15 = vpop.f32.mrb[231].mxu1 }
 0x2bd   : > { %v2440_v17 = vpop.f32.mrb[232].mxu1  ;;  %v2670_v28 = vpop.f32.mrb[232].mxu0 }
 0x2be   : > { %v2479_v48 = vadd.f32 %v2440_v17, %v6252_v43  ;;  %v6416_v23 = vadd.f32 %v2670_v28, %v2477_v45  ;;  %v4752_v22 = vpop.f32.mrb[233].mxu1  ;;  %v4818_v4 = vpop.f32.mrb[233].mxu0  ;;  %v6430_v45 = vld [vmem:[%s6583_s2] ss:$0 sm:$0xff] }
 0x2bf   : > { %v2443_v56 = vpop.f32.mrb[234].mxu1  ;;  %v2673_v2 = vpop.f32.mrb[234].mxu0 }
 0x2c0   : > { %v2480_v19 = vadd.f32 %v2443_v56, %v6256_v46  ;;  %v6419_v41 = vadd.f32 %v2673_v2, %v2478_v30  ;;  %v4819_v59 = vpop.f32.mrb[235].mxu0  ;;  %v4753_v7 = vpop.f32.mrb[235].mxu1 }
 0x2c5   : > { %v2678_v44 = vpop.f32.mrb[236].mxu0  ;;  %v2951_v20 = vpop.f32.mrb[236].mxu1 }
 0x2c6   : > { %v6421_v35 = vadd.f32 %v2678_v44, %v2479_v48  ;;  %v3086_v34 = vadd.f32 %v2951_v20, %v6268_v49  ;;  %v4822_v43 = vpop.f32.mrb[237].mxu0  ;;  %v4828_v57 = vpop.f32.mrb[237].mxu1 }
 0x2c7   : > { %v2681_v63 = vpop.f32.mrb[238].mxu0  ;;  %v2954_v13 = vpop.f32.mrb[238].mxu1 }
 0x2c8   : > { %v6424_v33 = vadd.f32 %v2681_v63, %v2480_v19  ;;  %v3087_v14 = vadd.f32 %v2954_v13, %v6272_v11  ;;  %v4823_v46 = vpop.f32.mrb[239].mxu0  ;;  %v4829_v8 = vpop.f32.mrb[239].mxu1 }
 0x2cd   : > { %v2959_v51 = vpop.f32.mrb[240].mxu1  ;;  %v3248_v58 = vpop.f32.mrb[240].mxu0 }
 0x2ce   : > { %v3088_v49 = vadd.f32 %v2959_v51, %v6283_v1  ;;  %v3383_v42 = vadd.f32 %v3248_v58, %v3086_v34  ;;  %v4832_v36 = vpop.f32.mrb[241].mxu1  ;;  %v4898_v38 = vpop.f32.mrb[241].mxu0 }
 0x2cf   : > { %v2962_v9 = vpop.f32.mrb[242].mxu1  ;;  %v3251_v30 = vpop.f32.mrb[242].mxu0 }
 0x2d0   : > { %v3424_v55 = vadd.f32 %v6430_v45, %v3383_v42  ;;  %v3089_v11 = vadd.f32 %v2962_v9, %v6287_v5  ;;  %v3384_v15 = vadd.f32 %v3251_v30, %v3087_v14  ;;  %v4899_v17 = vpop.f32.mrb[243].mxu0  ;;  %v4833_v28 = vpop.f32.mrb[243].mxu1 }
 0x2d2   : > { %v3458_v48 = vmax.f32 %v3424_v55, 0.0  ;;  %v3425_v22 = vadd.f32 %v6430_v45, %v3384_v15 }
 0x2d4   : > { %v4138_v1 = vpack.c.bf16 %v3458_v48, %v3458_v48  ;;  %v3459_v4 = vmax.f32 %v3425_v22, 0.0 }
 0x2d5   : > { %v2967_v56 = vpop.f32.mrb[244].mxu1  ;;  %v3256_v2 = vpop.f32.mrb[244].mxu0 }
 0x2d6   : > { %3629 = vst.msk [vmem:[%s6440_s20] sm:$0xf] %vm3628_vm6, %v4138_v1  ;;  %v4139_v5 = vpack.c.bf16 %v3459_v4, %v3459_v4  ;;  %v3090_v19 = vadd.f32 %v2967_v56, %v6298_v0  ;;  %v3385_v59 = vadd.f32 %v3256_v2, %v3088_v49  ;;  %v4836_v7 = vpop.f32.mrb[245].mxu1  ;;  %v4902_v44 = vpop.f32.mrb[245].mxu0 }
 0x2d7   : > { %v2970_v20 = vpop.f32.mrb[246].mxu1  ;;  %v3259_v34 = vpop.f32.mrb[246].mxu0 }
 0x2d8   : > { %3630 = vst.msk [vmem:[%s6440_s20 + $0x4] sm:$0xf] %vm3628_vm6, %v4139_v5  ;;  %v3426_v43 = vadd.f32 %v6430_v45, %v3385_v59  ;;  %v3091_v57 = vadd.f32 %v2970_v20, %v6302_v25  ;;  %v3386_v63 = vadd.f32 %v3259_v34, %v3089_v11  ;;  %v4903_v13 = vpop.f32.mrb[247].mxu0  ;;  %v4837_v14 = vpop.f32.mrb[247].mxu1 }
 0x2da   : > { %v3460_v46 = vmax.f32 %v3426_v43, 0.0  ;;  %v3427_v8 = vadd.f32 %v6430_v45, %v3386_v63 }
 0x2dc   : > { %v4140_v0 = vpack.c.bf16 %v3460_v46, %v3460_v46  ;;  %v3461_v51 = vmax.f32 %v3427_v8, 0.0 }
 0x2dd   : > { %v2975_v58 = vpop.f32.mrb[248].mxu1  ;;  %v3264_v49 = vpop.f32.mrb[248].mxu0 }
 0x2de   : > { %3631 = vst.msk [vmem:[%s6440_s20 + $0x8] sm:$0xf] %vm3628_vm6, %v4140_v0  ;;  %v4141_v42 = vpack.c.bf16 %v3461_v51, %v3461_v51  ;;  %v3092_v36 = vadd.f32 %v2975_v58, %v6314_v12  ;;  %v3387_v38 = vadd.f32 %v3264_v49, %v3090_v19  ;;  %v4840_v9 = vpop.f32.mrb[249].mxu1  ;;  %v4906_v25 = vpop.f32.mrb[249].mxu0 }
 0x2df   : > { %v2978_v30 = vpop.f32.mrb[250].mxu1  ;;  %v3267_v55 = vpop.f32.mrb[250].mxu0 }
 0x2e0   : > { %3632 = vst.msk [vmem:[%s6440_s20 + $0xc] sm:$0xf] %vm3628_vm6, %v4141_v42  ;;  %v3428_v11 = vadd.f32 %v6430_v45, %v3387_v38  ;;  %v3093_v15 = vadd.f32 %v2978_v30, %v6319_v40  ;;  %v3388_v17 = vadd.f32 %v3267_v55, %v3091_v57  ;;  %v4907_v28 = vpop.f32.mrb[251].mxu0  ;;  %v4841_v48 = vpop.f32.mrb[251].mxu1 }
 0x2e2   : > { %v3462_v22 = vmax.f32 %v3428_v11, 0.0  ;;  %v3429_v1 = vadd.f32 %v6430_v45, %v3388_v17 }
 0x2e4   : > { %v4142_v12 = vpack.c.bf16 %v3462_v22, %v3462_v22  ;;  %v3463_v4 = vmax.f32 %v3429_v1, 0.0 }
 0x2e5   : > { %v2983_v56 = vpop.f32.mrb[252].mxu1  ;;  %v3272_v2 = vpop.f32.mrb[252].mxu0 }
 0x2e6   : > { %3633 = vst.msk [vmem:[%s6440_s20 + $0x10] sm:$0xf] %vm3628_vm6, %v4142_v12  ;;  %v4143_v5 = vpack.c.bf16 %v3463_v4, %v3463_v4  ;;  %v3094_v19 = vadd.f32 %v2983_v56, %v6332_v50  ;;  %v3389_v59 = vadd.f32 %v3272_v2, %v3092_v36  ;;  %v4844_v7 = vpop.f32.mrb[253].mxu1  ;;  %v4910_v40 = vpop.f32.mrb[253].mxu0 }
 0x2e7   : > { %v2986_v44 = vpop.f32.mrb[254].mxu1  ;;  %v3275_v20 = vpop.f32.mrb[254].mxu0 }
 0x2e8   : > { %3634 = vst.msk [vmem:[%s6440_s20 + $0x14] sm:$0xf] %vm3628_vm6, %v4143_v5  ;;  %v3430_v34 = vadd.f32 %v6430_v45, %v3389_v59  ;;  %v3095_v43 = vadd.f32 %v2986_v44, %v6337_v37  ;;  %v3390_v57 = vadd.f32 %v3275_v20, %v3093_v15  ;;  %v4911_v63 = vpop.f32.mrb[255].mxu0  ;;  %v4845_v13 = vpop.f32.mrb[255].mxu1 }
 0x2ea   : > { %v3464_v14 = vmax.f32 %v3430_v34, 0.0  ;;  %v3431_v46 = vadd.f32 %v6430_v45, %v3390_v57 }
 0x2ec   : > { %v4144_v50 = vpack.c.bf16 %v3464_v14, %v3464_v14  ;;  %v3465_v8 = vmax.f32 %v3431_v46, 0.0 }
 0x2ed   : > { %v2991_v0 = vpop.f32.mrb[0].mxu1  ;;  %v3280_v51 = vpop.f32.mrb[0].mxu0 }
 0x2ee   : > { %3635 = vst.msk [vmem:[%s6440_s20 + $0x18] sm:$0xf] %vm3628_vm6, %v4144_v50  ;;  %v4145_v58 = vpack.c.bf16 %v3465_v8, %v3465_v8  ;;  %v3096_v49 = vadd.f32 %v2991_v0, %v6346_v54  ;;  %v3391_v42 = vadd.f32 %v3280_v51, %v3094_v19  ;;  %v4848_v36 = vpop.f32.mrb[1].mxu1  ;;  %v4914_v37 = vpop.f32.mrb[1].mxu0 }
 0x2ef   : > { %v2994_v38 = vpop.f32.mrb[2].mxu1  ;;  %v3283_v9 = vpop.f32.mrb[2].mxu0 }
 0x2f0   : > { %3636 = vst.msk [vmem:[%s6440_s20 + $0x1c] sm:$0xf] %vm3628_vm6, %v4145_v58  ;;  %v3432_v25 = vadd.f32 %v6430_v45, %v3391_v42  ;;  %v3097_v30 = vadd.f32 %v2994_v38, %v6353_v3  ;;  %v3392_v55 = vadd.f32 %v3283_v9, %v3095_v43  ;;  %v4915_v11 = vpop.f32.mrb[3].mxu0  ;;  %v4849_v15 = vpop.f32.mrb[3].mxu1 }
 0x2f2   : > { %v3466_v17 = vmax.f32 %v3432_v25, 0.0  ;;  %v3433_v28 = vadd.f32 %v6430_v45, %v3392_v55 }
 0x2f4   : > { %v4146_v54 = vpack.c.bf16 %v3466_v17, %v3466_v17  ;;  %v3467_v48 = vmax.f32 %v3433_v28, 0.0 }
 0x2f5   : > { %v2999_v22 = vpop.f32.mrb[4].mxu1  ;;  %v3288_v1 = vpop.f32.mrb[4].mxu0 }
 0x2f6   : > { %3637 = vst.msk [vmem:[%s6440_s20 + $0x20] sm:$0xf] %vm3628_vm6, %v4146_v54  ;;  %v4147_v12 = vpack.c.bf16 %v3467_v48, %v3467_v48  ;;  %v3098_v4 = vadd.f32 %v2999_v22, %v6360_v26  ;;  %v3393_v56 = vadd.f32 %v3288_v1, %v3096_v49  ;;  %v4852_v2 = vpop.f32.mrb[5].mxu1  ;;  %v4918_v3 = vpop.f32.mrb[5].mxu0 }
 0x2f7   : > { %v3002_v5 = vpop.f32.mrb[6].mxu1  ;;  %v3291_v19 = vpop.f32.mrb[6].mxu0 }
 0x2f8   : > { %3638 = vst.msk [vmem:[%s6440_s20 + $0x24] sm:$0xf] %vm3628_vm6, %v4147_v12  ;;  %v3434_v59 = vadd.f32 %v6430_v45, %v3393_v56  ;;  %v3099_v7 = vadd.f32 %v3002_v5, %v6363_v27  ;;  %v3394_v40 = vadd.f32 %v3291_v19, %v3097_v30  ;;  %v4919_v44 = vpop.f32.mrb[7].mxu0  ;;  %v4853_v20 = vpop.f32.mrb[7].mxu1 }
 0x2fa   : > { %v3468_v34 = vmax.f32 %v3434_v59, 0.0  ;;  %v3435_v43 = vadd.f32 %v6430_v45, %v3394_v40 }
 0x2fc   : > { %v4148_v26 = vpack.c.bf16 %v3468_v34, %v3468_v34  ;;  %v3469_v57 = vmax.f32 %v3435_v43, 0.0 }
 0x2fd   : > { %v3007_v63 = vpop.f32.mrb[8].mxu1  ;;  %v3296_v13 = vpop.f32.mrb[8].mxu0 }
 0x2fe   : > { %3639 = vst.msk [vmem:[%s6440_s20 + $0x28] sm:$0xf] %vm3628_vm6, %v4148_v26  ;;  %v4149_v14 = vpack.c.bf16 %v3469_v57, %v3469_v57  ;;  %v3100_v46 = vadd.f32 %v3007_v63, %v6368_v32  ;;  %v3395_v50 = vadd.f32 %v3296_v13, %v3098_v4  ;;  %v4856_v8 = vpop.f32.mrb[9].mxu1  ;;  %v4922_v27 = vpop.f32.mrb[9].mxu0 }
 0x2ff   : > { %v3010_v0 = vpop.f32.mrb[10].mxu1  ;;  %v3299_v51 = vpop.f32.mrb[10].mxu0 }
 0x300   : > { %3640 = vst.msk [vmem:[%s6440_s20 + $0x2c] sm:$0xf] %vm3628_vm6, %v4149_v14  ;;  %v3436_v58 = vadd.f32 %v6430_v45, %v3395_v50  ;;  %v3101_v49 = vadd.f32 %v3010_v0, %v6371_v39  ;;  %v3396_v42 = vadd.f32 %v3299_v51, %v3099_v7  ;;  %v4923_v36 = vpop.f32.mrb[11].mxu0  ;;  %v4857_v37 = vpop.f32.mrb[11].mxu1 }
 0x302   : > { %v3470_v38 = vmax.f32 %v3436_v58, 0.0  ;;  %v3437_v9 = vadd.f32 %v6430_v45, %v3396_v42 }
 0x304   : > { %v4150_v32 = vpack.c.bf16 %v3470_v38, %v3470_v38  ;;  %v3471_v25 = vmax.f32 %v3437_v9, 0.0 }
 0x305   : > { %v3015_v30 = vpop.f32.mrb[12].mxu1  ;;  %v3304_v55 = vpop.f32.mrb[12].mxu0 }
 0x306   : > { %3641 = vst.msk [vmem:[%s6440_s20 + $0x30] sm:$0xf] %vm3628_vm6, %v4150_v32  ;;  %v4151_v11 = vpack.c.bf16 %v3471_v25, %v3471_v25  ;;  %v3102_v15 = vadd.f32 %v3015_v30, %v6374_v60  ;;  %v3397_v17 = vadd.f32 %v3304_v55, %v3100_v46  ;;  %v4860_v28 = vpop.f32.mrb[13].mxu1  ;;  %v4926_v39 = vpop.f32.mrb[13].mxu0 }
 0x307   : > { %v3018_v54 = vpop.f32.mrb[14].mxu1  ;;  %v3307_v48 = vpop.f32.mrb[14].mxu0 }
 0x308   : > { %3642 = vst.msk [vmem:[%s6440_s20 + $0x34] sm:$0xf] %vm3628_vm6, %v4151_v11  ;;  %v3438_v22 = vadd.f32 %v6430_v45, %v3397_v17  ;;  %v3103_v1 = vadd.f32 %v3018_v54, %v6377_v21  ;;  %v3398_v12 = vadd.f32 %v3307_v48, %v3101_v49  ;;  %v4927_v4 = vpop.f32.mrb[15].mxu0  ;;  %v4861_v56 = vpop.f32.mrb[15].mxu1 }
 0x30a   : > { %v3472_v2 = vmax.f32 %v3438_v22, 0.0  ;;  %v3439_v3 = vadd.f32 %v6430_v45, %v3398_v12 }
 0x30c   : > { %v4152_v60 = vpack.c.bf16 %v3472_v2, %v3472_v2  ;;  %v3473_v5 = vmax.f32 %v3439_v3, 0.0 }
 0x30d   : > { %v3023_v19 = vpop.f32.mrb[16].mxu1  ;;  %v3312_v59 = vpop.f32.mrb[16].mxu0 }
 0x30e   : > { %3643 = vst.msk [vmem:[%s6440_s20 + $0x38] sm:$0xf] %vm3628_vm6, %v4152_v60  ;;  %v4153_v7 = vpack.c.bf16 %v3473_v5, %v3473_v5  ;;  %v3104_v40 = vadd.f32 %v3023_v19, %v6380_v10  ;;  %v3399_v44 = vadd.f32 %v3312_v59, %v3102_v15  ;;  %v4864_v20 = vpop.f32.mrb[17].mxu1  ;;  %v4930_v21 = vpop.f32.mrb[17].mxu0 }
 0x30f   : > { %v3026_v34 = vpop.f32.mrb[18].mxu1  ;;  %v3315_v43 = vpop.f32.mrb[18].mxu0 }
 0x310   : > { %3644 = vst.msk [vmem:[%s6440_s20 + $0x3c] sm:$0xf] %vm3628_vm6, %v4153_v7  ;;  %v3440_v26 = vadd.f32 %v6430_v45, %v3399_v44  ;;  %v3105_v57 = vadd.f32 %v3026_v34, %v6383_v6  ;;  %v3400_v63 = vadd.f32 %v3315_v43, %v3103_v1  ;;  %v4931_v13 = vpop.f32.mrb[19].mxu0  ;;  %v4865_v14 = vpop.f32.mrb[19].mxu1 }
 0x312   : > { %v3474_v46 = vmax.f32 %v3440_v26, 0.0  ;;  %v3441_v50 = vadd.f32 %v6430_v45, %v3400_v63 }
 0x314   : > { %v4154_v10 = vpack.c.bf16 %v3474_v46, %v3474_v46  ;;  %v3475_v8 = vmax.f32 %v3441_v50, 0.0 }
 0x315   : > { %v3031_v27 = vpop.f32.mrb[20].mxu1  ;;  %v3320_v0 = vpop.f32.mrb[20].mxu0 }
 0x316   : > { %3645 = vst.msk [vmem:[%s6440_s20 + $0x40] sm:$0xf] %vm3628_vm6, %v4154_v10  ;;  %v4155_v51 = vpack.c.bf16 %v3475_v8, %v3475_v8  ;;  %v3106_v58 = vadd.f32 %v3031_v27, %v6386_v31  ;;  %v3401_v49 = vadd.f32 %v3320_v0, %v3104_v40  ;;  %v4868_v42 = vpop.f32.mrb[21].mxu1  ;;  %v4934_v6 = vpop.f32.mrb[21].mxu0 }
 0x317   : > { %v3034_v36 = vpop.f32.mrb[22].mxu1  ;;  %v3323_v37 = vpop.f32.mrb[22].mxu0 }
 0x318   : > { %3646 = vst.msk [vmem:[%s6440_s20 + $0x44] sm:$0xf] %vm3628_vm6, %v4155_v51  ;;  %v3442_v38 = vadd.f32 %v6430_v45, %v3401_v49  ;;  %v3107_v9 = vadd.f32 %v3034_v36, %v6389_v24  ;;  %v3402_v32 = vadd.f32 %v3323_v37, %v3105_v57  ;;  %v4935_v25 = vpop.f32.mrb[23].mxu0  ;;  %v4869_v30 = vpop.f32.mrb[23].mxu1 }
 0x31a   : > { %v3476_v55 = vmax.f32 %v3442_v38, 0.0  ;;  %v3443_v11 = vadd.f32 %v6430_v45, %v3402_v32 }
 0x31c   : > { %v4156_v31 = vpack.c.bf16 %v3476_v55, %v3476_v55  ;;  %v3477_v15 = vmax.f32 %v3443_v11, 0.0 }
 0x31d   : > { %v3039_v17 = vpop.f32.mrb[24].mxu1  ;;  %v3328_v28 = vpop.f32.mrb[24].mxu0 }
 0x31e   : > { %3647 = vst.msk [vmem:[%s6440_s20 + $0x48] sm:$0xf] %vm3628_vm6, %v4156_v31  ;;  %v4157_v39 = vpack.c.bf16 %v3477_v15, %v3477_v15  ;;  %v3108_v54 = vadd.f32 %v3039_v17, %v6392_v16  ;;  %v3403_v48 = vadd.f32 %v3328_v28, %v3106_v58  ;;  %v4872_v22 = vpop.f32.mrb[25].mxu1  ;;  %v4938_v24 = vpop.f32.mrb[25].mxu0 }
 0x31f   : > { %v3042_v1 = vpop.f32.mrb[26].mxu1  ;;  %v3331_v12 = vpop.f32.mrb[26].mxu0 }
 0x320   : > { %3648 = vst.msk [vmem:[%s6440_s20 + $0x4c] sm:$0xf] %vm3628_vm6, %v4157_v39  ;;  %v3444_v4 = vadd.f32 %v6430_v45, %v3403_v48  ;;  %v3109_v56 = vadd.f32 %v3042_v1, %v6395_v29  ;;  %v3404_v2 = vadd.f32 %v3331_v12, %v3107_v9  ;;  %v4939_v3 = vpop.f32.mrb[27].mxu0  ;;  %v4873_v60 = vpop.f32.mrb[27].mxu1 }
 0x322   : > { %v3478_v5 = vmax.f32 %v3444_v4, 0.0  ;;  %v3445_v19 = vadd.f32 %v6430_v45, %v3404_v2 }
 0x324   : > { %v4158_v16 = vpack.c.bf16 %v3478_v5, %v3478_v5  ;;  %v3479_v59 = vmax.f32 %v3445_v19, 0.0 }
 0x325   : > { %v3047_v7 = vpop.f32.mrb[28].mxu1  ;;  %v3336_v40 = vpop.f32.mrb[28].mxu0 }
 0x326   : > { %3649 = vst.msk [vmem:[%s6440_s20 + $0x50] sm:$0xf] %vm3628_vm6, %v4158_v16  ;;  %v4159_v44 = vpack.c.bf16 %v3479_v59, %v3479_v59  ;;  %v3110_v20 = vadd.f32 %v3047_v7, %v6398_v47  ;;  %v3405_v21 = vadd.f32 %v3336_v40, %v3108_v54  ;;  %v4876_v34 = vpop.f32.mrb[29].mxu1  ;;  %v4942_v29 = vpop.f32.mrb[29].mxu0 }
 0x327   : > { %v3050_v43 = vpop.f32.mrb[30].mxu1  ;;  %v3339_v26 = vpop.f32.mrb[30].mxu0 }
 0x328   : > { %3650 = vst.msk [vmem:[%s6440_s20 + $0x54] sm:$0xf] %vm3628_vm6, %v4159_v44  ;;  %v3446_v57 = vadd.f32 %v6430_v45, %v3405_v21  ;;  %v3111_v63 = vadd.f32 %v3050_v43, %v6401_v18  ;;  %v3406_v13 = vadd.f32 %v3339_v26, %v3109_v56  ;;  %v4943_v14 = vpop.f32.mrb[31].mxu0  ;;  %v4877_v46 = vpop.f32.mrb[31].mxu1 }
 0x32a   : > { %v3480_v50 = vmax.f32 %v3446_v57, 0.0  ;;  %v3447_v10 = vadd.f32 %v6430_v45, %v3406_v13 }
 0x32c   : > { %v4160_v47 = vpack.c.bf16 %v3480_v50, %v3480_v50  ;;  %v3481_v8 = vmax.f32 %v3447_v10, 0.0 }
 0x32d   : > { %v3055_v27 = vpop.f32.mrb[32].mxu1  ;;  %v3344_v0 = vpop.f32.mrb[32].mxu0 }
 0x32e   : > { %3651 = vst.msk [vmem:[%s6440_s20 + $0x58] sm:$0xf] %vm3628_vm6, %v4160_v47  ;;  %v4161_v51 = vpack.c.bf16 %v3481_v8, %v3481_v8  ;;  %v3112_v58 = vadd.f32 %v3055_v27, %v6404_v53  ;;  %v3407_v49 = vadd.f32 %v3344_v0, %v3110_v20  ;;  %v4880_v42 = vpop.f32.mrb[33].mxu1  ;;  %v4946_v18 = vpop.f32.mrb[33].mxu0 }
 0x32f   : > { %v3058_v6 = vpop.f32.mrb[34].mxu1  ;;  %v3347_v36 = vpop.f32.mrb[34].mxu0 }
 0x330   : > { %3652 = vst.msk [vmem:[%s6440_s20 + $0x5c] sm:$0xf] %vm3628_vm6, %v4161_v51  ;;  %v3448_v37 = vadd.f32 %v6430_v45, %v3407_v49  ;;  %v3113_v38 = vadd.f32 %v3058_v6, %v6407_v61  ;;  %v3408_v9 = vadd.f32 %v3347_v36, %v3111_v63  ;;  %v4947_v32 = vpop.f32.mrb[35].mxu0  ;;  %v4881_v25 = vpop.f32.mrb[35].mxu1 }
 0x332   : > { %v3482_v30 = vmax.f32 %v3448_v37, 0.0  ;;  %v3449_v55 = vadd.f32 %v6430_v45, %v3408_v9 }
 0x334   : > { %v4162_v53 = vpack.c.bf16 %v3482_v30, %v3482_v30  ;;  %v3483_v11 = vmax.f32 %v3449_v55, 0.0 }
 0x335   : > { %v3063_v31 = vpop.f32.mrb[36].mxu1  ;;  %v3352_v15 = vpop.f32.mrb[36].mxu0 }
 0x336   : > { %3653 = vst.msk [vmem:[%s6440_s20 + $0x60] sm:$0xf] %vm3628_vm6, %v4162_v53  ;;  %v4163_v17 = vpack.c.bf16 %v3483_v11, %v3483_v11  ;;  %v3114_v28 = vadd.f32 %v3063_v31, %v6410_v62  ;;  %v3409_v39 = vadd.f32 %v3352_v15, %v3112_v58  ;;  %v4884_v54 = vpop.f32.mrb[37].mxu1  ;;  %v4950_v61 = vpop.f32.mrb[37].mxu0 }
 0x337   : > { %v3066_v48 = vpop.f32.mrb[38].mxu1  ;;  %v3355_v22 = vpop.f32.mrb[38].mxu0 }
 0x338   : > { %3654 = vst.msk [vmem:[%s6440_s20 + $0x64] sm:$0xf] %vm3628_vm6, %v4163_v17  ;;  %v3450_v24 = vadd.f32 %v6430_v45, %v3409_v39  ;;  %v3115_v1 = vadd.f32 %v3066_v48, %v6413_v52  ;;  %v3410_v12 = vadd.f32 %v3355_v22, %v3113_v38  ;;  %v4951_v4 = vpop.f32.mrb[39].mxu0  ;;  %v4885_v56 = vpop.f32.mrb[39].mxu1 }
 0x33a   : > { %v3484_v2 = vmax.f32 %v3450_v24, 0.0  ;;  %v3451_v3 = vadd.f32 %v6430_v45, %v3410_v12 }
 0x33c   : > { %v4164_v62 = vpack.c.bf16 %v3484_v2, %v3484_v2  ;;  %v3485_v60 = vmax.f32 %v3451_v3, 0.0 }
 0x33d   : > { %v3071_v5 = vpop.f32.mrb[40].mxu1  ;;  %v3360_v19 = vpop.f32.mrb[40].mxu0 }
 0x33e   : > { %3655 = vst.msk [vmem:[%s6440_s20 + $0x68] sm:$0xf] %vm3628_vm6, %v4164_v62  ;;  %v4165_v16 = vpack.c.bf16 %v3485_v60, %v3485_v60  ;;  %v3116_v59 = vadd.f32 %v3071_v5, %v6416_v23  ;;  %v3411_v7 = vadd.f32 %v3360_v19, %v3114_v28  ;;  %v4888_v40 = vpop.f32.mrb[41].mxu1  ;;  %v4954_v52 = vpop.f32.mrb[41].mxu0 }
 0x33f   : > { %v3074_v44 = vpop.f32.mrb[42].mxu1  ;;  %v3363_v20 = vpop.f32.mrb[42].mxu0 }
 0x340   : > { %3656 = vst.msk [vmem:[%s6440_s20 + $0x6c] sm:$0xf] %vm3628_vm6, %v4165_v16  ;;  %v3452_v21 = vadd.f32 %v6430_v45, %v3411_v7  ;;  %v3117_v34 = vadd.f32 %v3074_v44, %v6419_v41  ;;  %v3412_v29 = vadd.f32 %v3363_v20, %v3115_v1  ;;  %v4955_v43 = vpop.f32.mrb[43].mxu0  ;;  %v4889_v26 = vpop.f32.mrb[43].mxu1 }
 0x342   : > { %v3486_v57 = vmax.f32 %v3452_v21, 0.0  ;;  %v3453_v63 = vadd.f32 %v6430_v45, %v3412_v29 }
 0x344   : > { %v4166_v23 = vpack.c.bf16 %v3486_v57, %v3486_v57  ;;  %v3487_v13 = vmax.f32 %v3453_v63, 0.0 }
 0x345   : > { %v3079_v14 = vpop.f32.mrb[44].mxu1  ;;  %v3368_v46 = vpop.f32.mrb[44].mxu0 }
 0x346   : > { %3657 = vst.msk [vmem:[%s6440_s20 + $0x70] sm:$0xf] %vm3628_vm6, %v4166_v23  ;;  %v4167_v50 = vpack.c.bf16 %v3487_v13, %v3487_v13  ;;  %v3118_v10 = vadd.f32 %v3079_v14, %v6421_v35  ;;  %v3413_v47 = vadd.f32 %v3368_v46, %v3116_v59  ;;  %v4892_v8 = vpop.f32.mrb[45].mxu1  ;;  %v4958_v41 = vpop.f32.mrb[45].mxu0 }
 0x347   : > { %v3082_v27 = vpop.f32.mrb[46].mxu1  ;;  %v3371_v0 = vpop.f32.mrb[46].mxu0 }
 0x348   : > { %3658 = vst.msk [vmem:[%s6440_s20 + $0x74] sm:$0xf] %vm3628_vm6, %v4167_v50  ;;  %v3454_v51 = vadd.f32 %v6430_v45, %v3413_v47  ;;  %v3119_v58 = vadd.f32 %v3082_v27, %v6424_v33  ;;  %v3414_v49 = vadd.f32 %v3371_v0, %v3117_v34  ;;  %v4959_v42 = vpop.f32.mrb[47].mxu0  ;;  %v4893_v18 = vpop.f32.mrb[47].mxu1 }
 0x34a   : > { %v3488_v6 = vmax.f32 %v3454_v51, 0.0  ;;  %v3455_v36 = vadd.f32 %v6430_v45, %v3414_v49 }
 0x34c   : > { %v4168_v35 = vpack.c.bf16 %v3488_v6, %v3488_v6  ;;  %v3489_v37 = vmax.f32 %v3455_v36, 0.0 }
 0x34d   : > { %v3376_v38 = vpop.f32.mrb[48].mxu0 }
 0x34e   : > { %3659 = vst.msk [vmem:[%s6440_s20 + $0x78] sm:$0xf] %vm3628_vm6, %v4168_v35  ;;  %v4169_v9 = vpack.c.bf16 %v3489_v37, %v3489_v37  ;;  %v3415_v32 = vadd.f32 %v3376_v38, %v3118_v10  ;;  %v4962_v25 = vpop.f32.mrb[49].mxu0 }
 0x34f   : > { %v3379_v30 = vpop.f32.mrb[50].mxu0 }
 0x350   : > { %3660 = vst.msk [vmem:[%s6440_s20 + $0x7c] sm:$0xf] %vm3628_vm6, %v4169_v9  ;;  %v3456_v33 = vadd.f32 %v6430_v45, %v3415_v32  ;;  %v3416_v55 = vadd.f32 %v3379_v30, %v3119_v58  ;;  %v4963_v53 = vpop.f32.mrb[51].mxu0 }
 0x352   : > { %v3490_v11 = vmax.f32 %v3456_v33, 0.0  ;;  %v3457_v31 = vadd.f32 %v6430_v45, %v3416_v55 }
 0x354   : > { %v4170_v15 = vpack.c.bf16 %v3490_v11, %v3490_v11  ;;  %v3491_v17 = vmax.f32 %v3457_v31, 0.0 }
 0x356   : > { %3661 = vst.msk [vmem:[%s6440_s20 + $0x80] sm:$0xf] %vm3628_vm6, %v4170_v15  ;;  %v4171_v28 = vpack.c.bf16 %v3491_v17, %v3491_v17 }
 0x358   : > { %3662 = vst.msk [vmem:[%s6440_s20 + $0x84] sm:$0xf] %vm3628_vm6, %v4171_v28 }
 0x359 PF: > { %s13_s14 = sadd.s32 1, %s5131_s14   ;;  %s6674_s12 = smov %s5127_s13 }
 0x35a   : > { %p10_p5 = scmp.ge.s32.totalorder %s13_s14, 4   ;;  %s6675_s13 = smov %s6677_s15 }
 0x35c   :  { %12 = sbr.rel (!%p10_p5) target bundleno = 2 (0x2), region = 65 }

// kernel: seg_no_ffm_fpn_forward.6
= control target key start
LH: loop header
LB: loop body
LE: loop exit
PB: predicated region body
PF: predicated region fallthrough
CT: control target
= control target key end

     0   :  { %s1458_s12 = smov 0   ;;  %s1460_s13 = smov 0   ;;  %s1840_s0 = inlined_call_operand.vmem [shape: bf16[2,4,1,88,32], index: 0, kind: input, shape index: {}]   ;;  %s1841_s1 = inlined_call_operand.vmem [shape: bf16[288,64], index: 1, kind: input, shape index: {}]   ;;  %s1842_s2 = inlined_call_operand.vmem [shape: f32[1,64], index: 2, kind: input, shape index: {}]   ;;  %s1843_s3 = inlined_call_operand.vmem [shape: bf16[2,72,64], index: 3, kind: output, shape index: {}]  }
   0x1   :  { %s1462_s14 = smov 0  }
   0x2 LB: > { %s25_s15 = sadd.s32 1, %s1427_s13  ;;  %p1140_p0 = scmp.ge.s32.totalorder %s1431_s14, 1  ;;  %s1431_s14 = sphi %s1462_s14, %s13_s14   ;;  %s1427_s13 = sphi %s1460_s13, %s1845_s13   ;;  %s1423_s12 = sphi %s1458_s12, %s1844_s12  }
   0x3   : > { %p27_p1 = scmp.ge.s32.totalorder %s25_s15, 2  ;;  %p157_p2 = scmp.lt.s32.totalorder %s1431_s14, 3 }
   0x5   : > { %s1847_s15 = smov (%p27_p1, %s25_s15), 0  ;;  %p158_p3 = pnand %p1140_p0, %p157_p2 }
   0x6   : > { %p189_p4 = scmp.lt.s32.totalorder (!%p158_p3), %s1423_s12, 1  ;;  %v1384_v0 = vld [vmem:[%s1841_s1 + $0x40] sm:$0xff] (!%p158_p3)   ;;  %v1386_v2 = vld [vmem:[%s1841_s1 + $0x48] sm:$0xff] (!%p158_p3)   ;;  %vm314_vm0 = vsmask.f32 (!%p158_p3), 7424  ;;  %v1388_v4 = vld [vmem:[%s1841_s1 + $0x50] sm:$0xff] (!%p158_p3)  }
   0x7   : > { %161 = sbr.rel (%p158_p3) target bundleno = 419 (0x1a3), region = 32  ;;  %v1385_v1 = vld [vmem:[%s1841_s1] sm:$0xff] (!%p158_p3)   ;;  %1250 = vmatprep.subr.bf16.mxu0 (!%p158_p3), %v1384_v0  ;;  %v1387_v3 = vld [vmem:[%s1841_s1 + $0x8] sm:$0xff] (!%p158_p3)   ;;  %v1389_v5 = vld [vmem:[%s1841_s1 + $0x10] sm:$0xff] (!%p158_p3)   ;;  %s1433_s5 = smov (!%p158_p3), 96   ;;  %vm1437_vm1 = vmmov (!%p158_p3), 0  }
   0x8   : > { %1251 = vmatpush3.bf16.msra.mxu0 (!%p158_p3), %v1385_v1  ;;  %s1434_s6 = smov (!%p158_p3), 32   ;;  %v1390_v54 = vld [vmem:[%s1841_s1 + $0x58] sm:$0xff] (!%p158_p3)   ;;  %s1435_s11 = smov (!%p158_p3), 64   ;;  %vm591_vm2 = vcmask (!%p158_p3), 1046528   ;;  %vm601_vm3 = vcmask (!%p158_p3), 261120   ;;  %vm613_vm4 = vcmask (!%p158_p3), 523264  }
   0x9   : > { %1252 = vmatprep.subr.bf16.mxu0 (!%p158_p3), %v1386_v2  ;;  %v1391_v59 = vld [vmem:[%s1841_s1 + $0x18] sm:$0xff] (!%p158_p3)   ;;  %vm624_vm5 = vcmask (!%p158_p3), 785408   ;;  %vm1036_vm6 = vcmask (!%p158_p3), 519168  }
   0xc   : > { %1253 = vmatpush3.bf16.msra.mxu0 (!%p158_p3), %v1387_v3 }
   0xd   : > { %1254 = vmatprep.subr.bf16.mxu0 (!%p158_p3), %v1388_v4 }
   0xe   : > { %s1849_s12 = smov (!%p189_p4, %s1423_s12), 1 }
   0xf   : > { %s1327_s22 = smul.u32 176, %s1849_s12 }
  0x10   : > { %1255 = vmatpush3.bf16.msra.mxu0 %v1389_v5 }
  0x11   : > { %s1497_s29 = scalar_lea.vmem %s1840_s0, %s1327_s22  ;;  %1256 = vmatprep.subr.bf16.mxu0 %v1390_v54 }
  0x12   : > { %v1358_v6 = vld [vmem:[%s1497_s29 + $0x58] sm:$0xff]   ;;  %v1143_v7 = vld [vmem:[%s1497_s29 + $0x2c] sm:$0xf]  ;;  %v1144_v8 = vld [vmem:[%s1497_s29 + $0x30] sm:$0xf] }
  0x13   : > { %v1145_v9 = vld [vmem:[%s1497_s29 + $0x34] sm:$0xf]  ;;  %387 = vrot.lane.b32.xlu1 %v1358_v6, %s1433_s5  ;;  %v426_v10 = vshll.u32 %v1358_v6, 16  ;;  %v1178_v11 = vcombine.low %v1143_v7, %v1144_v8  ;;  %v1146_v13 = vld [vmem:[%s1497_s29 + $0x38] sm:$0xf]  ;;  %v1512_v15 = vld [vmem:[%s1497_s29 + $0x60] sm:$0xff]  }
  0x14   : > { %v1200_v12 = vcombine.low %v1144_v8, %v1145_v9  ;;  %v1509_v14 = vld [vmem:[%s1497_s29 + $0x3c] sm:$0xf]  ;;  %v1179_v16 = vcombine.low %v1145_v9, %v1146_v13  ;;  %v424_v18 = vshrl.u32 %v1358_v6, 16  ;;  %v431_v22 = vshll.u32 %v1512_v15, 16  ;;  %v210_v23 = vld [vmem:[%s1497_s29 + $0x4] sm:$0xf]  ;;  %1257 = vmatpush3.bf16.msra.mxu0 %v1391_v59 }
  0x15   : > { %v1515_v17 = vcombine.low %v1146_v13, %v1509_v14  ;;  %301 = vrot.lane.b32.xlu0 %v1178_v11, %s1434_s6  ;;  %v428_v21 = vrot.slane %v426_v10, 1  ;;  %v1521_v24 = vld [vmem:[%s1497_s29 + $0x8] sm:$0xf]  ;;  %v212_v25 = vld [vmem:[%s1497_s29 + $0xc] sm:$0xf]  ;;  %v435_v51 = vshrl.u32 %v1512_v15, 16 }
  0x16   : > { %v540_v19 = vshrl.u32 %v1200_v12, 16  ;;  %v542_v20 = vshll.u32 %v1200_v12, 16  ;;  %v1526_v27 = vld [vmem:[%s1497_s29 + $0x68] sm:$0xff]   ;;  %v433_v30 = vrot.slane %v431_v22, 1  ;;  %v213_v31 = vld [vmem:[%s1497_s29 + $0x10] sm:$0xf]  ;;  %v1195_v32 = vcombine.low %v210_v23, %v1521_v24 }
  0x17   : > { %v547_v26 = vshll.u32 %v1515_v17, 16  ;;  %303 = vrot.lane.b32.xlu1 %v1179_v16, %s1434_s6  ;;  %v429_v29 = vor.u32 %v428_v21, %v424_v18  ;;  %v209_v33 = vld [vmem:[%s1497_s29] sm:$0xf]  ;;  %v1532_v34 = vcombine.low %v212_v25, %v213_v31  ;;  %v1537_v37 = vcombine.low %v1521_v24, %v212_v25  ;;  %v214_v42 = vld [vmem:[%s1497_s29 + $0x14] sm:$0xf] }
  0x18   : > { %v544_v28 = vrot.slane %v542_v20, 1  ;;  %v1534_v35 = vcombine.low %v209_v33, %v210_v23  ;;  %v482_v39 = vshrl.u32 %v1195_v32, 16  ;;  %v484_v40 = vshll.u32 %v1195_v32, 16  ;;  %v215_v43 = vld [vmem:[%s1497_s29 + $0x18] sm:$0xf]  ;;  %v1571_v4 = vld [vmem:[%s1497_s29 + $0x70] sm:$0xff]  }
  0x19   : > { %v549_v36 = vrot.slane %v547_v26, 1  ;;  %v434_v38 = vsel %vm314_vm0, %v429_v29, %v433_v30  ;;  %v489_v44 = vshll.u32 %v1532_v34, 16  ;;  %v323_v47 = vshll.u32 %v1537_v37, 16  ;;  %v1548_v48 = vld [vmem:[%s1497_s29 + $0x40] sm:$0xf] }
  0x1a   : > { %v545_v41 = vor.u32 %v544_v28, %v540_v19  ;;  %462 = vrot.lane.b32.xlu0 %v434_v38, %s1434_s6  ;;  %v316_v45 = vshrl.u32 %v1534_v35, 16  ;;  %v318_v46 = vshll.u32 %v1534_v35, 16  ;;  %v486_v49 = vrot.slane %v484_v40, 1  ;;  %v1554_v53 = vld [vmem:[%s1497_s29 + $0x44] sm:$0xf] }
  0x1b   : > { %v439_v52 = vshll.u32 %v1526_v27, 16  ;;  %v491_v55 = vrot.slane %v489_v44, 1  ;;  %v325_v57 = vrot.slane %v323_v47, 1  ;;  %v1559_v58 = vcombine.low %v213_v31, %v214_v42  ;;  %v216_v12 = vld [vmem:[%s1497_s29 + $0x1c] sm:$0xf]  ;;  %v1393_v33 = vld [vmem:[%s1841_s1 + $0x20] sm:$0xff]  }
  0x1c   : > { %v550_v50 = vsel %vm314_vm0, %v545_v41, %v549_v36  ;;  %v320_v56 = vrot.slane %v318_v46, 1  ;;  %v487_v60 = vor.u32 %v486_v49, %v482_v39  ;;  %v437_v61 = vor.u32 %v435_v51, %v433_v30  ;;  %v1584_v13 = vld [vmem:[%s1497_s29 + $0x20] sm:$0xf]  ;;  %v1595_v26 = vld [vmem:[%s1497_s29 + $0x48] sm:$0xf] }
  0x1d   : > { %v441_v62 = vrot.slane %v439_v52, 1  ;;  %v327_v63 = vshrl.u32 %v1537_v37, 16  ;;  %v331_v1 = vshll.u32 %v1559_v58, 16  ;;  %v1567_v2 = vcombine.low %v214_v42, %v215_v43  ;;  %v1600_v29 = vld [vmem:[%s1497_s29 + $0x4c] sm:$0xf]  ;;  %v1392_v30 = vld [vmem:[%s1841_s1 + $0x60] sm:$0xff]  }
  0x1e   : > { %578 = vrot.lane.b32.xlu0 %v550_v50, %s1433_s5  ;;  %v321_v0 = vor.u32 %v320_v56, %v316_v45  ;;  %v493_v3 = vshrl.u32 %v1532_v34, 16  ;;  %v551_v5 = vshrl.u32 %v1515_v17, 16  ;;  %v492_v6 = vsel %vm314_vm0, %v487_v60, %v491_v55  ;;  %v1613_v39 = vld [vmem:[%s1497_s29 + $0x78] sm:$0xf]  ;;  %v1170_v40 = vld [vmem:[%s1497_s29 + $0x7c] sm:$0x1]  ;;  %1258 = vmatprep.subr.bf16.mxu0 %v1392_v30 }
  0x1f   : > { %v442_v7 = vsel %vm314_vm0, %v437_v61, %v441_v62  ;;  %v1578_v8 = vcombine.low %v1548_v48, %v1554_v53  ;;  %520 = vrot.lane.b32.xlu1 %v492_v6, %s1435_s11  ;;  %v329_v9 = vor.u32 %v327_v63, %v325_v57  ;;  %v497_v11 = vshll.u32 %v1567_v2, 16  ;;  %1259 = vmatpush3.bf16.msra.mxu0 %v1393_v33  ;;  %v1394_v45 = vld [vmem:[%s1841_s1 + $0x68] sm:$0xff]   ;;  %v1396_v52 = vld [vmem:[%s1841_s1 + $0x70] sm:$0xff]   ;;  %v228_v60 = vld [vmem:[%s1497_s29 + $0x24] sm:$0x1] }
  0x20   : > { %v495_v10 = vor.u32 %v493_v3, %v491_v55  ;;  %v326_v16 = vsel %vm314_vm0, %v321_v0, %v325_v57  ;;  %v333_v17 = vrot.slane %v331_v1, 1  ;;  %v443_v19 = vshrl.u32 %v1526_v27, 16  ;;  %v1395_v49 = vld [vmem:[%s1841_s1 + $0x28] sm:$0xff]   ;;  %1260 = vmatprep.subr.bf16.mxu0 %v1394_v45  ;;  %v1398_v0 = vld [vmem:[%s1841_s1 + $0x30] sm:$0xff]   ;;  %v1400_v6 = vld [vmem:[%s1841_s1 + $0x38] sm:$0xff]  }
  0x21   : > { %v555_v18 = vshll.u32 %v1578_v8, 16  ;;  %v499_v20 = vrot.slane %v497_v11, 1  ;;  %v447_v21 = vshll.u32 %v1571_v4, 16  ;;  %v553_v22 = vor.u32 %v551_v5, %v549_v36  ;;  %v1648_v61 = vld [vmem:[%s1497_s29 + $0x24] sm:$0x1f]  }
  0x22   : > { %464 = vrot.lane.b32.xlu0 %v442_v7, %s1434_s6  ;;  %v1592_v25 = vcombine.low %v216_v12, %v1584_v13  ;;  %v334_v31 = vsel %vm314_vm0, %v329_v9, %v333_v17  ;;  %v1606_v32 = vcombine.low %v215_v43, %v216_v12  ;;  %v445_v36 = vor.u32 %v443_v19, %v441_v62  ;;  %v1669_v9 = vld [vmem:[%s1497_s29 + $0x50] sm:$0x1f]   ;;  %v1401_v11 = vld [vmem:[%s1841_s1 + $0x80] sm:$0xff]  }
  0x23   : > { %v557_v23 = vrot.slane %v555_v18, 1  ;;  %354 = vrot.lane.b32.xlu1 %v326_v16, %s1435_s11  ;;  %v500_v28 = vsel %vm314_vm0, %v495_v10, %v499_v20  ;;  %v449_v38 = vrot.slane %v447_v21, 1  ;;  %v501_v42 = vshrl.u32 %v1567_v2, 16  ;;  %1261 = vmatpush3.bf16.msra.mxu0 %v1395_v49  ;;  %v254_v21 = vld [vmem:[%s1497_s29 + $0x4] sm:$0xe] }
  0x24   : > { %v505_v44 = vshll.u32 %v1592_v25, 16  ;;  %v1621_v43 = vcombine.low %v1595_v26, %v1600_v29  ;;  %v335_v46 = vshrl.u32 %v1559_v58, 16  ;;  %v339_v47 = vshll.u32 %v1606_v32, 16  ;;  %1262 = vmatprep.subr.bf16.mxu0 %v1396_v52 }
  0x25   : > { %v558_v41 = vsel %vm314_vm0, %v553_v22, %v557_v23  ;;  %v450_v50 = vsel %vm314_vm0, %v445_v36, %v449_v38  ;;  %v559_v51 = vshrl.u32 %v1578_v8, 16  ;;  %v503_v54 = vor.u32 %v501_v42, %v499_v20  ;;  %v1403_v20 = vld [vmem:[%s1841_s1 + $0x88] sm:$0xff]  }
  0x26   : > { %522 = vrot.lane.b32.xlu0 %v500_v28, %s1435_s11  ;;  %v507_v55 = vrot.slane %v505_v44, 1  ;;  %v563_v56 = vshll.u32 %v1621_v43, 16  ;;  %v1640_v57 = vcombine.low %v1613_v39, %v1170_v40  ;;  %v1180_v59 = vcombine.low %v1509_v14, %v1548_v48  ;;  %v1399_v48 = vld [vmem:[%s1841_s1 + $0x78] sm:$0xff]  }
  0x27   : > { %356 = vrot.lane.b32.xlu1 %v334_v31, %s1435_s11  ;;  %v337_v62 = vor.u32 %v335_v46, %v333_v17  ;;  %v341_v63 = vrot.slane %v339_v47, 1  ;;  %v451_v1 = vshrl.u32 %v1571_v4, 16  ;;  %v561_v3 = vor.u32 %v559_v51, %v557_v23  ;;  %1263 = vmatpush3.bf16.msra.mxu0 %v1398_v0  ;;  %v1397_v0 = vld [vmem:[%s1497_s29 + $0x84] sm:$0xff]  }
  0x28   : > { %v565_v5 = vrot.slane %v563_v56, 1  ;;  %v455_v14 = vshll.u32 %v1640_v57, 16  ;;  %v1666_v8 = vcombine.low %v1584_v13, %v228_v60  ;;  %1264 = vmatprep.subr.bf16.mxu0 %v1399_v48  ;;  %v1436_v10 = vmov 0.0  }
  0x29   : > { %v342_v7 = vsel %vm314_vm0, %v337_v62, %v341_v63  ;;  %1303 = vmatprep.subr.bf16.mxu1 %v1436_v10  ;;  %v509_v12 = vshrl.u32 %v1592_v25, 16  ;;  %v513_v16 = vshll.u32 %v1648_v61, 16  ;;  %1307 = vmatprep.mubr.msk.bf16.mxu1 %vm1437_vm1, %v1436_v10  ;;  %v453_v18 = vor.u32 %v451_v1, %v449_v38 }
  0x2a   : > { %580 = vrot.lane.b32.xlu0 %v558_v41, %s1433_s5  ;;  %v566_v17 = vsel %vm314_vm0, %v561_v3, %v565_v5  ;;  %v457_v19 = vrot.slane %v455_v14, 1  ;;  %1304 = vmatpush3.bf16.msra.mxu1 %v1401_v11  ;;  %v343_v22 = vshrl.u32 %v1606_v32, 16  ;;  %v1205_v23 = vcombine.low %v254_v21, %v1521_v24 }
  0x2b   : > { %389 = vrot.lane.b32.xlu1 %v1512_v15, %s1433_s5  ;;  %v508_v15 = vsel %vm314_vm0, %v503_v54, %v507_v55  ;;  %1265 = vmatpush3.bf16.msra.mxu0 %v1400_v6  ;;  %v593_v28 = vrot.slane %v1532_v34, 1  ;;  %v347_v30 = vshll.u32 %v1666_v8, 16  ;;  %v567_v31 = vshrl.u32 %v1621_v43, 16 }
  0x2c   : > { %1305 = vmatprep.subr.bf16.mxu1 %v1436_v10  ;;  %v592_v33 = vrot.slane %v1205_v23, 1  ;;  %v458_v36 = vsel %vm314_vm0, %v453_v18, %v457_v19  ;;  %v511_v38 = vor.u32 %v509_v12, %v507_v55  ;;  %v515_v40 = vrot.slane %v513_v16, 1 }
  0x2d   : > { %v571_v41 = vshll.u32 %v1669_v9, 16  ;;  %v1181_v24 = vcombine.low %v1554_v53, %v1595_v26  ;;  %v345_v42 = vor.u32 %v343_v22, %v341_v63  ;;  %v349_v44 = vrot.slane %v347_v30, 1  ;;  %v1405_v30 = vld [vmem:[%s1497_s29 + $0x94] sm:$0xff]  }
  0x2e   : > { %466 = vrot.lane.b32.xlu0 %v450_v50, %s1434_s6  ;;  %1306 = vmatpush3.bf16.msra.mxu1 %v1403_v20  ;;  %v594_v34 = vsel %vm591_vm2, %v592_v33, %v593_v28  ;;  %v516_v43 = vsel %vm314_vm0, %v511_v38, %v515_v40  ;;  %v569_v45 = vor.u32 %v567_v31, %v565_v5  ;;  %v459_v26 = vshrl.u32 %v1640_v57, 16 }
  0x2f   : > { %305 = vrot.lane.b32.xlu1 %v1180_v59, %s1434_s6  ;;  %v573_v46 = vrot.slane %v571_v41, 1  ;;  %v350_v53 = vsel %vm314_vm0, %v345_v42, %v349_v44  ;;  %v517_v51 = vshrl.u32 %v1648_v61, 16  ;;  %v1182_v52 = vcombine.low %v1600_v29, %v1600_v29 }
  0x30   : > { %v461_v50 = vor.u32 %v459_v26, %v457_v19  ;;  %v351_v54 = vshrl.u32 %v1666_v8, 16  ;;  %v575_v56 = vshrl.u32 %v1669_v9, 16  ;;  %v1188_v29 = vcombine.low %v1613_v39, %v1613_v39  ;;  %v1402_v9 = vld [vmem:[%s1497_s29 + $0x8c] sm:$0xff]  }
  0x31   : > { %1308 = vmatmul.mubr.msk.bf16.vlgmr.msra.gmra.mrb[0].mxu1 %vm601_vm3, %v594_v34  ;;  %v574_v47 = vsel %vm314_vm0, %v569_v45, %v573_v46  ;;  %v519_v55 = vor.u32 %v517_v51, %v515_v40  ;;  %v1406_v45 = vld [vmem:[%s1497_s29 + $0x9c] sm:$0xff]  }
  0x32   : > { %524 = vrot.lane.b32.xlu0 %v508_v15, %s1435_s11  ;;  %1311 = vmatprep.mubr.msk.bf16.mxu1 %vm1437_vm1, %v1436_v10  ;;  %v353_v59 = vor.u32 %v351_v54, %v349_v44 }
  0x33   : > { %358 = vrot.lane.b32.xlu1 %v342_v7, %s1435_s11 }
  0x36   : > { %582 = vrot.lane.b32.xlu0 %v566_v17, %s1433_s5 }
  0x37   : > { %391 = vrot.lane.b32.xlu1 %v1526_v27, %s1433_s5  ;;  %v595_v27 = vrot.slane %v1567_v2, 1  ;;  %v597_v2 = vrot.slane %v1592_v25, 1  ;;  %v577_v25 = vor.u32 %v575_v56, %v573_v46 }
  0x39   : > { %v596_v49 = vsel %vm591_vm2, %v593_v28, %v595_v27  ;;  %v598_v57 = vsel %vm591_vm2, %v595_v27, %v597_v2 }
  0x3a   : > { %468 = vrot.lane.b32.xlu0 %v458_v36, %s1434_s6  ;;  %1312 = vmatmul.mubr.msk.bf16.gmra.mrb[4].mxu1 %vm601_vm3, %v596_v49 }
  0x3b   : > { %307 = vrot.lane.b32.xlu1 %v1181_v24, %s1434_s6  ;;  %1315 = vmatprep.mubr.msk.bf16.mxu1 %vm1437_vm1, %v1436_v10 }
  0x3e   : > { %526 = vrot.lane.b32.xlu0 %v516_v43, %s1435_s11 }
  0x3f   : > { %360 = vrot.lane.b32.xlu1 %v350_v53, %s1435_s11 }
  0x42   : > { %584 = vrot.lane.b32.xlu0 %v574_v47, %s1433_s5  ;;  %1316 = vmatmul.mubr.msk.bf16.gmra.mrb[8].mxu1 %vm601_vm3, %v598_v57 }
  0x43   : > { %393 = vrot.lane.b32.xlu1 %v1571_v4, %s1433_s5  ;;  %1319 = vmatprep.mubr.msk.bf16.mxu1 %vm1437_vm1, %v1436_v10  ;;  %v599_v4 = vrot.slane %v1648_v61, 1 }
  0x45   : > { %v600_v60 = vsel %vm591_vm2, %v597_v2, %v599_v4 }
  0x46   : > { %470 = vrot.lane.b32.xlu0 %v461_v50, %s1434_s6 }
  0x47   : > { %309 = vrot.lane.b32.xlu1 %v1182_v52, %s1434_s6  ;;  %s1328_s6 = smul.u32 36, %s1849_s12 }
  0x49   : > { %s1801_s18 = scalar_lea.vmem %s1843_s3, %s1328_s6 }
  0x4a   : > { %528 = vrot.lane.b32.xlu0 %v519_v55, %s1435_s11  ;;  %1320 = vmatmul.mubr.msk.bf16.gmra.mrb[12].mxu1 %vm601_vm3, %v600_v60  ;;  %v1177_v55 = vcombine.low %v1584_v13, %v1584_v13 }
  0x4b   : > { %362 = vrot.lane.b32.xlu1 %v353_v59, %s1435_s11  ;;  %1323 = vmatprep.mubr.msk.bf16.mxu1 %vm1437_vm1, %v1436_v10 }
  0x4e   : > { %586 = vrot.lane.b32.xlu0 %v577_v25, %s1433_s5 }
  0x4f   : > { %395 = vrot.lane.b32.xlu1 %v1188_v29, %s1433_s5 }
  0x52   : > { %1324 = vmatmul.mubr.msk.bf16.gmra.mrb[16].mxu1 %vm601_vm3, %v599_v4 }
  0x85   : > { %v388_v62 = vpop.permute.xlu1 %387 }
  0x87   : > { %v302_v61 = vpop.permute.xlu0 %301 }
  0x88   : > { %v603_v6 = vsel %vm601_vm3, %v1534_v35, %v302_v61 }
  0x89   : > { %v304_v63 = vpop.permute.xlu1 %303 }
  0x8a   : > { %v605_v35 = vsel %vm601_vm3, %v1537_v37, %v304_v63 }
  0x8c   : > { %v463_v1 = vpop.permute.xlu0 %462 }
  0x8d   : > { %v642_v39 = vsel %vm601_vm3, %v1397_v0, %v463_v1 }
  0x90   : > { %v579_v15 = vpop.permute.xlu0 %578 }
  0x91   : > { %v521_v3 = vpop.permute.xlu1 %520 }
  0x92   : > { %v656_v5 = vsel %vm613_vm4, %v642_v39, %v521_v3 }
  0x93   : > { %v666_v14 = vsel %vm624_vm5, %v656_v5, %v579_v15 }
  0x94   : > { %v465_v48 = vpop.permute.xlu0 %464  ;;  %878 = vmatprep.mubr.bf16.mxu0 %v666_v14 }
  0x95   : > { %v355_v7 = vpop.permute.xlu1 %354  ;;  %v645_v16 = vsel %vm601_vm3, %v1402_v9, %v465_v48 }
  0x96   : > { %v615_v8 = vsel %vm613_vm4, %v603_v6, %v355_v7 }
  0x97   : > { %v626_v10 = vsel %vm624_vm5, %v615_v8, %v388_v62 }
  0x98   : > { %v523_v11 = vpop.permute.xlu0 %522  ;;  %879 = vmatmul.mubr.bf16.vlgmr.msra.gmra.mrb[0].mxu0 %v626_v10 }
  0x99   : > { %v357_v12 = vpop.permute.xlu1 %356  ;;  %v658_v17 = vsel %vm613_vm4, %v645_v16, %v523_v11 }
  0x9a   : > { %v617_v21 = vsel %vm613_vm4, %v605_v35, %v357_v12 }
  0x9c   : > { %v581_v18 = vpop.permute.xlu0 %580 }
  0x9d   : > { %v669_v19 = vsel %vm624_vm5, %v658_v17, %v581_v18  ;;  %v390_v20 = vpop.permute.xlu1 %389 }
  0x9e   : > { %886 = vmatprep.mubr.bf16.mxu0 %v669_v19  ;;  %v629_v22 = vsel %vm624_vm5, %v617_v21, %v390_v20  ;;  %v1793_v21 = vld [vmem:[%s1842_s2] ss:$0 sm:$0xff] }
  0xa0   : > { %v467_v23 = vpop.permute.xlu0 %466  ;;  %887 = vmatmul.mubr.bf16.gmra.mrb[4].mxu0 %v629_v22 }
  0xa1   : > { %v306_v28 = vpop.permute.xlu1 %305  ;;  %v648_v38 = vsel %vm601_vm3, %v1405_v30, %v467_v23 }
  0xa2   : > { %v607_v36 = vsel %vm601_vm3, %v1559_v58, %v306_v28 }
  0xa4   : > { %v525_v31 = vpop.permute.xlu0 %524 }
  0xa5   : > { %v359_v33 = vpop.permute.xlu1 %358  ;;  %v660_v37 = vsel %vm613_vm4, %v648_v38, %v525_v31 }
  0xa6   : > { %v619_v24 = vsel %vm613_vm4, %v607_v36, %v359_v33 }
  0xa8   : > { %v583_v40 = vpop.permute.xlu0 %582 }
  0xa9   : > { %v672_v41 = vsel %vm624_vm5, %v660_v37, %v583_v40  ;;  %v392_v34 = vpop.permute.xlu1 %391 }
  0xaa   : > { %894 = vmatprep.mubr.bf16.mxu0 %v672_v41  ;;  %v632_v42 = vsel %vm624_vm5, %v619_v24, %v392_v34 }
  0xab   : > { %895 = vmatmul.mubr.bf16.gmra.mrb[8].mxu0 %v632_v42 }
  0xac   : > { %v469_v44 = vpop.permute.xlu0 %468 }
  0xad   : > { %v308_v43 = vpop.permute.xlu1 %307  ;;  %v651_v53 = vsel %vm601_vm3, %v1406_v45, %v469_v44 }
  0xae   : > { %v609_v27 = vsel %vm601_vm3, %v1606_v32, %v308_v43  ;;  %v1408_v32 = vld [vmem:[%s1497_s29 + $0xa4] ss:$0 sps:$4 sm:$0xff]  }
  0xb0   : > { %v527_v46 = vpop.permute.xlu0 %526 }
  0xb1   : > { %v361_v58 = vpop.permute.xlu1 %360  ;;  %v662_v26 = vsel %vm613_vm4, %v651_v53, %v527_v46 }
  0xb2   : > { %v621_v50 = vsel %vm613_vm4, %v609_v27, %v361_v58 }
  0xb4   : > { %v585_v47 = vpop.permute.xlu0 %584 }
  0xb5   : > { %v675_v49 = vsel %vm624_vm5, %v662_v26, %v585_v47  ;;  %v394_v51 = vpop.permute.xlu1 %393 }
  0xb6   : > { %902 = vmatprep.mubr.bf16.mxu0 %v675_v49  ;;  %v635_v2 = vsel %vm624_vm5, %v621_v50, %v394_v51 }
  0xb7   : > { %903 = vmatmul.mubr.bf16.gmra.mrb[12].mxu0 %v635_v2 }
  0xb8   : > { %v471_v52 = vpop.permute.xlu0 %470 }
  0xb9   : > { %v310_v54 = vpop.permute.xlu1 %309  ;;  %v654_v25 = vsel %vm601_vm3, %v1408_v32, %v471_v52 }
  0xba   : > { %v612_v59 = vsel %vm601_vm3, %v1177_v55, %v310_v54 }
  0xbc   : > { %v529_v56 = vpop.permute.xlu0 %528 }
  0xbd   : > { %v363_v57 = vpop.permute.xlu1 %362  ;;  %v664_v4 = vsel %vm613_vm4, %v654_v25, %v529_v56 }
  0xbe   : > { %v623_v62 = vsel %vm613_vm4, %v612_v59, %v363_v57 }
  0xc0   : > { %v587_v29 = vpop.permute.xlu0 %586 }
  0xc1   : > { %v678_v60 = vsel %vm624_vm5, %v664_v4, %v587_v29  ;;  %v396_v61 = vpop.permute.xlu1 %395 }
  0xc2   : > { %910 = vmatprep.mubr.bf16.mxu0 %v678_v60  ;;  %v638_v63 = vsel %vm624_vm5, %v623_v62, %v396_v61 }
  0xc3   : > { %911 = vmatmul.mubr.bf16.gmra.mrb[16].mxu0 %v638_v63 }
 0x104   : > { %v952_v13 = vpop.f32.mrb[0].mxu1 }
 0x105   : > { %v1309_v0 = vpop.f32.mrb[1].mxu1 }
 0x106   : > { %v955_v1 = vpop.f32.mrb[2].mxu1 }
 0x107   : > { %v1310_v39 = vpop.f32.mrb[3].mxu1 }
 0x10d   : > { %v960_v15 = vpop.f32.mrb[4].mxu1 }
 0x10e   : > { %v1313_v3 = vpop.f32.mrb[5].mxu1 }
 0x10f   : > { %v963_v5 = vpop.f32.mrb[6].mxu1 }
 0x110   : > { %v1314_v14 = vpop.f32.mrb[7].mxu1 }
 0x115   : > { %v968_v48 = vpop.f32.mrb[8].mxu1 }
 0x116   : > { %v1317_v6 = vpop.f32.mrb[9].mxu1 }
 0x117   : > { %v971_v7 = vpop.f32.mrb[10].mxu1 }
 0x118   : > { %v1318_v8 = vpop.f32.mrb[11].mxu1 }
 0x11d   : > { %v1784_v9 = vpop.f32.mrb[12].mxu1 }
 0x11e   : > { %v1321_v10 = vpop.f32.mrb[13].mxu1 }
 0x11f   : > { %v1786_v11 = vpop.f32.mrb[14].mxu1 }
 0x120   : > { %v1322_v12 = vpop.f32.mrb[15].mxu1 }
 0x125   : > { %v1788_v16 = vpop.f32.mrb[16].mxu1 }
 0x126   : > { %v1325_v17 = vpop.f32.mrb[17].mxu1 }
 0x127   : > { %v987_v18 = vpop.f32.mrb[18].mxu1 }
 0x128   : > { %v1326_v19 = vpop.f32.mrb[19].mxu1 }
 0x16b   : > { %v1266_v35 = vpop.f32.mrb[0].mxu0 }
 0x16c   : > { %v1267_v20 = vpop.f32.mrb[1].mxu0 }
 0x16d   : > { %v1268_v22 = vadd.f32 %v1267_v20, %v1266_v35  ;;  %v1269_v23 = vpop.f32.mrb[2].mxu0 }
 0x16e   : > { %v1270_v28 = vpop.f32.mrb[3].mxu0 }
 0x16f   : > { %v1271_v30 = vadd.f32 %v1270_v28, %v1269_v23  ;;  %v881_v31 = vadd.f32 %v1268_v22, %v1793_v21 }
 0x171   : > { %v953_v33 = vadd.f32 %v952_v13, %v881_v31  ;;  %v884_v36 = vadd.f32 %v1271_v30, %v1793_v21 }
 0x173   : > { %v990_v38 = vmax.f32 %v953_v33, 0.0  ;;  %v956_v37 = vadd.f32 %v955_v1, %v884_v36  ;;  %v1272_v40 = vpop.f32.mrb[4].mxu0 }
 0x174   : > { %v1273_v41 = vpop.f32.mrb[5].mxu0 }
 0x175   : > { %v1241_v24 = vpack.c.bf16 %v990_v38, %v990_v38  ;;  %v991_v34 = vmax.f32 %v956_v37, 0.0  ;;  %v1274_v42 = vadd.f32 %v1273_v41, %v1272_v40  ;;  %v1275_v44 = vpop.f32.mrb[6].mxu0 }
 0x176   : > { %v1276_v43 = vpop.f32.mrb[7].mxu0 }
 0x177   : > { %1037 = vst.msk [vmem:[%s1801_s18] sm:$0xf] %vm1036_vm6, %v1241_v24  ;;  %v1242_v45 = vpack.c.bf16 %v991_v34, %v991_v34  ;;  %v1277_v46 = vadd.f32 %v1276_v43, %v1275_v44  ;;  %v889_v58 = vadd.f32 %v1274_v42, %v1793_v21 }
 0x179   : > { %1038 = vst.msk [vmem:[%s1801_s18 + $0x4] sm:$0xf] %vm1036_vm6, %v1242_v45  ;;  %v961_v27 = vadd.f32 %v960_v15, %v889_v58  ;;  %v892_v53 = vadd.f32 %v1277_v46, %v1793_v21 }
 0x17b   : > { %v992_v26 = vmax.f32 %v961_v27, 0.0  ;;  %v964_v47 = vadd.f32 %v963_v5, %v892_v53 }
 0x17d   : > { %v1243_v49 = vpack.c.bf16 %v992_v26, %v992_v26  ;;  %v993_v50 = vmax.f32 %v964_v47, 0.0 }
 0x17e   : > { %v1278_v51 = vpop.f32.mrb[8].mxu0 }
 0x17f   : > { %1039 = vst.msk [vmem:[%s1801_s18 + $0x8] sm:$0xf] %vm1036_vm6, %v1243_v49  ;;  %v1244_v2 = vpack.c.bf16 %v993_v50, %v993_v50  ;;  %v1279_v52 = vpop.f32.mrb[9].mxu0 }
 0x180   : > { %v1280_v54 = vadd.f32 %v1279_v52, %v1278_v51  ;;  %v1281_v55 = vpop.f32.mrb[10].mxu0 }
 0x181   : > { %1040 = vst.msk [vmem:[%s1801_s18 + $0xc] sm:$0xf] %vm1036_vm6, %v1244_v2  ;;  %v1282_v32 = vpop.f32.mrb[11].mxu0 }
 0x182   : > { %v1283_v56 = vadd.f32 %v1282_v32, %v1281_v55  ;;  %v897_v57 = vadd.f32 %v1280_v54, %v1793_v21 }
 0x184   : > { %v969_v59 = vadd.f32 %v968_v48, %v897_v57  ;;  %v900_v25 = vadd.f32 %v1283_v56, %v1793_v21 }
 0x186   : > { %v994_v4 = vmax.f32 %v969_v59, 0.0  ;;  %v972_v29 = vadd.f32 %v971_v7, %v900_v25 }
 0x188   : > { %v1245_v60 = vpack.c.bf16 %v994_v4, %v994_v4  ;;  %v995_v62 = vmax.f32 %v972_v29, 0.0 }
 0x18a   : > { %1041 = vst.msk [vmem:[%s1801_s18 + $0x10] sm:$0xf] %vm1036_vm6, %v1245_v60  ;;  %v1246_v61 = vpack.c.bf16 %v995_v62, %v995_v62  ;;  %v1284_v63 = vpop.f32.mrb[12].mxu0 }
 0x18b   : > { %v1285_v13 = vpop.f32.mrb[13].mxu0 }
 0x18c   : > { %1042 = vst.msk [vmem:[%s1801_s18 + $0x14] sm:$0xf] %vm1036_vm6, %v1246_v61  ;;  %v1286_v0 = vadd.f32 %v1285_v13, %v1284_v63  ;;  %v1287_v1 = vpop.f32.mrb[14].mxu0 }
 0x18d   : > { %v1288_v39 = vpop.f32.mrb[15].mxu0 }
 0x18e   : > { %v1289_v15 = vadd.f32 %v1288_v39, %v1287_v1  ;;  %v905_v3 = vadd.f32 %v1286_v0, %v1793_v21 }
 0x190   : > { %v977_v5 = vadd.f32 %v1784_v9, %v905_v3  ;;  %v908_v14 = vadd.f32 %v1289_v15, %v1793_v21 }
 0x192   : > { %v996_v48 = vmax.f32 %v977_v5, 0.0  ;;  %v980_v6 = vadd.f32 %v1786_v11, %v908_v14 }
 0x194   : > { %v1247_v7 = vpack.c.bf16 %v996_v48, %v996_v48  ;;  %v997_v8 = vmax.f32 %v980_v6, 0.0 }
 0x196   : > { %1043 = vst.msk [vmem:[%s1801_s18 + $0x18] sm:$0xf] %vm1036_vm6, %v1247_v7  ;;  %v1248_v10 = vpack.c.bf16 %v997_v8, %v997_v8  ;;  %v1290_v12 = vpop.f32.mrb[16].mxu0 }
 0x197   : > { %v1291_v17 = vpop.f32.mrb[17].mxu0 }
 0x198   : > { %1044 = vst.msk [vmem:[%s1801_s18 + $0x1c] sm:$0xf] %vm1036_vm6, %v1248_v10  ;;  %v1292_v18 = vadd.f32 %v1291_v17, %v1290_v12  ;;  %v1293_v19 = vpop.f32.mrb[18].mxu0 }
 0x199   : > { %v1294_v35 = vpop.f32.mrb[19].mxu0 }
 0x19a   : > { %v913_v9 = vadd.f32 %v1292_v18, %v1793_v21 }
 0x19c   : > { %v985_v20 = vadd.f32 %v1788_v16, %v913_v9 }
 0x19e   : > { %v998_v22 = vmax.f32 %v985_v20, 0.0 }
 0x1a0   : > { %v1249_v23 = vpack.c.bf16 %v998_v22, %v998_v22 }
 0x1a2   : > { %1045 = vst.msk [vmem:[%s1801_s18 + $0x20] sm:$0xf] %vm1036_vm6, %v1249_v23 }
 0x1a3 PF: > { %s13_s14 = sadd.s32 1, %s1431_s14   ;;  %s1844_s12 = smov %s1427_s13 }
 0x1a4   : > { %p10_p5 = scmp.ge.s32.totalorder %s13_s14, 4   ;;  %s1845_s13 = smov %s1847_s15 }
 0x1a6   :  { %12 = sbr.rel (!%p10_p5) target bundleno = 2 (0x2), region = 65 }

// kernel: seg_no_ffm_fpn_forward.7
= control target key start
LH: loop header
LB: loop body
LE: loop exit
PB: predicated region body
PF: predicated region fallthrough
CT: control target
= control target key end

     0   :  { %s1479_s12 = smov 0   ;;  %s1481_s13 = smov 0   ;;  %s1794_s0 = inlined_call_operand.vmem [shape: bf16[2,4,1,32,64], index: 0, kind: input, shape index: {}]   ;;  %s1795_s1 = inlined_call_operand.vmem [shape: bf16[576,256], index: 1, kind: input, shape index: {}]   ;;  %s1796_s2 = inlined_call_operand.vmem [shape: f32[1,256], index: 2, kind: input, shape index: {}]   ;;  %s1797_s3 = inlined_call_operand.vmem [shape: bf16[2,20,256], index: 3, kind: output, shape index: {}]  }
   0x1   :  { %s1483_s14 = smov 0  }
   0x2 LB: > { %s25_s15 = sadd.s32 1, %s1451_s13  ;;  %p1142_p0 = scmp.ge.s32.totalorder %s1455_s14, 1  ;;  %s1455_s14 = sphi %s1483_s14, %s13_s14   ;;  %s1451_s13 = sphi %s1481_s13, %s1799_s13   ;;  %s1447_s12 = sphi %s1479_s12, %s1798_s12  }
   0x3   : > { %p27_p1 = scmp.ge.s32.totalorder %s25_s15, 2  ;;  %p157_p2 = scmp.lt.s32.totalorder %s1455_s14, 3 }
   0x5   : > { %s1801_s15 = smov (%p27_p1, %s25_s15), 0  ;;  %p158_p3 = pnand %p1142_p0, %p157_p2 }
   0x6   : > { %p190_p4 = scmp.lt.s32.totalorder (!%p158_p3), %s1447_s12, 1  ;;  %v1317_v0 = vld [vmem:[%s1795_s1 + $0x4] ss:$8 sps:$4 sm:$0xff] (!%p158_p3)   ;;  %v1321_v2 = vld [vmem:[%s1795_s1] ss:$8 sps:$4 sm:$0xff] (!%p158_p3)   ;;  %s1457_s7 = smov (!%p158_p3), 64  }
   0x7   : > { %161 = sbr.rel (%p158_p3) target bundleno = 385 (0x181), region = 32  ;;  %v1319_v1 = vld [vmem:[%s1795_s1 + $0x104] ss:$8 sps:$4 sm:$0xff] (!%p158_p3)   ;;  %860 = vmatprep.subr.bf16.mxu1 (!%p158_p3), %v1317_v0  ;;  %v1322_v3 = vld [vmem:[%s1795_s1 + $0x100] ss:$8 sps:$4 sm:$0xff] (!%p158_p3)   ;;  %vm378_vm2 = vcmask (!%p158_p3), 523264  }
   0x8   : > { %911 = vmatprep.subr.bf16.mxu0 (!%p158_p3), %v1319_v1  ;;  %v1323_v4 = vld [vmem:[%s1795_s1 + $0x14] ss:$8 sps:$4 sm:$0xff] (!%p158_p3)   ;;  %861 = vmatpush1.bf16.msra.mxu1 (!%p158_p3), %v1321_v2  ;;  %v1327_v6 = vld [vmem:[%s1795_s1 + $0x10] ss:$8 sps:$4 sm:$0xff] (!%p158_p3)   ;;  %vm324_vm0 = vsmask.f32 (!%p158_p3), 5376 }
   0x9   : > { %912 = vmatpush1.bf16.msra.mxu0 (!%p158_p3), %v1322_v3  ;;  %v1325_v5 = vld [vmem:[%s1795_s1 + $0x114] ss:$8 sps:$4 sm:$0xff] (!%p158_p3)   ;;  %862 = vmatprep.subr.bf16.mxu1 (!%p158_p3), %v1323_v4  ;;  %v1328_v22 = vld [vmem:[%s1795_s1 + $0x110] ss:$8 sps:$4 sm:$0xff] (!%p158_p3)   ;;  %vm258_vm1 = vsmask.f32 (!%p158_p3), 7424 }
   0xa   : > { %913 = vmatprep.subr.bf16.mxu0 (!%p158_p3), %v1325_v5  ;;  %v1329_v32 = vld [vmem:[%s1795_s1 + $0x24] ss:$8 sps:$4 sm:$0xff] (!%p158_p3)   ;;  %v1333_v35 = vld [vmem:[%s1795_s1 + $0x20] ss:$8 sps:$4 sm:$0xff] (!%p158_p3)   ;;  %v1335_v38 = vld [vmem:[%s1795_s1 + $0x34] ss:$8 sps:$4 sm:$0xff] (!%p158_p3)  }
   0xb   : > { %v1331_v34 = vld [vmem:[%s1795_s1 + $0x124] ss:$8 sps:$4 sm:$0xff] (!%p158_p3)   ;;  %v1334_v37 = vld [vmem:[%s1795_s1 + $0x120] ss:$8 sps:$4 sm:$0xff] (!%p158_p3)   ;;  %v1337_v41 = vld [vmem:[%s1795_s1 + $0x134] ss:$8 sps:$4 sm:$0xff] (!%p158_p3)  }
   0xc   : > { %863 = vmatpush1.bf16.msra.mxu1 (!%p158_p3), %v1327_v6  ;;  %v1339_v43 = vld [vmem:[%s1795_s1 + $0x30] ss:$8 sps:$4 sm:$0xff] (!%p158_p3)   ;;  %v1341_v45 = vld [vmem:[%s1795_s1 + $0x44] ss:$8 sps:$4 sm:$0xff] (!%p158_p3)   ;;  %v1345_v47 = vld [vmem:[%s1795_s1 + $0x40] ss:$8 sps:$4 sm:$0xff] (!%p158_p3)  }
   0xd   : > { %914 = vmatpush1.bf16.msra.mxu0 (!%p158_p3), %v1328_v22  ;;  %864 = vmatprep.subr.bf16.mxu1 (!%p158_p3), %v1329_v32  ;;  %v1340_v44 = vld [vmem:[%s1795_s1 + $0x130] ss:$8 sps:$4 sm:$0xff] (!%p158_p3)   ;;  %v1343_v46 = vld [vmem:[%s1795_s1 + $0x144] ss:$8 sps:$4 sm:$0xff] (!%p158_p3)   ;;  %v1346_v48 = vld [vmem:[%s1795_s1 + $0x140] ss:$8 sps:$4 sm:$0xff] (!%p158_p3)  }
   0xe   : > { %s1803_s12 = smov (!%p190_p4, %s1447_s12), 1  ;;  %915 = vmatprep.subr.bf16.mxu0 %v1331_v34  ;;  %v1347_v49 = vld [vmem:[%s1795_s1 + $0x54] ss:$8 sps:$4 sm:$0xff]   ;;  %v1351_v52 = vld [vmem:[%s1795_s1 + $0x50] ss:$8 sps:$4 sm:$0xff]   ;;  %vm374_vm3 = vcmask 1044480  }
   0xf   : > { %s1253_s24 = sshll.u32 %s1803_s12, 6  ;;  %v1349_v50 = vld [vmem:[%s1795_s1 + $0x154] ss:$8 sps:$4 sm:$0xff]   ;;  %v1352_v53 = vld [vmem:[%s1795_s1 + $0x150] ss:$8 sps:$4 sm:$0xff]   ;;  %s1283_s9 = smul.u32 24, %s1803_s12 }
  0x10   : > { %s1518_s29 = scalar_lea.vmem %s1794_s0, %s1253_s24  ;;  %865 = vmatpush1.bf16.msra.mxu1 %v1333_v35  ;;  %v1353_v54 = vld [vmem:[%s1795_s1 + $0x64] ss:$8 sps:$4 sm:$0xff]   ;;  %v1357_v56 = vld [vmem:[%s1795_s1 + $0x60] ss:$8 sps:$4 sm:$0xff]   ;;  %v1359_v58 = vld [vmem:[%s1795_s1 + $0x74] ss:$8 sps:$4 sm:$0xff]  }
  0x11   : > { %v1310_v7 = vld [vmem:[%s1518_s29 + $0x20] sm:$0xff]   ;;  %v1147_v8 = vld [vmem:[%s1518_s29 + $0x14] sm:$0xf]  ;;  %v1156_v9 = vld [vmem:[%s1518_s29 + $0x10] sm:$0xc]  ;;  %916 = vmatpush1.bf16.msra.mxu0 %v1334_v37  ;;  %866 = vmatprep.subr.bf16.mxu1 %v1335_v38  ;;  %s208_s12 = scalar_lea.vmem %s1797_s3, %s1283_s9 }
  0x12   : > { %282 = vrot.lane.b32.xlu1 %v1310_v7, %s1457_s7  ;;  %v300_v10 = vshll.u32 %v1310_v7, 16  ;;  %v1171_v11 = vcombine.low %v1156_v9, %v1147_v8  ;;  %v1312_v12 = vld [vmem:[%s1518_s29 + $0x18] sm:$0x1f]   ;;  %v298_v13 = vshrl.u32 %v1310_v7, 16  ;;  %v1146_v14 = vld [vmem:[%s1518_s29 + $0x10] sm:$0xf]  ;;  %917 = vmatprep.subr.bf16.mxu0 %v1337_v41 }
  0x13   : > { %v359_v17 = vshrl.u32 %v1312_v12, 16  ;;  %v362_v18 = vshll.u32 %v1312_v12, 16  ;;  %v1161_v19 = vcombine.low %v1146_v14, %v1147_v8  ;;  %v1314_v20 = vld [vmem:[%s1518_s29 + $0x28] ss:$0 sps:$4 sm:$0x77]  }
  0x14   : > { %v351_v15 = vshrl.u32 %v1171_v11, 16  ;;  %v354_v16 = vshll.u32 %v1171_v11, 16  ;;  %v302_v21 = vrot.slane %v300_v10, 1  ;;  %v305_v27 = vshll.u32 %v1314_v20, 16  ;;  %867 = vmatpush1.bf16.msra.mxu1 %v1339_v43  ;;  %v1355_v55 = vld [vmem:[%s1795_s1 + $0x164] ss:$8 sps:$4 sm:$0xff]  }
  0x15   : > { %v361_v25 = vrot.slane %v359_v17, 2  ;;  %v364_v26 = vrot.slane %v362_v18, 3  ;;  %v309_v28 = vshrl.u32 %v1314_v20, 16  ;;  %v1316_v40 = vld [vmem:[%s1518_s29 + $0x18] ss:$0 sps:$4 sm:$0x33]   ;;  %918 = vmatpush1.bf16.msra.mxu0 %v1340_v44  ;;  %868 = vmatprep.subr.bf16.mxu1 %v1341_v45 }
  0x16   : > { %v353_v23 = vrot.slane %v351_v15, 2  ;;  %v356_v24 = vrot.slane %v354_v16, 3  ;;  %251 = vrot.lane.b32.xlu1 %v1161_v19, %s1457_s7  ;;  %v303_v31 = vor.u32 %v302_v21, %v298_v13  ;;  %v307_v33 = vrot.slane %v305_v27, 1  ;;  %v1315_v51 = vld [vmem:[%s1518_s29 + $0x28] ss:$0 sps:$4 sm:$0x33]   ;;  %919 = vmatprep.subr.bf16.mxu0 %v1343_v46 }
  0x17   : > { %v365_v30 = vor.u32 %v364_v26, %v361_v25  ;;  %v1358_v57 = vld [vmem:[%s1795_s1 + $0x160] ss:$8 sps:$4 sm:$0xff]   ;;  %v1361_v59 = vld [vmem:[%s1795_s1 + $0x174] ss:$8 sps:$4 sm:$0xff]   ;;  %v1363_v60 = vld [vmem:[%s1795_s1 + $0x70] ss:$8 sps:$4 sm:$0xff]  }
  0x18   : > { %v357_v29 = vor.u32 %v356_v24, %v353_v23  ;;  %v311_v39 = vor.u32 %v309_v28, %v307_v33  ;;  %v308_v42 = vsel %vm258_vm1, %v303_v31, %v307_v33  ;;  %869 = vmatpush1.bf16.msra.mxu1 %v1345_v47  ;;  %v1364_v61 = vld [vmem:[%s1795_s1 + $0x170] ss:$8 sps:$4 sm:$0xff]   ;;  %v1365_v62 = vld [vmem:[%s1795_s1 + $0x84] ss:$8 sps:$4 sm:$0xff]   ;;  %v1369_v0 = vld [vmem:[%s1795_s1 + $0x80] ss:$8 sps:$4 sm:$0xff]  }
  0x19   : > { %920 = vmatpush1.bf16.msra.mxu0 %v1346_v48  ;;  %870 = vmatprep.subr.bf16.mxu1 %v1347_v49  ;;  %v1367_v63 = vld [vmem:[%s1795_s1 + $0x184] ss:$8 sps:$4 sm:$0xff]   ;;  %v1370_v1 = vld [vmem:[%s1795_s1 + $0x180] ss:$8 sps:$4 sm:$0xff]   ;;  %v1371_v2 = vld [vmem:[%s1795_s1 + $0x94] ss:$8 sps:$4 sm:$0xff]  }
  0x1a   : > { %v366_v36 = vsel %vm324_vm0, %v357_v29, %v365_v30  ;;  %314 = vrot.lane.b32.xlu1 %v311_v39, %s1457_s7  ;;  %921 = vmatprep.subr.bf16.mxu0 %v1349_v50  ;;  %v1373_v3 = vld [vmem:[%s1795_s1 + $0x194] ss:$8 sps:$4 sm:$0xff]   ;;  %v1375_v4 = vld [vmem:[%s1795_s1 + $0x90] ss:$8 sps:$4 sm:$0xff]   ;;  %v1377_v6 = vld [vmem:[%s1795_s1 + $0xa4] ss:$8 sps:$4 sm:$0xff]  }
  0x1b   : > { %367 = vrot.lane.b32.xlu0 %v366_v36, %s1457_s7  ;;  %v1376_v5 = vld [vmem:[%s1795_s1 + $0x190] ss:$8 sps:$4 sm:$0xff]   ;;  %v1379_v7 = vld [vmem:[%s1795_s1 + $0x1a4] ss:$8 sps:$4 sm:$0xff]   ;;  %v1381_v8 = vld [vmem:[%s1795_s1 + $0xa0] ss:$8 sps:$4 sm:$0xff]  }
  0x1c   : > { %871 = vmatpush1.bf16.msra.mxu1 %v1351_v52  ;;  %v1382_v9 = vld [vmem:[%s1795_s1 + $0x1a0] ss:$8 sps:$4 sm:$0xff]   ;;  %v1383_v10 = vld [vmem:[%s1795_s1 + $0xb4] ss:$8 sps:$4 sm:$0xff]   ;;  %v1387_v12 = vld [vmem:[%s1795_s1 + $0xb0] ss:$8 sps:$4 sm:$0xff]  }
  0x1d   : > { %922 = vmatpush1.bf16.msra.mxu0 %v1352_v53  ;;  %872 = vmatprep.subr.bf16.mxu1 %v1353_v54  ;;  %v1385_v11 = vld [vmem:[%s1795_s1 + $0x1b4] ss:$8 sps:$4 sm:$0xff]   ;;  %v1388_v13 = vld [vmem:[%s1795_s1 + $0x1b0] ss:$8 sps:$4 sm:$0xff]   ;;  %v1389_v14 = vld [vmem:[%s1795_s1 + $0xc4] ss:$8 sps:$4 sm:$0xff]  }
  0x1e   : > { %253 = vrot.lane.b32.xlu1 %v1316_v40, %s1457_s7  ;;  %923 = vmatprep.subr.bf16.mxu0 %v1355_v55  ;;  %v1391_v15 = vld [vmem:[%s1795_s1 + $0x1c4] ss:$8 sps:$4 sm:$0xff]   ;;  %v228_v17 = vld [vmem:[%s1518_s29] sm:$0xc]  ;;  %v1395_v25 = vld [vmem:[%s1795_s1 + $0xd4] ss:$8 sps:$4 sm:$0xff]  }
  0x1f   : > { %312 = vrot.lane.b32.xlu0 %v308_v42, %s1457_s7  ;;  %v1674_v16 = vld [vmem:[%s1518_s29 + $0x4] sm:$0xf]  ;;  %v1393_v18 = vld [vmem:[%s1795_s1 + $0xc0] ss:$8 sps:$4 sm:$0xff]   ;;  %v1399_v40 = vld [vmem:[%s1795_s1 + $0xd0] ss:$8 sps:$4 sm:$0xff]  }
  0x20   : > { %873 = vmatpush1.bf16.msra.mxu1 %v1357_v56  ;;  %v1394_v19 = vld [vmem:[%s1795_s1 + $0x1c0] ss:$8 sps:$4 sm:$0xff]   ;;  %v1169_v20 = vcombine.low %v228_v17, %v1674_v16  ;;  %v1400_v41 = vld [vmem:[%s1795_s1 + $0x1d0] ss:$8 sps:$4 sm:$0xff]   ;;  %v1401_v44 = vld [vmem:[%s1795_s1 + $0xe4] ss:$8 sps:$4 sm:$0xff]  }
  0x21   : > { %924 = vmatpush1.bf16.msra.mxu0 %v1358_v57  ;;  %874 = vmatprep.subr.bf16.mxu1 %v1359_v58  ;;  %v1685_v21 = vld [vmem:[%s1518_s29 + $0x8] sm:$0x1f]   ;;  %v211_v22 = vld [vmem:[%s1518_s29] sm:$0xf]  ;;  %v1409_v52 = vld [vmem:[%s1795_s1 + $0x1f4] ss:$8 sps:$4 sm:$0xff]  }
  0x22   : > { %925 = vmatprep.subr.bf16.mxu0 %v1361_v59  ;;  %v1159_v23 = vcombine.low %v211_v22, %v1674_v16  ;;  %v1690_v24 = vld [vmem:[%s1518_s29 + $0x8] ss:$0 sps:$4 sm:$0x77]   ;;  %v326_v26 = vshrl.u32 %v1169_v20, 16  ;;  %v329_v27 = vshll.u32 %v1169_v20, 16  ;;  %v334_v28 = vshrl.u32 %v1685_v21, 16 }
  0x23   : > { %369 = vrot.lane.b32.xlu0 %v365_v30, %s1457_s7  ;;  %v337_v29 = vshll.u32 %v1685_v21, 16  ;;  %v1397_v30 = vld [vmem:[%s1795_s1 + $0x1d4] ss:$8 sps:$4 sm:$0xff]   ;;  %v267_v33 = vshll.u32 %v1690_v24, 16  ;;  %v1403_v45 = vld [vmem:[%s1795_s1 + $0x1e4] ss:$8 sps:$4 sm:$0xff]  }
  0x24   : > { %875 = vmatpush1.bf16.msra.mxu1 %v1363_v60  ;;  %v260_v31 = vshrl.u32 %v1159_v23, 16  ;;  %v262_v32 = vshll.u32 %v1159_v23, 16  ;;  %v328_v34 = vrot.slane %v326_v26, 2  ;;  %v331_v35 = vrot.slane %v329_v27, 3  ;;  %v1405_v49 = vld [vmem:[%s1795_s1 + $0xe0] ss:$8 sps:$4 sm:$0xff]  }
  0x25   : > { %926 = vmatpush1.bf16.msra.mxu0 %v1364_v61  ;;  %876 = vmatprep.subr.bf16.mxu1 %v1365_v62  ;;  %v336_v36 = vrot.slane %v334_v28, 2  ;;  %v339_v37 = vrot.slane %v337_v29, 3  ;;  %v1701_v39 = vrot.slane %v267_v33, 1  ;;  %v1406_v50 = vld [vmem:[%s1795_s1 + $0x1e0] ss:$8 sps:$4 sm:$0xff]   ;;  %v1458_v26 = vmov 0  }
  0x26   : > { %927 = vmatprep.subr.bf16.mxu0 %v1367_v63  ;;  %v264_v38 = vrot.slane %v262_v32, 1  ;;  %v332_v42 = vor.u32 %v331_v35, %v328_v34  ;;  %v1411_v53 = vld [vmem:[%s1795_s1 + $0xf0] ss:$8 sps:$4 sm:$0xff]   ;;  %v1419_v55 = vld [vmem:[%s1795_s1 + $0x204] ss:$8 sps:$4 sm:$0xff]  }
  0x27   : > { %284 = vrot.lane.b32.xlu0 %v1315_v51, %s1457_s7  ;;  %v340_v43 = vor.u32 %v339_v37, %v336_v36  ;;  %v1407_v51 = vld [vmem:[%s1795_s1 + $0xf4] ss:$8 sps:$4 sm:$0xff]   ;;  %v1412_v54 = vld [vmem:[%s1795_s1 + $0x1f0] ss:$8 sps:$4 sm:$0xff]   ;;  %v1417_v58 = vld [vmem:[%s1795_s1 + $0x200] ss:$8 sps:$4 sm:$0xff]  }
  0x28   : > { %877 = vmatpush1.bf16.msra.mxu1 %v1369_v0  ;;  %v265_v46 = vor.u32 %v264_v38, %v260_v31  ;;  %v1423_v60 = vld [vmem:[%s1795_s1 + $0x214] ss:$8 sps:$4 sm:$0xff]   ;;  %v1421_v62 = vld [vmem:[%s1795_s1 + $0x210] ss:$8 sps:$4 sm:$0xff]   ;;  %v1426_v0 = vld [vmem:[%s1795_s1 + $0x224] ss:$8 sps:$4 sm:$0xff]   ;;  %v484_v31 = vlaneseq }
  0x29   : > { %928 = vmatpush1.bf16.msra.mxu0 %v1370_v1  ;;  %878 = vmatprep.subr.bf16.mxu1 %v1371_v2  ;;  %v341_v47 = vsel %vm324_vm0, %v332_v42, %v340_v43  ;;  %v1420_v2 = vld [vmem:[%s1518_s29 + $0x30] sm:$0xff]   ;;  %v1427_v17 = vld [vmem:[%s1518_s29 + $0x38] ss:$0 sps:$4 sm:$0x33]  }
  0x2a   : > { %929 = vmatprep.subr.bf16.mxu0 %v1373_v3  ;;  %v270_v48 = vsel %vm258_vm1, %v265_v46, %v1701_v39  ;;  %v485_v32 = vshrl.u32 %v484_v31, 7 }
  0x2c   : > { %879 = vmatpush1.bf16.msra.mxu1 %v1375_v4  ;;  %v1424_v4 = vld [vmem:[%s1795_s1 + $0x220] ss:$8 sps:$4 sm:$0xff]   ;;  %v486_v33 = vsub.s32 0, %v485_v32  ;;  %v490_v34 = vsub.s32 1, %v485_v32 }
  0x2d   : > { %930 = vmatpush1.bf16.msra.mxu0 %v1376_v5  ;;  %880 = vmatprep.subr.bf16.mxu1 %v1377_v6  ;;  %v1431_v6 = vld [vmem:[%s1795_s1 + $0x234] ss:$8 sps:$4 sm:$0xff]  }
  0x2e   : > { %931 = vmatprep.subr.bf16.mxu0 %v1379_v7 }
  0x30   : > { %881 = vmatpush1.bf16.msra.mxu1 %v1381_v8  ;;  %v271_v8 = vshrl.u32 %v1690_v24, 16 }
  0x31   : > { %932 = vmatpush1.bf16.msra.mxu0 %v1382_v9  ;;  %882 = vmatprep.subr.bf16.mxu1 %v1383_v10  ;;  %v1429_v9 = vld [vmem:[%s1795_s1 + $0x230] ss:$8 sps:$4 sm:$0xff]  }
  0x32   : > { %933 = vmatprep.subr.bf16.mxu0 %v1385_v11  ;;  %v1428_v11 = vld [vmem:[%s1518_s29 + $0x8] ss:$0 sps:$4 sm:$0x33]  }
  0x34   : > { %883 = vmatpush1.bf16.msra.mxu1 %v1387_v12  ;;  %v234_v12 = vld [vmem:[%s1518_s29] sm:$0x8] }
  0x35   : > { %934 = vmatpush1.bf16.msra.mxu0 %v1388_v13  ;;  %884 = vmatprep.subr.bf16.mxu1 %v1389_v14 }
  0x36   : > { %935 = vmatprep.subr.bf16.mxu0 %v1391_v15  ;;  %v273_v15 = vor.u32 %v271_v8, %v1701_v39 }
  0x38   : > { %885 = vmatpush1.bf16.msra.mxu1 %v1393_v18  ;;  %v1173_v18 = vcombine.low %v234_v12, %v1674_v16 }
  0x39   : > { %936 = vmatpush1.bf16.msra.mxu0 %v1394_v19  ;;  %886 = vmatprep.subr.bf16.mxu1 %v1395_v25  ;;  %v376_v25 = vrot.slane %v1685_v21, 3  ;;  %v482_v21 = vld [vmem:[%s1796_s2] sm:$0x3] }
  0x3a   : > { %937 = vmatprep.subr.bf16.mxu0 %v1397_v30  ;;  %v375_v24 = vrot.slane %v1173_v18, 3  ;;  %v487_v35 = vrot.slane %v482_v21, %v486_v33  ;;  %v491_v37 = vrot.slane %v482_v21, %v490_v34 }
  0x3c   : > { %887 = vmatpush1.bf16.msra.mxu1 %v1399_v40  ;;  %v377_v16 = vsel %vm374_vm3, %v375_v24, %v376_v25 }
  0x3d   : > { %938 = vmatpush1.bf16.msra.mxu0 %v1400_v41  ;;  %888 = vmatprep.subr.bf16.mxu1 %v1401_v44 }
  0x3e   : > { %939 = vmatprep.subr.bf16.mxu0 %v1403_v45 }
  0x40   : > { %889 = vmatpush1.bf16.msra.mxu1 %v1405_v49 }
  0x41   : > { %940 = vmatpush1.bf16.msra.mxu0 %v1406_v50  ;;  %890 = vmatprep.subr.bf16.mxu1 %v1407_v51 }
  0x42   : > { %941 = vmatprep.subr.bf16.mxu0 %v1409_v52 }
  0x44   : > { %891 = vmatpush1.bf16.msra.mxu1 %v1411_v53 }
  0x45   : > { %942 = vmatpush1.bf16.msra.mxu0 %v1412_v54  ;;  %1257 = vmatprep.subr.bf16.mxu1 %v1419_v55 }
  0x46   : > { %962 = vmatprep.subr.bf16.mxu0 %v1419_v55 }
  0x84   : > { %v283_v56 = vpop.permute.xlu1 %282 }
  0x85   : > { %v388_v57 = vsel %vm378_vm2, %v270_v48, %v283_v56 }
  0x86   : > { %892 = vmatprep.mubr.bf16.mxu1 %v388_v57 }
  0x88   : > { %v252_v59 = vpop.permute.xlu1 %251 }
  0x89   : > { %v380_v61 = vsel %vm378_vm2, %v1159_v23, %v252_v59 }
  0x8a   : > { %893 = vmatmul.mubr.bf16.vlgmr.msra.gmra.mrb[0].mxu1 %v380_v61 }
  0x8b   : > { %1261 = vmatpush1.bf16.msra.mxu1 %v1417_v58 }
  0x8c   : > { %1258 = vmatprep.subr.bf16.mxu1 %v1423_v60  ;;  %v315_v3 = vpop.permute.xlu1 %314 }
  0x8d   : > { %v368_v63 = vpop.permute.xlu0 %367  ;;  %v400_v23 = vsel %vm378_vm2, %v1427_v17, %v315_v3 }
  0x8e   : > { %v404_v1 = vsel %vm378_vm2, %v341_v47, %v368_v63 }
  0x8f   : > { %943 = vmatprep.mubr.bf16.mxu0 %v404_v1  ;;  %1262 = vmatpush1.bf16.msra.mxu1 %v1421_v62 }
  0x90   : > { %1259 = vmatprep.subr.bf16.mxu1 %v1426_v0  ;;  %v254_v14 = vpop.permute.xlu1 %253 }
  0x91   : > { %v313_v5 = vpop.permute.xlu0 %312  ;;  %v384_v20 = vsel %vm378_vm2, %v1428_v11, %v254_v14 }
  0x92   : > { %v396_v7 = vsel %vm378_vm2, %v1420_v2, %v313_v5 }
  0x93   : > { %944 = vmatmul.mubr.bf16.vlgmr.msra.gmra.mrb[0].mxu0 %v396_v7  ;;  %1263 = vmatpush1.bf16.msra.mxu1 %v1424_v4 }
  0x94   : > { %963 = vmatpush1.bf16.msra.mxu0 %v1417_v58  ;;  %1260 = vmatprep.subr.bf16.mxu1 %v1431_v6 }
  0x95   : > { %v370_v10 = vpop.permute.xlu0 %369  ;;  %964 = vmatprep.subr.bf16.mxu0 %v1423_v60 }
  0x96   : > { %v408_v13 = vsel %vm378_vm2, %v340_v43, %v370_v10 }
  0x97   : > { %953 = vmatprep.mubr.bf16.mxu0 %v408_v13  ;;  %1264 = vmatpush1.bf16.msra.mxu1 %v1429_v9 }
  0x98   : > { %965 = vmatpush1.bf16.msra.mxu0 %v1421_v62 }
  0x99   : > { %v285_v19 = vpop.permute.xlu0 %284  ;;  %966 = vmatprep.subr.bf16.mxu0 %v1426_v0 }
  0x9a   : > { %v392_v22 = vsel %vm378_vm2, %v273_v15, %v285_v19 }
  0x9b   : > { %902 = vmatprep.mubr.bf16.mxu1 %v392_v22  ;;  %954 = vmatmul.mubr.bf16.gmra.mrb[4].mxu0 %v400_v23 }
  0x9c   : > { %967 = vmatpush1.bf16.msra.mxu0 %v1424_v4  ;;  %903 = vmatmul.mubr.bf16.gmra.mrb[4].mxu1 %v384_v20 }
  0x9d   : > { %968 = vmatprep.subr.bf16.mxu0 %v1431_v6  ;;  %994 = vmatprep.mubr.bf16.mxu0 %v1458_v26 }
  0x9e   : > { %1004 = vmatprep.mubr.bf16.mxu1 %v1458_v26 }
  0xa0   : > { %969 = vmatpush1.bf16.msra.mxu0 %v1429_v9 }
  0xa3   : > { %1246 = vmatmul.mubr.msk.bf16.vlgmr.msra.gmra.mrb[0].mxu0 %vm378_vm2, %v377_v16 }
  0xa4   : > { %1247 = vmatmul.mubr.msk.bf16.vlgmr.msra.gmra.mrb[8].mxu1 %vm378_vm2, %v376_v25 }
 0x15d   : > { %v894_v27 = vpop.f32.mrb[0].mxu1 }
 0x15e   : > { %v896_v28 = vpop.f32.mrb[1].mxu1  ;;  %v895_v49 = vadd.f32 %v894_v27, %v487_v35 }
 0x15f   : > { %v898_v29 = vpop.f32.mrb[2].mxu1  ;;  %v897_v50 = vadd.f32 %v896_v28, %v491_v37 }
 0x160   : > { %v900_v30 = vpop.f32.mrb[3].mxu1  ;;  %v899_v52 = vadd.f32 %v898_v29, %v487_v35 }
 0x161   : > { %v901_v56 = vadd.f32 %v900_v30, %v491_v37 }
 0x16e   : > { %v955_v36 = vpop.f32.mrb[4].mxu0 }
 0x16f   : > { %v904_v38 = vpop.f32.mrb[4].mxu1  ;;  %v957_v39 = vpop.f32.mrb[5].mxu0 }
 0x170   : > { %v905_v40 = vadd.f32 %v904_v38, %v487_v35  ;;  %v906_v41 = vpop.f32.mrb[5].mxu1  ;;  %v959_v42 = vpop.f32.mrb[6].mxu0 }
 0x171   : > { %v907_v43 = vadd.f32 %v906_v41, %v491_v37  ;;  %v908_v44 = vpop.f32.mrb[6].mxu1  ;;  %v960_v45 = vpop.f32.mrb[7].mxu0 }
 0x172   : > { %v909_v46 = vpop.f32.mrb[7].mxu1  ;;  %v956_v47 = vadd.f32 %v955_v36, %v905_v40 }
 0x173   : > { %v958_v48 = vadd.f32 %v957_v39, %v907_v43 }
 0x176   : > { %v996_v51 = vpop.f32.mrb[0].mxu0 }
 0x177   : > { %v1266_v53 = vadd.f32 %v996_v51, %v895_v49  ;;  %v998_v54 = vpop.f32.mrb[1].mxu0  ;;  %v1006_v55 = vpop.f32.mrb[8].mxu1 }
 0x178   : > { %v1268_v57 = vadd.f32 %v998_v54, %v897_v50  ;;  %v1007_v58 = vadd.f32 %v1006_v55, %v956_v47  ;;  %v1000_v59 = vpop.f32.mrb[2].mxu0  ;;  %v1008_v60 = vpop.f32.mrb[9].mxu1 }
 0x179   : > { %v1013_v61 = vmax.f32 %v1266_v53, 0.0  ;;  %v1270_v62 = vadd.f32 %v1000_v59, %v899_v52  ;;  %v1009_v63 = vadd.f32 %v1008_v60, %v958_v48  ;;  %v1002_v0 = vpop.f32.mrb[3].mxu0  ;;  %v1010_v1 = vpop.f32.mrb[10].mxu1 }
 0x17a   : > { %v1014_v2 = vmax.f32 %v1268_v57, 0.0  ;;  %v1017_v3 = vmax.f32 %v1007_v58, 0.0  ;;  %v1272_v4 = vadd.f32 %v1002_v0, %v901_v56  ;;  %v1011_v5 = vpop.f32.mrb[11].mxu1 }
 0x17b   : > { %v1015_v6 = vmax.f32 %v1270_v62, 0.0  ;;  %v1018_v7 = vmax.f32 %v1009_v63, 0.0 }
 0x17c   : > { %v1254_v8 = vpack.c.bf16 %v1014_v2, %v1013_v61  ;;  %v1016_v9 = vmax.f32 %v1272_v4, 0.0 }
 0x17d   : > { %v1256_v10 = vpack.c.bf16 %v1018_v7, %v1017_v3 }
 0x17e   : > { %1039 = vst [vmem:[%s208_s12] sm:$0xff] %v1254_v8  ;;  %v1255_v11 = vpack.c.bf16 %v1016_v9, %v1015_v6 }
 0x17f   : > { %1041 = vst [vmem:[%s208_s12 + $0x10] sm:$0x33] %v1256_v10 }
 0x180   : > { %1040 = vst [vmem:[%s208_s12 + $0x8] sm:$0xff] %v1255_v11 }
 0x181 PF: > { %s13_s14 = sadd.s32 1, %s1455_s14   ;;  %s1798_s12 = smov %s1451_s13 }
 0x182   : > { %p10_p5 = scmp.ge.s32.totalorder %s13_s14, 4   ;;  %s1799_s13 = smov %s1801_s15 }
 0x184   :  { %12 = sbr.rel (!%p10_p5) target bundleno = 2 (0x2), region = 65 }

// kernel: seg_no_ffm_fpn_forward.8
= control target key start
LH: loop header
LB: loop body
LE: loop exit
PB: predicated region body
PF: predicated region fallthrough
CT: control target
= control target key end

     0   :  { %s5039_s18 = smov 0   ;;  %s5041_s19 = smov 0   ;;  %s6214_s0 = inlined_call_operand.vmem [shape: bf16[2,1,1,328,16], index: 0, kind: input, shape index: {}]   ;;  %s6215_s1 = inlined_call_operand.vmem [shape: bf16[144,16], index: 1, kind: input, shape index: {}]   ;;  %s6216_s2 = inlined_call_operand.vmem [shape: f32[1,16], index: 2, kind: input, shape index: {}]   ;;  %s6217_s3 = inlined_call_operand.vmem [shape: f32[16,5], index: 3, kind: input, shape index: {}]   ;;  %s6218_s4 = inlined_call_operand.vmem [shape: f32[1,5], index: 4, kind: input, shape index: {}]   ;;  %s6219_s5 = inlined_call_operand.vmem [shape: f32[2,288,5], index: 5, kind: output, shape index: {}]  }
   0x1   :  { %s5043_s20 = smov 0  }
   0x2 LB: > { %s27_s21 = sadd.s32 1, %s5003_s19  ;;  %p3768_p0 = scmp.ge.s32.totalorder %s5007_s20, 1  ;;  %s5007_s20 = sphi %s5043_s20, %s15_s20   ;;  %s5003_s19 = sphi %s5041_s19, %s6283_s19   ;;  %s4999_s18 = sphi %s5039_s18, %s6282_s18  }
   0x3   : > { %p29_p1 = scmp.ge.s32.totalorder %s27_s21, 2  ;;  %p207_p2 = scmp.lt.s32.totalorder %s5007_s20, 3 }
   0x5   : > { %s6285_s21 = smov (%p29_p1, %s27_s21), 0  ;;  %p208_p3 = pnand %p3768_p0, %p207_p2 }
   0x7   : > { %211 = sbr.rel (%p208_p3) target bundleno = 826 (0x33a), region = 40 }
   0xe   : > { %v4939_v0 = vld [vmem:[%s6215_s1 + $0x20] sm:$0xff]   ;;  %p243_p4 = scmp.lt.s32.totalorder %s4999_s18, 1  ;;  %v4940_v1 = vld [vmem:[%s6215_s1 + $0x8] sm:$0xff]   ;;  %vm410_vm0 = vsmask.f32 7424  ;;  %vm565_vm2 = vcmask 130048  }
   0xf   : > { %4373 = vmatprep.subr.bf16.mxu0 %v4939_v0  ;;  %v5068_v2 = vld [vmem:[%s6215_s1 + $0x28] sm:$0xff]   ;;  %4221 = vmatprep.subr.bf16.mxu1 %v4940_v1  ;;  %v5075_v3 = vld [vmem:[%s6215_s1] sm:$0xff]   ;;  %vm1584_vm1 = vsmask.f32 6400  ;;  %v5155_v50 = vld [vmem:[%s6215_s1 + $0x30] sm:$0xff]   ;;  %vm1953_vm3 = vcmask 1045504  }
  0x10   : > { %s6287_s18 = smov (!%p243_p4, %s4999_s18), 1  ;;  %4374 = vmatpush3.bf16.msra.mxu0 %v4939_v0  ;;  %4222 = vmatpush3.bf16.msra.mxu1 %v4940_v1  ;;  %vm1021_vm4 = vcmask 1046528   ;;  %vm2516_vm5 = vsmask.f32 5376  ;;  %vm2885_vm6 = vcmask 1044480   ;;  %vm3637_vm7 = vcmask 39936  }
  0x11   : > { %s4913_s28 = smul.u32 164, %s6287_s18  ;;  %4411 = vmatprep.subr.bf16.mxu0 %v5068_v2  ;;  %4259 = vmatprep.subr.bf16.mxu1 %v5075_v3 }
  0x12   : > { %s4914_s29 = smul.u32 288, %s6287_s18 }
  0x13   : > { %s5080_s8 = scalar_lea.vmem %s6214_s0, %s4913_s28 }
  0x14   : > { %v263_v4 = vld [vmem:[%s5080_s8] sm:$0xf]  ;;  %v5085_v5 = vld [vmem:[%s5080_s8 + $0x4] sm:$0xf]  ;;  %v265_v6 = vld [vmem:[%s5080_s8 + $0x8] sm:$0xf]  ;;  %s6095_s9 = scalar_lea.vmem %s6219_s5, %s4914_s29 }
  0x15   : > { %v5089_v7 = vld [vmem:[%s5080_s8 + $0xc] sm:$0xf]  ;;  %v5092_v8 = vcombine.low %v263_v4, %v5085_v5  ;;  %v267_v9 = vld [vmem:[%s5080_s8 + $0x10] sm:$0xf]  ;;  %v5096_v10 = vld [vmem:[%s5080_s8 + $0x14] sm:$0xf] }
  0x16   : > { %v5099_v11 = vcombine.low %v265_v6, %v5089_v7  ;;  %v301_v12 = vld [vmem:[%s5080_s8 + $0x8] sm:$0xe]  ;;  %v5103_v13 = vcombine.low %v267_v9, %v5096_v10  ;;  %v5111_v17 = vld [vmem:[%s5080_s8 + $0x18] sm:$0xff]   ;;  %v5118_v22 = vld [vmem:[%s5080_s8 + $0x20] sm:$0xff]  }
  0x17   : > { %v412_v14 = vshrl.u32 %v5092_v8, 16  ;;  %v414_v15 = vshll.u32 %v5092_v8, 16  ;;  %v5108_v16 = vcombine.low %v301_v12, %v5089_v7  ;;  %v5123_v26 = vshll.u32 %v5111_v17, 16  ;;  %v5129_v35 = vld [vmem:[%s5080_s8 + $0x28] sm:$0xff]   ;;  %v5136_v44 = vld [vmem:[%s5080_s8 + $0x30] sm:$0xff]   ;;  %v5150_v49 = vld [vmem:[%s5080_s8 + $0x38] sm:$0xff]  }
  0x18   : > { %v419_v18 = vshll.u32 %v5099_v11, 16  ;;  %v423_v19 = vshrl.u32 %v5099_v11, 16  ;;  %v427_v20 = vshll.u32 %v5103_v13, 16  ;;  %v431_v21 = vshrl.u32 %v5103_v13, 16  ;;  %v5180_v4 = vld [vmem:[%s5080_s8 + $0x40] sm:$0xff]  }
  0x19   : > { %v416_v23 = vrot.slane %v414_v15, 1  ;;  %v1586_v24 = vshrl.u32 %v5108_v16, 16  ;;  %v1589_v25 = vshll.u32 %v5108_v16, 16  ;;  %v5126_v34 = vshrl.u32 %v5111_v17, 16 }
  0x1a   : > { %v421_v27 = vrot.slane %v419_v18, 1  ;;  %v1593_v28 = vrot.slane %v431_v21, 1  ;;  %v1594_v29 = vrot.slane %v427_v20, 2  ;;  %v429_v30 = vrot.slane %v427_v20, 1 }
  0x1b   : > { %v417_v31 = vor.u32 %v416_v23, %v412_v14  ;;  %v1588_v32 = vrot.slane %v1586_v24, 1  ;;  %v1591_v33 = vrot.slane %v1589_v25, 2  ;;  %v1598_v38 = vrot.slane %v5123_v26, 2 }
  0x1c   : > { %v425_v36 = vor.u32 %v423_v19, %v421_v27  ;;  %v1595_v37 = vor.u32 %v1594_v29, %v1593_v28  ;;  %v433_v39 = vor.u32 %v431_v21, %v429_v30  ;;  %v1597_v42 = vrot.slane %v5126_v34, 1  ;;  %v5211_v29 = vld [vmem:[%s5080_s8 + $0x48] sm:$0xff]  }
  0x1d   : > { %v422_v40 = vsel %vm410_vm0, %v417_v31, %v421_v27  ;;  %v1592_v41 = vor.u32 %v1591_v33, %v1588_v32  ;;  %v437_v43 = vrot.slane %v5123_v26, 1  ;;  %v5141_v46 = vshll.u32 %v5118_v22, 16  ;;  %v5217_v32 = vld [vmem:[%s5080_s8 + $0x50] sm:$0xff]  }
  0x1e   : > { %4223 = vmatprep.mubr.msk.bf16.mxu1 %vm565_vm2, %v422_v40  ;;  %v430_v45 = vsel %vm410_vm0, %v425_v36, %v429_v30  ;;  %v5144_v47 = vshrl.u32 %v5118_v22, 16  ;;  %v5147_v48 = vshll.u32 %v5129_v35, 16  ;;  %v1599_v52 = vor.u32 %v1598_v38, %v1597_v42 }
  0x1f   : > { %v1596_v51 = vsel %vm1584_vm1, %v1592_v41, %v1595_v37  ;;  %4224 = vmatmul.mubr.msk.bf16.vlgmr.msra.gmra.mrb[0].mxu1 %vm565_vm2, %v430_v45  ;;  %v438_v53 = vsel %vm410_vm0, %v433_v39, %v437_v43  ;;  %v441_v54 = vor.u32 %v5126_v34, %v437_v43  ;;  %v1602_v56 = vrot.slane %v5141_v46, 2 }
  0x20   : > { %4375 = vmatprep.mubr.msk.bf16.mxu0 %vm565_vm2, %v1596_v51  ;;  %4227 = vmatprep.mubr.msk.bf16.mxu1 %vm565_vm2, %v438_v53  ;;  %v1601_v55 = vrot.slane %v5144_v47, 1  ;;  %v445_v57 = vrot.slane %v5141_v46, 1  ;;  %v5167_v58 = vshrl.u32 %v5129_v35, 16  ;;  %v1600_v59 = vsel %vm1584_vm1, %v1595_v37, %v1599_v52 }
  0x21   : > { %v1606_v60 = vrot.slane %v5147_v48, 2  ;;  %v453_v61 = vrot.slane %v5147_v48, 1  ;;  %v5173_v62 = vshll.u32 %v5136_v44, 16  ;;  %4260 = vmatpush3.bf16.msra.mxu1 %v5075_v3  ;;  %4376 = vmatmul.mubr.msk.bf16.vlgmr.msra.gmra.mrb[0].mxu0 %vm565_vm2, %v1600_v59  ;;  %v5184_v6 = vshrl.u32 %v5136_v44, 16  ;;  %v5251_v59 = vld [vmem:[%s5080_s8 + $0x58] sm:$0xff]  }
  0x22   : > { %v1603_v63 = vor.u32 %v1602_v56, %v1601_v55  ;;  %v1605_v0 = vrot.slane %v5167_v58, 1  ;;  %v449_v1 = vor.u32 %v5144_v47, %v445_v57  ;;  %4412 = vmatpush3.bf16.msra.mxu0 %v5068_v2  ;;  %v446_v3 = vsel %vm410_vm0, %v441_v54, %v445_v57 }
  0x23   : > { %v1610_v9 = vrot.slane %v5173_v62, 2  ;;  %v5190_v15 = vshll.u32 %v5150_v49, 16  ;;  %4449 = vmatprep.subr.bf16.mxu0 %v5155_v50  ;;  %v1609_v18 = vrot.slane %v5184_v6, 1  ;;  %v5197_v19 = vshrl.u32 %v5150_v49, 16 }
  0x24   : > { %v1604_v12 = vsel %vm1584_vm1, %v1599_v52, %v1603_v63  ;;  %v1607_v14 = vor.u32 %v1606_v60, %v1605_v0  ;;  %v454_v2 = vsel %vm410_vm0, %v449_v1, %v453_v61  ;;  %v461_v21 = vrot.slane %v5173_v62, 1  ;;  %v5241_v52 = vld [vmem:[%s6215_s1 + $0x10] sm:$0xff]   ;;  %v5259_v1 = vld [vmem:[%s5080_s8 + $0x60] sm:$0xff]  }
  0x25   : > { %4379 = vmatprep.mubr.msk.bf16.mxu0 %vm565_vm2, %v1604_v12  ;;  %v5202_v23 = vshll.u32 %v5180_v4, 16  ;;  %v1611_v24 = vor.u32 %v1610_v9, %v1609_v18  ;;  %v1613_v25 = vrot.slane %v5197_v19, 1  ;;  %v1614_v27 = vrot.slane %v5190_v15, 2  ;;  %4297 = vmatprep.subr.bf16.mxu1 %v5241_v52 }
  0x26   : > { %v1608_v20 = vsel %vm1584_vm1, %v1603_v63, %v1607_v14  ;;  %v5208_v28 = vshrl.u32 %v5180_v4, 16  ;;  %v457_v30 = vor.u32 %v5167_v58, %v453_v61  ;;  %v465_v36 = vor.u32 %v5184_v6, %v461_v21 }
  0x27   : > { %6241 = vst [vmem:[#allocation2_spill] sm:$0xff] %v5202_v23  ;;  %4228 = vmatmul.mubr.msk.bf16.gmra.mrb[4].mxu1 %vm565_vm2, %v446_v3  ;;  %v1618_v31 = vrot.slane %v5202_v23, 2  ;;  %v1612_v33 = vsel %vm1584_vm1, %v1607_v14, %v1611_v24  ;;  %v469_v37 = vrot.slane %v5190_v15, 1  ;;  %v1615_v39 = vor.u32 %v1614_v27, %v1613_v25 }
  0x28   : > { %4231 = vmatprep.mubr.msk.bf16.mxu1 %vm565_vm2, %v454_v2  ;;  %v1617_v38 = vrot.slane %v5208_v28, 1  ;;  %v5226_v40 = vshll.u32 %v5211_v29, 16  ;;  %v5229_v41 = vshrl.u32 %v5211_v29, 16  ;;  %v462_v42 = vsel %vm410_vm0, %v457_v30, %v461_v21 }
  0x29   : > { %4380 = vmatmul.mubr.msk.bf16.gmra.mrb[4].mxu0 %vm565_vm2, %v1608_v20  ;;  %v5233_v45 = vshll.u32 %v5217_v32, 16  ;;  %v5236_v51 = vshrl.u32 %v5217_v32, 16  ;;  %v470_v53 = vsel %vm410_vm0, %v465_v36, %v469_v37  ;;  %v1616_v54 = vsel %vm1584_vm1, %v1611_v24, %v1615_v39  ;;  %v5285_v36 = vld [vmem:[%s5080_s8 + $0x68] sm:$0xff]  }
  0x2a   : > { %4383 = vmatprep.mubr.msk.bf16.mxu0 %vm565_vm2, %v1612_v33  ;;  %6242 = vst [vmem:[#allocation3_spill] sm:$0xff] %v5226_v40  ;;  %6243 = vst [vmem:[#allocation4_spill] sm:$0xff] %v5229_v41  ;;  %v1619_v43 = vor.u32 %v1618_v31, %v1617_v38  ;;  %v477_v55 = vrot.slane %v5202_v23, 1  ;;  %v1621_v56 = vrot.slane %v5229_v41, 1  ;;  %v1622_v57 = vrot.slane %v5226_v40, 2 }
  0x2b   : > { %6244 = vst [vmem:[#allocation5_spill] sm:$0xff] %v5233_v45  ;;  %6245 = vst [vmem:[#allocation6_spill] sm:$0xff] %v5236_v51  ;;  %v473_v61 = vor.u32 %v5197_v19, %v469_v37  ;;  %v1625_v63 = vrot.slane %v5236_v51, 1  ;;  %v1626_v0 = vrot.slane %v5233_v45, 2  ;;  %v485_v12 = vrot.slane %v5226_v40, 1 }
  0x2c   : > { %v1620_v60 = vsel %vm1584_vm1, %v1615_v39, %v1619_v43  ;;  %v481_v9 = vor.u32 %v5208_v28, %v477_v55  ;;  %v1623_v3 = vor.u32 %v1622_v57, %v1621_v56  ;;  %v5266_v14 = vshll.u32 %v5251_v59, 16 }
  0x2d   : > { %v5269_v2 = vshrl.u32 %v5251_v59, 16  ;;  %v478_v18 = vsel %vm410_vm0, %v473_v61, %v477_v55  ;;  %v1627_v20 = vor.u32 %v1626_v0, %v1625_v63  ;;  %v5273_v21 = vshll.u32 %v5259_v1, 16 }
  0x2e   : > { %6246 = vst [vmem:[#allocation7_spill] sm:$0xff] %v5266_v14  ;;  %v5276_v24 = vshrl.u32 %v5259_v1, 16  ;;  %v486_v25 = vsel %vm410_vm0, %v481_v9, %v485_v12  ;;  %v1624_v27 = vsel %vm1584_vm1, %v1619_v43, %v1623_v3  ;;  %v493_v30 = vrot.slane %v5233_v45, 1 }
  0x2f   : > { %4232 = vmatmul.mubr.msk.bf16.gmra.mrb[8].mxu1 %vm565_vm2, %v462_v42  ;;  %6247 = vst [vmem:[#allocation8_spill] sm:$0xff] %v5269_v2  ;;  %6248 = vst [vmem:[#allocation9_spill] sm:$0xff] %v5273_v21  ;;  %v1629_v31 = vrot.slane %v5269_v2, 1  ;;  %v1630_v33 = vrot.slane %v5266_v14, 2  ;;  %v1628_v37 = vsel %vm1584_vm1, %v1623_v3, %v1627_v20  ;;  %v489_v38 = vor.u32 %v5229_v41, %v485_v12 }
  0x30   : > { %4235 = vmatprep.mubr.msk.bf16.mxu1 %vm565_vm2, %v470_v53  ;;  %6249 = vst [vmem:[#allocation10_spill] sm:$0xff] %v5276_v24  ;;  %v1633_v39 = vrot.slane %v5276_v24, 1  ;;  %v1634_v42 = vrot.slane %v5273_v21, 2  ;;  %v5293_v53 = vld [vmem:[%s5080_s8 + $0x70] sm:$0xff]   ;;  %v497_v43 = vor.u32 %v5236_v51, %v493_v30  ;;  %v5300_v56 = vshll.u32 %v5285_v36, 16 }
  0x31   : > { %4384 = vmatmul.mubr.msk.bf16.gmra.mrb[8].mxu0 %vm565_vm2, %v1616_v54  ;;  %v501_v54 = vrot.slane %v5266_v14, 1  ;;  %v1631_v55 = vor.u32 %v1630_v33, %v1629_v31  ;;  %v5303_v57 = vshrl.u32 %v5285_v36, 16  ;;  %v5307_v63 = vshll.u32 %v5293_v53, 16 }
  0x32   : > { %4387 = vmatprep.mubr.msk.bf16.mxu0 %vm565_vm2, %v1620_v60  ;;  %6250 = vst [vmem:[#allocation11_spill] sm:$0xff] %v5300_v56  ;;  %v494_v60 = vsel %vm410_vm0, %v489_v38, %v493_v30  ;;  %v1635_v61 = vor.u32 %v1634_v42, %v1633_v39  ;;  %v5310_v0 = vshrl.u32 %v5293_v53, 16  ;;  %v509_v3 = vrot.slane %v5273_v21, 1  ;;  %v5327_v38 = vld [vmem:[%s5080_s8 + $0x80] sm:$0xff]   ;;  %v307_v21 = vld [vmem:[%s5080_s8 + $0x10] sm:$0xc] }
  0x33   : > { %6251 = vst [vmem:[#allocation12_spill] sm:$0xff] %v5303_v57  ;;  %6252 = vst [vmem:[#allocation13_spill] sm:$0xff] %v5307_v63  ;;  %v502_v9 = vsel %vm410_vm0, %v497_v43, %v501_v54  ;;  %v1632_v12 = vsel %vm1584_vm1, %v1627_v20, %v1631_v55  ;;  %v505_v31 = vor.u32 %v5269_v2, %v501_v54  ;;  %v517_v39 = vrot.slane %v5300_v56, 1 }
  0x34   : > { %6253 = vst [vmem:[#allocation14_spill] sm:$0xff] %v5310_v0  ;;  %v1636_v30 = vsel %vm1584_vm1, %v1631_v55, %v1635_v61  ;;  %v1641_v33 = vrot.slane %v5310_v0, 1  ;;  %v513_v20 = vor.u32 %v5276_v24, %v509_v3 }
  0x35   : > { %v510_v55 = vsel %vm410_vm0, %v505_v31, %v509_v3 }
  0x37   : > { %4236 = vmatmul.mubr.msk.bf16.gmra.mrb[12].mxu1 %vm565_vm2, %v478_v18  ;;  %v1637_v18 = vrot.slane %v5303_v57, 1 }
  0x38   : > { %4239 = vmatprep.mubr.msk.bf16.mxu1 %vm565_vm2, %v486_v25  ;;  %v1638_v25 = vrot.slane %v5300_v56, 2  ;;  %v5344_v56 = vshrl.u32 %v5327_v38, 16 }
  0x39   : > { %4388 = vmatmul.mubr.msk.bf16.gmra.mrb[12].mxu0 %vm565_vm2, %v1624_v27  ;;  %v5319_v27 = vld [vmem:[%s5080_s8 + $0x78] sm:$0xff]  }
  0x3a   : > { %4391 = vmatprep.mubr.msk.bf16.mxu0 %vm565_vm2, %v1628_v37  ;;  %v1642_v37 = vrot.slane %v5307_v63, 2  ;;  %v1639_v42 = vor.u32 %v1638_v25, %v1637_v18  ;;  %v5334_v43 = vshll.u32 %v5319_v27, 16  ;;  %v5337_v54 = vshrl.u32 %v5319_v27, 16  ;;  %6257 = vst [vmem:[#allocation18_spill] sm:$0xff] %v5344_v56 }
  0x3b   : > { %v521_v18 = vor.u32 %v5303_v57, %v517_v39  ;;  %v525_v25 = vrot.slane %v5307_v63, 1  ;;  %v5361_v57 = vld [vmem:[%s5080_s8 + $0x90] sm:$0xff]   ;;  %v4963_v63 = vld [vmem:[%s5080_s8 + $0x98] ss:$0 sps:$4 sm:$0x33]  }
  0x3c   : > { %6254 = vst [vmem:[#allocation15_spill] sm:$0xff] %v5334_v43  ;;  %6255 = vst [vmem:[#allocation16_spill] sm:$0xff] %v5337_v54  ;;  %v1640_v3 = vsel %vm1584_vm1, %v1635_v61, %v1639_v42  ;;  %v1646_v31 = vrot.slane %v5334_v43, 2  ;;  %v533_v61 = vrot.slane %v5334_v43, 1  ;;  %v1989_v43 = vrot.slane %v4963_v63, 2 }
  0x3d   : > { %6258 = vst [vmem:[#allocation19_spill] sm:$0xff] %v5361_v57  ;;  %v526_v24 = vsel %vm410_vm0, %v521_v18, %v525_v25  ;;  %v6234_v45 = vshrl.u32 %v5361_v57, 16  ;;  %v5382_v18 = vcombine.low %v307_v21, %v5096_v10  ;;  %v1670_v40 = vshll.u32 %v4963_v63, 16 }
  0x3f   : > { %4240 = vmatmul.mubr.msk.bf16.gmra.mrb[16].mxu1 %vm565_vm2, %v494_v60  ;;  %v1643_v60 = vor.u32 %v1642_v37, %v1641_v33  ;;  %v5354_v33 = vld [vmem:[%s5080_s8 + $0x88] sm:$0xff]   ;;  %v1672_v23 = vrot.slane %v1670_v40, 2  ;;  %v1955_v40 = vrot.slane %v5103_v13, 2 }
  0x40   : > { %4243 = vmatprep.mubr.msk.bf16.mxu1 %vm565_vm2, %v502_v9  ;;  %v5341_v9 = vshll.u32 %v5327_v38, 16  ;;  %v5374_v14 = vshll.u32 %v5354_v33, 16 }
  0x41   : > { %4392 = vmatmul.mubr.msk.bf16.gmra.mrb[16].mxu0 %vm565_vm2, %v1632_v12  ;;  %v518_v12 = vsel %vm410_vm0, %v513_v20, %v517_v39  ;;  %v1644_v37 = vsel %vm1584_vm1, %v1639_v42, %v1643_v60  ;;  %v1649_v20 = vrot.slane %v5344_v56, 1 }
  0x42   : > { %4395 = vmatprep.mubr.msk.bf16.mxu0 %vm565_vm2, %v1636_v30  ;;  %6256 = vst [vmem:[#allocation17_spill] sm:$0xff] %v5341_v9  ;;  %v1645_v30 = vrot.slane %v5337_v54, 1  ;;  %v1650_v39 = vrot.slane %v5341_v9, 2  ;;  %6259 = vst [vmem:[#allocation20_spill] sm:$0xff] %v5374_v14  ;;  %v1654_v21 = vrot.slane %v5374_v14, 2  ;;  %v549_v51 = vrot.slane %v5374_v14, 1 }
  0x44   : > { %v1647_v42 = vor.u32 %v1646_v31, %v1645_v30  ;;  %v1651_v2 = vor.u32 %v1650_v39, %v1649_v20  ;;  %v537_v31 = vor.u32 %v5337_v54, %v533_v61  ;;  %v2277_v20 = vrot.slane %v5382_v18, 2 }
  0x46   : > { %v1648_v39 = vsel %vm1584_vm1, %v1643_v60, %v1647_v42 }
  0x47   : > { %4244 = vmatmul.mubr.msk.bf16.gmra.mrb[20].mxu1 %vm565_vm2, %v510_v55  ;;  %v529_v55 = vor.u32 %v5310_v0, %v525_v25  ;;  %v5377_v0 = vshrl.u32 %v5354_v33, 16 }
  0x48   : > { %4247 = vmatprep.mubr.msk.bf16.mxu1 %vm565_vm2, %v518_v12  ;;  %v5370_v12 = vrot.slane %v5361_v57, 2 }
  0x49   : > { %4396 = vmatmul.mubr.msk.bf16.gmra.mrb[20].mxu0 %vm565_vm2, %v1640_v3  ;;  %v534_v25 = vsel %vm410_vm0, %v529_v55, %v533_v61  ;;  %v541_v3 = vrot.slane %v5341_v9, 1  ;;  %v1653_v10 = vrot.slane %v5377_v0, 1  ;;  %v1660_v55 = vrot.slane %v6234_v45, 1 }
  0x4a   : > { %4399 = vmatprep.mubr.msk.bf16.mxu0 %vm565_vm2, %v1644_v37  ;;  %v5387_v30 = vsel %vm1953_vm3, %v5370_v12, %v1989_v43  ;;  %v1957_v37 = vrot.slane %v5111_v17, 2  ;;  %v1652_v43 = vsel %vm1584_vm1, %v1647_v42, %v1651_v2  ;;  %v6260_v61 = vshll.u32 %v5361_v57, 16 }
  0x4b   : > { %v545_v9 = vor.u32 %v5344_v56, %v541_v3  ;;  %v1655_v42 = vor.u32 %v1654_v21, %v1653_v10  ;;  %v542_v45 = vsel %vm410_vm0, %v537_v31, %v541_v3  ;;  %v5481_v21 = vld [vmem:[%s6215_s1 + $0x18] sm:$0xff]  }
  0x4c   : > { %v1663_v54 = vrot.slane %v6260_v61, 2  ;;  %v5407_v60 = vsel %vm1953_vm3, %v2277_v20, %v1957_v37  ;;  %v306_v20 = vld [vmem:[%s5080_s8 + $0x8] sm:$0xc] }
  0x4d   : > { %v550_v41 = vsel %vm410_vm0, %v545_v9, %v549_v51  ;;  %v1656_v56 = vsel %vm1584_vm1, %v1651_v2, %v1655_v42  ;;  %v5451_v2 = vld [vmem:[%s5080_s8 + $0x98] sm:$0xff]  }
  0x4e   : > { %v1664_v57 = vor.u32 %v1663_v54, %v1660_v55  ;;  %v3890_v54 = vcombine.low %v306_v20, %v5089_v7  ;;  %v1967_v55 = vrot.slane %v5180_v4, 2  ;;  %v1971_v20 = vrot.slane %v5217_v32, 2 }
  0x4f   : > { %4248 = vmatmul.mubr.msk.bf16.gmra.mrb[24].mxu1 %vm565_vm2, %v526_v24  ;;  %v5404_v24 = vld [vmem:[%s5080_s8 + $0x90] ss:$0 sps:$4 sm:$0x11]  }
  0x50   : > { %4251 = vmatprep.mubr.msk.bf16.mxu1 %vm565_vm2, %v534_v25  ;;  %v1667_v25 = vshrl.u32 %v4963_v63, 16  ;;  %v555_v61 = vshll.u32 %v5404_v24, 16  ;;  %v553_v63 = vor.u32 %v5377_v0, %v549_v51  ;;  %v1954_v3 = vrot.slane %v3890_v54, 2 }
  0x51   : > { %4400 = vmatmul.mubr.msk.bf16.gmra.mrb[24].mxu0 %vm565_vm2, %v1648_v39  ;;  %v1665_v39 = vsel %vm1584_vm1, %v1655_v42, %v1664_v57  ;;  %v1958_v51 = vsel %vm1953_vm3, %v1955_v40, %v1957_v37  ;;  %v1975_v54 = vrot.slane %v5259_v1, 2 }
  0x52   : > { %4403 = vmatprep.mubr.msk.bf16.mxu0 %vm565_vm2, %v1652_v43  ;;  %v1669_v14 = vrot.slane %v1667_v25, 1  ;;  %v557_v10 = vrot.slane %v555_v61, 1  ;;  %v1956_v7 = vsel %vm1953_vm3, %v1954_v3, %v1955_v40  ;;  %v1965_v43 = vrot.slane %v5150_v49, 2 }
  0x53   : > { %v1969_v61 = vrot.slane %v5211_v29, 2  ;;  %v1977_v3 = vrot.slane %v5285_v36, 2  ;;  %v1979_v40 = vrot.slane %v5293_v53, 2 }
  0x54   : > { %v1673_v9 = vor.u32 %v1672_v23, %v1669_v14  ;;  %v1959_v23 = vrot.slane %v5118_v22, 2  ;;  %v5496_v25 = vsel %vm1953_vm3, %v1965_v43, %v1967_v55 }
  0x56   : > { %v5441_v14 = vsel %vm1953_vm3, %v1957_v37, %v1959_v23 }
  0x57   : > { %4252 = vmatmul.mubr.msk.bf16.gmra.mrb[28].mxu1 %vm565_vm2, %v542_v45  ;;  %v558_v45 = vsel %vm410_vm0, %v553_v63, %v557_v10  ;;  %v5512_v63 = vsel %vm1953_vm3, %v1969_v61, %v1971_v20  ;;  %v1973_v10 = vrot.slane %v5251_v59, 2 }
  0x58   : > { %4255 = vmatprep.mubr.msk.bf16.mxu1 %vm565_vm2, %v550_v41  ;;  %v1674_v41 = vsel %vm1584_vm1, %v1664_v57, %v1673_v9  ;;  %v1963_v57 = vrot.slane %v5136_v44, 2 }
  0x59   : > { %4404 = vmatmul.mubr.msk.bf16.gmra.mrb[28].mxu0 %vm565_vm2, %v1656_v56  ;;  %v1961_v56 = vrot.slane %v5129_v35, 2  ;;  %v5523_v9 = vsel %vm1953_vm3, %v1971_v20, %v1973_v10 }
  0x5a   : > { %4407 = vmatprep.mubr.msk.bf16.mxu0 %vm565_vm2, %v1665_v39  ;;  %v5491_v42 = vsel %vm1953_vm3, %v1963_v57, %v1965_v43  ;;  %v5507_v39 = vsel %vm1953_vm3, %v1967_v55, %v1969_v61  ;;  %v300_v43 = vld [vmem:[%s5080_s8] sm:$0xe]  ;;  %v1985_v55 = vrot.slane %v5354_v33, 2 }
  0x5b   : > { %v5474_v37 = vsel %vm1953_vm3, %v1961_v56, %v1963_v57  ;;  %v3828_v61 = vcombine.low %v300_v43, %v5085_v5  ;;  %v1047_v43 = vrot.slane %v5285_v36, 1 }
  0x5f   : > { %4256 = vmatmul.mubr.msk.bf16.gmra.mrb[32].mxu1 %vm565_vm2, %v558_v45  ;;  %v5528_v45 = vsel %vm1953_vm3, %v1973_v10, %v1975_v54  ;;  %v5578_v10 = vsel %vm1953_vm3, %v1985_v55, %v5370_v12 }
  0x60   : > { %4261 = vmatprep.mubr.msk.bf16.mxu1 %vm565_vm2, %v5092_v8  ;;  %v5447_v8 = vld [vmem:[%s6215_s1 + $0x38] sm:$0xff]  }
  0x61   : > { %4408 = vmatmul.mubr.msk.bf16.gmra.mrb[32].mxu0 %vm565_vm2, %v1674_v41  ;;  %v5539_v41 = vsel %vm1953_vm3, %v1975_v54, %v1977_v3  ;;  %v1022_v54 = vrot.slane %v3828_v61, 1  ;;  %v1051_v61 = vrot.slane %v5319_v27, 1 }
  0x62   : > { %4413 = vmatprep.mubr.msk.bf16.mxu0 %vm565_vm2, %v1956_v7  ;;  %v5544_v7 = vsel %vm1953_vm3, %v1977_v3, %v1979_v40  ;;  %v1023_v3 = vrot.slane %v5099_v11, 1 }
  0x64   : > { %v1024_v5 = vsel %vm1021_vm4, %v1022_v54, %v1023_v3  ;;  %v1053_v54 = vrot.slane %v5327_v38, 1 }
  0x67   : > { %4262 = vmatmul.mubr.msk.bf16.vlgmr.msra.gmra.mrb[0].mxu1 %vm565_vm2, %v5099_v11 }
  0x68   : > { %4265 = vmatprep.mubr.msk.bf16.mxu1 %vm565_vm2, %v5103_v13  ;;  %4298 = vmatpush3.bf16.msra.mxu1 %v5241_v52  ;;  %v2279_v52 = vrot.slane %v5451_v2, 2 }
  0x69   : > { %4414 = vmatmul.mubr.msk.bf16.vlgmr.msra.gmra.mrb[0].mxu0 %vm565_vm2, %v1958_v51  ;;  %4335 = vmatprep.subr.bf16.mxu1 %v5481_v21  ;;  %v1983_v51 = vrot.slane %v5327_v38, 2 }
  0x6a   : > { %4450 = vmatpush3.bf16.msra.mxu0 %v5155_v50  ;;  %4417 = vmatprep.mubr.msk.bf16.mxu0 %vm565_vm2, %v5441_v14  ;;  %v5464_v31 = vsel %vm1953_vm3, %v5370_v12, %v2279_v52  ;;  %v5469_v50 = vsel %vm1953_vm3, %v1959_v23, %v1961_v56  ;;  %v1981_v23 = vrot.slane %v5319_v27, 2  ;;  %v5590_v12 = vrot.slane %v5103_v13, 1 }
  0x6b   : > { %4487 = vmatprep.subr.bf16.mxu0 %v5447_v8  ;;  %v5572_v20 = vsel %vm1953_vm3, %v1983_v51, %v1985_v55  ;;  %v1029_v13 = vrot.slane %v5118_v22, 1  ;;  %v1049_v55 = vrot.slane %v5293_v53, 1 }
  0x6c   : > { %v5555_v56 = vsel %vm1953_vm3, %v1979_v40, %v1981_v23  ;;  %v5560_v57 = vsel %vm1953_vm3, %v1981_v23, %v1983_v51  ;;  %v1027_v40 = vrot.slane %v5111_v17, 1  ;;  %v1026_v11 = vsel %vm1021_vm4, %v1023_v3, %v5590_v12 }
  0x6d   : > { %v1045_v51 = vrot.slane %v5259_v1, 1  ;;  %v2518_v3 = vshrl.u32 %v5382_v18, 16 }
  0x6e   : > { %v5601_v23 = vsel %vm1021_vm4, %v5590_v12, %v1027_v40 }
  0x6f   : > { %4266 = vmatmul.mubr.msk.bf16.gmra.mrb[4].mxu1 %vm565_vm2, %v5111_v17  ;;  %v5611_v17 = vld [vmem:[%s6215_s1 + $0x40] sm:$0xff]  }
  0x70   : > { %4269 = vmatprep.mubr.msk.bf16.mxu1 %vm565_vm2, %v5118_v22 }
  0x71   : > { %4418 = vmatmul.mubr.msk.bf16.gmra.mrb[4].mxu0 %vm565_vm2, %v5469_v50 }
  0x72   : > { %4421 = vmatprep.mubr.msk.bf16.mxu0 %vm565_vm2, %v5474_v37 }
  0x77   : > { %4270 = vmatmul.mubr.msk.bf16.gmra.mrb[8].mxu1 %vm565_vm2, %v5129_v35 }
  0x78   : > { %4273 = vmatprep.mubr.msk.bf16.mxu1 %vm565_vm2, %v5136_v44 }
  0x79   : > { %4422 = vmatmul.mubr.msk.bf16.gmra.mrb[8].mxu0 %vm565_vm2, %v5491_v42 }
  0x7a   : > { %4425 = vmatprep.mubr.msk.bf16.mxu0 %vm565_vm2, %v5496_v25 }
  0x7f   : > { %4274 = vmatmul.mubr.msk.bf16.gmra.mrb[12].mxu1 %vm565_vm2, %v5150_v49 }
  0x80   : > { %4277 = vmatprep.mubr.msk.bf16.mxu1 %vm565_vm2, %v5180_v4 }
  0x81   : > { %4426 = vmatmul.mubr.msk.bf16.gmra.mrb[12].mxu0 %vm565_vm2, %v5507_v39 }
  0x82   : > { %4429 = vmatprep.mubr.msk.bf16.mxu0 %vm565_vm2, %v5512_v63 }
  0x87   : > { %4278 = vmatmul.mubr.msk.bf16.gmra.mrb[16].mxu1 %vm565_vm2, %v5211_v29 }
  0x88   : > { %4281 = vmatprep.mubr.msk.bf16.mxu1 %vm565_vm2, %v5217_v32 }
  0x89   : > { %4430 = vmatmul.mubr.msk.bf16.gmra.mrb[16].mxu0 %vm565_vm2, %v5523_v9 }
  0x8a   : > { %4433 = vmatprep.mubr.msk.bf16.mxu0 %vm565_vm2, %v5528_v45 }
  0x8f   : > { %4282 = vmatmul.mubr.msk.bf16.gmra.mrb[20].mxu1 %vm565_vm2, %v5251_v59 }
  0x90   : > { %4285 = vmatprep.mubr.msk.bf16.mxu1 %vm565_vm2, %v5259_v1 }
  0x91   : > { %4434 = vmatmul.mubr.msk.bf16.gmra.mrb[20].mxu0 %vm565_vm2, %v5539_v41 }
  0x92   : > { %4437 = vmatprep.mubr.msk.bf16.mxu0 %vm565_vm2, %v5544_v7 }
  0x97   : > { %4286 = vmatmul.mubr.msk.bf16.gmra.mrb[24].mxu1 %vm565_vm2, %v5285_v36 }
  0x98   : > { %4289 = vmatprep.mubr.msk.bf16.mxu1 %vm565_vm2, %v5293_v53 }
  0x99   : > { %4438 = vmatmul.mubr.msk.bf16.gmra.mrb[24].mxu0 %vm565_vm2, %v5555_v56 }
  0x9a   : > { %4441 = vmatprep.mubr.msk.bf16.mxu0 %vm565_vm2, %v5560_v57 }
  0x9f   : > { %4290 = vmatmul.mubr.msk.bf16.gmra.mrb[28].mxu1 %vm565_vm2, %v5319_v27 }
  0xa0   : > { %4293 = vmatprep.mubr.msk.bf16.mxu1 %vm565_vm2, %v5327_v38 }
  0xa1   : > { %4442 = vmatmul.mubr.msk.bf16.gmra.mrb[28].mxu0 %vm565_vm2, %v5572_v20 }
  0xa2   : > { %4445 = vmatprep.mubr.msk.bf16.mxu0 %vm565_vm2, %v5578_v10 }
  0xa7   : > { %4294 = vmatmul.mubr.msk.bf16.gmra.mrb[32].mxu1 %vm565_vm2, %v5354_v33 }
  0xa8   : > { %4299 = vmatprep.mubr.msk.bf16.mxu1 %vm565_vm2, %v1024_v5  ;;  %v2521_v5 = vshll.u32 %v5382_v18, 16  ;;  %v1345_v18 = vrot.slane %v5108_v16, 1 }
  0xa9   : > { %4446 = vmatmul.mubr.msk.bf16.gmra.mrb[32].mxu0 %vm565_vm2, %v5387_v30  ;;  %v1031_v30 = vrot.slane %v5129_v35, 1  ;;  %v1033_v35 = vrot.slane %v5136_v44, 1  ;;  %v1037_v44 = vrot.slane %v5180_v4, 1  ;;  %v1041_v4 = vrot.slane %v5217_v32, 1 }
  0xaa   : > { %4451 = vmatprep.mubr.msk.bf16.mxu0 %vm565_vm2, %v5407_v60  ;;  %v5620_v60 = vsel %vm1021_vm4, %v1027_v40, %v1029_v13 }
  0xab   : > { %v5624_v22 = vsel %vm1021_vm4, %v1029_v13, %v1031_v30  ;;  %v2523_v13 = vrot.slane %v2521_v5, 3 }
  0xaf   : > { %4300 = vmatmul.mubr.msk.bf16.vlgmr.msra.gmra.mrb[0].mxu1 %vm565_vm2, %v1026_v11  ;;  %v1057_v11 = vrot.slane %v5404_v24, 1 }
  0xb0   : > { %4303 = vmatprep.mubr.msk.bf16.mxu1 %vm565_vm2, %v5601_v23  ;;  %4336 = vmatpush3.bf16.msra.mxu1 %v5481_v21 }
  0xb1   : > { %4452 = vmatmul.mubr.msk.bf16.vlgmr.msra.gmra.mrb[0].mxu0 %vm565_vm2, %v5441_v14  ;;  %v1035_v14 = vrot.slane %v5150_v49, 1  ;;  %v1039_v49 = vrot.slane %v5211_v29, 1 }
  0xb2   : > { %4488 = vmatpush3.bf16.msra.mxu0 %v5447_v8  ;;  %4455 = vmatprep.mubr.msk.bf16.mxu0 %vm565_vm2, %v5469_v50  ;;  %v5637_v8 = vsel %vm1021_vm4, %v1031_v30, %v1033_v35  ;;  %v2525_v30 = vrot.slane %v5126_v34, 2  ;;  %v2530_v34 = vrot.slane %v5141_v46, 3  ;;  %v2537_v46 = vrot.slane %v5184_v6, 2 }
  0xb3   : > { %4525 = vmatprep.subr.bf16.mxu0 %v5611_v17  ;;  %v5640_v50 = vsel %vm1021_vm4, %v1033_v35, %v1035_v14  ;;  %v5656_v21 = vsel %vm1021_vm4, %v1037_v44, %v1039_v49  ;;  %v2526_v35 = vrot.slane %v5123_v26, 3  ;;  %v2529_v26 = vrot.slane %v5144_v47, 2 }
  0xb4   : > { %v2545_v6 = vrot.slane %v5208_v28, 2 }
  0xb7   : > { %4304 = vmatmul.mubr.msk.bf16.gmra.mrb[4].mxu1 %vm565_vm2, %v5620_v60 }
  0xb8   : > { %4307 = vmatprep.mubr.msk.bf16.mxu1 %vm565_vm2, %v5624_v22 }
  0xb9   : > { %4456 = vmatmul.mubr.msk.bf16.gmra.mrb[4].mxu0 %vm565_vm2, %v5474_v37  ;;  %v5653_v37 = vsel %vm1021_vm4, %v1035_v14, %v1037_v44 }
  0xba   : > { %4459 = vmatprep.mubr.msk.bf16.mxu0 %vm565_vm2, %v5491_v42  ;;  %v1043_v42 = vrot.slane %v5251_v59, 1 }
  0xbf   : > { %4308 = vmatmul.mubr.msk.bf16.gmra.mrb[8].mxu1 %vm565_vm2, %v5637_v8 }
  0xc0   : > { %4311 = vmatprep.mubr.msk.bf16.mxu1 %vm565_vm2, %v5640_v50 }
  0xc1   : > { %4460 = vmatmul.mubr.msk.bf16.gmra.mrb[8].mxu0 %vm565_vm2, %v5496_v25  ;;  %v5669_v25 = vsel %vm1021_vm4, %v1039_v49, %v1041_v4  ;;  %v2527_v49 = vor.u32 %v2526_v35, %v2525_v30  ;;  %v6266_v30 = vld [vmem:[#allocation8_spill] sm:$0xff] }
  0xc2   : > { %4463 = vmatprep.mubr.msk.bf16.mxu0 %vm565_vm2, %v5507_v39  ;;  %v5672_v39 = vsel %vm1021_vm4, %v1041_v4, %v1043_v42  ;;  %v1346_v4 = vsel %vm1021_vm4, %v1345_v18, %v5590_v12  ;;  %v2531_v12 = vor.u32 %v2530_v34, %v2529_v26  ;;  %v2557_v35 = vrot.slane %v6266_v30, 2  ;;  %v6267_v18 = vld [vmem:[#allocation7_spill] sm:$0xff]  ;;  %v6270_v34 = vld [vmem:[#allocation12_spill] sm:$0xff] }
  0xc4   : > { %v2532_v47 = vsel %vm2516_vm5, %v2527_v49, %v2531_v12 }
  0xc7   : > { %4312 = vmatmul.mubr.msk.bf16.gmra.mrb[12].mxu1 %vm565_vm2, %v5653_v37 }
  0xc8   : > { %4315 = vmatprep.mubr.msk.bf16.mxu1 %vm565_vm2, %v5656_v21 }
  0xc9   : > { %4464 = vmatmul.mubr.msk.bf16.gmra.mrb[12].mxu0 %vm565_vm2, %v5512_v63  ;;  %v5685_v63 = vsel %vm1021_vm4, %v1043_v42, %v1045_v51  ;;  %v2534_v42 = vrot.slane %v5147_v48, 3 }
  0xca   : > { %4467 = vmatprep.mubr.msk.bf16.mxu0 %vm565_vm2, %v5523_v9  ;;  %v5688_v9 = vsel %vm1021_vm4, %v1045_v51, %v1047_v43 }
  0xcf   : > { %4316 = vmatmul.mubr.msk.bf16.gmra.mrb[16].mxu1 %vm565_vm2, %v5669_v25 }
  0xd0   : > { %4319 = vmatprep.mubr.msk.bf16.mxu1 %vm565_vm2, %v5672_v39 }
  0xd1   : > { %4468 = vmatmul.mubr.msk.bf16.gmra.mrb[16].mxu0 %vm565_vm2, %v5528_v45  ;;  %v5701_v45 = vsel %vm1021_vm4, %v1047_v43, %v1049_v55  ;;  %v2542_v43 = vrot.slane %v5190_v15, 3 }
  0xd2   : > { %4471 = vmatprep.mubr.msk.bf16.mxu0 %vm565_vm2, %v5539_v41  ;;  %v5704_v41 = vsel %vm1021_vm4, %v1049_v55, %v1051_v61 }
  0xd7   : > { %4320 = vmatmul.mubr.msk.bf16.gmra.mrb[20].mxu1 %vm565_vm2, %v5685_v63 }
  0xd8   : > { %4323 = vmatprep.mubr.msk.bf16.mxu1 %vm565_vm2, %v5688_v9 }
  0xd9   : > { %4472 = vmatmul.mubr.msk.bf16.gmra.mrb[20].mxu0 %vm565_vm2, %v5544_v7  ;;  %v5712_v7 = vrot.slane %v5354_v33, 1 }
  0xda   : > { %4475 = vmatprep.mubr.msk.bf16.mxu0 %vm565_vm2, %v5555_v56  ;;  %v5719_v56 = vsel %vm1021_vm4, %v1051_v61, %v1053_v54 }
  0xdb   : > { %v5725_v40 = vsel %vm1021_vm4, %v1053_v54, %v5712_v7  ;;  %v1058_v24 = vsel %vm1021_vm4, %v5712_v7, %v1057_v11  ;;  %v6263_v54 = vld [vmem:[#allocation3_spill] sm:$0xff]  ;;  %v6264_v11 = vld [vmem:[#allocation6_spill] sm:$0xff] }
  0xdf   : > { %4324 = vmatmul.mubr.msk.bf16.gmra.mrb[24].mxu1 %vm565_vm2, %v5701_v45 }
  0xe0   : > { %4327 = vmatprep.mubr.msk.bf16.mxu1 %vm565_vm2, %v5704_v41 }
  0xe1   : > { %4476 = vmatmul.mubr.msk.bf16.gmra.mrb[24].mxu0 %vm565_vm2, %v5560_v57  ;;  %v4972_v57 = vld [vmem:[%s5080_s8 + $0xa0] ss:$0 sps:$4 sm:$0x33]  }
  0xe2   : > { %4479 = vmatprep.mubr.msk.bf16.mxu0 %vm565_vm2, %v5572_v20  ;;  %v2520_v20 = vrot.slane %v2518_v3, 2  ;;  %v2281_v14 = vrot.slane %v4972_v57, 2  ;;  %v2550_v3 = vrot.slane %v6263_v54, 3  ;;  %v2553_v57 = vrot.slane %v6264_v11, 2  ;;  %v6278_v54 = vld [vmem:[#allocation20_spill] sm:$0xff]  ;;  %v6279_v11 = vld [vmem:[#allocation19_spill] sm:$0xff] }
  0xe4   : > { %v2524_v44 = vor.u32 %v2523_v13, %v2520_v20  ;;  %v2282_v16 = vsel %vm1953_vm3, %v2279_v52, %v2281_v14  ;;  %v2538_v52 = vrot.slane %v5173_v62, 3  ;;  %v2558_v14 = vrot.slane %v6267_v18, 3 }
  0xe7   : > { %4328 = vmatmul.mubr.msk.bf16.gmra.mrb[28].mxu1 %vm565_vm2, %v5719_v56 }
  0xe8   : > { %4331 = vmatprep.mubr.msk.bf16.mxu1 %vm565_vm2, %v5725_v40 }
  0xe9   : > { %4480 = vmatmul.mubr.msk.bf16.gmra.mrb[28].mxu0 %vm565_vm2, %v5578_v10  ;;  %v2533_v10 = vrot.slane %v5167_v58, 2  ;;  %v2541_v58 = vrot.slane %v5197_v19, 2  ;;  %v6262_v19 = vld [vmem:[#allocation4_spill] sm:$0xff] }
  0xea   : > { %4483 = vmatprep.mubr.msk.bf16.mxu0 %vm565_vm2, %v5464_v31  ;;  %v2528_v31 = vsel %vm2516_vm5, %v2524_v44, %v2527_v49  ;;  %v6268_v49 = vld [vmem:[#allocation10_spill] sm:$0xff] }
  0xeb   : > { %v2535_v51 = vor.u32 %v2534_v42, %v2533_v10  ;;  %v2543_v55 = vor.u32 %v2542_v43, %v2541_v58  ;;  %v6271_v10 = vld [vmem:[#allocation11_spill] sm:$0xff]  ;;  %v6274_v58 = vld [vmem:[#allocation16_spill] sm:$0xff] }
  0xec   : > { %v2566_v42 = vrot.slane %v6271_v10, 3  ;;  %v2573_v43 = vrot.slane %v6274_v58, 2  ;;  %v4978_v10 = vld [vmem:[%s5080_s8 + $0x14] sm:$0xf] }
  0xed   : > { %v2536_v48 = vsel %vm2516_vm5, %v2531_v12, %v2535_v51 }
  0xef   : > { %4332 = vmatmul.mubr.msk.bf16.gmra.mrb[32].mxu1 %vm565_vm2, %v1058_v24  ;;  %v2559_v24 = vor.u32 %v2558_v14, %v2557_v35 }
  0xf0   : > { %4337 = vmatprep.mubr.msk.bf16.mxu1 %vm565_vm2, %v1346_v4  ;;  %v2561_v4 = vrot.slane %v6268_v49, 2  ;;  %v4975_v49 = vld [vmem:[%s5080_s8 + $0x98] ss:$0 sps:$4 sm:$0x11]  }
  0xf1   : > { %4484 = vmatmul.mubr.msk.bf16.gmra.mrb[32].mxu0 %vm565_vm2, %v2282_v16 }
  0xf2   : > { %4489 = vmatprep.mubr.msk.bf16.mxu0 %vm565_vm2, %v2528_v31  ;;  %v2565_v31 = vrot.slane %v6270_v34, 2 }
  0xf4   : > { %v2567_v12 = vor.u32 %v2566_v42, %v2565_v31  ;;  %v1349_v31 = vrot.slane %v4975_v49, 1 }
  0xf7   : > { %4338 = vmatmul.mubr.msk.bf16.vlgmr.msra.gmra.mrb[0].mxu1 %vm565_vm2, %v5601_v23  ;;  %v2539_v23 = vor.u32 %v2538_v52, %v2537_v46 }
  0xf8   : > { %4341 = vmatprep.mubr.msk.bf16.mxu1 %vm565_vm2, %v5620_v60  ;;  %v6261_v60 = vld [vmem:[#allocation2_spill] sm:$0xff] }
  0xf9   : > { %4490 = vmatmul.mubr.msk.bf16.vlgmr.msra.gmra.mrb[0].mxu0 %vm565_vm2, %v2532_v47  ;;  %v2540_v62 = vsel %vm2516_vm5, %v2535_v51, %v2539_v23  ;;  %v2546_v61 = vrot.slane %v6261_v60, 3  ;;  %v2544_v15 = vsel %vm2516_vm5, %v2539_v23, %v2543_v55  ;;  %v6272_v47 = vld [vmem:[#allocation14_spill] sm:$0xff]  ;;  %v6275_v23 = vld [vmem:[#allocation15_spill] sm:$0xff] }
  0xfa   : > { %4526 = vmatpush3.bf16.msra.mxu0 %v5611_v17  ;;  %4493 = vmatprep.mubr.msk.bf16.mxu0 %vm565_vm2, %v2536_v48  ;;  %v2549_v17 = vrot.slane %v6262_v19, 2  ;;  %v2569_v46 = vrot.slane %v6272_v47, 2  ;;  %v6276_v60 = vld [vmem:[#allocation18_spill] sm:$0xff] }
  0xfc   : > { %v2551_v5 = vor.u32 %v2550_v3, %v2549_v17  ;;  %v2581_v17 = vrot.slane %v5377_v0, 2  ;;  %v2582_v3 = vrot.slane %v6278_v54, 3  ;;  %v6280_v0 = vshrl.u32 %v6279_v11, 16 }
  0xff   : > { %4342 = vmatmul.mubr.msk.bf16.gmra.mrb[4].mxu1 %vm565_vm2, %v5624_v22  ;;  %v2547_v22 = vor.u32 %v2546_v61, %v2545_v6  ;;  %v2577_v61 = vrot.slane %v6276_v60, 2 }
 0x100   : > { %4345 = vmatprep.mubr.msk.bf16.mxu1 %vm565_vm2, %v5637_v8  ;;  %v6265_v8 = vld [vmem:[#allocation5_spill] sm:$0xff] }
 0x101   : > { %4494 = vmatmul.mubr.msk.bf16.gmra.mrb[4].mxu0 %vm565_vm2, %v2540_v62  ;;  %v2548_v28 = vsel %vm2516_vm5, %v2543_v55, %v2547_v22  ;;  %v2554_v20 = vrot.slane %v6265_v8, 3  ;;  %v2552_v13 = vsel %vm2516_vm5, %v2547_v22, %v2551_v5  ;;  %v2574_v55 = vrot.slane %v6275_v23, 3 }
 0x102   : > { %4497 = vmatprep.mubr.msk.bf16.mxu0 %vm565_vm2, %v2544_v15  ;;  %v2583_v22 = vor.u32 %v2582_v3, %v2581_v17  ;;  %v6281_v8 = vshll.u32 %v6279_v11, 16  ;;  %v2901_v3 = vrot.slane %v5217_v32, 3  ;;  %v2905_v32 = vrot.slane %v5259_v1, 3 }
 0x103   : > { %v2575_v62 = vor.u32 %v2574_v55, %v2573_v43  ;;  %v4982_v55 = vld [vmem:[%s5080_s8 + $0x30] sm:$0xff]   ;;  %v2913_v1 = vrot.slane %v5327_v38, 3 }
 0x107   : > { %4346 = vmatmul.mubr.msk.bf16.gmra.mrb[8].mxu1 %vm565_vm2, %v5640_v50  ;;  %v2555_v50 = vor.u32 %v2554_v20, %v2553_v57  ;;  %v2585_v57 = vrot.slane %v6280_v0, 2  ;;  %v2586_v20 = vrot.slane %v6281_v8, 3  ;;  %v2907_v0 = vrot.slane %v5285_v36, 3 }
 0x108   : > { %4349 = vmatprep.mubr.msk.bf16.mxu1 %vm565_vm2, %v5653_v37  ;;  %v6269_v37 = vld [vmem:[#allocation9_spill] sm:$0xff]  ;;  %v2915_v36 = vrot.slane %v5354_v33, 3 }
 0x109   : > { %4498 = vmatmul.mubr.msk.bf16.gmra.mrb[8].mxu0 %vm565_vm2, %v2548_v28  ;;  %v2556_v44 = vsel %vm2516_vm5, %v2551_v5, %v2555_v50  ;;  %v2562_v16 = vrot.slane %v6269_v37, 3  ;;  %v2560_v26 = vsel %vm2516_vm5, %v2555_v50, %v2559_v24  ;;  %v2590_v5 = vshrl.u32 %v5451_v2, 16 }
 0x10a   : > { %4501 = vmatprep.mubr.msk.bf16.mxu0 %vm565_vm2, %v2552_v13  ;;  %v2593_v28 = vshll.u32 %v5451_v2, 16  ;;  %v5839_v13 = vld [vmem:[%s5080_s8 + $0xa0] ss:$0 sps:$4 sm:$0x77]   ;;  %v2587_v14 = vor.u32 %v2586_v20, %v2585_v57  ;;  %v2908_v8 = vsel %vm2885_vm6, %v2905_v32, %v2907_v0  ;;  %v2911_v20 = vrot.slane %v5319_v27, 3 }
 0x10b   : > { %v2592_v35 = vrot.slane %v2590_v5, 2  ;;  %v2599_v50 = vshrl.u32 %v5839_v13, 16  ;;  %v2919_v27 = vrot.slane %v5451_v2, 3  ;;  %v2921_v38 = vrot.slane %v5839_v13, 3 }
 0x10c   : > { %v2595_v18 = vrot.slane %v2593_v28, 3  ;;  %v2588_v37 = vsel %vm2516_vm5, %v2583_v22, %v2587_v14 }
 0x10d   : > { %v2922_v33 = vsel %vm2885_vm6, %v2919_v27, %v2921_v38 }
 0x10f   : > { %4350 = vmatmul.mubr.msk.bf16.gmra.mrb[12].mxu1 %vm565_vm2, %v5656_v21  ;;  %v2563_v21 = vor.u32 %v2562_v16, %v2561_v4  ;;  %v312_v4 = vld [vmem:[%s5080_s8 + $0x10] sm:$0x8]  ;;  %v2601_v16 = vrot.slane %v2599_v50, 2 }
 0x110   : > { %4353 = vmatprep.mubr.msk.bf16.mxu1 %vm565_vm2, %v5669_v25  ;;  %v6273_v25 = vld [vmem:[#allocation13_spill] sm:$0xff]  ;;  %v3952_v42 = vcombine.low %v312_v4, %v4978_v10 }
 0x111   : > { %4502 = vmatmul.mubr.msk.bf16.gmra.mrb[12].mxu0 %vm565_vm2, %v2556_v44  ;;  %v2564_v51 = vsel %vm2516_vm5, %v2559_v24, %v2563_v21  ;;  %v2570_v52 = vrot.slane %v6273_v25, 3  ;;  %v2568_v48 = vsel %vm2516_vm5, %v2563_v21, %v2567_v12  ;;  %v2602_v24 = vshll.u32 %v5839_v13, 16  ;;  %v4980_v25 = vld [vmem:[%s5080_s8 + $0x20] sm:$0xff]  }
 0x112   : > { %4505 = vmatprep.mubr.msk.bf16.mxu0 %vm565_vm2, %v2560_v26  ;;  %v2596_v44 = vor.u32 %v2595_v18, %v2592_v35  ;;  %v2886_v21 = vrot.slane %v3952_v42, 3  ;;  %v2914_v18 = vsel %vm2885_vm6, %v2911_v20, %v2913_v1 }
 0x113   : > { %v2604_v26 = vrot.slane %v2602_v24, 3 }
 0x114   : > { %v2597_v34 = vsel %vm2516_vm5, %v2587_v14, %v2596_v44 }
 0x117   : > { %4354 = vmatmul.mubr.msk.bf16.gmra.mrb[16].mxu1 %vm565_vm2, %v5672_v39  ;;  %v2571_v39 = vor.u32 %v2570_v52, %v2569_v46  ;;  %v2889_v52 = vrot.slane %v4980_v25, 3 }
 0x118   : > { %4357 = vmatprep.mubr.msk.bf16.mxu1 %vm565_vm2, %v5685_v63  ;;  %v6277_v63 = vld [vmem:[#allocation17_spill] sm:$0xff] }
 0x119   : > { %4506 = vmatmul.mubr.msk.bf16.gmra.mrb[16].mxu0 %vm565_vm2, %v2564_v51  ;;  %v2572_v6 = vsel %vm2516_vm5, %v2567_v12, %v2571_v39  ;;  %v2578_v15 = vrot.slane %v6277_v63, 3  ;;  %v2576_v19 = vsel %vm2516_vm5, %v2571_v39, %v2575_v62  ;;  %v4979_v12 = vld [vmem:[%s5080_s8 + $0x18] sm:$0xff]   ;;  %v2893_v39 = vrot.slane %v4982_v55, 3  ;;  %v4984_v63 = vld [vmem:[%s5080_s8 + $0x40] sm:$0xff]  }
 0x11a   : > { %4509 = vmatprep.mubr.msk.bf16.mxu0 %vm565_vm2, %v2568_v48  ;;  %v2887_v51 = vrot.slane %v4979_v12, 3  ;;  %v4981_v48 = vld [vmem:[%s5080_s8 + $0x28] sm:$0xff]  }
 0x11b   : > { %v2891_v58 = vrot.slane %v4981_v48, 3 }
 0x11c   : > { %v2888_v46 = vsel %vm2885_vm6, %v2886_v21, %v2887_v51  ;;  %v2890_v43 = vsel %vm2885_vm6, %v2887_v51, %v2889_v52 }
 0x11d   : > { %v2892_v23 = vsel %vm2885_vm6, %v2889_v52, %v2891_v58  ;;  %v2894_v60 = vsel %vm2885_vm6, %v2891_v58, %v2893_v39 }
 0x11f   : > { %4358 = vmatmul.mubr.msk.bf16.gmra.mrb[20].mxu1 %vm565_vm2, %v5688_v9  ;;  %v2579_v9 = vor.u32 %v2578_v15, %v2577_v61  ;;  %v2897_v15 = vrot.slane %v4984_v63, 3 }
 0x120   : > { %4361 = vmatprep.mubr.msk.bf16.mxu1 %vm565_vm2, %v5701_v45 }
 0x121   : > { %4510 = vmatmul.mubr.msk.bf16.gmra.mrb[20].mxu0 %vm565_vm2, %v2572_v6  ;;  %v2580_v45 = vsel %vm2516_vm5, %v2575_v62, %v2579_v9  ;;  %v2584_v30 = vsel %vm2516_vm5, %v2579_v9, %v2583_v22  ;;  %v4983_v62 = vld [vmem:[%s5080_s8 + $0x38] sm:$0xff]   ;;  %v3275_v9 = vld [vmem:[%s6217_s3] sm:$0xff]  ;;  %v3276_v22 = vld [vmem:[%s6217_s3 + $0x8] sm:$0xff] }
 0x122   : > { %4513 = vmatprep.mubr.msk.bf16.mxu0 %vm565_vm2, %v2576_v19  ;;  %v2895_v6 = vrot.slane %v4983_v62, 3  ;;  %v2899_v19 = vrot.slane %v5211_v29, 3  ;;  %v2903_v29 = vrot.slane %v5251_v59, 3  ;;  %v4621_v5 = vpack.c.bf16 %v3276_v22, %v3275_v9 }
 0x123   : > { %v2909_v59 = vrot.slane %v5293_v53, 3  ;;  %v2917_v53 = vrot.slane %v6279_v11, 3 }
 0x124   : > { %v2896_v61 = vsel %vm2885_vm6, %v2893_v39, %v2895_v6  ;;  %v2898_v17 = vsel %vm2885_vm6, %v2895_v6, %v2897_v15  ;;  %v2900_v54 = vsel %vm2885_vm6, %v2897_v15, %v2899_v19  ;;  %4622 = vmatprep.subr.bf16.mxu1 %v4621_v5  ;;  %v2902_v28 = vsel %vm2885_vm6, %v2899_v19, %v2901_v3 }
 0x125   : > { %4624 = vmatpush3.bf16.msra.mxu1 %v4621_v5  ;;  %v2906_v57 = vsel %vm2885_vm6, %v2903_v29, %v2905_v32  ;;  %v2912_v35 = vsel %vm2885_vm6, %v2909_v59, %v2911_v20  ;;  %v2918_v14 = vsel %vm2885_vm6, %v2915_v36, %v2917_v53  ;;  %v2920_v50 = vsel %vm2885_vm6, %v2917_v53, %v2919_v27 }
 0x127   : > { %4362 = vmatmul.mubr.msk.bf16.gmra.mrb[24].mxu1 %vm565_vm2, %v5704_v41  ;;  %v1347_v41 = vrot.slane %v6279_v11, 1 }
 0x128   : > { %4365 = vmatprep.mubr.msk.bf16.mxu1 %vm565_vm2, %v5719_v56 }
 0x129   : > { %4514 = vmatmul.mubr.msk.bf16.gmra.mrb[24].mxu0 %vm565_vm2, %v2580_v45  ;;  %v1348_v56 = vsel %vm1021_vm4, %v5712_v7, %v1347_v41  ;;  %v2605_v7 = vor.u32 %v2604_v26, %v2601_v16  ;;  %v2904_v45 = vsel %vm2885_vm6, %v2901_v3, %v2903_v29 }
 0x12a   : > { %4517 = vmatprep.mubr.msk.bf16.mxu0 %vm565_vm2, %v2584_v30  ;;  %v2910_v30 = vsel %vm2885_vm6, %v2907_v0, %v2909_v59 }
 0x12b   : > { %v2606_v47 = vsel %vm2516_vm5, %v2596_v44, %v2605_v7 }
 0x12f   : > { %4366 = vmatmul.mubr.msk.bf16.gmra.mrb[28].mxu1 %vm565_vm2, %v5725_v40  ;;  %v1350_v40 = vsel %vm1021_vm4, %v1347_v41, %v1349_v31  ;;  %v2916_v41 = vsel %vm2885_vm6, %v2913_v1, %v2915_v36 }
 0x130   : > { %4369 = vmatprep.mubr.msk.bf16.mxu1 %vm565_vm2, %v1348_v56 }
 0x131   : > { %4518 = vmatmul.mubr.msk.bf16.gmra.mrb[28].mxu0 %vm565_vm2, %v2588_v37 }
 0x132   : > { %4521 = vmatprep.mubr.msk.bf16.mxu0 %vm565_vm2, %v2597_v34 }
 0x137   : > { %4370 = vmatmul.mubr.msk.bf16.gmra.mrb[32].mxu1 %vm565_vm2, %v1350_v40 }
 0x139   : > { %4522 = vmatmul.mubr.msk.bf16.gmra.mrb[32].mxu0 %vm565_vm2, %v2606_v47 }
 0x13a   : > { %4527 = vmatprep.mubr.msk.bf16.mxu0 %vm565_vm2, %v2888_v46 }
 0x141   : > { %4528 = vmatmul.mubr.msk.bf16.vlgmr.msra.gmra.mrb[0].mxu0 %vm565_vm2, %v2890_v43 }
 0x142   : > { %4531 = vmatprep.mubr.msk.bf16.mxu0 %vm565_vm2, %v2892_v23 }
 0x149   : > { %4532 = vmatmul.mubr.msk.bf16.gmra.mrb[4].mxu0 %vm565_vm2, %v2894_v60 }
 0x14a   : > { %4535 = vmatprep.mubr.msk.bf16.mxu0 %vm565_vm2, %v2896_v61 }
 0x151   : > { %4536 = vmatmul.mubr.msk.bf16.gmra.mrb[8].mxu0 %vm565_vm2, %v2898_v17 }
 0x152   : > { %4539 = vmatprep.mubr.msk.bf16.mxu0 %vm565_vm2, %v2900_v54  ;;  %v5984_v54 = vld [vmem:[%s6216_s2] ss:$0 sm:$0xff] }
 0x159   : > { %4540 = vmatmul.mubr.msk.bf16.gmra.mrb[12].mxu0 %vm565_vm2, %v2902_v28 }
 0x15a   : > { %4543 = vmatprep.mubr.msk.bf16.mxu0 %vm565_vm2, %v2904_v45 }
 0x161   : > { %4544 = vmatmul.mubr.msk.bf16.gmra.mrb[16].mxu0 %vm565_vm2, %v2906_v57 }
 0x162   : > { %4547 = vmatprep.mubr.msk.bf16.mxu0 %vm565_vm2, %v2908_v8 }
 0x169   : > { %4548 = vmatmul.mubr.msk.bf16.gmra.mrb[20].mxu0 %vm565_vm2, %v2910_v30 }
 0x16a   : > { %4551 = vmatprep.mubr.msk.bf16.mxu0 %vm565_vm2, %v2912_v35 }
 0x171   : > { %4552 = vmatmul.mubr.msk.bf16.gmra.mrb[24].mxu0 %vm565_vm2, %v2914_v18 }
 0x172   : > { %4555 = vmatprep.mubr.msk.bf16.mxu0 %vm565_vm2, %v2916_v41 }
 0x179   : > { %4556 = vmatmul.mubr.msk.bf16.gmra.mrb[28].mxu0 %vm565_vm2, %v2918_v14 }
 0x17a   : > { %4559 = vmatprep.mubr.msk.bf16.mxu0 %vm565_vm2, %v2920_v50 }
 0x181   : > { %4560 = vmatmul.mubr.msk.bf16.gmra.mrb[32].mxu0 %vm565_vm2, %v2922_v33 }
 0x1ca   : > { %v4339_v24 = vpop.f32.mrb[0].mxu1 }
 0x1cb   : > { %v1400_v44 = vpop.f32.mrb[1].mxu1 }
 0x1cc   : > { %v4340_v49 = vpop.f32.mrb[2].mxu1 }
 0x1cd   : > { %v1403_v11 = vpop.f32.mrb[3].mxu1 }
 0x1d2   : > { %v4343_v56 = vpop.f32.mrb[4].mxu1 }
 0x1d3   : > { %v1416_v2 = vpop.f32.mrb[5].mxu1 }
 0x1d4   : > { %v4344_v4 = vpop.f32.mrb[6].mxu1 }
 0x1d5   : > { %v1419_v37 = vpop.f32.mrb[7].mxu1 }
 0x1da   : > { %v5925_v16 = vpop.f32.mrb[8].mxu1 }
 0x1db   : > { %v5927_v26 = vpop.f32.mrb[9].mxu1 }
 0x1dc   : > { %v5929_v34 = vpop.f32.mrb[10].mxu1 }
 0x1dd   : > { %v5931_v31 = vpop.f32.mrb[11].mxu1 }
 0x1e2   : > { %v5933_v13 = vpop.f32.mrb[12].mxu1 }
 0x1e3   : > { %v5935_v10 = vpop.f32.mrb[13].mxu1 }
 0x1e4   : > { %v5937_v42 = vpop.f32.mrb[14].mxu1 }
 0x1e5   : > { %v5939_v7 = vpop.f32.mrb[15].mxu1 }
 0x1ea   : > { %v5941_v40 = vpop.f32.mrb[16].mxu1 }
 0x1eb   : > { %v5943_v21 = vpop.f32.mrb[17].mxu1 }
 0x1ec   : > { %v5945_v12 = vpop.f32.mrb[18].mxu1 }
 0x1ed   : > { %v5947_v51 = vpop.f32.mrb[19].mxu1 }
 0x1f2   : > { %v5949_v47 = vpop.f32.mrb[20].mxu1 }
 0x1f3   : > { %v5951_v46 = vpop.f32.mrb[21].mxu1 }
 0x1f4   : > { %v5953_v25 = vpop.f32.mrb[22].mxu1 }
 0x1f5   : > { %v5955_v52 = vpop.f32.mrb[23].mxu1 }
 0x1fa   : > { %v5957_v48 = vpop.f32.mrb[24].mxu1 }
 0x1fb   : > { %v5959_v58 = vpop.f32.mrb[25].mxu1 }
 0x1fc   : > { %v5961_v43 = vpop.f32.mrb[26].mxu1 }
 0x1fd   : > { %v5963_v23 = vpop.f32.mrb[27].mxu1 }
 0x202   : > { %v5965_v55 = vpop.f32.mrb[28].mxu1 }
 0x203   : > { %v5967_v39 = vpop.f32.mrb[29].mxu1 }
 0x204   : > { %v5969_v62 = vpop.f32.mrb[30].mxu1 }
 0x205   : > { %v5971_v6 = vpop.f32.mrb[31].mxu1 }
 0x20a   : > { %v5973_v60 = vpop.f32.mrb[32].mxu1 }
 0x20b   : > { %v5975_v61 = vpop.f32.mrb[33].mxu1 }
 0x20c   : > { %v5977_v63 = vpop.f32.mrb[34].mxu1 }
 0x20d   : > { %v5979_v15 = vpop.f32.mrb[35].mxu1 }
 0x214   : > { %v4529_v19 = vpop.f32.mrb[0].mxu0 }
 0x215   : > { %v4625_v17 = vadd.f32 %v4529_v19, %v4339_v24  ;;  %v3017_v3 = vpop.f32.mrb[1].mxu0 }
 0x216   : > { %v4626_v9 = vadd.f32 %v3017_v3, %v1400_v44  ;;  %v4530_v22 = vpop.f32.mrb[2].mxu0 }
 0x217   : > { %v4627_v29 = vadd.f32 %v4530_v22, %v4340_v49  ;;  %v3020_v5 = vpop.f32.mrb[3].mxu0  ;;  %v3205_v32 = vadd.f32 %v4625_v17, %v5984_v54 }
 0x218   : > { %v3203_v28 = vadd.f32 %v4626_v9, %v5984_v54  ;;  %v4628_v45 = vadd.f32 %v3020_v5, %v1403_v11 }
 0x219   : > { %v3206_v8 = vadd.f32 %v4627_v29, %v5984_v54  ;;  %v3241_v30 = vmax.f32 %v3205_v32, 0.0 }
 0x21a   : > { %v3239_v0 = vmax.f32 %v3203_v28, 0.0  ;;  %v3204_v57 = vadd.f32 %v4628_v45, %v5984_v54 }
 0x21b   : > { %v3242_v27 = vmax.f32 %v3206_v8, 0.0 }
 0x21c   : > { %v3240_v59 = vmax.f32 %v3204_v57, 0.0  ;;  %v4533_v20 = vpop.f32.mrb[4].mxu0  ;;  %4567 = vmatprep.mubr.msk.f32.mxu1 %vm565_vm2, %v3239_v0 }
 0x21d   : > { %v4629_v35 = vadd.f32 %v4533_v20, %v4343_v56  ;;  %v3033_v1 = vpop.f32.mrb[5].mxu0 }
 0x21e   : > { %v4630_v36 = vadd.f32 %v3033_v1, %v1416_v2  ;;  %v4534_v18 = vpop.f32.mrb[6].mxu0  ;;  %4568 = vmatmul.mubr.msk.f32.vlgmr.msra.gmra.mrb[36].mxu1 %vm565_vm2, %v3240_v59 }
 0x21f   : > { %v4631_v41 = vadd.f32 %v4534_v18, %v4344_v4  ;;  %v3036_v53 = vpop.f32.mrb[7].mxu0  ;;  %4570 = vmatprep.mubr.msk.f32.mxu1 %vm565_vm2, %v3241_v30  ;;  %v3209_v38 = vadd.f32 %v4629_v35, %v5984_v54 }
 0x220   : > { %v3207_v14 = vadd.f32 %v4630_v36, %v5984_v54  ;;  %v4632_v50 = vadd.f32 %v3036_v53, %v1419_v37 }
 0x221   : > { %v3210_v44 = vadd.f32 %v4631_v41, %v5984_v54  ;;  %v3245_v56 = vmax.f32 %v3209_v38, 0.0 }
 0x222   : > { %v3243_v33 = vmax.f32 %v3207_v14, 0.0  ;;  %v3208_v24 = vadd.f32 %v4632_v50, %v5984_v54  ;;  %4571 = vmatmul.mubr.msk.f32.gmra.mrb[38].mxu1 %vm565_vm2, %v3242_v27 }
 0x223   : > { %v3246_v9 = vmax.f32 %v3210_v44, 0.0 }
 0x224   : > { %v3244_v49 = vmax.f32 %v3208_v24, 0.0  ;;  %v4537_v11 = vpop.f32.mrb[8].mxu0  ;;  %4573 = vmatprep.mubr.msk.f32.mxu1 %vm565_vm2, %v3243_v33 }
 0x225   : > { %v4633_v2 = vadd.f32 %v4537_v11, %v5925_v16  ;;  %v3049_v4 = vpop.f32.mrb[9].mxu0 }
 0x226   : > { %v4634_v19 = vadd.f32 %v3049_v4, %v5927_v26  ;;  %v4538_v37 = vpop.f32.mrb[10].mxu0  ;;  %4574 = vmatmul.mubr.msk.f32.gmra.mrb[40].mxu1 %vm565_vm2, %v3244_v49 }
 0x227   : > { %v4635_v17 = vadd.f32 %v4538_v37, %v5929_v34  ;;  %v3052_v3 = vpop.f32.mrb[11].mxu0  ;;  %4576 = vmatprep.mubr.msk.f32.mxu1 %vm565_vm2, %v3245_v56  ;;  %v3213_v5 = vadd.f32 %v4633_v2, %v5984_v54 }
 0x228   : > { %v3211_v22 = vadd.f32 %v4634_v19, %v5984_v54  ;;  %v4636_v29 = vadd.f32 %v3052_v3, %v5931_v31 }
 0x229   : > { %v3214_v26 = vadd.f32 %v4635_v17, %v5984_v54  ;;  %v3249_v34 = vmax.f32 %v3213_v5, 0.0 }
 0x22a   : > { %v3247_v28 = vmax.f32 %v3211_v22, 0.0  ;;  %v3212_v16 = vadd.f32 %v4636_v29, %v5984_v54  ;;  %4577 = vmatmul.mubr.msk.f32.gmra.mrb[42].mxu1 %vm565_vm2, %v3246_v9 }
 0x22b   : > { %v3250_v30 = vmax.f32 %v3214_v26, 0.0 }
 0x22c   : > { %v3248_v45 = vmax.f32 %v3212_v16, 0.0  ;;  %v4541_v32 = vpop.f32.mrb[12].mxu0  ;;  %4579 = vmatprep.mubr.msk.f32.mxu1 %vm565_vm2, %v3247_v28 }
 0x22d   : > { %v4637_v0 = vadd.f32 %v4541_v32, %v5933_v13  ;;  %v3065_v57 = vpop.f32.mrb[13].mxu0 }
 0x22e   : > { %v4638_v8 = vadd.f32 %v3065_v57, %v5935_v10  ;;  %v4542_v31 = vpop.f32.mrb[14].mxu0  ;;  %4580 = vmatmul.mubr.msk.f32.gmra.mrb[44].mxu1 %vm565_vm2, %v3248_v45 }
 0x22f   : > { %v4639_v59 = vadd.f32 %v4542_v31, %v5937_v42  ;;  %v3068_v20 = vpop.f32.mrb[15].mxu0  ;;  %4582 = vmatprep.mubr.msk.f32.mxu1 %vm565_vm2, %v3249_v34  ;;  %v3217_v36 = vadd.f32 %v4637_v0, %v5984_v54 }
 0x230   : > { %v3215_v35 = vadd.f32 %v4638_v8, %v5984_v54  ;;  %v4640_v1 = vadd.f32 %v3068_v20, %v5939_v7 }
 0x231   : > { %v3218_v10 = vadd.f32 %v4639_v59, %v5984_v54  ;;  %v3253_v42 = vmax.f32 %v3217_v36, 0.0 }
 0x232   : > { %v3251_v18 = vmax.f32 %v3215_v35, 0.0  ;;  %v3216_v13 = vadd.f32 %v4640_v1, %v5984_v54  ;;  %4583 = vmatmul.mubr.msk.f32.gmra.mrb[46].mxu1 %vm565_vm2, %v3250_v30 }
 0x233   : > { %v3254_v24 = vmax.f32 %v3218_v10, 0.0 }
 0x234   : > { %v3252_v41 = vmax.f32 %v3216_v13, 0.0  ;;  %v4545_v53 = vpop.f32.mrb[16].mxu0  ;;  %4585 = vmatprep.mubr.msk.f32.mxu1 %vm565_vm2, %v3251_v18 }
 0x235   : > { %v4641_v27 = vadd.f32 %v4545_v53, %v5941_v40  ;;  %v3081_v14 = vpop.f32.mrb[17].mxu0 }
 0x236   : > { %v4642_v50 = vadd.f32 %v3081_v14, %v5943_v21  ;;  %v4546_v7 = vpop.f32.mrb[18].mxu0  ;;  %4586 = vmatmul.mubr.msk.f32.gmra.mrb[48].mxu1 %vm565_vm2, %v3252_v41 }
 0x237   : > { %v4643_v38 = vadd.f32 %v4546_v7, %v5945_v12  ;;  %v3084_v33 = vpop.f32.mrb[19].mxu0  ;;  %4588 = vmatprep.mubr.msk.f32.mxu1 %vm565_vm2, %v3253_v42  ;;  %v3221_v11 = vadd.f32 %v4641_v27, %v5984_v54 }
 0x238   : > { %v3219_v44 = vadd.f32 %v4642_v50, %v5984_v54  ;;  %v4644_v49 = vadd.f32 %v3084_v33, %v5947_v51 }
 0x239   : > { %v3222_v21 = vadd.f32 %v4643_v38, %v5984_v54  ;;  %v3257_v12 = vmax.f32 %v3221_v11, 0.0 }
 0x23a   : > { %v3255_v56 = vmax.f32 %v3219_v44, 0.0  ;;  %v3220_v40 = vadd.f32 %v4644_v49, %v5984_v54  ;;  %4589 = vmatmul.mubr.msk.f32.gmra.mrb[50].mxu1 %vm565_vm2, %v3254_v24 }
 0x23b   : > { %v3258_v22 = vmax.f32 %v3222_v21, 0.0 }
 0x23c   : > { %v3256_v2 = vmax.f32 %v3220_v40, 0.0  ;;  %v4549_v4 = vpop.f32.mrb[20].mxu0  ;;  %4591 = vmatprep.mubr.msk.f32.mxu1 %vm565_vm2, %v3255_v56 }
 0x23d   : > { %v4645_v19 = vadd.f32 %v4549_v4, %v5949_v47  ;;  %v3097_v37 = vpop.f32.mrb[21].mxu0 }
 0x23e   : > { %v4646_v17 = vadd.f32 %v3097_v37, %v5951_v46  ;;  %v4550_v51 = vpop.f32.mrb[22].mxu0  ;;  %4592 = vmatmul.mubr.msk.f32.gmra.mrb[52].mxu1 %vm565_vm2, %v3256_v2 }
 0x23f   : > { %v4647_v3 = vadd.f32 %v4550_v51, %v5953_v25  ;;  %v3100_v9 = vpop.f32.mrb[23].mxu0  ;;  %4594 = vmatprep.mubr.msk.f32.mxu1 %vm565_vm2, %v3257_v12  ;;  %v3225_v28 = vadd.f32 %v4645_v19, %v5984_v54 }
 0x240   : > { %v3223_v29 = vadd.f32 %v4646_v17, %v5984_v54  ;;  %v4648_v5 = vadd.f32 %v3100_v9, %v5955_v52 }
 0x241   : > { %v3226_v46 = vadd.f32 %v4647_v3, %v5984_v54  ;;  %v3261_v25 = vmax.f32 %v3225_v28, 0.0 }
 0x242   : > { %v3259_v16 = vmax.f32 %v3223_v29, 0.0  ;;  %v3224_v47 = vadd.f32 %v4648_v5, %v5984_v54  ;;  %4595 = vmatmul.mubr.msk.f32.gmra.mrb[54].mxu1 %vm565_vm2, %v3258_v22 }
 0x243   : > { %v3262_v31 = vmax.f32 %v3226_v46, 0.0 }
 0x244   : > { %v3260_v26 = vmax.f32 %v3224_v47, 0.0  ;;  %v4553_v45 = vpop.f32.mrb[24].mxu0  ;;  %4597 = vmatprep.mubr.msk.f32.mxu1 %vm565_vm2, %v3259_v16 }
 0x245   : > { %v4649_v32 = vadd.f32 %v4553_v45, %v5957_v48  ;;  %v3113_v34 = vpop.f32.mrb[25].mxu0 }
 0x246   : > { %v4650_v0 = vadd.f32 %v3113_v34, %v5959_v58  ;;  %v4554_v52 = vpop.f32.mrb[26].mxu0  ;;  %4598 = vmatmul.mubr.msk.f32.gmra.mrb[56].mxu1 %vm565_vm2, %v3260_v26 }
 0x247   : > { %v4651_v57 = vadd.f32 %v4554_v52, %v5961_v43  ;;  %v3116_v8 = vpop.f32.mrb[27].mxu0  ;;  %4600 = vmatprep.mubr.msk.f32.mxu1 %vm565_vm2, %v3261_v25  ;;  %v3229_v30 = vadd.f32 %v4649_v32, %v5984_v54 }
 0x248   : > { %v3227_v59 = vadd.f32 %v4650_v0, %v5984_v54  ;;  %v4652_v20 = vadd.f32 %v3116_v8, %v5963_v23 }
 0x249   : > { %v3230_v58 = vadd.f32 %v4651_v57, %v5984_v54  ;;  %v3265_v43 = vmax.f32 %v3229_v30, 0.0 }
 0x24a   : > { %v3263_v35 = vmax.f32 %v3227_v59, 0.0  ;;  %v3228_v48 = vadd.f32 %v4652_v20, %v5984_v54  ;;  %4601 = vmatmul.mubr.msk.f32.gmra.mrb[58].mxu1 %vm565_vm2, %v3262_v31 }
 0x24b   : > { %v3266_v42 = vmax.f32 %v3230_v58, 0.0 }
 0x24c   : > { %v3264_v1 = vmax.f32 %v3228_v48, 0.0  ;;  %v4557_v36 = vpop.f32.mrb[28].mxu0  ;;  %4603 = vmatprep.mubr.msk.f32.mxu1 %vm565_vm2, %v3263_v35 }
 0x24d   : > { %v4653_v18 = vadd.f32 %v4557_v36, %v5965_v55  ;;  %v3129_v13 = vpop.f32.mrb[29].mxu0 }
 0x24e   : > { %v4654_v10 = vadd.f32 %v3129_v13, %v5967_v39  ;;  %v4558_v23 = vpop.f32.mrb[30].mxu0  ;;  %4604 = vmatmul.mubr.msk.f32.gmra.mrb[60].mxu1 %vm565_vm2, %v3264_v1 }
 0x24f   : > { %v4655_v41 = vadd.f32 %v4558_v23, %v5969_v62  ;;  %v3132_v53 = vpop.f32.mrb[31].mxu0  ;;  %4606 = vmatprep.mubr.msk.f32.mxu1 %vm565_vm2, %v3265_v43  ;;  %v3233_v50 = vadd.f32 %v4653_v18, %v5984_v54 }
 0x250   : > { %v3231_v27 = vadd.f32 %v4654_v10, %v5984_v54  ;;  %v4656_v14 = vadd.f32 %v3132_v53, %v5971_v6 }
 0x251   : > { %v3234_v39 = vadd.f32 %v4655_v41, %v5984_v54  ;;  %v3269_v62 = vmax.f32 %v3233_v50, 0.0 }
 0x252   : > { %v3267_v7 = vmax.f32 %v3231_v27, 0.0  ;;  %v3232_v55 = vadd.f32 %v4656_v14, %v5984_v54  ;;  %4607 = vmatmul.mubr.msk.f32.gmra.mrb[62].mxu1 %vm565_vm2, %v3266_v42 }
 0x253   : > { %v3270_v40 = vmax.f32 %v3234_v39, 0.0 }
 0x254   : > { %v3268_v38 = vmax.f32 %v3232_v55, 0.0  ;;  %v4561_v33 = vpop.f32.mrb[32].mxu0  ;;  %4609 = vmatprep.mubr.msk.f32.mxu1 %vm565_vm2, %v3267_v7 }
 0x255   : > { %v4657_v24 = vadd.f32 %v4561_v33, %v5973_v60  ;;  %v3145_v44 = vpop.f32.mrb[33].mxu0 }
 0x256   : > { %v4658_v49 = vadd.f32 %v3145_v44, %v5975_v61  ;;  %v4562_v6 = vpop.f32.mrb[34].mxu0  ;;  %4610 = vmatmul.mubr.msk.f32.gmra.mrb[64].mxu1 %vm565_vm2, %v3268_v38 }
 0x257   : > { %v4659_v11 = vadd.f32 %v4562_v6, %v5977_v63  ;;  %v3148_v56 = vpop.f32.mrb[35].mxu0  ;;  %4612 = vmatprep.mubr.msk.f32.mxu1 %vm565_vm2, %v3269_v62  ;;  %v3237_v4 = vadd.f32 %v4657_v24, %v5984_v54 }
 0x258   : > { %v3235_v21 = vadd.f32 %v4658_v49, %v5984_v54  ;;  %v4660_v2 = vadd.f32 %v3148_v56, %v5979_v15  ;;  %v6090_v15 = vld [vmem:[%s6218_s4] ss:$0 sm:$0xff] }
 0x259   : > { %v3238_v61 = vadd.f32 %v4659_v11, %v5984_v54  ;;  %v3273_v63 = vmax.f32 %v3237_v4, 0.0 }
 0x25a   : > { %v3271_v60 = vmax.f32 %v3235_v21, 0.0  ;;  %v3236_v12 = vadd.f32 %v4660_v2, %v5984_v54  ;;  %4613 = vmatmul.mubr.msk.f32.gmra.mrb[66].mxu1 %vm565_vm2, %v3270_v40 }
 0x25b   : > { %v3274_v37 = vmax.f32 %v3238_v61, 0.0 }
 0x25c   : > { %v3272_v19 = vmax.f32 %v3236_v12, 0.0  ;;  %4615 = vmatprep.mubr.msk.f32.mxu1 %vm565_vm2, %v3271_v60 }
 0x25e   : > { %4616 = vmatmul.mubr.msk.f32.gmra.mrb[68].mxu1 %vm565_vm2, %v3272_v19 }
 0x25f   : > { %4618 = vmatprep.mubr.msk.f32.mxu1 %vm565_vm2, %v3273_v63 }
 0x262   : > { %4619 = vmatmul.mubr.msk.f32.gmra.mrb[70].mxu1 %vm565_vm2, %v3274_v37 }
 0x2f1   : > { %v4569_v54 = vpop.f32.mrb[36].mxu1 }
 0x2f2   : > { %v3464_v17 = vadd.f32 %v4569_v54, %v6090_v15  ;;  %v3458_v51 = vpop.f32.mrb[37].mxu1 }
 0x2f3   : > { %v3459_v3 = vadd.f32 %v6090_v15, %v3458_v51 }
 0x2f4   : > { %3639 = vst.msk [vmem:[%s6095_s9 + $0x8] sm:$0xff] %vm3637_vm7, %v3464_v17 }
 0x2f5   : > { %3638 = vst.msk [vmem:[%s6095_s9] sm:$0xff] %vm3637_vm7, %v3459_v3  ;;  %v4572_v9 = vpop.f32.mrb[38].mxu1 }
 0x2f6   : > { %v3474_v22 = vadd.f32 %v4572_v9, %v6090_v15  ;;  %v3468_v29 = vpop.f32.mrb[39].mxu1 }
 0x2f7   : > { %v3469_v5 = vadd.f32 %v6090_v15, %v3468_v29 }
 0x2f8   : > { %3641 = vst.msk [vmem:[%s6095_s9 + $0x18] sm:$0xff] %vm3637_vm7, %v3474_v22 }
 0x2f9   : > { %3640 = vst.msk [vmem:[%s6095_s9 + $0x10] sm:$0xff] %vm3637_vm7, %v3469_v5  ;;  %v4575_v28 = vpop.f32.mrb[40].mxu1 }
 0x2fa   : > { %v3484_v16 = vadd.f32 %v4575_v28, %v6090_v15  ;;  %v3478_v47 = vpop.f32.mrb[41].mxu1 }
 0x2fb   : > { %v3479_v46 = vadd.f32 %v6090_v15, %v3478_v47 }
 0x2fc   : > { %3643 = vst.msk [vmem:[%s6095_s9 + $0x28] sm:$0xff] %vm3637_vm7, %v3484_v16 }
 0x2fd   : > { %3642 = vst.msk [vmem:[%s6095_s9 + $0x20] sm:$0xff] %vm3637_vm7, %v3479_v46  ;;  %v4578_v26 = vpop.f32.mrb[42].mxu1 }
 0x2fe   : > { %v3494_v45 = vadd.f32 %v4578_v26, %v6090_v15  ;;  %v3488_v25 = vpop.f32.mrb[43].mxu1 }
 0x2ff   : > { %v3489_v32 = vadd.f32 %v6090_v15, %v3488_v25 }
 0x300   : > { %3645 = vst.msk [vmem:[%s6095_s9 + $0x38] sm:$0xff] %vm3637_vm7, %v3494_v45 }
 0x301   : > { %3644 = vst.msk [vmem:[%s6095_s9 + $0x30] sm:$0xff] %vm3637_vm7, %v3489_v32  ;;  %v4581_v34 = vpop.f32.mrb[44].mxu1 }
 0x302   : > { %v3504_v0 = vadd.f32 %v4581_v34, %v6090_v15  ;;  %v3498_v52 = vpop.f32.mrb[45].mxu1 }
 0x303   : > { %v3499_v57 = vadd.f32 %v6090_v15, %v3498_v52 }
 0x304   : > { %3647 = vst.msk [vmem:[%s6095_s9 + $0x48] sm:$0xff] %vm3637_vm7, %v3504_v0 }
 0x305   : > { %3646 = vst.msk [vmem:[%s6095_s9 + $0x40] sm:$0xff] %vm3637_vm7, %v3499_v57  ;;  %v4584_v8 = vpop.f32.mrb[46].mxu1 }
 0x306   : > { %v3514_v31 = vadd.f32 %v4584_v8, %v6090_v15  ;;  %v3508_v59 = vpop.f32.mrb[47].mxu1 }
 0x307   : > { %v3509_v20 = vadd.f32 %v6090_v15, %v3508_v59 }
 0x308   : > { %3649 = vst.msk [vmem:[%s6095_s9 + $0x58] sm:$0xff] %vm3637_vm7, %v3514_v31 }
 0x309   : > { %3648 = vst.msk [vmem:[%s6095_s9 + $0x50] sm:$0xff] %vm3637_vm7, %v3509_v20  ;;  %v4587_v30 = vpop.f32.mrb[48].mxu1 }
 0x30a   : > { %v3524_v35 = vadd.f32 %v4587_v30, %v6090_v15  ;;  %v3518_v48 = vpop.f32.mrb[49].mxu1 }
 0x30b   : > { %v3519_v58 = vadd.f32 %v6090_v15, %v3518_v48 }
 0x30c   : > { %3651 = vst.msk [vmem:[%s6095_s9 + $0x68] sm:$0xff] %vm3637_vm7, %v3524_v35 }
 0x30d   : > { %3650 = vst.msk [vmem:[%s6095_s9 + $0x60] sm:$0xff] %vm3637_vm7, %v3519_v58  ;;  %v4590_v1 = vpop.f32.mrb[50].mxu1 }
 0x30e   : > { %v3534_v36 = vadd.f32 %v4590_v1, %v6090_v15  ;;  %v3528_v43 = vpop.f32.mrb[51].mxu1 }
 0x30f   : > { %v3529_v18 = vadd.f32 %v6090_v15, %v3528_v43 }
 0x310   : > { %3653 = vst.msk [vmem:[%s6095_s9 + $0x78] sm:$0xff] %vm3637_vm7, %v3534_v36 }
 0x311   : > { %3652 = vst.msk [vmem:[%s6095_s9 + $0x70] sm:$0xff] %vm3637_vm7, %v3529_v18  ;;  %v4593_v13 = vpop.f32.mrb[52].mxu1 }
 0x312   : > { %v3544_v10 = vadd.f32 %v4593_v13, %v6090_v15  ;;  %v3538_v23 = vpop.f32.mrb[53].mxu1 }
 0x313   : > { %v3539_v41 = vadd.f32 %v6090_v15, %v3538_v23 }
 0x314   : > { %3655 = vst.msk [vmem:[%s6095_s9 + $0x88] sm:$0xff] %vm3637_vm7, %v3544_v10 }
 0x315   : > { %3654 = vst.msk [vmem:[%s6095_s9 + $0x80] sm:$0xff] %vm3637_vm7, %v3539_v41  ;;  %v4596_v53 = vpop.f32.mrb[54].mxu1 }
 0x316   : > { %v3554_v42 = vadd.f32 %v4596_v53, %v6090_v15  ;;  %v3548_v27 = vpop.f32.mrb[55].mxu1 }
 0x317   : > { %v3549_v14 = vadd.f32 %v6090_v15, %v3548_v27 }
 0x318   : > { %3657 = vst.msk [vmem:[%s6095_s9 + $0x98] sm:$0xff] %vm3637_vm7, %v3554_v42 }
 0x319   : > { %3656 = vst.msk [vmem:[%s6095_s9 + $0x90] sm:$0xff] %vm3637_vm7, %v3549_v14  ;;  %v4599_v50 = vpop.f32.mrb[56].mxu1 }
 0x31a   : > { %v3564_v7 = vadd.f32 %v4599_v50, %v6090_v15  ;;  %v3558_v55 = vpop.f32.mrb[57].mxu1 }
 0x31b   : > { %v3559_v39 = vadd.f32 %v6090_v15, %v3558_v55 }
 0x31c   : > { %3659 = vst.msk [vmem:[%s6095_s9 + $0xa8] sm:$0xff] %vm3637_vm7, %v3564_v7 }
 0x31d   : > { %3658 = vst.msk [vmem:[%s6095_s9 + $0xa0] sm:$0xff] %vm3637_vm7, %v3559_v39  ;;  %v4602_v38 = vpop.f32.mrb[58].mxu1 }
 0x31e   : > { %v3574_v33 = vadd.f32 %v4602_v38, %v6090_v15  ;;  %v3568_v62 = vpop.f32.mrb[59].mxu1 }
 0x31f   : > { %v3569_v24 = vadd.f32 %v6090_v15, %v3568_v62 }
 0x320   : > { %3661 = vst.msk [vmem:[%s6095_s9 + $0xb8] sm:$0xff] %vm3637_vm7, %v3574_v33 }
 0x321   : > { %3660 = vst.msk [vmem:[%s6095_s9 + $0xb0] sm:$0xff] %vm3637_vm7, %v3569_v24  ;;  %v4605_v44 = vpop.f32.mrb[60].mxu1 }
 0x322   : > { %v3584_v49 = vadd.f32 %v4605_v44, %v6090_v15  ;;  %v3578_v6 = vpop.f32.mrb[61].mxu1 }
 0x323   : > { %v3579_v11 = vadd.f32 %v6090_v15, %v3578_v6 }
 0x324   : > { %3663 = vst.msk [vmem:[%s6095_s9 + $0xc8] sm:$0xff] %vm3637_vm7, %v3584_v49 }
 0x325   : > { %3662 = vst.msk [vmem:[%s6095_s9 + $0xc0] sm:$0xff] %vm3637_vm7, %v3579_v11  ;;  %v4608_v56 = vpop.f32.mrb[62].mxu1 }
 0x326   : > { %v3594_v40 = vadd.f32 %v4608_v56, %v6090_v15  ;;  %v3588_v21 = vpop.f32.mrb[63].mxu1 }
 0x327   : > { %v3589_v2 = vadd.f32 %v6090_v15, %v3588_v21 }
 0x328   : > { %3665 = vst.msk [vmem:[%s6095_s9 + $0xd8] sm:$0xff] %vm3637_vm7, %v3594_v40 }
 0x329   : > { %3664 = vst.msk [vmem:[%s6095_s9 + $0xd0] sm:$0xff] %vm3637_vm7, %v3589_v2  ;;  %v4611_v4 = vpop.f32.mrb[64].mxu1 }
 0x32a   : > { %v3604_v60 = vadd.f32 %v4611_v4, %v6090_v15  ;;  %v3598_v12 = vpop.f32.mrb[65].mxu1 }
 0x32b   : > { %v3599_v61 = vadd.f32 %v6090_v15, %v3598_v12 }
 0x32c   : > { %3667 = vst.msk [vmem:[%s6095_s9 + $0xe8] sm:$0xff] %vm3637_vm7, %v3604_v60 }
 0x32d   : > { %3666 = vst.msk [vmem:[%s6095_s9 + $0xe0] sm:$0xff] %vm3637_vm7, %v3599_v61  ;;  %v4614_v19 = vpop.f32.mrb[66].mxu1 }
 0x32e   : > { %v3614_v63 = vadd.f32 %v4614_v19, %v6090_v15  ;;  %v3608_v37 = vpop.f32.mrb[67].mxu1 }
 0x32f   : > { %v3609_v54 = vadd.f32 %v6090_v15, %v3608_v37 }
 0x330   : > { %3669 = vst.msk [vmem:[%s6095_s9 + $0xf8] sm:$0xff] %vm3637_vm7, %v3614_v63 }
 0x331   : > { %3668 = vst.msk [vmem:[%s6095_s9 + $0xf0] sm:$0xff] %vm3637_vm7, %v3609_v54  ;;  %v4617_v17 = vpop.f32.mrb[68].mxu1 }
 0x332   : > { %v3624_v51 = vadd.f32 %v4617_v17, %v6090_v15  ;;  %v3618_v3 = vpop.f32.mrb[69].mxu1 }
 0x333   : > { %v3619_v9 = vadd.f32 %v6090_v15, %v3618_v3 }
 0x334   : > { %3671 = vst.msk [vmem:[%s6095_s9 + $0x108] sm:$0xff] %vm3637_vm7, %v3624_v51 }
 0x335   : > { %3670 = vst.msk [vmem:[%s6095_s9 + $0x100] sm:$0xff] %vm3637_vm7, %v3619_v9  ;;  %v4620_v22 = vpop.f32.mrb[70].mxu1 }
 0x336   : > { %v3634_v29 = vadd.f32 %v4620_v22, %v6090_v15  ;;  %v3628_v5 = vpop.f32.mrb[71].mxu1 }
 0x337   : > { %v3629_v28 = vadd.f32 %v6090_v15, %v3628_v5 }
 0x338   : > { %3673 = vst.msk [vmem:[%s6095_s9 + $0x118] sm:$0xff] %vm3637_vm7, %v3634_v29 }
 0x339   : > { %3672 = vst.msk [vmem:[%s6095_s9 + $0x110] sm:$0xff] %vm3637_vm7, %v3629_v28 }
 0x33a PF: > { %s15_s20 = sadd.s32 1, %s5007_s20   ;;  %s6282_s18 = smov %s5003_s19 }
 0x33b   : > { %p12_p5 = scmp.ge.s32.totalorder %s15_s20, 4   ;;  %s6283_s19 = smov %s6285_s21 }
 0x33d   :  { %14 = sbr.rel (!%p12_p5) target bundleno = 2 (0x2), region = 70 }

// kernel: seg_no_ffm_fpn_forward.9
= control target key start
LH: loop header
LB: loop body
LE: loop exit
PB: predicated region body
PF: predicated region fallthrough
CT: control target
= control target key end

     0   :  { %8 = vsyncpa [#allocation3], 0  ;;  %s2537_s0 = inlined_call_operand.vmem [shape: f32[2,80,16], index: 0, kind: input, shape index: {}]   ;;  %s2538_s1 = inlined_call_operand.vmem [shape: f32[128,16], index: 1, kind: input, shape index: {}]   ;;  %s2539_s2 = inlined_call_operand.vmem [shape: f32[16,128], index: 2, kind: input, shape index: {}]   ;;  %s2540_s3 = inlined_call_operand.hbm [shape: f32[2,5,128,128], index: 3, kind: output, shape index: {}]  }
   0x1   :  { %10 = vsyncpa [#allocation3 + $0x1], 0  ;;  %s2112_s12 = smov 0   ;;  %s2114_s13 = smov 0  }
   0x2   :  { %s2116_s14 = smov 0   ;;  %s2118_s15 = smov 0  }
   0x3 LB: > { %s2133_s16 = sadd.s32 4294967295, %s2087_s15   ;;  %s1532_s17 = sadd.s32 4294967294, %s2087_s15   ;;  %s2087_s15 = sphi %s2118_s15, %s2546_s15   ;;  %s2083_s14 = sphi %s2116_s14, %s2545_s14   ;;  %s2079_s13 = sphi %s2114_s13, %s2544_s13   ;;  %s2075_s12 = sphi %s2112_s12, %s2543_s12  }
   0x4   : > { %s2137_s18 = sadd.s32 1, %s2087_s15   ;;  %s91_s19 = sadd.s32 1, %s2083_s14 }
   0x5   : > { %s88_s20 = ssub.s32 %s2087_s15, %s2137_s18  ;;  %p101_p0 = scmp.ne.s32.totalorder %s2083_s14, %s2079_s13 }
   0x6   : > { %p89_p1 = scmp.eq.s32.totalorder %s88_s20, 0  ;;  %p102_p2 = scmp.eq.s32.totalorder %s2133_s16, 1 }
   0x7   : > { %p107_p3 = scmp.ne.s32.totalorder %s2079_s13, %s2075_s12  ;;  %p108_p4 = scmp.eq.s32.totalorder %s1532_s17, 1 }
   0x8   : > { %s2148_s21 = scalar_select %p89_p1, %s2083_s14, %s91_s19  }
   0x9   : > { %p2150_p5 = por %p102_p2, %p101_p0  ;;  %p2154_p6 = por %p108_p4, %p107_p3 }
   0xa   : > { %p1535_p7 = scmp.ge.s32.totalorder %s2087_s15, 1  ;;  %p140_p8 = scmp.lt.s32.totalorder %s2087_s15, 3 }
   0xc   : > { %p141_p9 = pnand %p1535_p7, %p140_p8 }
   0xd   : > { %v179_v0 = vld [vmem:[%s2539_s2] sm:$0xff] (!%p141_p9)  ;;  %v180_v1 = vld [vmem:[%s2539_s2 + $0x8] sm:$0xff] (!%p141_p9)  ;;  %p164_p10 = scmp.lt.s32.totalorder (!%p141_p9), %s2133_s16, 1  ;;  %vm181_vm0 = vcmask (!%p141_p9), 130048   ;;  %v2184_v13 = vld [vmem:[%s2538_s1 + $0x10] sm:$0xff] (!%p141_p9)  ;;  %s2089_s11 = smov (!%p141_p9), [#allocation2]  }
   0xe   : > { %144 = sbr.rel (%p141_p9) target bundleno = 565 (0x235), region = 32  ;;  %v1955_v2 = vpack.c.bf16 (!%p141_p9), %v180_v1, %v179_v0  ;;  %1822 = vmatprep.mubr.msk.f32.mxu1 (!%p141_p9), %vm181_vm0, %v2184_v13  ;;  %v2191_v14 = vld [vmem:[%s2538_s1] sm:$0xff] (!%p141_p9)  ;;  %v2198_v20 = vld [vmem:[%s2538_s1 + $0x8] sm:$0xff] (!%p141_p9)  ;;  %v2203_v22 = vld [vmem:[%s2538_s1 + $0x18] sm:$0xff] (!%p141_p9)  ;;  %s2029_s17 = sshll.u32 (!%p141_p9), %s2089_s11, 4  ;;  %s2030_s17 = int_to_ptr.vmem [resolvable:$false] %s2029_s17 }
   0xf   : > { %v2208_v23 = vld [vmem:[%s2538_s1 + $0x20] sm:$0xff] (!%p141_p9)  ;;  %v2221_v27 = vld [vmem:[%s2538_s1 + $0x28] sm:$0xff] (!%p141_p9)  ;;  %v2226_v28 = vld [vmem:[%s2538_s1 + $0x30] sm:$0xff] (!%p141_p9)  ;;  %s2031_s19 = scalar_lea.vmem (!%p141_p9), %s2030_s17, 20480 }
  0x10   : > { %1956 = vmatprep.subr.bf16.mxu0 (!%p141_p9), %v1955_v2  ;;  %v2239_v32 = vld [vmem:[%s2538_s1 + $0x38] sm:$0xff] (!%p141_p9)  ;;  %v2244_v33 = vld [vmem:[%s2538_s1 + $0x40] sm:$0xff] (!%p141_p9)  ;;  %v2257_v37 = vld [vmem:[%s2538_s1 + $0x48] sm:$0xff] (!%p141_p9) }
  0x11   : > { %1958 = vmatpush3.bf16.msra.mxu0 (!%p141_p9), %v1955_v2  ;;  %v2262_v38 = vld [vmem:[%s2538_s1 + $0x50] sm:$0xff] (!%p141_p9)  ;;  %v2275_v39 = vld [vmem:[%s2538_s1 + $0x58] sm:$0xff] (!%p141_p9)  ;;  %v2280_v40 = vld [vmem:[%s2538_s1 + $0x60] sm:$0xff] (!%p141_p9) }
  0x12   : > { %v340_v41 = vld [vmem:[%s2538_s1 + $0x68] sm:$0xff] (!%p141_p9)  ;;  %v341_v42 = vld [vmem:[%s2538_s1 + $0x70] sm:$0xff] (!%p141_p9)  ;;  %v342_v43 = vld [vmem:[%s2538_s1 + $0x78] sm:$0xff] (!%p141_p9) }
  0x15   : > { %s165_s28 = scalar_select %p164_p10, %s2133_s16, 1 }
  0x17   : > { %s1982_s29 = smul.u32 80, %s165_s28 }
  0x19   : > { %s168_s5 = scalar_lea.vmem %s2537_s0, %s1982_s29  ;;  %s161_s29 = sand.u32 1, %s2079_s13  }
  0x1a   : > { %v169_v3 = vld [vmem:[%s168_s5] sm:$0xff]  ;;  %v170_v4 = vld [vmem:[%s168_s5 + $0x8] sm:$0xff]  ;;  %v171_v5 = vld [vmem:[%s168_s5 + $0x10] sm:$0xff]  ;;  %s1981_s30 = smul.u32 640, %s161_s29 }
  0x1b   : > { %1800 = vmatprep.mubr.msk.f32.mxu0 %vm181_vm0, %v169_v3  ;;  %v172_v6 = vld [vmem:[%s168_s5 + $0x18] sm:$0xff]  ;;  %v173_v7 = vld [vmem:[%s168_s5 + $0x20] sm:$0xff]  ;;  %v174_v8 = vld [vmem:[%s168_s5 + $0x28] sm:$0xff] }
  0x1c   : > { %1801 = vmatmul.mubr.msk.f32.vlgmr.msra.gmra.mrb[0].mxu0 %vm181_vm0, %v170_v4  ;;  %v175_v9 = vld [vmem:[%s168_s5 + $0x30] sm:$0xff]  ;;  %v176_v10 = vld [vmem:[%s168_s5 + $0x38] sm:$0xff]  ;;  %v177_v11 = vld [vmem:[%s168_s5 + $0x40] sm:$0xff]  ;;  %s2403_s4 = scalar_lea.vmem [#allocation2], %s1981_s30 }
  0x1d   : > { %1803 = vmatprep.mubr.msk.f32.mxu0 %vm181_vm0, %v171_v5  ;;  %v178_v12 = vld [vmem:[%s168_s5 + $0x48] sm:$0xff]  ;;  %s1983_s5 = smul.u32 10240, %s2133_s16  ;;  %s1470_s6 = sshll.u32 %s2403_s4, 4  ;;  %s2490_s6 = int_to_ptr.vmem [resolvable:$true] %s1470_s6 }
  0x1e   : > { %s2496_s16 = scalar_lea.sflag [#allocation3], %s161_s29  ;;  %s2025_s10 = scalar_lea.vmem %s2490_s6, 10240 }
  0x1f   : > { %s2488_s9 = scalar_lea.hbm %s2540_s3, %s1983_s5  ;;  %p2026_p11 = scmp.ne.s32.totalorder %s2490_s6, %s2025_s10 }
  0x20   : > { %1804 = vmatmul.mubr.msk.f32.gmra.mrb[2].mxu0 %vm181_vm0, %v172_v6  ;;  %p2032_p0 = scmp.lt.s32.totalorder %s2490_s6, %s2030_s17  ;;  %p2033_p1 = scmp.lt.s32.totalorder %s2031_s19, %s2025_s10 }
  0x21   : > { %1806 = vmatprep.mubr.msk.f32.mxu0 %vm181_vm0, %v173_v7  ;;  %p2027_p12 = pnand %p2026_p11, %p2150_p5 }
  0x22   : > { %p2034_p2 = por %p2033_p1, %p2032_p0 }
  0x23   : > { %p2028_p13 = pneg %p2027_p12 }
  0x24   : > { %1807 = vmatmul.mubr.msk.f32.gmra.mrb[4].mxu0 %vm181_vm0, %v174_v8 }
  0x25   : > { %1809 = vmatprep.mubr.msk.f32.mxu0 %vm181_vm0, %v175_v9  ;;  %p2035_p3 = pnand %p2034_p2, %p2028_p13 }
  0x28   : > { %1810 = vmatmul.mubr.msk.f32.gmra.mrb[6].mxu0 %vm181_vm0, %v176_v10 }
  0x29   : > { %1812 = vmatprep.mubr.msk.f32.mxu0 %vm181_vm0, %v177_v11 }
  0x2c   : > { %1813 = vmatmul.mubr.msk.f32.gmra.mrb[8].mxu0 %vm181_vm0, %v178_v12 }
  0x2d   : > { %1819 = vmatprep.mubr.msk.f32.mxu0 %vm181_vm0, %v2191_v14 }
  0xef   : > { %v1802_v15 = vpop.f32.mrb[0].mxu0 }
  0xf0   : > { %v278_v16 = vpop.f32.mrb[1].mxu0 }
  0xf1   : > { %v1959_v17 = vpack.c.bf16 %v1802_v15, %v278_v16 }
  0xf3   : > { %v1805_v18 = vpop.f32.mrb[2].mxu0  ;;  %1960 = vmatprep.subr.bf16.mxu0 %v1959_v17  ;;  %1979 = vmatprep.subr.bf16.mxu1 %v1959_v17 }
  0xf4   : > { %v288_v19 = vpop.f32.mrb[3].mxu0  ;;  %1962 = vmatpush3.bf16.msra.mxu0 %v1959_v17  ;;  %1980 = vmatpush3.bf16.msra.mxu1 %v1959_v17 }
  0xf5   : > { %v1963_v21 = vpack.c.bf16 %v1805_v18, %v288_v19 }
  0xf7   : > { %v1808_v24 = vpop.f32.mrb[4].mxu0  ;;  %1964 = vmatprep.subr.bf16.mxu0 %v1963_v21  ;;  %1820 = vmatmul.mubr.msk.f32.vlgmr.msra.gmra.mrb[10].mxu0 %vm181_vm0, %v2198_v20 }
  0xf8   : > { %v298_v25 = vpop.f32.mrb[5].mxu0  ;;  %1966 = vmatpush3.bf16.msra.mxu0 %v1963_v21  ;;  %1823 = vmatmul.mubr.msk.f32.vlgmr.msra.gmra.mrb[0].mxu1 %vm181_vm0, %v2203_v22 }
  0xf9   : > { %v1967_v26 = vpack.c.bf16 %v1808_v24, %v298_v25  ;;  %1825 = vmatprep.mubr.msk.f32.mxu1 %vm181_vm0, %v2208_v23  ;;  %1847 = vmatprep.mubr.msk.f32.mxu0 %vm181_vm0, %v2191_v14 }
  0xfb   : > { %1968 = vmatprep.subr.bf16.mxu1 %v1967_v26  ;;  %v1811_v29 = vpop.f32.mrb[6].mxu0  ;;  %1848 = vmatmul.mubr.msk.f32.vlgmr.msra.gmra.mrb[12].mxu0 %vm181_vm0, %v2198_v20 }
  0xfc   : > { %1970 = vmatpush3.bf16.msra.mxu1 %v1967_v26  ;;  %v308_v30 = vpop.f32.mrb[7].mxu0  ;;  %1850 = vmatprep.mubr.msk.f32.mxu0 %vm181_vm0, %v2184_v13 }
  0xfd   : > { %1826 = vmatmul.mubr.msk.f32.gmra.mrb[2].mxu1 %vm181_vm0, %v2221_v27  ;;  %v1971_v31 = vpack.c.bf16 %v1811_v29, %v308_v30 }
  0xfe   : > { %1828 = vmatprep.mubr.msk.f32.mxu1 %vm181_vm0, %v2226_v28 }
  0xff   : > { %v1814_v34 = vpop.f32.mrb[8].mxu0  ;;  %1972 = vmatprep.subr.bf16.mxu0 %v1971_v31  ;;  %1851 = vmatmul.mubr.msk.f32.gmra.mrb[14].mxu0 %vm181_vm0, %v2203_v22 }
 0x100   : > { %v318_v35 = vpop.f32.mrb[9].mxu0  ;;  %1974 = vmatpush3.bf16.msra.mxu0 %v1971_v31  ;;  %1853 = vmatprep.mubr.msk.f32.mxu0 %vm181_vm0, %v2208_v23 }
 0x101   : > { %1829 = vmatmul.mubr.msk.f32.gmra.mrb[4].mxu1 %vm181_vm0, %v2239_v32  ;;  %v1975_v36 = vpack.c.bf16 %v1814_v34, %v318_v35 }
 0x102   : > { %1831 = vmatprep.mubr.msk.f32.mxu1 %vm181_vm0, %v2244_v33 }
 0x103   : > { %1976 = vmatprep.subr.bf16.mxu1 %v1975_v36  ;;  %1854 = vmatmul.mubr.msk.f32.gmra.mrb[16].mxu0 %vm181_vm0, %v2221_v27 }
 0x104   : > { %1856 = vmatprep.mubr.msk.f32.mxu0 %vm181_vm0, %v2226_v28 }
 0x105   : > { %1832 = vmatmul.mubr.msk.f32.gmra.mrb[6].mxu1 %vm181_vm0, %v2257_v37 }
 0x106   : > { %1834 = vmatprep.mubr.msk.f32.mxu1 %vm181_vm0, %v2262_v38 }
 0x107   : > { %1857 = vmatmul.mubr.msk.f32.gmra.mrb[18].mxu0 %vm181_vm0, %v2239_v32 }
 0x108   : > { %1859 = vmatprep.mubr.msk.f32.mxu0 %vm181_vm0, %v2244_v33 }
 0x109   : > { %1835 = vmatmul.mubr.msk.f32.gmra.mrb[8].mxu1 %vm181_vm0, %v2275_v39 }
 0x10a   : > { %1837 = vmatprep.mubr.msk.f32.mxu1 %vm181_vm0, %v2280_v40 }
 0x10b   : > { %1860 = vmatmul.mubr.msk.f32.gmra.mrb[20].mxu0 %vm181_vm0, %v2257_v37 }
 0x10c   : > { %1862 = vmatprep.mubr.msk.f32.mxu0 %vm181_vm0, %v2262_v38 }
 0x10d   : > { %1838 = vmatmul.mubr.msk.f32.gmra.mrb[10].mxu1 %vm181_vm0, %v340_v41 }
 0x10e   : > { %1840 = vmatprep.mubr.msk.f32.mxu1 %vm181_vm0, %v341_v42 }
 0x10f   : > { %1863 = vmatmul.mubr.msk.f32.gmra.mrb[22].mxu0 %vm181_vm0, %v2275_v39 }
 0x110   : > { %1865 = vmatprep.mubr.msk.f32.mxu0 %vm181_vm0, %v2280_v40 }
 0x111   : > { %1841 = vmatmul.mubr.msk.f32.gmra.mrb[12].mxu1 %vm181_vm0, %v342_v43 }
 0x112   : > { %1875 = vmatprep.mubr.msk.f32.mxu1 %vm181_vm0, %v2191_v14 }
 0x113   : > { %1866 = vmatmul.mubr.msk.f32.gmra.mrb[24].mxu0 %vm181_vm0, %v340_v41 }
 0x114   : > { %1868 = vmatprep.mubr.msk.f32.mxu0 %vm181_vm0, %v341_v42 }
 0x115   : > { %1876 = vmatmul.mubr.msk.f32.vlgmr.msra.gmra.mrb[14].mxu1 %vm181_vm0, %v2198_v20 }
 0x116   : > { %1978 = vmatpush3.bf16.msra.mxu1 %v1975_v36  ;;  %1878 = vmatprep.mubr.msk.f32.mxu1 %vm181_vm0, %v2184_v13 }
 0x117   : > { %1869 = vmatmul.mubr.msk.f32.gmra.mrb[26].mxu0 %vm181_vm0, %v342_v43 }
 0x118   : > { %1903 = vmatprep.mubr.msk.f32.mxu0 %vm181_vm0, %v2191_v14 }
 0x119   : > { %1879 = vmatmul.mubr.msk.f32.gmra.mrb[16].mxu1 %vm181_vm0, %v2203_v22 }
 0x11a   : > { %1881 = vmatprep.mubr.msk.f32.mxu1 %vm181_vm0, %v2208_v23 }
 0x11b   : > { %1904 = vmatmul.mubr.msk.f32.vlgmr.msra.gmra.mrb[28].mxu0 %vm181_vm0, %v2198_v20 }
 0x11c   : > { %1906 = vmatprep.mubr.msk.f32.mxu0 %vm181_vm0, %v2184_v13 }
 0x11d   : > { %1882 = vmatmul.mubr.msk.f32.gmra.mrb[18].mxu1 %vm181_vm0, %v2221_v27 }
 0x11e   : > { %1884 = vmatprep.mubr.msk.f32.mxu1 %vm181_vm0, %v2226_v28 }
 0x11f   : > { %1907 = vmatmul.mubr.msk.f32.gmra.mrb[30].mxu0 %vm181_vm0, %v2203_v22 }
 0x120   : > { %1909 = vmatprep.mubr.msk.f32.mxu0 %vm181_vm0, %v2208_v23 }
 0x121   : > { %1885 = vmatmul.mubr.msk.f32.gmra.mrb[20].mxu1 %vm181_vm0, %v2239_v32 }
 0x122   : > { %1887 = vmatprep.mubr.msk.f32.mxu1 %vm181_vm0, %v2244_v33 }
 0x123   : > { %1910 = vmatmul.mubr.msk.f32.gmra.mrb[32].mxu0 %vm181_vm0, %v2221_v27 }
 0x124   : > { %1912 = vmatprep.mubr.msk.f32.mxu0 %vm181_vm0, %v2226_v28 }
 0x125   : > { %1888 = vmatmul.mubr.msk.f32.gmra.mrb[22].mxu1 %vm181_vm0, %v2257_v37 }
 0x126   : > { %1890 = vmatprep.mubr.msk.f32.mxu1 %vm181_vm0, %v2262_v38 }
 0x127   : > { %1913 = vmatmul.mubr.msk.f32.gmra.mrb[34].mxu0 %vm181_vm0, %v2239_v32 }
 0x128   : > { %1915 = vmatprep.mubr.msk.f32.mxu0 %vm181_vm0, %v2244_v33 }
 0x129   : > { %1891 = vmatmul.mubr.msk.f32.gmra.mrb[24].mxu1 %vm181_vm0, %v2275_v39 }
 0x12a   : > { %1893 = vmatprep.mubr.msk.f32.mxu1 %vm181_vm0, %v2280_v40 }
 0x12b   : > { %1916 = vmatmul.mubr.msk.f32.gmra.mrb[36].mxu0 %vm181_vm0, %v2257_v37 }
 0x12c   : > { %1918 = vmatprep.mubr.msk.f32.mxu0 %vm181_vm0, %v2262_v38 }
 0x12d   : > { %1894 = vmatmul.mubr.msk.f32.gmra.mrb[26].mxu1 %vm181_vm0, %v340_v41 }
 0x12e   : > { %1896 = vmatprep.mubr.msk.f32.mxu1 %vm181_vm0, %v341_v42 }
 0x12f   : > { %1919 = vmatmul.mubr.msk.f32.gmra.mrb[38].mxu0 %vm181_vm0, %v2275_v39 }
 0x130   : > { %1921 = vmatprep.mubr.msk.f32.mxu0 %vm181_vm0, %v2280_v40 }
 0x131   : > { %1897 = vmatmul.mubr.msk.f32.gmra.mrb[28].mxu1 %vm181_vm0, %v342_v43 }
 0x132   : > { %1931 = vmatprep.mubr.msk.f32.mxu1 %vm181_vm0, %v2191_v14 }
 0x133   : > { %1922 = vmatmul.mubr.msk.f32.gmra.mrb[40].mxu0 %vm181_vm0, %v340_v41 }
 0x134   : > { %1924 = vmatprep.mubr.msk.f32.mxu0 %vm181_vm0, %v341_v42 }
 0x135   : > { %1932 = vmatmul.mubr.msk.f32.vlgmr.msra.gmra.mrb[30].mxu1 %vm181_vm0, %v2198_v20 }
 0x136   : > { %1934 = vmatprep.mubr.msk.f32.mxu1 %vm181_vm0, %v2184_v13 }
 0x137   : > { %1925 = vmatmul.mubr.msk.f32.gmra.mrb[42].mxu0 %vm181_vm0, %v342_v43 }
 0x139   : > { %1935 = vmatmul.mubr.msk.f32.gmra.mrb[32].mxu1 %vm181_vm0, %v2203_v22 }
 0x13a   : > { %1937 = vmatprep.mubr.msk.f32.mxu1 %vm181_vm0, %v2208_v23 }
 0x13d   : > { %1938 = vmatmul.mubr.msk.f32.gmra.mrb[34].mxu1 %vm181_vm0, %v2221_v27 }
 0x13e   : > { %1940 = vmatprep.mubr.msk.f32.mxu1 %vm181_vm0, %v2226_v28 }
 0x141   : > { %1941 = vmatmul.mubr.msk.f32.gmra.mrb[36].mxu1 %vm181_vm0, %v2239_v32 }
 0x142   : > { %1943 = vmatprep.mubr.msk.f32.mxu1 %vm181_vm0, %v2244_v33 }
 0x145   : > { %1944 = vmatmul.mubr.msk.f32.gmra.mrb[38].mxu1 %vm181_vm0, %v2257_v37 }
 0x146   : > { %1946 = vmatprep.mubr.msk.f32.mxu1 %vm181_vm0, %v2262_v38 }
 0x149   : > { %1947 = vmatmul.mubr.msk.f32.gmra.mrb[40].mxu1 %vm181_vm0, %v2275_v39 }
 0x14a   : > { %1949 = vmatprep.mubr.msk.f32.mxu1 %vm181_vm0, %v2280_v40 }
 0x14d   : > { %1950 = vmatmul.mubr.msk.f32.gmra.mrb[42].mxu1 %vm181_vm0, %v340_v41 }
 0x14e   : > { %1952 = vmatprep.mubr.msk.f32.mxu1 %vm181_vm0, %v341_v42 }
 0x151   : > { %1953 = vmatmul.mubr.msk.f32.gmra.mrb[44].mxu1 %vm181_vm0, %v342_v43 }
 0x1ca   : > { %v1821_v44 = vpop.f32.mrb[10].mxu0 }
 0x1cb   : > { %v1824_v45 = vpop.f32.mrb[0].mxu1  ;;  %537 = vst [vmem:[%s2403_s4 + $0x8] sm:$0xff] %v1821_v44  ;;  %v457_v46 = vpop.f32.mrb[11].mxu0 }
 0x1cc   : > { %539 = vst [vmem:[%s2403_s4 + $0x18] sm:$0xff] %v1824_v45  ;;  %v467_v47 = vpop.f32.mrb[1].mxu1  ;;  %536 = vst [vmem:[%s2403_s4] sm:$0xff] %v457_v46 }
 0x1cd   : > { %538 = vst [vmem:[%s2403_s4 + $0x10] sm:$0xff] %v467_v47 }
 0x1ce   : > { %v1849_v48 = vpop.f32.mrb[12].mxu0 }
 0x1cf   : > { %1580 = vst [vmem:[%s2403_s4 + $0x88] sm:$0xff] %v1849_v48  ;;  %v682_v49 = vpop.f32.mrb[13].mxu0 }
 0x1d0   : > { %v1827_v50 = vpop.f32.mrb[2].mxu1  ;;  %1579 = vst [vmem:[%s2403_s4 + $0x80] sm:$0xff] %v682_v49 }
 0x1d1   : > { %541 = vst [vmem:[%s2403_s4 + $0x28] sm:$0xff] %v1827_v50  ;;  %v477_v51 = vpop.f32.mrb[3].mxu1 }
 0x1d2   : > { %540 = vst [vmem:[%s2403_s4 + $0x20] sm:$0xff] %v477_v51  ;;  %v1852_v52 = vpop.f32.mrb[14].mxu0 }
 0x1d3   : > { %1582 = vst [vmem:[%s2403_s4 + $0x98] sm:$0xff] %v1852_v52  ;;  %v692_v53 = vpop.f32.mrb[15].mxu0 }
 0x1d4   : > { %v1830_v54 = vpop.f32.mrb[4].mxu1  ;;  %1581 = vst [vmem:[%s2403_s4 + $0x90] sm:$0xff] %v692_v53 }
 0x1d5   : > { %543 = vst [vmem:[%s2403_s4 + $0x38] sm:$0xff] %v1830_v54  ;;  %v487_v55 = vpop.f32.mrb[5].mxu1 }
 0x1d6   : > { %542 = vst [vmem:[%s2403_s4 + $0x30] sm:$0xff] %v487_v55  ;;  %v1855_v56 = vpop.f32.mrb[16].mxu0 }
 0x1d7   : > { %1584 = vst [vmem:[%s2403_s4 + $0xa8] sm:$0xff] %v1855_v56  ;;  %v702_v57 = vpop.f32.mrb[17].mxu0 }
 0x1d8   : > { %v1833_v58 = vpop.f32.mrb[6].mxu1  ;;  %1583 = vst [vmem:[%s2403_s4 + $0xa0] sm:$0xff] %v702_v57 }
 0x1d9   : > { %545 = vst [vmem:[%s2403_s4 + $0x48] sm:$0xff] %v1833_v58  ;;  %v497_v59 = vpop.f32.mrb[7].mxu1 }
 0x1da   : > { %544 = vst [vmem:[%s2403_s4 + $0x40] sm:$0xff] %v497_v59  ;;  %v1858_v60 = vpop.f32.mrb[18].mxu0 }
 0x1db   : > { %1586 = vst [vmem:[%s2403_s4 + $0xb8] sm:$0xff] %v1858_v60  ;;  %v712_v61 = vpop.f32.mrb[19].mxu0 }
 0x1dc   : > { %v1836_v62 = vpop.f32.mrb[8].mxu1  ;;  %1585 = vst [vmem:[%s2403_s4 + $0xb0] sm:$0xff] %v712_v61 }
 0x1dd   : > { %547 = vst [vmem:[%s2403_s4 + $0x58] sm:$0xff] %v1836_v62  ;;  %v507_v63 = vpop.f32.mrb[9].mxu1 }
 0x1de   : > { %546 = vst [vmem:[%s2403_s4 + $0x50] sm:$0xff] %v507_v63  ;;  %v1861_v0 = vpop.f32.mrb[20].mxu0 }
 0x1df   : > { %1588 = vst [vmem:[%s2403_s4 + $0xc8] sm:$0xff] %v1861_v0  ;;  %v722_v1 = vpop.f32.mrb[21].mxu0 }
 0x1e0   : > { %v1839_v2 = vpop.f32.mrb[10].mxu1  ;;  %1587 = vst [vmem:[%s2403_s4 + $0xc0] sm:$0xff] %v722_v1 }
 0x1e1   : > { %549 = vst [vmem:[%s2403_s4 + $0x68] sm:$0xff] %v1839_v2  ;;  %v517_v3 = vpop.f32.mrb[11].mxu1 }
 0x1e2   : > { %548 = vst [vmem:[%s2403_s4 + $0x60] sm:$0xff] %v517_v3  ;;  %v1864_v4 = vpop.f32.mrb[22].mxu0 }
 0x1e3   : > { %1590 = vst [vmem:[%s2403_s4 + $0xd8] sm:$0xff] %v1864_v4  ;;  %v732_v5 = vpop.f32.mrb[23].mxu0 }
 0x1e4   : > { %v1842_v6 = vpop.f32.mrb[12].mxu1  ;;  %1589 = vst [vmem:[%s2403_s4 + $0xd0] sm:$0xff] %v732_v5 }
 0x1e5   : > { %551 = vst [vmem:[%s2403_s4 + $0x78] sm:$0xff] %v1842_v6  ;;  %v527_v7 = vpop.f32.mrb[13].mxu1 }
 0x1e6   : > { %550 = vst [vmem:[%s2403_s4 + $0x70] sm:$0xff] %v527_v7  ;;  %v1867_v8 = vpop.f32.mrb[24].mxu0 }
 0x1e7   : > { %1592 = vst [vmem:[%s2403_s4 + $0xe8] sm:$0xff] %v1867_v8  ;;  %v742_v9 = vpop.f32.mrb[25].mxu0 }
 0x1e8   : > { %v1877_v10 = vpop.f32.mrb[14].mxu1  ;;  %1591 = vst [vmem:[%s2403_s4 + $0xe0] sm:$0xff] %v742_v9 }
 0x1e9   : > { %1612 = vst [vmem:[%s2403_s4 + $0x108] sm:$0xff] %v1877_v10  ;;  %v908_v11 = vpop.f32.mrb[15].mxu1 }
 0x1ea   : > { %1611 = vst [vmem:[%s2403_s4 + $0x100] sm:$0xff] %v908_v11  ;;  %v1870_v12 = vpop.f32.mrb[26].mxu0 }
 0x1eb   : > { %1594 = vst [vmem:[%s2403_s4 + $0xf8] sm:$0xff] %v1870_v12  ;;  %v752_v13 = vpop.f32.mrb[27].mxu0 }
 0x1ec   : > { %v1880_v14 = vpop.f32.mrb[16].mxu1  ;;  %1593 = vst [vmem:[%s2403_s4 + $0xf0] sm:$0xff] %v752_v13 }
 0x1ed   : > { %1614 = vst [vmem:[%s2403_s4 + $0x118] sm:$0xff] %v1880_v14  ;;  %v918_v15 = vpop.f32.mrb[17].mxu1 }
 0x1ee   : > { %1613 = vst [vmem:[%s2403_s4 + $0x110] sm:$0xff] %v918_v15  ;;  %v1905_v16 = vpop.f32.mrb[28].mxu0 }
 0x1ef   : > { %1644 = vst [vmem:[%s2403_s4 + $0x188] sm:$0xff] %v1905_v16  ;;  %v1134_v17 = vpop.f32.mrb[29].mxu0 }
 0x1f0   : > { %v1883_v18 = vpop.f32.mrb[18].mxu1  ;;  %1643 = vst [vmem:[%s2403_s4 + $0x180] sm:$0xff] %v1134_v17 }
 0x1f1   : > { %1616 = vst [vmem:[%s2403_s4 + $0x128] sm:$0xff] %v1883_v18  ;;  %v928_v19 = vpop.f32.mrb[19].mxu1 }
 0x1f2   : > { %1615 = vst [vmem:[%s2403_s4 + $0x120] sm:$0xff] %v928_v19  ;;  %v1908_v20 = vpop.f32.mrb[30].mxu0 }
 0x1f3   : > { %1646 = vst [vmem:[%s2403_s4 + $0x198] sm:$0xff] %v1908_v20  ;;  %v1144_v21 = vpop.f32.mrb[31].mxu0 }
 0x1f4   : > { %v1886_v22 = vpop.f32.mrb[20].mxu1  ;;  %1645 = vst [vmem:[%s2403_s4 + $0x190] sm:$0xff] %v1144_v21 }
 0x1f5   : > { %1618 = vst [vmem:[%s2403_s4 + $0x138] sm:$0xff] %v1886_v22  ;;  %v938_v23 = vpop.f32.mrb[21].mxu1 }
 0x1f6   : > { %1617 = vst [vmem:[%s2403_s4 + $0x130] sm:$0xff] %v938_v23  ;;  %v1911_v24 = vpop.f32.mrb[32].mxu0 }
 0x1f7   : > { %1648 = vst [vmem:[%s2403_s4 + $0x1a8] sm:$0xff] %v1911_v24  ;;  %v1154_v25 = vpop.f32.mrb[33].mxu0 }
 0x1f8   : > { %v1889_v26 = vpop.f32.mrb[22].mxu1  ;;  %1647 = vst [vmem:[%s2403_s4 + $0x1a0] sm:$0xff] %v1154_v25 }
 0x1f9   : > { %1620 = vst [vmem:[%s2403_s4 + $0x148] sm:$0xff] %v1889_v26  ;;  %v948_v27 = vpop.f32.mrb[23].mxu1 }
 0x1fa   : > { %1619 = vst [vmem:[%s2403_s4 + $0x140] sm:$0xff] %v948_v27  ;;  %v1914_v28 = vpop.f32.mrb[34].mxu0 }
 0x1fb   : > { %1650 = vst [vmem:[%s2403_s4 + $0x1b8] sm:$0xff] %v1914_v28  ;;  %v1164_v29 = vpop.f32.mrb[35].mxu0 }
 0x1fc   : > { %v1892_v30 = vpop.f32.mrb[24].mxu1  ;;  %1649 = vst [vmem:[%s2403_s4 + $0x1b0] sm:$0xff] %v1164_v29 }
 0x1fd   : > { %1622 = vst [vmem:[%s2403_s4 + $0x158] sm:$0xff] %v1892_v30  ;;  %v958_v31 = vpop.f32.mrb[25].mxu1 }
 0x1fe   : > { %1621 = vst [vmem:[%s2403_s4 + $0x150] sm:$0xff] %v958_v31  ;;  %v1917_v32 = vpop.f32.mrb[36].mxu0 }
 0x1ff   : > { %1652 = vst [vmem:[%s2403_s4 + $0x1c8] sm:$0xff] %v1917_v32  ;;  %v1174_v33 = vpop.f32.mrb[37].mxu0 }
 0x200   : > { %v1895_v34 = vpop.f32.mrb[26].mxu1  ;;  %1651 = vst [vmem:[%s2403_s4 + $0x1c0] sm:$0xff] %v1174_v33 }
 0x201   : > { %1624 = vst [vmem:[%s2403_s4 + $0x168] sm:$0xff] %v1895_v34  ;;  %v968_v35 = vpop.f32.mrb[27].mxu1 }
 0x202   : > { %1623 = vst [vmem:[%s2403_s4 + $0x160] sm:$0xff] %v968_v35  ;;  %v1920_v36 = vpop.f32.mrb[38].mxu0 }
 0x203   : > { %1654 = vst [vmem:[%s2403_s4 + $0x1d8] sm:$0xff] %v1920_v36  ;;  %v1184_v37 = vpop.f32.mrb[39].mxu0 }
 0x204   : > { %v1898_v38 = vpop.f32.mrb[28].mxu1  ;;  %1653 = vst [vmem:[%s2403_s4 + $0x1d0] sm:$0xff] %v1184_v37 }
 0x205   : > { %1626 = vst [vmem:[%s2403_s4 + $0x178] sm:$0xff] %v1898_v38  ;;  %v978_v39 = vpop.f32.mrb[29].mxu1 }
 0x206   : > { %1625 = vst [vmem:[%s2403_s4 + $0x170] sm:$0xff] %v978_v39  ;;  %v1923_v40 = vpop.f32.mrb[40].mxu0 }
 0x207   : > { %1656 = vst [vmem:[%s2403_s4 + $0x1e8] sm:$0xff] %v1923_v40  ;;  %v1194_v41 = vpop.f32.mrb[41].mxu0 }
 0x208   : > { %v1933_v42 = vpop.f32.mrb[30].mxu1  ;;  %1655 = vst [vmem:[%s2403_s4 + $0x1e0] sm:$0xff] %v1194_v41 }
 0x209   : > { %1676 = vst [vmem:[%s2403_s4 + $0x208] sm:$0xff] %v1933_v42  ;;  %v1360_v43 = vpop.f32.mrb[31].mxu1 }
 0x20a   : > { %1675 = vst [vmem:[%s2403_s4 + $0x200] sm:$0xff] %v1360_v43  ;;  %v1926_v44 = vpop.f32.mrb[42].mxu0 }
 0x20b   : > { %1658 = vst [vmem:[%s2403_s4 + $0x1f8] sm:$0xff] %v1926_v44  ;;  %v1204_v45 = vpop.f32.mrb[43].mxu0 }
 0x20c   : > { %v1936_v46 = vpop.f32.mrb[32].mxu1  ;;  %1657 = vst [vmem:[%s2403_s4 + $0x1f0] sm:$0xff] %v1204_v45 }
 0x20d   : > { %1678 = vst [vmem:[%s2403_s4 + $0x218] sm:$0xff] %v1936_v46  ;;  %v1370_v47 = vpop.f32.mrb[33].mxu1 }
 0x20e   : > { %1677 = vst [vmem:[%s2403_s4 + $0x210] sm:$0xff] %v1370_v47 }
 0x210   : > { %v1939_v48 = vpop.f32.mrb[34].mxu1 }
 0x211   : > { %1680 = vst [vmem:[%s2403_s4 + $0x228] sm:$0xff] %v1939_v48  ;;  %v1380_v49 = vpop.f32.mrb[35].mxu1 }
 0x212   : > { %1679 = vst [vmem:[%s2403_s4 + $0x220] sm:$0xff] %v1380_v49 }
 0x214   : > { %v1942_v50 = vpop.f32.mrb[36].mxu1 }
 0x215   : > { %1682 = vst [vmem:[%s2403_s4 + $0x238] sm:$0xff] %v1942_v50  ;;  %v1390_v51 = vpop.f32.mrb[37].mxu1 }
 0x216   : > { %1681 = vst [vmem:[%s2403_s4 + $0x230] sm:$0xff] %v1390_v51 }
 0x218   : > { %v1945_v52 = vpop.f32.mrb[38].mxu1 }
 0x219   : > { %1684 = vst [vmem:[%s2403_s4 + $0x248] sm:$0xff] %v1945_v52  ;;  %v1400_v53 = vpop.f32.mrb[39].mxu1 }
 0x21a   : > { %1683 = vst [vmem:[%s2403_s4 + $0x240] sm:$0xff] %v1400_v53 }
 0x21c   : > { %v1948_v54 = vpop.f32.mrb[40].mxu1 }
 0x21d   : > { %1686 = vst [vmem:[%s2403_s4 + $0x258] sm:$0xff] %v1948_v54  ;;  %v1410_v55 = vpop.f32.mrb[41].mxu1 }
 0x21e   : > { %1685 = vst [vmem:[%s2403_s4 + $0x250] sm:$0xff] %v1410_v55 }
 0x220   : > { %v1951_v56 = vpop.f32.mrb[42].mxu1 }
 0x221   : > { %1688 = vst [vmem:[%s2403_s4 + $0x268] sm:$0xff] %v1951_v56  ;;  %v1420_v57 = vpop.f32.mrb[43].mxu1 }
 0x222   : > { %1687 = vst [vmem:[%s2403_s4 + $0x260] sm:$0xff] %v1420_v57 }
 0x224   : > { %v1954_v58 = vpop.f32.mrb[44].mxu1 }
 0x225   : > { %1690 = vst [vmem:[%s2403_s4 + $0x278] sm:$0xff] %v1954_v58  ;;  %v1430_v59 = vpop.f32.mrb[45].mxu1 }
 0x226   : > { %1689 = vst [vmem:[%s2403_s4 + $0x270] sm:$0xff] %v1430_v59 }
 0x227   : > { %2038 = shalt.err (!%p2035_p3)
}
 0x228   : > { %s2039_s20 = scalar_lea.hbm %s2488_s9, 10240  ;;  %s2043_s26 = scalar_lea.hbm %s2540_s3, 20480 }
 0x229   : > { %p2040_p4 = scmp.ne.s32.totalorder %s2488_s9, %s2039_s20  ;;  %p2044_p9 = scmp.lt.u32.totalorder %s2488_s9, %s2540_s3 }
 0x22a   : > { %p2045_p10 = scmp.lt.u32.totalorder %s2043_s26, %s2039_s20  ;;  %p2047_p12 = scmp.lt.u32.totalorder %s2039_s20, %s2488_s9 }
 0x22b   : > { %p2041_p7 = pnand %p2040_p4, %p2150_p5 }
 0x22c   : > { %p2046_p11 = por %p2045_p10, %p2044_p9 }
 0x22d   : > { %p2042_p8 = pneg %p2041_p7 }
 0x22e   : > { %p2048_p13 = por %p2047_p12, %p2046_p11 }
 0x230   : > { %p2049_p0 = pnand %p2048_p13, %p2042_p8 }
 0x232   : > { %2052 = shalt.err (!%p2049_p0)
}
 0x233   : > { %s2090_s29 = smov 128   ;;  %s2091_s30 = smov 8  }
 0x234   : > { %1984 = dma.vmem_to_hbm [thread:$0]  (%p2150_p5), %s2490_s6, 10240, %s2488_s9, %s2496_s16, %s2090_s29, %s2090_s29, %s2091_s30  }
 0x235 PF: > { %p1990_p1 = scmp.ge.s32.totalorder %s2087_s15, 2  ;;  %s1485_s4 = sand.u32 1, %s2075_s12  }
 0x236   : > { %s1486_s5 = scalar_lea.sflag [#allocation3], %s1485_s4 }
 0x237   : > { %p1987_p2 = pnand %p1990_p1, %p2154_p6 }
 0x239   : > { %2070 = dma.done.wait (!%p1987_p2), %s1486_s5, 10240  }
 0x23a   : > { %2072 = vsyncadd (!%p1987_p2), %s1486_s5, 4294957056  ;;  %p13_p3 = scmp.ge.s32.totalorder %s2137_s18, 4   ;;  %s2543_s12 = smov %s2079_s13 }
 0x23b   : > { %s2544_s13 = smov %s2083_s14  ;;  %s2545_s14 = smov %s2148_s21 }
 0x23c   : > { %s2546_s15 = smov %s2137_s18  ;;  %15 = sbr.rel (!%p13_p3) target bundleno = 3 (0x3), region = 71 }
 0x243   :  { %1491 = vsyncpa [#allocation3], 1 }
 0x244   :  { %1493 = vsyncpa [#allocation3 + $0x1], 1 }

</bundles_post_ra>
